<compile_context>
chip_gen: v7x
topology: tpu7x:2x2x1
jax: 0.10.0
libtpu: 0.0.40
codegen_flags: <defaults>
</compile_context>

<pallas_src>
import jax
import jax.numpy as jnp
from jax.experimental import pallas as pl
from jax.experimental.pallas import tpu as pltpu

POOL = 7  # AvgPool3d kernel_size=[1, 7, 7], stride=(1, 1, 1)


def _i3d_kernel(x_ref, w_ref, b_ref, o_ref):
    # x_ref: (TB, H, W, C) channels-last frame block
    # w_ref: (C, F) pointwise-conv weight, b_ref: (1, F) bias
    # o_ref: (TB, OH, OW, F) pooled features
    tb, h, w, c = x_ref.shape
    f = w_ref.shape[1]
    oh = h - POOL + 1
    ow = w - POOL + 1

    x = x_ref[...]          # (TB, H, W, C)
    wm = w_ref[...]         # (C, F)

    # --- feature extraction hot path --------------------------------------
    # TODO(synk): InceptionI3dBackbone is not defined in the provided module;
    # extract_features is replaced by this deterministic 1x1x1 conv + ReLU.
    # Cin is tiny (=3): keep the contraction on the VPU as broadcast FMAs
    # instead of a K=3 MXU matmul (which would use 3/256 of the array and
    # still pay full push/pop).  For real I3D channel counts (Cin~F~1024),
    # switch back to jnp.dot with bf16 inputs, F tiled in multiples of 256
    # (v6e/v7x) or 128 (v5e), preferred_element_type=jnp.float32.
    feat = x[..., 0:1] * wm[0] + b_ref[0]          # (TB, H, W, F)
    for cc in range(1, c):
        feat = feat + x[..., cc:cc + 1] * wm[cc]
    feat = jnp.maximum(feat, 0.0)

    # --- AvgPool3d(kernel_size=[1, 7, 7], stride=(1, 1, 1)), separable -----
    # Pass 1: 6 adds along W (sublane axis), init from the first slice.
    row = feat[:, :, 0:ow, :]
    for dw in range(1, POOL):
        row = row + feat[:, :, dw:dw + ow, :]      # (TB, H, OW, F)
    # Pass 2: 6 adds along H (above sublane granularity -> cheap offsets).
    acc = row[:, 0:oh, :, :]
    for dh in range(1, POOL):
        acc = acc + row[:, dh:dh + oh, :, :]       # (TB, OH, OW, F)

    o_ref[...] = acc * (1.0 / float(POOL * POOL))


def _choose_frames_per_block(n, h, w, c, f, oh, ow, budget_bytes=16 << 20):
    """Largest divisor of n whose live f32 working set fits the budget and,
    when possible, still leaves a grid of >= 2 steps (v7x megacore)."""
    per_frame = 4 * (h * w * c          # input block
                     + h * w * f        # feat
                     + h * ow * f       # row-summed intermediate
                     + 2 * oh * ow * f)  # acc + output block
    best = 1
    for tb in range(1, n + 1):
        if n % tb:
            continue
        if tb * per_frame > budget_bytes:
            break
        if n // tb >= 2 or n == 1:
            best = tb
    return best


def i3d_backbone_forward(inputs, w, b):
    """inputs: (B, T, C, H, W) float32 (same convention as the PyTorch module).

    Returns (B, F, T, H-6, W-6) float32, matching the PyTorch output layout
    (NCTHW) of `avg_pool(extract_features(inputs.permute(0,2,1,3,4)))`.
    """
    B, T, C, H, W = inputs.shape
    assert H >= POOL and W >= POOL, "spatial dims must be >= 7 for the 7x7 pool"
    F = w.shape[1]
    OH, OW = H - POOL + 1, W - POOL + 1
    N = B * T

    TB = _choose_frames_per_block(N, H, W, C, F, OH, OW)

    # The module does inputs.permute(0, 2, 1, 3, 4) -> (B, C, T, H, W); for
    # the TPU kernel we go straight to channels-last frames (B*T, H, W, C).
    x = jnp.transpose(inputs, (0, 1, 3, 4, 2)).reshape(N, H, W, C)

    # Note: w/b have constant index_maps; with the real 1024x1024 I3D weight,
    # add pipeline_mode=pl.Buffered(1) to avoid double-buffering a 2-4 MiB
    # constant block (matters most on v7x's 64 MiB VMEM).
    out = pl.pallas_call(
        _i3d_kernel,
        out_shape=jax.ShapeDtypeStruct((N, OH, OW, F), jnp.float32),
        grid_spec=pl.GridSpec(
            grid=(N // TB,),
            in_specs=[
                pl.BlockSpec((TB, H, W, C), lambda i: (i, 0, 0, 0)),
                pl.BlockSpec((C, F), lambda i: (0, 0)),
                pl.BlockSpec((1, F), lambda i: (0, 0)),
            ],
            out_specs=pl.BlockSpec((TB, OH, OW, F), lambda i: (i, 0, 0, 0)),
        ),
        compiler_params=pltpu.CompilerParams(
            dimension_semantics=("parallel",)),
    )(x, w, b)

    # back to PyTorch NCTHW: (B, F, T, OH, OW).  If the downstream consumer
    # can take channels-last (B, T, OH, OW, F), drop this transpose to save
    # an HBM relayout.
    out = out.reshape(B, T, OH, OW, F)
    return jnp.transpose(out, (0, 4, 1, 2, 3))


if __name__ == "__main__":
    key = jax.random.PRNGKey(0)
    k_in, k_w, k_b = jax.random.split(key, 3)

    # small shapes consistent with the module's video input (B, T, C, H, W)
    B, T, C, H, W = 2, 4, 3, 16, 16
    F = 128  # lane-dense stand-in for the 1024-channel I3D feature map

    inputs = jax.random.normal(k_in, (B, T, C, H, W), dtype=jnp.float32)
    w = jax.random.normal(k_w, (C, F), dtype=jnp.float32) * 0.1
    b = jax.random.normal(k_b, (1, F), dtype=jnp.float32) * 0.1

    out = jax.block_until_ready(i3d_backbone_forward(inputs, w, b))

    # plain-JAX reference check
    OH, OW = H - POOL + 1, W - POOL + 1
    xr = jnp.transpose(inputs, (0, 1, 3, 4, 2))            # (B, T, H, W, C)
    fr = jnp.maximum(xr @ w + b[0], 0.0)                   # (B, T, H, W, F)
    ref = jnp.zeros((B, T, OH, OW, F), jnp.float32)
    for dh in range(POOL):
        for dw in range(POOL):
            ref = ref + fr[:, :, dh:dh + OH, dw:dw + OW, :]
    ref = jnp.transpose(ref / (POOL * POOL), (0, 4, 1, 2, 3))

    assert out.shape == (B, F, T, OH, OW), out.shape
    assert jnp.allclose(out, ref, atol=1e-4, rtol=1e-4)
    print("KERNEL_OK")
</pallas_src>

<mosaic_0001>
module attributes {stable_mosaic.version = 11 : i64} {
  func.func @_i3d_kernel(%arg0: i32, %arg1: memref<4x16x16x3xf32, #tpu.memory_space<vmem>>, %arg2: memref<3x128xf32, #tpu.memory_space<vmem>>, %arg3: memref<1x128xf32, #tpu.memory_space<vmem>>, %arg4: memref<4x10x10x128xf32, #tpu.memory_space<vmem>>) attributes {dimension_semantics = [#tpu.dimension_semantics<parallel>], iteration_bounds = array<i64: 2>, scalar_prefetch = 0 : i64, scratch_operands = 0 : i64, tpu.core_type = #tpu.core_type<tc>, window_params = [{transform_indices = @transform_0, window_bounds = array<i64: 4, 16, 16, 3>}, {pipeline_mode = #tpu.pipeline_mode<synchronous>, transform_indices = @transform_1, window_bounds = array<i64: 3, 128>}, {pipeline_mode = #tpu.pipeline_mode<synchronous>, transform_indices = @transform_2, window_bounds = array<i64: 1, 128>}, {transform_indices = @transform_3, window_bounds = array<i64: 4, 10, 10, 128>}]} {
    %c0 = arith.constant 0 : index
    %c0_0 = arith.constant 0 : index
    %c0_1 = arith.constant 0 : index
    %c0_2 = arith.constant 0 : index
    %0 = vector.load %arg1[%c0, %c0_0, %c0_1, %c0_2] : memref<4x16x16x3xf32, #tpu.memory_space<vmem>>, vector<4x16x16x3xf32>
    %c0_3 = arith.constant 0 : index
    %c0_4 = arith.constant 0 : index
    %1 = vector.load %arg2[%c0_3, %c0_4] : memref<3x128xf32, #tpu.memory_space<vmem>>, vector<3x128xf32>
    %2 = vector.extract_strided_slice %0 {offsets = [0, 0, 0, 0], sizes = [4, 16, 16, 1], strides = [1, 1, 1, 1]} : vector<4x16x16x3xf32> to vector<4x16x16x1xf32>
    %3 = vector.extract_strided_slice %1 {offsets = [0, 0], sizes = [1, 128], strides = [1, 1]} : vector<3x128xf32> to vector<1x128xf32>
    %4 = vector.shape_cast %3 : vector<1x128xf32> to vector<128xf32>
    %5 = vector.shape_cast %4 : vector<128xf32> to vector<1x1x1x128xf32>
    %6 = vector.broadcast %2 : vector<4x16x16x1xf32> to vector<4x16x16x128xf32>
    %7 = vector.broadcast %5 : vector<1x1x1x128xf32> to vector<4x16x16x128xf32>
    %8 = arith.mulf %6, %7 : vector<4x16x16x128xf32>
    %c0_5 = arith.constant 0 : index
    %c0_6 = arith.constant 0 : index
    %9 = vector.load %arg3[%c0_5, %c0_6] : memref<1x128xf32, #tpu.memory_space<vmem>>, vector<1x128xf32>
    %10 = vector.shape_cast %9 : vector<1x128xf32> to vector<128xf32>
    %11 = vector.shape_cast %10 : vector<128xf32> to vector<1x1x1x128xf32>
    %12 = vector.broadcast %11 : vector<1x1x1x128xf32> to vector<4x16x16x128xf32>
    %13 = arith.addf %8, %12 : vector<4x16x16x128xf32>
    %14 = vector.extract_strided_slice %0 {offsets = [0, 0, 0, 1], sizes = [4, 16, 16, 1], strides = [1, 1, 1, 1]} : vector<4x16x16x3xf32> to vector<4x16x16x1xf32>
    %15 = vector.extract_strided_slice %1 {offsets = [1, 0], sizes = [1, 128], strides = [1, 1]} : vector<3x128xf32> to vector<1x128xf32>
    %16 = vector.shape_cast %15 : vector<1x128xf32> to vector<128xf32>
    %17 = vector.shape_cast %16 : vector<128xf32> to vector<1x1x1x128xf32>
    %18 = vector.broadcast %14 : vector<4x16x16x1xf32> to vector<4x16x16x128xf32>
    %19 = vector.broadcast %17 : vector<1x1x1x128xf32> to vector<4x16x16x128xf32>
    %20 = arith.mulf %18, %19 : vector<4x16x16x128xf32>
    %21 = arith.addf %13, %20 : vector<4x16x16x128xf32>
    %22 = vector.extract_strided_slice %0 {offsets = [0, 0, 0, 2], sizes = [4, 16, 16, 1], strides = [1, 1, 1, 1]} : vector<4x16x16x3xf32> to vector<4x16x16x1xf32>
    %23 = vector.extract_strided_slice %1 {offsets = [2, 0], sizes = [1, 128], strides = [1, 1]} : vector<3x128xf32> to vector<1x128xf32>
    %24 = vector.shape_cast %23 : vector<1x128xf32> to vector<128xf32>
    %25 = vector.shape_cast %24 : vector<128xf32> to vector<1x1x1x128xf32>
    %26 = vector.broadcast %22 : vector<4x16x16x1xf32> to vector<4x16x16x128xf32>
    %27 = vector.broadcast %25 : vector<1x1x1x128xf32> to vector<4x16x16x128xf32>
    %28 = arith.mulf %26, %27 : vector<4x16x16x128xf32>
    %29 = arith.addf %21, %28 : vector<4x16x16x128xf32>
    %cst = arith.constant 0.000000e+00 : f32
    %30 = vector.broadcast %cst : f32 to vector<4x16x16x128xf32>
    %31 = arith.maximumf %29, %30 : vector<4x16x16x128xf32>
    %32 = vector.extract_strided_slice %31 {offsets = [0, 0, 0, 0], sizes = [4, 16, 10, 128], strides = [1, 1, 1, 1]} : vector<4x16x16x128xf32> to vector<4x16x10x128xf32>
    %33 = vector.extract_strided_slice %31 {offsets = [0, 0, 1, 0], sizes = [4, 16, 10, 128], strides = [1, 1, 1, 1]} : vector<4x16x16x128xf32> to vector<4x16x10x128xf32>
    %34 = arith.addf %32, %33 : vector<4x16x10x128xf32>
    %35 = vector.extract_strided_slice %31 {offsets = [0, 0, 2, 0], sizes = [4, 16, 10, 128], strides = [1, 1, 1, 1]} : vector<4x16x16x128xf32> to vector<4x16x10x128xf32>
    %36 = arith.addf %34, %35 : vector<4x16x10x128xf32>
    %37 = vector.extract_strided_slice %31 {offsets = [0, 0, 3, 0], sizes = [4, 16, 10, 128], strides = [1, 1, 1, 1]} : vector<4x16x16x128xf32> to vector<4x16x10x128xf32>
    %38 = arith.addf %36, %37 : vector<4x16x10x128xf32>
    %39 = vector.extract_strided_slice %31 {offsets = [0, 0, 4, 0], sizes = [4, 16, 10, 128], strides = [1, 1, 1, 1]} : vector<4x16x16x128xf32> to vector<4x16x10x128xf32>
    %40 = arith.addf %38, %39 : vector<4x16x10x128xf32>
    %41 = vector.extract_strided_slice %31 {offsets = [0, 0, 5, 0], sizes = [4, 16, 10, 128], strides = [1, 1, 1, 1]} : vector<4x16x16x128xf32> to vector<4x16x10x128xf32>
    %42 = arith.addf %40, %41 : vector<4x16x10x128xf32>
    %43 = vector.extract_strided_slice %31 {offsets = [0, 0, 6, 0], sizes = [4, 16, 10, 128], strides = [1, 1, 1, 1]} : vector<4x16x16x128xf32> to vector<4x16x10x128xf32>
    %44 = arith.addf %42, %43 : vector<4x16x10x128xf32>
    %45 = vector.extract_strided_slice %44 {offsets = [0, 0, 0, 0], sizes = [4, 10, 10, 128], strides = [1, 1, 1, 1]} : vector<4x16x10x128xf32> to vector<4x10x10x128xf32>
    %46 = vector.extract_strided_slice %44 {offsets = [0, 1, 0, 0], sizes = [4, 10, 10, 128], strides = [1, 1, 1, 1]} : vector<4x16x10x128xf32> to vector<4x10x10x128xf32>
    %47 = arith.addf %45, %46 : vector<4x10x10x128xf32>
    %48 = vector.extract_strided_slice %44 {offsets = [0, 2, 0, 0], sizes = [4, 10, 10, 128], strides = [1, 1, 1, 1]} : vector<4x16x10x128xf32> to vector<4x10x10x128xf32>
    %49 = arith.addf %47, %48 : vector<4x10x10x128xf32>
    %50 = vector.extract_strided_slice %44 {offsets = [0, 3, 0, 0], sizes = [4, 10, 10, 128], strides = [1, 1, 1, 1]} : vector<4x16x10x128xf32> to vector<4x10x10x128xf32>
    %51 = arith.addf %49, %50 : vector<4x10x10x128xf32>
    %52 = vector.extract_strided_slice %44 {offsets = [0, 4, 0, 0], sizes = [4, 10, 10, 128], strides = [1, 1, 1, 1]} : vector<4x16x10x128xf32> to vector<4x10x10x128xf32>
    %53 = arith.addf %51, %52 : vector<4x10x10x128xf32>
    %54 = vector.extract_strided_slice %44 {offsets = [0, 5, 0, 0], sizes = [4, 10, 10, 128], strides = [1, 1, 1, 1]} : vector<4x16x10x128xf32> to vector<4x10x10x128xf32>
    %55 = arith.addf %53, %54 : vector<4x10x10x128xf32>
    %56 = vector.extract_strided_slice %44 {offsets = [0, 6, 0, 0], sizes = [4, 10, 10, 128], strides = [1, 1, 1, 1]} : vector<4x16x10x128xf32> to vector<4x10x10x128xf32>
    %57 = arith.addf %55, %56 : vector<4x10x10x128xf32>
    %cst_7 = arith.constant 0.0204081628 : f32
    %58 = vector.broadcast %cst_7 : f32 to vector<4x10x10x128xf32>
    %59 = arith.mulf %57, %58 : vector<4x10x10x128xf32>
    %c0_8 = arith.constant 0 : index
    %c0_9 = arith.constant 0 : index
    %c0_10 = arith.constant 0 : index
    %c0_11 = arith.constant 0 : index
    %60 = vector.load %arg4[%c0_8, %c0_9, %c0_10, %c0_11] : memref<4x10x10x128xf32, #tpu.memory_space<vmem>>, vector<4x10x10x128xf32>
    tpu.vector_store %arg4[%c0_8, %c0_9, %c0_10, %c0_11], %59 {strides = array<i32>} : memref<4x10x10x128xf32, #tpu.memory_space<vmem>>, vector<4x10x10x128xf32>,
    return
  }
  func.func @transform_0(%arg0: i32) -> (i32, i32, i32, i32) {
    %c0_i32 = arith.constant 0 : i32
    %c0_i32_0 = arith.constant 0 : i32
    %c0_i32_1 = arith.constant 0 : i32
    %c0_i32_2 = arith.constant 0 : i32
    return %arg0, %c0_i32, %c0_i32_0, %c0_i32_1 : i32, i32, i32, i32
  }
  func.func @transform_1(%arg0: i32) -> (i32, i32) {
    %c0_i32 = arith.constant 0 : i32
    %c0_i32_0 = arith.constant 0 : i32
    %c0_i32_1 = arith.constant 0 : i32
    return %c0_i32, %c0_i32_0 : i32, i32
  }
  func.func @transform_2(%arg0: i32) -> (i32, i32) {
    %c0_i32 = arith.constant 0 : i32
    %c0_i32_0 = arith.constant 0 : i32
    %c0_i32_1 = arith.constant 0 : i32
    return %c0_i32, %c0_i32_0 : i32, i32
  }
  func.func @transform_3(%arg0: i32) -> (i32, i32, i32, i32) {
    %c0_i32 = arith.constant 0 : i32
    %c0_i32_0 = arith.constant 0 : i32
    %c0_i32_1 = arith.constant 0 : i32
    %c0_i32_2 = arith.constant 0 : i32
    return %arg0, %c0_i32, %c0_i32_0, %c0_i32_1 : i32, i32, i32, i32
  }
}

</mosaic_0001>

<bundles_post_ra>
// kernel: tpu_custom_call.1
= control target key start
LH: loop header
LB: loop body
LE: loop exit
PB: predicated region body
PF: predicated region fallthrough
CT: control target
= control target key end

     0   :  { %s6599_s12 = smov 0   ;;  %s11989_s0 = inlined_call_operand.vmem [shape: f32[8,16,16,3], index: 0, kind: input, shape index: {}]   ;;  %s11990_s1 = inlined_call_operand.vmem [shape: f32[3,128], index: 1, kind: input, shape index: {}]   ;;  %s11991_s2 = inlined_call_operand.vmem [shape: f32[1,128], index: 2, kind: input, shape index: {}]   ;;  %s11992_s3 = inlined_call_operand.vmem [shape: f32[8,10,10,128], index: 3, kind: output, shape index: {}]  }
   0x1 LB: > { %s6407_s13 = sadd.s32 4294967295, %s6574_s12   ;;  %p6411_p0 = scmp.ge.s32.totalorder %s6574_s12, 1  ;;  %s6574_s12 = sphi %s6599_s12, %s13_s12  }
   0x2   : > { %p139_p1 = scmp.lt.s32.totalorder %s6574_s12, 3 }
   0x4   : > { %p140_p2 = pnand %p6411_p0, %p139_p1 }
   0x6   : > { %143 = sbr.rel (%p140_p2) target bundleno = 1436 (0x59c), region = 32 }
   0xd   : > { %s6412_s14 = sshll.u32 %s6407_s13, 2  ;;  %v6576_v0 = vmov 0   ;;  %vm3015_vm0 = vcmask 1046528   ;;  %vm3464_vm1 = vcmask 1045504   ;;  %vm3913_vm2 = vcmask 1044480  }
   0xe   : > { %6434 = vset.pattern.permute.xlu1 %v6576_v0  ;;  %6433 = vset.pattern.permute.xlu0 %v6576_v0  ;;  %p166_p3 = scmp.lt.s32.totalorder %s6412_s14, 7  ;;  %vm4362_vm3 = vcmask 1043456   ;;  %vm4811_vm4 = vcmask 1042432   ;;  %vm5260_vm5 = vcmask 1041408  }
  0x10   : > { %s13052_s14 = smov (!%p166_p3, %s6412_s14), 7 }
  0x11   : > { %s6420_s15 = sshll.u32 %s13052_s14, 8  ;;  %s6421_s23 = smul.u32 160, %s13052_s14 }
  0x12   : > { %s6613_s18 = scalar_lea.vmem %s11989_s0, %s6420_s15 }
  0x13   : > { %v6616_v1 = vld [vmem:[%s6613_s18 + $0x10] sm:$0xff]  ;;  %v6619_v2 = vld [vmem:[%s6613_s18] sm:$0xff]  ;;  %v6624_v3 = vld [vmem:[%s6613_s18 + $0x18] sm:$0xff]  ;;  %s9523_s26 = scalar_lea.vmem %s11992_s3, %s6421_s23 }
  0x14   : > { %320 = vperm.xlu1 %6434, %v6616_v1   ;;  %310 = vperm.xlu0 %6433, %v6619_v2   ;;  %v6627_v4 = vld [vmem:[%s6613_s18 + $0x8] sm:$0xff]  ;;  %v6635_v6 = vld [vmem:[%s6613_s18 + $0x20] sm:$0xff]  ;;  %v6640_v7 = vld [vmem:[%s6613_s18 + $0x38] sm:$0xff] }
  0x15   : > { %v6632_v5 = vld [vmem:[%s6613_s18 + $0x28] sm:$0xff]  ;;  %v6643_v8 = vld [vmem:[%s6613_s18 + $0x30] sm:$0xff]  ;;  %v6651_v10 = vld [vmem:[%s6613_s18 + $0x40] sm:$0xff] }
  0x16   : > { %v6648_v9 = vld [vmem:[%s6613_s18 + $0x48] sm:$0xff]  ;;  %v6656_v11 = vld [vmem:[%s6613_s18 + $0x58] sm:$0xff]  ;;  %v6659_v12 = vld [vmem:[%s6613_s18 + $0x50] sm:$0xff] }
  0x17   : > { %v6664_v13 = vld [vmem:[%s6613_s18 + $0x68] sm:$0xff]  ;;  %v6667_v14 = vld [vmem:[%s6613_s18 + $0x60] sm:$0xff]  ;;  %v6672_v15 = vld [vmem:[%s6613_s18 + $0x78] sm:$0xff] }
  0x18   : > { %325 = vperm.xlu1 %6434, %v6624_v3   ;;  %315 = vperm.xlu0 %6433, %v6627_v4   ;;  %v6675_v16 = vld [vmem:[%s6613_s18 + $0x70] sm:$0xff]  ;;  %v6680_v17 = vld [vmem:[%s6613_s18 + $0x88] sm:$0xff]  ;;  %v6683_v18 = vld [vmem:[%s6613_s18 + $0x80] sm:$0xff] }
  0x19   : > { %v6688_v19 = vld [vmem:[%s6613_s18 + $0x98] sm:$0xff]  ;;  %v6691_v20 = vld [vmem:[%s6613_s18 + $0x90] sm:$0xff]  ;;  %v6696_v21 = vld [vmem:[%s6613_s18 + $0xa8] sm:$0xff] }
  0x1a   : > { %v6699_v22 = vld [vmem:[%s6613_s18 + $0xa0] sm:$0xff]  ;;  %v6704_v23 = vld [vmem:[%s6613_s18 + $0xb8] sm:$0xff]  ;;  %v6707_v24 = vld [vmem:[%s6613_s18 + $0xb0] sm:$0xff] }
  0x1b   : > { %v6712_v25 = vld [vmem:[%s6613_s18 + $0xc8] sm:$0xff]  ;;  %v6715_v26 = vld [vmem:[%s6613_s18 + $0xc0] sm:$0xff]  ;;  %v6720_v27 = vld [vmem:[%s6613_s18 + $0xd8] sm:$0xff] }
  0x1c   : > { %335 = vperm.xlu1 %6434, %v6632_v5   ;;  %330 = vperm.xlu0 %6433, %v6635_v6   ;;  %v6723_v28 = vld [vmem:[%s6613_s18 + $0xd0] sm:$0xff]  ;;  %v6728_v29 = vld [vmem:[%s6613_s18 + $0xe8] sm:$0xff]  ;;  %v6731_v30 = vld [vmem:[%s6613_s18 + $0xe0] sm:$0xff] }
  0x1d   : > { %v6736_v31 = vld [vmem:[%s6613_s18 + $0xf8] sm:$0xff]  ;;  %v6739_v32 = vld [vmem:[%s6613_s18 + $0xf0] sm:$0xff]  ;;  %v6744_v33 = vld [vmem:[%s6613_s18 + $0x108] sm:$0xff] }
  0x1e   : > { %v6747_v34 = vld [vmem:[%s6613_s18 + $0x100] sm:$0xff]  ;;  %v6752_v35 = vld [vmem:[%s6613_s18 + $0x118] sm:$0xff]  ;;  %v6755_v36 = vld [vmem:[%s6613_s18 + $0x110] sm:$0xff] }
  0x1f   : > { %v6760_v37 = vld [vmem:[%s6613_s18 + $0x128] sm:$0xff]  ;;  %v6763_v38 = vld [vmem:[%s6613_s18 + $0x120] sm:$0xff]  ;;  %v6768_v39 = vld [vmem:[%s6613_s18 + $0x138] sm:$0xff] }
  0x20   : > { %345 = vperm.xlu1 %6434, %v6640_v7   ;;  %340 = vperm.xlu0 %6433, %v6643_v8   ;;  %v6771_v40 = vld [vmem:[%s6613_s18 + $0x130] sm:$0xff]  ;;  %v6776_v41 = vld [vmem:[%s6613_s18 + $0x148] sm:$0xff]  ;;  %v6779_v42 = vld [vmem:[%s6613_s18 + $0x140] sm:$0xff] }
  0x21   : > { %v6784_v43 = vld [vmem:[%s6613_s18 + $0x158] sm:$0xff]  ;;  %v6787_v44 = vld [vmem:[%s6613_s18 + $0x150] sm:$0xff]  ;;  %v6792_v45 = vld [vmem:[%s6613_s18 + $0x168] sm:$0xff] }
  0x22   : > { %v6795_v46 = vld [vmem:[%s6613_s18 + $0x160] sm:$0xff]  ;;  %v6800_v47 = vld [vmem:[%s6613_s18 + $0x178] sm:$0xff]  ;;  %v6803_v48 = vld [vmem:[%s6613_s18 + $0x170] sm:$0xff] }
  0x23   : > { %v6808_v49 = vld [vmem:[%s6613_s18 + $0x188] sm:$0xff]  ;;  %v6811_v50 = vld [vmem:[%s6613_s18 + $0x180] sm:$0xff]  ;;  %v6816_v51 = vld [vmem:[%s6613_s18 + $0x198] sm:$0xff] }
  0x24   : > { %355 = vperm.xlu1 %6434, %v6648_v9   ;;  %350 = vperm.xlu0 %6433, %v6651_v10   ;;  %v6819_v52 = vld [vmem:[%s6613_s18 + $0x190] sm:$0xff]  ;;  %v6824_v53 = vld [vmem:[%s6613_s18 + $0x1a8] sm:$0xff]  ;;  %v6827_v54 = vld [vmem:[%s6613_s18 + $0x1a0] sm:$0xff] }
  0x25   : > { %v6832_v55 = vld [vmem:[%s6613_s18 + $0x1b8] sm:$0xff]  ;;  %v6835_v56 = vld [vmem:[%s6613_s18 + $0x1b0] sm:$0xff]  ;;  %v6840_v57 = vld [vmem:[%s6613_s18 + $0x1c8] sm:$0xff] }
  0x26   : > { %12065 = vst [vmem:[#allocation2_spill] sm:$0xff] %v6832_v55  ;;  %12066 = vst [vmem:[#allocation3_spill] sm:$0xff] %v6840_v57  ;;  %v6843_v58 = vld [vmem:[%s6613_s18 + $0x1c0] sm:$0xff]  ;;  %v6848_v59 = vld [vmem:[%s6613_s18 + $0x1d8] sm:$0xff] }
  0x27   : > { %12067 = vst [vmem:[#allocation4_spill] sm:$0xff] %v6843_v58  ;;  %12068 = vst [vmem:[#allocation5_spill] sm:$0xff] %v6848_v59  ;;  %v6851_v60 = vld [vmem:[%s6613_s18 + $0x1d0] sm:$0xff]  ;;  %v6856_v61 = vld [vmem:[%s6613_s18 + $0x1e8] sm:$0xff] }
  0x28   : > { %365 = vperm.xlu1 %6434, %v6656_v11   ;;  %360 = vperm.xlu0 %6433, %v6659_v12   ;;  %12069 = vst [vmem:[#allocation6_spill] sm:$0xff] %v6851_v60  ;;  %12070 = vst [vmem:[#allocation7_spill] sm:$0xff] %v6856_v61  ;;  %v6859_v62 = vld [vmem:[%s6613_s18 + $0x1e0] sm:$0xff]  ;;  %v6864_v63 = vld [vmem:[%s6613_s18 + $0x1f8] sm:$0xff] }
  0x29   : > { %12071 = vst [vmem:[#allocation8_spill] sm:$0xff] %v6859_v62  ;;  %12072 = vst [vmem:[#allocation9_spill] sm:$0xff] %v6864_v63  ;;  %v6867_v0 = vld [vmem:[%s6613_s18 + $0x1f0] sm:$0xff] }
  0x2a   : > { %12073 = vst [vmem:[#allocation10_spill] sm:$0xff] %v6867_v0 }
  0x2c   : > { %375 = vperm.xlu1 %6434, %v6664_v13   ;;  %370 = vperm.xlu0 %6433, %v6667_v14  }
  0x30   : > { %385 = vperm.xlu1 %6434, %v6672_v15   ;;  %380 = vperm.xlu0 %6433, %v6675_v16  }
  0x34   : > { %395 = vperm.xlu1 %6434, %v6680_v17   ;;  %390 = vperm.xlu0 %6433, %v6683_v18  }
  0x38   : > { %405 = vperm.xlu1 %6434, %v6688_v19   ;;  %400 = vperm.xlu0 %6433, %v6691_v20  }
  0x3c   : > { %415 = vperm.xlu1 %6434, %v6696_v21   ;;  %410 = vperm.xlu0 %6433, %v6699_v22  }
  0x40   : > { %425 = vperm.xlu1 %6434, %v6704_v23   ;;  %420 = vperm.xlu0 %6433, %v6707_v24  }
  0x44   : > { %435 = vperm.xlu1 %6434, %v6712_v25   ;;  %430 = vperm.xlu0 %6433, %v6715_v26  }
  0x48   : > { %445 = vperm.xlu1 %6434, %v6720_v27   ;;  %440 = vperm.xlu0 %6433, %v6723_v28  }
  0x4c   : > { %455 = vperm.xlu1 %6434, %v6728_v29   ;;  %450 = vperm.xlu0 %6433, %v6731_v30  }
  0x50   : > { %465 = vperm.xlu1 %6434, %v6736_v31   ;;  %460 = vperm.xlu0 %6433, %v6739_v32  }
  0x54   : > { %475 = vperm.xlu1 %6434, %v6744_v33   ;;  %470 = vperm.xlu0 %6433, %v6747_v34  }
  0x58   : > { %485 = vperm.xlu1 %6434, %v6752_v35   ;;  %480 = vperm.xlu0 %6433, %v6755_v36  }
  0x5c   : > { %495 = vperm.xlu1 %6434, %v6760_v37   ;;  %490 = vperm.xlu0 %6433, %v6763_v38  }
  0x60   : > { %505 = vperm.xlu1 %6434, %v6768_v39   ;;  %500 = vperm.xlu0 %6433, %v6771_v40  }
  0x64   : > { %515 = vperm.xlu1 %6434, %v6776_v41   ;;  %510 = vperm.xlu0 %6433, %v6779_v42  }
  0x68   : > { %525 = vperm.xlu1 %6434, %v6784_v43   ;;  %520 = vperm.xlu0 %6433, %v6787_v44  }
  0x6c   : > { %535 = vperm.xlu1 %6434, %v6792_v45   ;;  %530 = vperm.xlu0 %6433, %v6795_v46  }
  0x70   : > { %545 = vperm.xlu1 %6434, %v6800_v47   ;;  %540 = vperm.xlu0 %6433, %v6803_v48  }
  0x74   : > { %555 = vperm.xlu1 %6434, %v6808_v49   ;;  %550 = vperm.xlu0 %6433, %v6811_v50  }
  0x78   : > { %565 = vperm.xlu1 %6434, %v6816_v51   ;;  %560 = vperm.xlu0 %6433, %v6819_v52  }
  0x7c   : > { %575 = vperm.xlu1 %6434, %v6824_v53   ;;  %570 = vperm.xlu0 %6433, %v6827_v54  }
  0x80   : > { %585 = vperm.xlu1 %6434, %v6832_v55   ;;  %580 = vperm.xlu0 %6433, %v6835_v56  }
  0x84   : > { %595 = vperm.xlu1 %6434, %v6840_v57   ;;  %590 = vperm.xlu0 %6433, %v6843_v58   ;;  %v6887_v58 = vld [vmem:[%s6613_s18 + $0x210] sm:$0xff] }
  0x85   : > { %12079 = vst [vmem:[#allocation16_spill] sm:$0xff] %v6887_v58 }
  0x88   : > { %605 = vperm.xlu1 %6434, %v6848_v59   ;;  %600 = vperm.xlu0 %6433, %v6851_v60   ;;  %v6872_v59 = vld [vmem:[%s6613_s18 + $0x208] sm:$0xff]  ;;  %v6875_v60 = vld [vmem:[%s6613_s18 + $0x200] sm:$0xff] }
  0x89   : > { %12074 = vst [vmem:[#allocation11_spill] sm:$0xff] %v6872_v59  ;;  %12075 = vst [vmem:[#allocation12_spill] sm:$0xff] %v6875_v60 }
  0x8c   : > { %615 = vperm.xlu1 %6434, %v6856_v61   ;;  %610 = vperm.xlu0 %6433, %v6859_v62   ;;  %v6884_v62 = vld [vmem:[%s6613_s18 + $0x218] sm:$0xff] }
  0x8d   : > { %12078 = vst [vmem:[#allocation15_spill] sm:$0xff] %v6884_v62 }
  0x90   : > { %625 = vperm.xlu1 %6434, %v6864_v63   ;;  %620 = vperm.xlu0 %6433, %v6867_v0  }
  0x93   : > { %v6877_v57 = vpop.permute.xlu1 %320  ;;  %v6879_v61 = vpop.permute.xlu0 %310 }
  0x94   : > { %12076 = vst [vmem:[#allocation13_spill] sm:$0xff] %v6877_v57  ;;  %12077 = vst [vmem:[#allocation14_spill] sm:$0xff] %v6879_v61  ;;  %635 = vperm.xlu1 %6434, %v6872_v59   ;;  %630 = vperm.xlu0 %6433, %v6875_v60   ;;  %v6896_v61 = vld [vmem:[%s6613_s18 + $0x228] sm:$0xff]  ;;  %v6899_v57 = vld [vmem:[%s6613_s18 + $0x220] sm:$0xff] }
  0x95   : > { %12082 = vst [vmem:[#allocation19_spill] sm:$0xff] %v6896_v61  ;;  %12083 = vst [vmem:[#allocation20_spill] sm:$0xff] %v6899_v57 }
  0x97   : > { %v6889_v63 = vpop.permute.xlu1 %325  ;;  %v6891_v0 = vpop.permute.xlu0 %315 }
  0x98   : > { %12080 = vst [vmem:[#allocation17_spill] sm:$0xff] %v6889_v63  ;;  %12081 = vst [vmem:[#allocation18_spill] sm:$0xff] %v6891_v0  ;;  %645 = vperm.xlu1 %6434, %v6884_v62   ;;  %640 = vperm.xlu0 %6433, %v6887_v58   ;;  %v6908_v0 = vld [vmem:[%s6613_s18 + $0x238] sm:$0xff]  ;;  %v6911_v63 = vld [vmem:[%s6613_s18 + $0x230] sm:$0xff] }
  0x99   : > { %12086 = vst [vmem:[#allocation23_spill] sm:$0xff] %v6908_v0  ;;  %12087 = vst [vmem:[#allocation24_spill] sm:$0xff] %v6911_v63 }
  0x9b   : > { %v6901_v59 = vpop.permute.xlu1 %335  ;;  %v6903_v60 = vpop.permute.xlu0 %330 }
  0x9c   : > { %12084 = vst [vmem:[#allocation21_spill] sm:$0xff] %v6901_v59  ;;  %12085 = vst [vmem:[#allocation22_spill] sm:$0xff] %v6903_v60  ;;  %655 = vperm.xlu1 %6434, %v6896_v61   ;;  %650 = vperm.xlu0 %6433, %v6899_v57   ;;  %v6920_v60 = vld [vmem:[%s6613_s18 + $0x248] sm:$0xff]  ;;  %v6923_v59 = vld [vmem:[%s6613_s18 + $0x240] sm:$0xff] }
  0x9d   : > { %12090 = vst [vmem:[#allocation27_spill] sm:$0xff] %v6920_v60  ;;  %12091 = vst [vmem:[#allocation28_spill] sm:$0xff] %v6923_v59 }
  0x9f   : > { %v6913_v62 = vpop.permute.xlu1 %345  ;;  %v6915_v58 = vpop.permute.xlu0 %340 }
  0xa0   : > { %12088 = vst [vmem:[#allocation25_spill] sm:$0xff] %v6913_v62  ;;  %12089 = vst [vmem:[#allocation26_spill] sm:$0xff] %v6915_v58  ;;  %665 = vperm.xlu1 %6434, %v6908_v0   ;;  %660 = vperm.xlu0 %6433, %v6911_v63   ;;  %v6932_v58 = vld [vmem:[%s6613_s18 + $0x258] sm:$0xff]  ;;  %v6935_v62 = vld [vmem:[%s6613_s18 + $0x250] sm:$0xff] }
  0xa1   : > { %12094 = vst [vmem:[#allocation31_spill] sm:$0xff] %v6932_v58  ;;  %12095 = vst [vmem:[#allocation32_spill] sm:$0xff] %v6935_v62 }
  0xa3   : > { %v6925_v61 = vpop.permute.xlu1 %355  ;;  %v6927_v57 = vpop.permute.xlu0 %350 }
  0xa4   : > { %12092 = vst [vmem:[#allocation29_spill] sm:$0xff] %v6925_v61  ;;  %12093 = vst [vmem:[#allocation30_spill] sm:$0xff] %v6927_v57  ;;  %675 = vperm.xlu1 %6434, %v6920_v60   ;;  %670 = vperm.xlu0 %6433, %v6923_v59   ;;  %v6944_v57 = vld [vmem:[%s6613_s18 + $0x268] sm:$0xff]  ;;  %v6947_v61 = vld [vmem:[%s6613_s18 + $0x260] sm:$0xff] }
  0xa5   : > { %12098 = vst [vmem:[#allocation35_spill] sm:$0xff] %v6944_v57  ;;  %12099 = vst [vmem:[#allocation36_spill] sm:$0xff] %v6947_v61 }
  0xa7   : > { %v6937_v0 = vpop.permute.xlu1 %365  ;;  %v6939_v63 = vpop.permute.xlu0 %360 }
  0xa8   : > { %12096 = vst [vmem:[#allocation33_spill] sm:$0xff] %v6937_v0  ;;  %12097 = vst [vmem:[#allocation34_spill] sm:$0xff] %v6939_v63  ;;  %685 = vperm.xlu1 %6434, %v6932_v58   ;;  %680 = vperm.xlu0 %6433, %v6935_v62   ;;  %v6956_v63 = vld [vmem:[%s6613_s18 + $0x278] sm:$0xff]  ;;  %v6959_v0 = vld [vmem:[%s6613_s18 + $0x270] sm:$0xff] }
  0xa9   : > { %12102 = vst [vmem:[#allocation39_spill] sm:$0xff] %v6956_v63  ;;  %12103 = vst [vmem:[#allocation40_spill] sm:$0xff] %v6959_v0 }
  0xab   : > { %v6949_v60 = vpop.permute.xlu1 %375  ;;  %v6951_v59 = vpop.permute.xlu0 %370 }
  0xac   : > { %12100 = vst [vmem:[#allocation37_spill] sm:$0xff] %v6949_v60  ;;  %12101 = vst [vmem:[#allocation38_spill] sm:$0xff] %v6951_v59  ;;  %695 = vperm.xlu1 %6434, %v6944_v57   ;;  %690 = vperm.xlu0 %6433, %v6947_v61   ;;  %v6968_v59 = vld [vmem:[%s6613_s18 + $0x288] sm:$0xff]  ;;  %v6971_v60 = vld [vmem:[%s6613_s18 + $0x280] sm:$0xff] }
  0xad   : > { %12106 = vst [vmem:[#allocation43_spill] sm:$0xff] %v6968_v59  ;;  %12107 = vst [vmem:[#allocation44_spill] sm:$0xff] %v6971_v60 }
  0xaf   : > { %v6961_v58 = vpop.permute.xlu1 %385  ;;  %v6963_v62 = vpop.permute.xlu0 %380 }
  0xb0   : > { %12104 = vst [vmem:[#allocation41_spill] sm:$0xff] %v6961_v58  ;;  %12105 = vst [vmem:[#allocation42_spill] sm:$0xff] %v6963_v62  ;;  %705 = vperm.xlu1 %6434, %v6956_v63   ;;  %700 = vperm.xlu0 %6433, %v6959_v0   ;;  %v6980_v62 = vld [vmem:[%s6613_s18 + $0x298] sm:$0xff]  ;;  %v6983_v58 = vld [vmem:[%s6613_s18 + $0x290] sm:$0xff] }
  0xb1   : > { %12110 = vst [vmem:[#allocation47_spill] sm:$0xff] %v6980_v62  ;;  %12111 = vst [vmem:[#allocation48_spill] sm:$0xff] %v6983_v58 }
  0xb3   : > { %v6973_v57 = vpop.permute.xlu1 %395  ;;  %v6975_v61 = vpop.permute.xlu0 %390 }
  0xb4   : > { %12108 = vst [vmem:[#allocation45_spill] sm:$0xff] %v6973_v57  ;;  %12109 = vst [vmem:[#allocation46_spill] sm:$0xff] %v6975_v61  ;;  %715 = vperm.xlu1 %6434, %v6968_v59   ;;  %710 = vperm.xlu0 %6433, %v6971_v60   ;;  %v6992_v61 = vld [vmem:[%s6613_s18 + $0x2a8] sm:$0xff]  ;;  %v6995_v57 = vld [vmem:[%s6613_s18 + $0x2a0] sm:$0xff] }
  0xb5   : > { %12114 = vst [vmem:[#allocation51_spill] sm:$0xff] %v6992_v61  ;;  %12115 = vst [vmem:[#allocation52_spill] sm:$0xff] %v6995_v57 }
  0xb7   : > { %v6985_v63 = vpop.permute.xlu1 %405  ;;  %v6987_v0 = vpop.permute.xlu0 %400 }
  0xb8   : > { %12112 = vst [vmem:[#allocation49_spill] sm:$0xff] %v6985_v63  ;;  %12113 = vst [vmem:[#allocation50_spill] sm:$0xff] %v6987_v0  ;;  %725 = vperm.xlu1 %6434, %v6980_v62   ;;  %720 = vperm.xlu0 %6433, %v6983_v58   ;;  %v7004_v0 = vld [vmem:[%s6613_s18 + $0x2b8] sm:$0xff]  ;;  %v7007_v63 = vld [vmem:[%s6613_s18 + $0x2b0] sm:$0xff] }
  0xb9   : > { %12118 = vst [vmem:[#allocation55_spill] sm:$0xff] %v7004_v0  ;;  %12119 = vst [vmem:[#allocation56_spill] sm:$0xff] %v7007_v63 }
  0xbb   : > { %v6997_v59 = vpop.permute.xlu1 %415  ;;  %v6999_v60 = vpop.permute.xlu0 %410 }
  0xbc   : > { %12116 = vst [vmem:[#allocation53_spill] sm:$0xff] %v6997_v59  ;;  %12117 = vst [vmem:[#allocation54_spill] sm:$0xff] %v6999_v60  ;;  %735 = vperm.xlu1 %6434, %v6992_v61   ;;  %730 = vperm.xlu0 %6433, %v6995_v57   ;;  %v7016_v60 = vld [vmem:[%s6613_s18 + $0x2c8] sm:$0xff]  ;;  %v7019_v59 = vld [vmem:[%s6613_s18 + $0x2c0] sm:$0xff] }
  0xbd   : > { %12122 = vst [vmem:[#allocation59_spill] sm:$0xff] %v7016_v60  ;;  %12123 = vst [vmem:[#allocation60_spill] sm:$0xff] %v7019_v59 }
  0xbf   : > { %v7009_v62 = vpop.permute.xlu1 %425  ;;  %v7011_v58 = vpop.permute.xlu0 %420 }
  0xc0   : > { %12120 = vst [vmem:[#allocation57_spill] sm:$0xff] %v7009_v62  ;;  %12121 = vst [vmem:[#allocation58_spill] sm:$0xff] %v7011_v58  ;;  %745 = vperm.xlu1 %6434, %v7004_v0   ;;  %740 = vperm.xlu0 %6433, %v7007_v63   ;;  %v7028_v58 = vld [vmem:[%s6613_s18 + $0x2d8] sm:$0xff]  ;;  %v7031_v62 = vld [vmem:[%s6613_s18 + $0x2d0] sm:$0xff] }
  0xc1   : > { %12126 = vst [vmem:[#allocation63_spill] sm:$0xff] %v7028_v58  ;;  %12127 = vst [vmem:[#allocation64_spill] sm:$0xff] %v7031_v62 }
  0xc3   : > { %v7021_v61 = vpop.permute.xlu1 %435  ;;  %v7023_v57 = vpop.permute.xlu0 %430 }
  0xc4   : > { %12124 = vst [vmem:[#allocation61_spill] sm:$0xff] %v7021_v61  ;;  %12125 = vst [vmem:[#allocation62_spill] sm:$0xff] %v7023_v57  ;;  %755 = vperm.xlu1 %6434, %v7016_v60   ;;  %750 = vperm.xlu0 %6433, %v7019_v59   ;;  %v7040_v57 = vld [vmem:[%s6613_s18 + $0x2e8] sm:$0xff]  ;;  %v7043_v61 = vld [vmem:[%s6613_s18 + $0x2e0] sm:$0xff] }
  0xc5   : > { %12130 = vst [vmem:[#allocation67_spill] sm:$0xff] %v7040_v57  ;;  %12131 = vst [vmem:[#allocation68_spill] sm:$0xff] %v7043_v61 }
  0xc7   : > { %v7033_v0 = vpop.permute.xlu1 %445  ;;  %v7035_v63 = vpop.permute.xlu0 %440 }
  0xc8   : > { %12128 = vst [vmem:[#allocation65_spill] sm:$0xff] %v7033_v0  ;;  %12129 = vst [vmem:[#allocation66_spill] sm:$0xff] %v7035_v63  ;;  %765 = vperm.xlu1 %6434, %v7028_v58   ;;  %760 = vperm.xlu0 %6433, %v7031_v62   ;;  %v7052_v63 = vld [vmem:[%s6613_s18 + $0x2f8] sm:$0xff]  ;;  %v7055_v0 = vld [vmem:[%s6613_s18 + $0x2f0] sm:$0xff] }
  0xc9   : > { %12134 = vst [vmem:[#allocation71_spill] sm:$0xff] %v7052_v63  ;;  %12135 = vst [vmem:[#allocation72_spill] sm:$0xff] %v7055_v0 }
  0xcb   : > { %v7045_v60 = vpop.permute.xlu1 %455  ;;  %v7047_v59 = vpop.permute.xlu0 %450 }
  0xcc   : > { %12132 = vst [vmem:[#allocation69_spill] sm:$0xff] %v7045_v60  ;;  %12133 = vst [vmem:[#allocation70_spill] sm:$0xff] %v7047_v59  ;;  %775 = vperm.xlu1 %6434, %v7040_v57   ;;  %770 = vperm.xlu0 %6433, %v7043_v61   ;;  %v7064_v59 = vld [vmem:[%s6613_s18 + $0x308] sm:$0xff]  ;;  %v7067_v60 = vld [vmem:[%s6613_s18 + $0x300] sm:$0xff] }
  0xcd   : > { %12138 = vst [vmem:[#allocation75_spill] sm:$0xff] %v7064_v59  ;;  %12139 = vst [vmem:[#allocation76_spill] sm:$0xff] %v7067_v60 }
  0xcf   : > { %v7057_v58 = vpop.permute.xlu1 %465  ;;  %v7059_v62 = vpop.permute.xlu0 %460 }
  0xd0   : > { %12136 = vst [vmem:[#allocation73_spill] sm:$0xff] %v7057_v58  ;;  %12137 = vst [vmem:[#allocation74_spill] sm:$0xff] %v7059_v62  ;;  %785 = vperm.xlu1 %6434, %v7052_v63   ;;  %780 = vperm.xlu0 %6433, %v7055_v0   ;;  %v7076_v62 = vld [vmem:[%s6613_s18 + $0x318] sm:$0xff]  ;;  %v7079_v58 = vld [vmem:[%s6613_s18 + $0x310] sm:$0xff] }
  0xd1   : > { %12142 = vst [vmem:[#allocation79_spill] sm:$0xff] %v7076_v62  ;;  %12143 = vst [vmem:[#allocation80_spill] sm:$0xff] %v7079_v58 }
  0xd3   : > { %v7069_v57 = vpop.permute.xlu1 %475  ;;  %v7071_v61 = vpop.permute.xlu0 %470 }
  0xd4   : > { %12140 = vst [vmem:[#allocation77_spill] sm:$0xff] %v7069_v57  ;;  %12141 = vst [vmem:[#allocation78_spill] sm:$0xff] %v7071_v61  ;;  %795 = vperm.xlu1 %6434, %v7064_v59   ;;  %790 = vperm.xlu0 %6433, %v7067_v60   ;;  %v7088_v61 = vld [vmem:[%s6613_s18 + $0x328] sm:$0xff]  ;;  %v7091_v57 = vld [vmem:[%s6613_s18 + $0x320] sm:$0xff] }
  0xd5   : > { %12146 = vst [vmem:[#allocation83_spill] sm:$0xff] %v7088_v61  ;;  %12147 = vst [vmem:[#allocation84_spill] sm:$0xff] %v7091_v57 }
  0xd7   : > { %v7081_v63 = vpop.permute.xlu1 %485  ;;  %v7083_v0 = vpop.permute.xlu0 %480 }
  0xd8   : > { %12144 = vst [vmem:[#allocation81_spill] sm:$0xff] %v7081_v63  ;;  %12145 = vst [vmem:[#allocation82_spill] sm:$0xff] %v7083_v0  ;;  %805 = vperm.xlu1 %6434, %v7076_v62   ;;  %800 = vperm.xlu0 %6433, %v7079_v58   ;;  %v7100_v0 = vld [vmem:[%s6613_s18 + $0x338] sm:$0xff]  ;;  %v7103_v63 = vld [vmem:[%s6613_s18 + $0x330] sm:$0xff] }
  0xd9   : > { %12150 = vst [vmem:[#allocation87_spill] sm:$0xff] %v7100_v0  ;;  %12151 = vst [vmem:[#allocation88_spill] sm:$0xff] %v7103_v63 }
  0xdb   : > { %v7093_v59 = vpop.permute.xlu1 %495  ;;  %v7095_v60 = vpop.permute.xlu0 %490 }
  0xdc   : > { %12148 = vst [vmem:[#allocation85_spill] sm:$0xff] %v7093_v59  ;;  %12149 = vst [vmem:[#allocation86_spill] sm:$0xff] %v7095_v60  ;;  %815 = vperm.xlu1 %6434, %v7088_v61   ;;  %810 = vperm.xlu0 %6433, %v7091_v57   ;;  %v7112_v60 = vld [vmem:[%s6613_s18 + $0x348] sm:$0xff]  ;;  %v7115_v59 = vld [vmem:[%s6613_s18 + $0x340] sm:$0xff] }
  0xdd   : > { %12154 = vst [vmem:[#allocation91_spill] sm:$0xff] %v7112_v60  ;;  %12155 = vst [vmem:[#allocation92_spill] sm:$0xff] %v7115_v59 }
  0xdf   : > { %v7105_v62 = vpop.permute.xlu1 %505  ;;  %v7107_v58 = vpop.permute.xlu0 %500 }
  0xe0   : > { %12152 = vst [vmem:[#allocation89_spill] sm:$0xff] %v7105_v62  ;;  %12153 = vst [vmem:[#allocation90_spill] sm:$0xff] %v7107_v58  ;;  %825 = vperm.xlu1 %6434, %v7100_v0   ;;  %820 = vperm.xlu0 %6433, %v7103_v63   ;;  %v7124_v58 = vld [vmem:[%s6613_s18 + $0x358] sm:$0xff]  ;;  %v7127_v62 = vld [vmem:[%s6613_s18 + $0x350] sm:$0xff] }
  0xe1   : > { %12158 = vst [vmem:[#allocation95_spill] sm:$0xff] %v7124_v58  ;;  %12159 = vst [vmem:[#allocation96_spill] sm:$0xff] %v7127_v62 }
  0xe3   : > { %v7117_v61 = vpop.permute.xlu1 %515  ;;  %v7119_v57 = vpop.permute.xlu0 %510 }
  0xe4   : > { %12156 = vst [vmem:[#allocation93_spill] sm:$0xff] %v7117_v61  ;;  %12157 = vst [vmem:[#allocation94_spill] sm:$0xff] %v7119_v57  ;;  %835 = vperm.xlu1 %6434, %v7112_v60   ;;  %830 = vperm.xlu0 %6433, %v7115_v59   ;;  %v7136_v57 = vld [vmem:[%s6613_s18 + $0x368] sm:$0xff]  ;;  %v7139_v61 = vld [vmem:[%s6613_s18 + $0x360] sm:$0xff] }
  0xe5   : > { %12162 = vst [vmem:[#allocation99_spill] sm:$0xff] %v7136_v57  ;;  %12163 = vst [vmem:[#allocation100_spill] sm:$0xff] %v7139_v61 }
  0xe7   : > { %v7129_v0 = vpop.permute.xlu1 %525  ;;  %v7131_v63 = vpop.permute.xlu0 %520 }
  0xe8   : > { %12160 = vst [vmem:[#allocation97_spill] sm:$0xff] %v7129_v0  ;;  %12161 = vst [vmem:[#allocation98_spill] sm:$0xff] %v7131_v63  ;;  %845 = vperm.xlu1 %6434, %v7124_v58   ;;  %840 = vperm.xlu0 %6433, %v7127_v62   ;;  %v7148_v63 = vld [vmem:[%s6613_s18 + $0x378] sm:$0xff]  ;;  %v7151_v0 = vld [vmem:[%s6613_s18 + $0x370] sm:$0xff] }
  0xe9   : > { %12166 = vst [vmem:[#allocation103_spill] sm:$0xff] %v7148_v63  ;;  %12167 = vst [vmem:[#allocation104_spill] sm:$0xff] %v7151_v0 }
  0xeb   : > { %v7141_v60 = vpop.permute.xlu1 %535  ;;  %v7143_v59 = vpop.permute.xlu0 %530 }
  0xec   : > { %12164 = vst [vmem:[#allocation101_spill] sm:$0xff] %v7141_v60  ;;  %12165 = vst [vmem:[#allocation102_spill] sm:$0xff] %v7143_v59  ;;  %855 = vperm.xlu1 %6434, %v7136_v57   ;;  %850 = vperm.xlu0 %6433, %v7139_v61   ;;  %v7160_v59 = vld [vmem:[%s6613_s18 + $0x388] sm:$0xff]  ;;  %v7163_v60 = vld [vmem:[%s6613_s18 + $0x380] sm:$0xff] }
  0xed   : > { %12170 = vst [vmem:[#allocation107_spill] sm:$0xff] %v7160_v59  ;;  %12171 = vst [vmem:[#allocation108_spill] sm:$0xff] %v7163_v60 }
  0xef   : > { %v7153_v58 = vpop.permute.xlu1 %545  ;;  %v7155_v62 = vpop.permute.xlu0 %540 }
  0xf0   : > { %12168 = vst [vmem:[#allocation105_spill] sm:$0xff] %v7153_v58  ;;  %12169 = vst [vmem:[#allocation106_spill] sm:$0xff] %v7155_v62  ;;  %865 = vperm.xlu1 %6434, %v7148_v63   ;;  %860 = vperm.xlu0 %6433, %v7151_v0   ;;  %v7172_v62 = vld [vmem:[%s6613_s18 + $0x398] sm:$0xff]  ;;  %v7175_v58 = vld [vmem:[%s6613_s18 + $0x390] sm:$0xff] }
  0xf1   : > { %12174 = vst [vmem:[#allocation111_spill] sm:$0xff] %v7172_v62  ;;  %12175 = vst [vmem:[#allocation112_spill] sm:$0xff] %v7175_v58 }
  0xf3   : > { %v7165_v57 = vpop.permute.xlu1 %555  ;;  %v7167_v61 = vpop.permute.xlu0 %550 }
  0xf4   : > { %12172 = vst [vmem:[#allocation109_spill] sm:$0xff] %v7165_v57  ;;  %12173 = vst [vmem:[#allocation110_spill] sm:$0xff] %v7167_v61  ;;  %875 = vperm.xlu1 %6434, %v7160_v59   ;;  %870 = vperm.xlu0 %6433, %v7163_v60   ;;  %v7184_v61 = vld [vmem:[%s6613_s18 + $0x3a8] sm:$0xff]  ;;  %v7187_v57 = vld [vmem:[%s6613_s18 + $0x3a0] sm:$0xff] }
  0xf5   : > { %12178 = vst [vmem:[#allocation115_spill] sm:$0xff] %v7184_v61  ;;  %12179 = vst [vmem:[#allocation116_spill] sm:$0xff] %v7187_v57 }
  0xf7   : > { %v7177_v63 = vpop.permute.xlu1 %565  ;;  %v7179_v0 = vpop.permute.xlu0 %560 }
  0xf8   : > { %12176 = vst [vmem:[#allocation113_spill] sm:$0xff] %v7177_v63  ;;  %12177 = vst [vmem:[#allocation114_spill] sm:$0xff] %v7179_v0  ;;  %885 = vperm.xlu1 %6434, %v7172_v62   ;;  %880 = vperm.xlu0 %6433, %v7175_v58   ;;  %v7196_v0 = vld [vmem:[%s6613_s18 + $0x3b8] sm:$0xff]  ;;  %v7199_v63 = vld [vmem:[%s6613_s18 + $0x3b0] sm:$0xff] }
  0xf9   : > { %12182 = vst [vmem:[#allocation119_spill] sm:$0xff] %v7196_v0  ;;  %12183 = vst [vmem:[#allocation120_spill] sm:$0xff] %v7199_v63 }
  0xfb   : > { %v7189_v59 = vpop.permute.xlu1 %575  ;;  %v7191_v60 = vpop.permute.xlu0 %570 }
  0xfc   : > { %12180 = vst [vmem:[#allocation117_spill] sm:$0xff] %v7189_v59  ;;  %12181 = vst [vmem:[#allocation118_spill] sm:$0xff] %v7191_v60  ;;  %895 = vperm.xlu1 %6434, %v7184_v61   ;;  %890 = vperm.xlu0 %6433, %v7187_v57   ;;  %v7208_v60 = vld [vmem:[%s6613_s18 + $0x3c8] sm:$0xff]  ;;  %v7211_v59 = vld [vmem:[%s6613_s18 + $0x3c0] sm:$0xff] }
  0xfd   : > { %12186 = vst [vmem:[#allocation123_spill] sm:$0xff] %v7208_v60  ;;  %12187 = vst [vmem:[#allocation124_spill] sm:$0xff] %v7211_v59 }
  0xff   : > { %v7201_v62 = vpop.permute.xlu1 %585  ;;  %v7203_v58 = vpop.permute.xlu0 %580 }
 0x100   : > { %12184 = vst [vmem:[#allocation121_spill] sm:$0xff] %v7201_v62  ;;  %12185 = vst [vmem:[#allocation122_spill] sm:$0xff] %v7203_v58  ;;  %905 = vperm.xlu1 %6434, %v7196_v0   ;;  %900 = vperm.xlu0 %6433, %v7199_v63   ;;  %v7220_v58 = vld [vmem:[%s6613_s18 + $0x3d8] sm:$0xff]  ;;  %v7223_v62 = vld [vmem:[%s6613_s18 + $0x3d0] sm:$0xff] }
 0x101   : > { %12190 = vst [vmem:[#allocation127_spill] sm:$0xff] %v7220_v58  ;;  %12191 = vst [vmem:[#allocation128_spill] sm:$0xff] %v7223_v62 }
 0x103   : > { %v7213_v61 = vpop.permute.xlu1 %595  ;;  %v7215_v57 = vpop.permute.xlu0 %590 }
 0x104   : > { %12188 = vst [vmem:[#allocation125_spill] sm:$0xff] %v7213_v61  ;;  %12189 = vst [vmem:[#allocation126_spill] sm:$0xff] %v7215_v57  ;;  %915 = vperm.xlu1 %6434, %v7208_v60   ;;  %910 = vperm.xlu0 %6433, %v7211_v59   ;;  %v7232_v61 = vld [vmem:[%s6613_s18 + $0x3e8] sm:$0xff]  ;;  %v7235_v57 = vld [vmem:[%s6613_s18 + $0x3e0] sm:$0xff] }
 0x105   : > { %12194 = vst [vmem:[#allocation131_spill] sm:$0xff] %v7232_v61  ;;  %v7244_v59 = vld [vmem:[%s6613_s18 + $0x3f8] sm:$0xff] }
 0x107   : > { %v7225_v0 = vpop.permute.xlu1 %605  ;;  %v7227_v63 = vpop.permute.xlu0 %600 }
 0x108   : > { %12192 = vst [vmem:[#allocation129_spill] sm:$0xff] %v7225_v0  ;;  %12193 = vst [vmem:[#allocation130_spill] sm:$0xff] %v7227_v63  ;;  %925 = vperm.xlu1 %6434, %v7220_v58   ;;  %920 = vperm.xlu0 %6433, %v7223_v62   ;;  %v7247_v0 = vld [vmem:[%s6613_s18 + $0x3f0] sm:$0xff] }
 0x10b   : > { %v7237_v55 = vpop.permute.xlu1 %615  ;;  %v7239_v60 = vpop.permute.xlu0 %610 }
 0x10c   : > { %12195 = vst [vmem:[#allocation132_spill] sm:$0xff] %v7237_v55  ;;  %12196 = vst [vmem:[#allocation133_spill] sm:$0xff] %v7239_v60  ;;  %935 = vperm.xlu1 %6434, %v7232_v61   ;;  %930 = vperm.xlu0 %6433, %v7235_v57   ;;  %v6577_v60 = vmov 1  }
 0x10f   : > { %v7249_v63 = vpop.permute.xlu1 %625  ;;  %v7251_v58 = vpop.permute.xlu0 %620 }
 0x110   : > { %12197 = vst [vmem:[#allocation134_spill] sm:$0xff] %v7249_v63  ;;  %12198 = vst [vmem:[#allocation135_spill] sm:$0xff] %v7251_v58  ;;  %945 = vperm.xlu1 %6434, %v7244_v59   ;;  %940 = vperm.xlu0 %6433, %v7247_v0  }
 0x113   : > { %v7255_v62 = vpop.permute.xlu1 %635  ;;  %v7257_v55 = vpop.permute.xlu0 %630 }
 0x114   : > { %12199 = vst [vmem:[#allocation136_spill] sm:$0xff] %v7255_v62  ;;  %6436 = vset.pattern.permute.xlu1 %v6577_v60  ;;  %6435 = vset.pattern.permute.xlu0 %v6577_v60 }
 0x115   : > { %1220 = vperm.xlu1 %6436, %v6627_v4   ;;  %1216 = vperm.xlu0 %6435, %v6619_v2  }
 0x117   : > { %v7261_v61 = vpop.permute.xlu1 %645  ;;  %v7263_v63 = vpop.permute.xlu0 %640 }
 0x119   : > { %1224 = vperm.xlu1 %6436, %v6616_v1   ;;  %1228 = vperm.xlu0 %6435, %v6624_v3  }
 0x11b   : > { %v7267_v58 = vpop.permute.xlu1 %655  ;;  %v7269_v62 = vpop.permute.xlu0 %650 }
 0x11d   : > { %1232 = vperm.xlu1 %6436, %v6635_v6   ;;  %1236 = vperm.xlu0 %6435, %v6632_v5  }
 0x11f   : > { %v7273_v60 = vpop.permute.xlu1 %665  ;;  %v7275_v4 = vpop.permute.xlu0 %660 }
 0x121   : > { %1240 = vperm.xlu1 %6436, %v6643_v8   ;;  %1244 = vperm.xlu0 %6435, %v6640_v7  }
 0x123   : > { %v7279_v2 = vpop.permute.xlu1 %675  ;;  %v7281_v1 = vpop.permute.xlu0 %670 }
 0x125   : > { %1248 = vperm.xlu1 %6436, %v6651_v10   ;;  %1252 = vperm.xlu0 %6435, %v6648_v9  }
 0x127   : > { %v7285_v3 = vpop.permute.xlu1 %685  ;;  %v7287_v6 = vpop.permute.xlu0 %680 }
 0x129   : > { %1256 = vperm.xlu1 %6436, %v6659_v12   ;;  %1260 = vperm.xlu0 %6435, %v6656_v11  }
 0x12b   : > { %v7291_v5 = vpop.permute.xlu1 %695  ;;  %v7293_v8 = vpop.permute.xlu0 %690 }
 0x12d   : > { %1264 = vperm.xlu1 %6436, %v6667_v14   ;;  %1268 = vperm.xlu0 %6435, %v6664_v13  }
 0x12f   : > { %v7297_v7 = vpop.permute.xlu1 %705  ;;  %v7299_v10 = vpop.permute.xlu0 %700 }
 0x131   : > { %1272 = vperm.xlu1 %6436, %v6675_v16   ;;  %1276 = vperm.xlu0 %6435, %v6672_v15  }
 0x133   : > { %v7303_v9 = vpop.permute.xlu1 %715  ;;  %v7305_v12 = vpop.permute.xlu0 %710 }
 0x135   : > { %1280 = vperm.xlu1 %6436, %v6683_v18   ;;  %1284 = vperm.xlu0 %6435, %v6680_v17  }
 0x137   : > { %v7309_v11 = vpop.permute.xlu1 %725  ;;  %v7311_v14 = vpop.permute.xlu0 %720 }
 0x139   : > { %1288 = vperm.xlu1 %6436, %v6691_v20   ;;  %1292 = vperm.xlu0 %6435, %v6688_v19  }
 0x13b   : > { %v7315_v13 = vpop.permute.xlu1 %735  ;;  %v7317_v16 = vpop.permute.xlu0 %730 }
 0x13d   : > { %1296 = vperm.xlu1 %6436, %v6699_v22   ;;  %1300 = vperm.xlu0 %6435, %v6696_v21  }
 0x13f   : > { %v7321_v15 = vpop.permute.xlu1 %745  ;;  %v7323_v18 = vpop.permute.xlu0 %740 }
 0x141   : > { %1304 = vperm.xlu1 %6436, %v6707_v24   ;;  %1308 = vperm.xlu0 %6435, %v6704_v23  }
 0x143   : > { %v7327_v17 = vpop.permute.xlu1 %755  ;;  %v7329_v20 = vpop.permute.xlu0 %750 }
 0x145   : > { %1312 = vperm.xlu1 %6436, %v6715_v26   ;;  %1316 = vperm.xlu0 %6435, %v6712_v25  }
 0x147   : > { %v7333_v19 = vpop.permute.xlu1 %765  ;;  %v7335_v22 = vpop.permute.xlu0 %760 }
 0x149   : > { %1320 = vperm.xlu1 %6436, %v6723_v28   ;;  %1324 = vperm.xlu0 %6435, %v6720_v27  }
 0x14b   : > { %v7339_v21 = vpop.permute.xlu1 %775  ;;  %v7341_v24 = vpop.permute.xlu0 %770 }
 0x14d   : > { %1328 = vperm.xlu1 %6436, %v6731_v30   ;;  %1332 = vperm.xlu0 %6435, %v6728_v29  }
 0x14f   : > { %v7345_v23 = vpop.permute.xlu1 %785  ;;  %v7347_v26 = vpop.permute.xlu0 %780 }
 0x151   : > { %1336 = vperm.xlu1 %6436, %v6739_v32   ;;  %1340 = vperm.xlu0 %6435, %v6736_v31  }
 0x153   : > { %v7351_v25 = vpop.permute.xlu1 %795  ;;  %v7353_v28 = vpop.permute.xlu0 %790 }
 0x155   : > { %1344 = vperm.xlu1 %6436, %v6747_v34   ;;  %1348 = vperm.xlu0 %6435, %v6744_v33  }
 0x157   : > { %v7357_v27 = vpop.permute.xlu1 %805  ;;  %v7359_v30 = vpop.permute.xlu0 %800 }
 0x159   : > { %1352 = vperm.xlu1 %6436, %v6755_v36   ;;  %1356 = vperm.xlu0 %6435, %v6752_v35  }
 0x15b   : > { %v7363_v29 = vpop.permute.xlu1 %815  ;;  %v7365_v32 = vpop.permute.xlu0 %810 }
 0x15d   : > { %1360 = vperm.xlu1 %6436, %v6763_v38   ;;  %1364 = vperm.xlu0 %6435, %v6760_v37  }
 0x15f   : > { %v7369_v31 = vpop.permute.xlu1 %825  ;;  %v7371_v34 = vpop.permute.xlu0 %820 }
 0x161   : > { %1368 = vperm.xlu1 %6436, %v6771_v40   ;;  %1372 = vperm.xlu0 %6435, %v6768_v39  }
 0x163   : > { %v7375_v33 = vpop.permute.xlu1 %835  ;;  %v7377_v36 = vpop.permute.xlu0 %830 }
 0x165   : > { %1376 = vperm.xlu1 %6436, %v6779_v42   ;;  %1380 = vperm.xlu0 %6435, %v6776_v41  }
 0x167   : > { %v7381_v35 = vpop.permute.xlu1 %845  ;;  %v7383_v38 = vpop.permute.xlu0 %840 }
 0x168   : > { %12200 = vst [vmem:[#allocation137_spill] sm:$0xff] %v7381_v35  ;;  %12201 = vst [vmem:[#allocation138_spill] sm:$0xff] %v7383_v38 }
 0x169   : > { %1384 = vperm.xlu1 %6436, %v6787_v44   ;;  %1388 = vperm.xlu0 %6435, %v6784_v43  }
 0x16b   : > { %v7387_v37 = vpop.permute.xlu1 %855  ;;  %v7389_v40 = vpop.permute.xlu0 %850 }
 0x16c   : > { %12202 = vst [vmem:[#allocation139_spill] sm:$0xff] %v7387_v37  ;;  %12203 = vst [vmem:[#allocation140_spill] sm:$0xff] %v7389_v40  ;;  %v12366_v40 = vld [vmem:[#allocation29_spill] sm:$0xff]  ;;  %v12367_v37 = vld [vmem:[#allocation30_spill] sm:$0xff] }
 0x16d   : > { %1392 = vperm.xlu1 %6436, %v6795_v46   ;;  %1396 = vperm.xlu0 %6435, %v6792_v45  }
 0x16f   : > { %v7393_v39 = vpop.permute.xlu1 %865  ;;  %v7395_v42 = vpop.permute.xlu0 %860 }
 0x170   : > { %12204 = vst [vmem:[#allocation141_spill] sm:$0xff] %v7393_v39  ;;  %12205 = vst [vmem:[#allocation142_spill] sm:$0xff] %v7395_v42  ;;  %v12365_v42 = vld [vmem:[#allocation26_spill] sm:$0xff] }
 0x171   : > { %1400 = vperm.xlu1 %6436, %v6803_v48   ;;  %1404 = vperm.xlu0 %6435, %v6800_v47  }
 0x173   : > { %v7399_v41 = vpop.permute.xlu1 %875  ;;  %v7401_v44 = vpop.permute.xlu0 %870 }
 0x174   : > { %12206 = vst [vmem:[#allocation143_spill] sm:$0xff] %v7399_v41  ;;  %12207 = vst [vmem:[#allocation144_spill] sm:$0xff] %v7401_v44 }
 0x175   : > { %1408 = vperm.xlu1 %6436, %v6811_v50   ;;  %1412 = vperm.xlu0 %6435, %v6808_v49   ;;  %v12214_v49 = vld [vmem:[#allocation2_spill] sm:$0xff] }
 0x177   : > { %v7405_v43 = vpop.permute.xlu1 %885  ;;  %v7407_v46 = vpop.permute.xlu0 %880 }
 0x178   : > { %12208 = vst [vmem:[#allocation145_spill] sm:$0xff] %v7405_v43  ;;  %12209 = vst [vmem:[#allocation146_spill] sm:$0xff] %v7407_v46  ;;  %v6439_v43 = vld [vmem:[%s6613_s18] sm:$0xff] }
 0x179   : > { %1416 = vperm.xlu1 %6436, %v6819_v52   ;;  %1420 = vperm.xlu0 %6435, %v6816_v51   ;;  %v12217_v51 = vld [vmem:[#allocation4_spill] sm:$0xff] }
 0x17b   : > { %v7411_v45 = vpop.permute.xlu1 %895  ;;  %v7413_v48 = vpop.permute.xlu0 %890 }
 0x17c   : > { %12210 = vst [vmem:[#allocation147_spill] sm:$0xff] %v7411_v45  ;;  %12211 = vst [vmem:[#allocation148_spill] sm:$0xff] %v7413_v48  ;;  %v12218_v45 = vld [vmem:[#allocation3_spill] sm:$0xff] }
 0x17d   : > { %1424 = vperm.xlu1 %6436, %v6827_v54   ;;  %1428 = vperm.xlu0 %6435, %v6824_v53   ;;  %v12221_v53 = vld [vmem:[#allocation6_spill] sm:$0xff] }
 0x17f   : > { %v7417_v47 = vpop.permute.xlu1 %905  ;;  %v7419_v50 = vpop.permute.xlu0 %900 }
 0x180   : > { %12212 = vst [vmem:[#allocation149_spill] sm:$0xff] %v7417_v47  ;;  %12213 = vst [vmem:[#allocation150_spill] sm:$0xff] %v7419_v50  ;;  %v12222_v47 = vld [vmem:[#allocation5_spill] sm:$0xff] }
 0x181   : > { %1432 = vperm.xlu1 %6436, %v6835_v56   ;;  %1436 = vperm.xlu0 %6435, %v12214_v49   ;;  %v12225_v49 = vld [vmem:[#allocation8_spill] sm:$0xff] }
 0x183   : > { %v7423_v46 = vpop.permute.xlu1 %915  ;;  %v7425_v52 = vpop.permute.xlu0 %910 }
 0x184   : > { %12215 = vst [vmem:[#allocation2_spill] sm:$0xff] %v7423_v46  ;;  %12216 = vst [vmem:[#allocation151_spill] sm:$0xff] %v7425_v52  ;;  %v12226_v46 = vld [vmem:[#allocation7_spill] sm:$0xff] }
 0x185   : > { %1440 = vperm.xlu1 %6436, %v12217_v51   ;;  %1444 = vperm.xlu0 %6435, %v12218_v45   ;;  %v12229_v45 = vld [vmem:[#allocation10_spill] sm:$0xff] }
 0x187   : > { %v7429_v48 = vpop.permute.xlu1 %925  ;;  %v7431_v54 = vpop.permute.xlu0 %920 }
 0x188   : > { %12219 = vst [vmem:[#allocation4_spill] sm:$0xff] %v7429_v48  ;;  %12220 = vst [vmem:[#allocation3_spill] sm:$0xff] %v7431_v54  ;;  %v12230_v48 = vld [vmem:[#allocation9_spill] sm:$0xff] }
 0x189   : > { %1448 = vperm.xlu1 %6436, %v12221_v53   ;;  %1452 = vperm.xlu0 %6435, %v12222_v47   ;;  %v12233_v47 = vld [vmem:[#allocation12_spill] sm:$0xff] }
 0x18b   : > { %v7435_v50 = vpop.permute.xlu1 %935  ;;  %v7437_v56 = vpop.permute.xlu0 %930 }
 0x18c   : > { %12223 = vst [vmem:[#allocation6_spill] sm:$0xff] %v7435_v50  ;;  %12224 = vst [vmem:[#allocation5_spill] sm:$0xff] %v7437_v56  ;;  %v12234_v50 = vld [vmem:[#allocation11_spill] sm:$0xff] }
 0x18d   : > { %1456 = vperm.xlu1 %6436, %v12225_v49   ;;  %1460 = vperm.xlu0 %6435, %v12226_v46   ;;  %v12237_v46 = vld [vmem:[#allocation16_spill] sm:$0xff] }
 0x18f   : > { %v7441_v52 = vpop.permute.xlu1 %945  ;;  %v7443_v51 = vpop.permute.xlu0 %940 }
 0x190   : > { %12227 = vst [vmem:[#allocation8_spill] sm:$0xff] %v7441_v52  ;;  %12228 = vst [vmem:[#allocation7_spill] sm:$0xff] %v7443_v51  ;;  %v12238_v52 = vld [vmem:[#allocation15_spill] sm:$0xff] }
 0x191   : > { %1464 = vperm.xlu1 %6436, %v12229_v45   ;;  %1468 = vperm.xlu0 %6435, %v12230_v48   ;;  %v12241_v48 = vld [vmem:[#allocation20_spill] sm:$0xff] }
 0x194   : > { %v7447_v54 = vpop.permute.xlu1 %1220  ;;  %v7449_v53 = vpop.permute.xlu0 %1216 }
 0x195   : > { %12231 = vst [vmem:[#allocation10_spill] sm:$0xff] %v7447_v54  ;;  %12232 = vst [vmem:[#allocation9_spill] sm:$0xff] %v7449_v53  ;;  %1472 = vperm.xlu1 %6436, %v12233_v47   ;;  %1476 = vperm.xlu0 %6435, %v12234_v50   ;;  %v12242_v54 = vld [vmem:[#allocation19_spill] sm:$0xff]  ;;  %v12245_v50 = vld [vmem:[#allocation24_spill] sm:$0xff] }
 0x198   : > { %v7453_v56 = vpop.permute.xlu1 %1224  ;;  %v7455_v49 = vpop.permute.xlu0 %1228 }
 0x199   : > { %12235 = vst [vmem:[#allocation12_spill] sm:$0xff] %v7453_v56  ;;  %12236 = vst [vmem:[#allocation11_spill] sm:$0xff] %v7455_v49  ;;  %1480 = vperm.xlu1 %6436, %v12237_v46   ;;  %1484 = vperm.xlu0 %6435, %v12238_v52   ;;  %v12246_v56 = vld [vmem:[#allocation23_spill] sm:$0xff]  ;;  %v12249_v52 = vld [vmem:[#allocation28_spill] sm:$0xff] }
 0x19c   : > { %v7459_v51 = vpop.permute.xlu1 %1232  ;;  %v7461_v45 = vpop.permute.xlu0 %1236 }
 0x19d   : > { %12239 = vst [vmem:[#allocation16_spill] sm:$0xff] %v7459_v51  ;;  %12240 = vst [vmem:[#allocation15_spill] sm:$0xff] %v7461_v45  ;;  %1488 = vperm.xlu1 %6436, %v12241_v48   ;;  %1492 = vperm.xlu0 %6435, %v12242_v54   ;;  %v12250_v51 = vld [vmem:[#allocation27_spill] sm:$0xff]  ;;  %v12253_v54 = vld [vmem:[#allocation32_spill] sm:$0xff] }
 0x1a0   : > { %v7465_v53 = vpop.permute.xlu1 %1240  ;;  %v7467_v47 = vpop.permute.xlu0 %1244 }
 0x1a1   : > { %12243 = vst [vmem:[#allocation20_spill] sm:$0xff] %v7465_v53  ;;  %12244 = vst [vmem:[#allocation19_spill] sm:$0xff] %v7467_v47  ;;  %1496 = vperm.xlu1 %6436, %v12245_v50   ;;  %1500 = vperm.xlu0 %6435, %v12246_v56   ;;  %v12254_v53 = vld [vmem:[#allocation31_spill] sm:$0xff]  ;;  %v12257_v56 = vld [vmem:[#allocation36_spill] sm:$0xff] }
 0x1a4   : > { %v7471_v49 = vpop.permute.xlu1 %1248  ;;  %v7473_v46 = vpop.permute.xlu0 %1252 }
 0x1a5   : > { %12247 = vst [vmem:[#allocation24_spill] sm:$0xff] %v7471_v49  ;;  %12248 = vst [vmem:[#allocation23_spill] sm:$0xff] %v7473_v46  ;;  %1504 = vperm.xlu1 %6436, %v12249_v52   ;;  %1508 = vperm.xlu0 %6435, %v12250_v51   ;;  %v12258_v49 = vld [vmem:[#allocation35_spill] sm:$0xff]  ;;  %v12261_v51 = vld [vmem:[#allocation40_spill] sm:$0xff] }
 0x1a8   : > { %v7477_v45 = vpop.permute.xlu1 %1256  ;;  %v7479_v48 = vpop.permute.xlu0 %1260 }
 0x1a9   : > { %12251 = vst [vmem:[#allocation28_spill] sm:$0xff] %v7477_v45  ;;  %12252 = vst [vmem:[#allocation27_spill] sm:$0xff] %v7479_v48  ;;  %1512 = vperm.xlu1 %6436, %v12253_v54   ;;  %1516 = vperm.xlu0 %6435, %v12254_v53   ;;  %v12262_v45 = vld [vmem:[#allocation39_spill] sm:$0xff]  ;;  %v12265_v53 = vld [vmem:[#allocation44_spill] sm:$0xff] }
 0x1ac   : > { %v7483_v47 = vpop.permute.xlu1 %1264  ;;  %v7485_v50 = vpop.permute.xlu0 %1268 }
 0x1ad   : > { %12255 = vst [vmem:[#allocation32_spill] sm:$0xff] %v7483_v47  ;;  %12256 = vst [vmem:[#allocation31_spill] sm:$0xff] %v7485_v50  ;;  %1520 = vperm.xlu1 %6436, %v12257_v56   ;;  %1524 = vperm.xlu0 %6435, %v12258_v49   ;;  %v12266_v47 = vld [vmem:[#allocation43_spill] sm:$0xff]  ;;  %v12269_v49 = vld [vmem:[#allocation48_spill] sm:$0xff] }
 0x1b0   : > { %v7489_v46 = vpop.permute.xlu1 %1272  ;;  %v7491_v52 = vpop.permute.xlu0 %1276 }
 0x1b1   : > { %12259 = vst [vmem:[#allocation36_spill] sm:$0xff] %v7489_v46  ;;  %12260 = vst [vmem:[#allocation35_spill] sm:$0xff] %v7491_v52  ;;  %1528 = vperm.xlu1 %6436, %v12261_v51   ;;  %1532 = vperm.xlu0 %6435, %v12262_v45   ;;  %v12270_v46 = vld [vmem:[#allocation47_spill] sm:$0xff]  ;;  %v12273_v45 = vld [vmem:[#allocation52_spill] sm:$0xff] }
 0x1b4   : > { %v7495_v48 = vpop.permute.xlu1 %1280  ;;  %v7497_v54 = vpop.permute.xlu0 %1284 }
 0x1b5   : > { %12263 = vst [vmem:[#allocation40_spill] sm:$0xff] %v7495_v48  ;;  %12264 = vst [vmem:[#allocation39_spill] sm:$0xff] %v7497_v54  ;;  %1536 = vperm.xlu1 %6436, %v12265_v53   ;;  %1540 = vperm.xlu0 %6435, %v12266_v47   ;;  %v12274_v48 = vld [vmem:[#allocation51_spill] sm:$0xff]  ;;  %v12277_v47 = vld [vmem:[#allocation56_spill] sm:$0xff] }
 0x1b8   : > { %v7501_v50 = vpop.permute.xlu1 %1288  ;;  %v7503_v56 = vpop.permute.xlu0 %1292 }
 0x1b9   : > { %12267 = vst [vmem:[#allocation44_spill] sm:$0xff] %v7501_v50  ;;  %12268 = vst [vmem:[#allocation43_spill] sm:$0xff] %v7503_v56  ;;  %1544 = vperm.xlu1 %6436, %v12269_v49   ;;  %1548 = vperm.xlu0 %6435, %v12270_v46   ;;  %v12278_v50 = vld [vmem:[#allocation55_spill] sm:$0xff]  ;;  %v12281_v46 = vld [vmem:[#allocation60_spill] sm:$0xff] }
 0x1bc   : > { %v7507_v52 = vpop.permute.xlu1 %1296  ;;  %v7509_v51 = vpop.permute.xlu0 %1300 }
 0x1bd   : > { %12271 = vst [vmem:[#allocation48_spill] sm:$0xff] %v7507_v52  ;;  %12272 = vst [vmem:[#allocation47_spill] sm:$0xff] %v7509_v51  ;;  %1552 = vperm.xlu1 %6436, %v12273_v45   ;;  %1556 = vperm.xlu0 %6435, %v12274_v48   ;;  %v12282_v52 = vld [vmem:[#allocation59_spill] sm:$0xff]  ;;  %v12285_v48 = vld [vmem:[#allocation64_spill] sm:$0xff] }
 0x1c0   : > { %v7513_v54 = vpop.permute.xlu1 %1304  ;;  %v7515_v53 = vpop.permute.xlu0 %1308 }
 0x1c1   : > { %12275 = vst [vmem:[#allocation52_spill] sm:$0xff] %v7513_v54  ;;  %12276 = vst [vmem:[#allocation51_spill] sm:$0xff] %v7515_v53  ;;  %1560 = vperm.xlu1 %6436, %v12277_v47   ;;  %1564 = vperm.xlu0 %6435, %v12278_v50   ;;  %v12286_v54 = vld [vmem:[#allocation63_spill] sm:$0xff]  ;;  %v12289_v50 = vld [vmem:[#allocation68_spill] sm:$0xff] }
 0x1c4   : > { %v7519_v56 = vpop.permute.xlu1 %1312  ;;  %v7521_v49 = vpop.permute.xlu0 %1316 }
 0x1c5   : > { %12279 = vst [vmem:[#allocation56_spill] sm:$0xff] %v7519_v56  ;;  %12280 = vst [vmem:[#allocation55_spill] sm:$0xff] %v7521_v49  ;;  %1568 = vperm.xlu1 %6436, %v12281_v46   ;;  %1572 = vperm.xlu0 %6435, %v12282_v52   ;;  %v12290_v56 = vld [vmem:[#allocation67_spill] sm:$0xff]  ;;  %v12293_v52 = vld [vmem:[#allocation72_spill] sm:$0xff] }
 0x1c8   : > { %v7525_v51 = vpop.permute.xlu1 %1320  ;;  %v7527_v45 = vpop.permute.xlu0 %1324 }
 0x1c9   : > { %12283 = vst [vmem:[#allocation60_spill] sm:$0xff] %v7525_v51  ;;  %12284 = vst [vmem:[#allocation59_spill] sm:$0xff] %v7527_v45  ;;  %1576 = vperm.xlu1 %6436, %v12285_v48   ;;  %1580 = vperm.xlu0 %6435, %v12286_v54   ;;  %v12294_v51 = vld [vmem:[#allocation71_spill] sm:$0xff]  ;;  %v12297_v54 = vld [vmem:[#allocation76_spill] sm:$0xff] }
 0x1cc   : > { %v7531_v53 = vpop.permute.xlu1 %1328  ;;  %v7533_v47 = vpop.permute.xlu0 %1332 }
 0x1cd   : > { %12287 = vst [vmem:[#allocation64_spill] sm:$0xff] %v7531_v53  ;;  %12288 = vst [vmem:[#allocation63_spill] sm:$0xff] %v7533_v47  ;;  %1584 = vperm.xlu1 %6436, %v12289_v50   ;;  %1588 = vperm.xlu0 %6435, %v12290_v56   ;;  %v12298_v53 = vld [vmem:[#allocation75_spill] sm:$0xff]  ;;  %v12301_v56 = vld [vmem:[#allocation80_spill] sm:$0xff] }
 0x1d0   : > { %v7537_v49 = vpop.permute.xlu1 %1336  ;;  %v7539_v46 = vpop.permute.xlu0 %1340 }
 0x1d1   : > { %12291 = vst [vmem:[#allocation68_spill] sm:$0xff] %v7537_v49  ;;  %12292 = vst [vmem:[#allocation67_spill] sm:$0xff] %v7539_v46  ;;  %1592 = vperm.xlu1 %6436, %v12293_v52   ;;  %1596 = vperm.xlu0 %6435, %v12294_v51   ;;  %v12302_v49 = vld [vmem:[#allocation79_spill] sm:$0xff]  ;;  %v12305_v51 = vld [vmem:[#allocation84_spill] sm:$0xff] }
 0x1d4   : > { %v7543_v45 = vpop.permute.xlu1 %1344  ;;  %v7545_v48 = vpop.permute.xlu0 %1348 }
 0x1d5   : > { %12295 = vst [vmem:[#allocation72_spill] sm:$0xff] %v7543_v45  ;;  %12296 = vst [vmem:[#allocation71_spill] sm:$0xff] %v7545_v48  ;;  %1600 = vperm.xlu1 %6436, %v12297_v54   ;;  %1604 = vperm.xlu0 %6435, %v12298_v53   ;;  %v12306_v45 = vld [vmem:[#allocation83_spill] sm:$0xff]  ;;  %v12309_v53 = vld [vmem:[#allocation88_spill] sm:$0xff] }
 0x1d8   : > { %v7549_v47 = vpop.permute.xlu1 %1352  ;;  %v7551_v50 = vpop.permute.xlu0 %1356 }
 0x1d9   : > { %12299 = vst [vmem:[#allocation76_spill] sm:$0xff] %v7549_v47  ;;  %12300 = vst [vmem:[#allocation75_spill] sm:$0xff] %v7551_v50  ;;  %1608 = vperm.xlu1 %6436, %v12301_v56   ;;  %1612 = vperm.xlu0 %6435, %v12302_v49   ;;  %v12310_v47 = vld [vmem:[#allocation87_spill] sm:$0xff]  ;;  %v12313_v49 = vld [vmem:[#allocation92_spill] sm:$0xff] }
 0x1dc   : > { %v7555_v46 = vpop.permute.xlu1 %1360  ;;  %v7557_v52 = vpop.permute.xlu0 %1364 }
 0x1dd   : > { %12303 = vst [vmem:[#allocation80_spill] sm:$0xff] %v7555_v46  ;;  %12304 = vst [vmem:[#allocation79_spill] sm:$0xff] %v7557_v52  ;;  %1616 = vperm.xlu1 %6436, %v12305_v51   ;;  %1620 = vperm.xlu0 %6435, %v12306_v45   ;;  %v12314_v46 = vld [vmem:[#allocation91_spill] sm:$0xff]  ;;  %v12317_v45 = vld [vmem:[#allocation96_spill] sm:$0xff] }
 0x1e0   : > { %v7561_v48 = vpop.permute.xlu1 %1368  ;;  %v7563_v54 = vpop.permute.xlu0 %1372 }
 0x1e1   : > { %12307 = vst [vmem:[#allocation84_spill] sm:$0xff] %v7561_v48  ;;  %12308 = vst [vmem:[#allocation83_spill] sm:$0xff] %v7563_v54  ;;  %1624 = vperm.xlu1 %6436, %v12309_v53   ;;  %1628 = vperm.xlu0 %6435, %v12310_v47   ;;  %v12318_v48 = vld [vmem:[#allocation95_spill] sm:$0xff]  ;;  %v12321_v47 = vld [vmem:[#allocation100_spill] sm:$0xff] }
 0x1e4   : > { %v7567_v50 = vpop.permute.xlu1 %1376  ;;  %v7569_v56 = vpop.permute.xlu0 %1380 }
 0x1e5   : > { %12311 = vst [vmem:[#allocation88_spill] sm:$0xff] %v7567_v50  ;;  %12312 = vst [vmem:[#allocation87_spill] sm:$0xff] %v7569_v56  ;;  %1632 = vperm.xlu1 %6436, %v12313_v49   ;;  %1636 = vperm.xlu0 %6435, %v12314_v46   ;;  %v12322_v50 = vld [vmem:[#allocation99_spill] sm:$0xff]  ;;  %v12325_v46 = vld [vmem:[#allocation104_spill] sm:$0xff] }
 0x1e8   : > { %v7573_v52 = vpop.permute.xlu1 %1384  ;;  %v7575_v51 = vpop.permute.xlu0 %1388 }
 0x1e9   : > { %12315 = vst [vmem:[#allocation92_spill] sm:$0xff] %v7573_v52  ;;  %12316 = vst [vmem:[#allocation91_spill] sm:$0xff] %v7575_v51  ;;  %1640 = vperm.xlu1 %6436, %v12317_v45   ;;  %1644 = vperm.xlu0 %6435, %v12318_v48   ;;  %v12326_v52 = vld [vmem:[#allocation103_spill] sm:$0xff]  ;;  %v12329_v48 = vld [vmem:[#allocation108_spill] sm:$0xff] }
 0x1ec   : > { %v7579_v54 = vpop.permute.xlu1 %1392  ;;  %v7581_v53 = vpop.permute.xlu0 %1396 }
 0x1ed   : > { %12319 = vst [vmem:[#allocation96_spill] sm:$0xff] %v7579_v54  ;;  %12320 = vst [vmem:[#allocation95_spill] sm:$0xff] %v7581_v53  ;;  %1648 = vperm.xlu1 %6436, %v12321_v47   ;;  %1652 = vperm.xlu0 %6435, %v12322_v50   ;;  %v12330_v54 = vld [vmem:[#allocation107_spill] sm:$0xff]  ;;  %v12333_v50 = vld [vmem:[#allocation112_spill] sm:$0xff] }
 0x1f0   : > { %v7585_v56 = vpop.permute.xlu1 %1400  ;;  %v7587_v49 = vpop.permute.xlu0 %1404 }
 0x1f1   : > { %12323 = vst [vmem:[#allocation100_spill] sm:$0xff] %v7585_v56  ;;  %12324 = vst [vmem:[#allocation99_spill] sm:$0xff] %v7587_v49  ;;  %1656 = vperm.xlu1 %6436, %v12325_v46   ;;  %1660 = vperm.xlu0 %6435, %v12326_v52   ;;  %v12334_v56 = vld [vmem:[#allocation111_spill] sm:$0xff]  ;;  %v12337_v52 = vld [vmem:[#allocation116_spill] sm:$0xff] }
 0x1f4   : > { %v7591_v51 = vpop.permute.xlu1 %1408  ;;  %v7593_v45 = vpop.permute.xlu0 %1412 }
 0x1f5   : > { %12327 = vst [vmem:[#allocation104_spill] sm:$0xff] %v7591_v51  ;;  %12328 = vst [vmem:[#allocation103_spill] sm:$0xff] %v7593_v45  ;;  %1664 = vperm.xlu1 %6436, %v12329_v48   ;;  %1668 = vperm.xlu0 %6435, %v12330_v54   ;;  %v12338_v51 = vld [vmem:[#allocation115_spill] sm:$0xff]  ;;  %v12341_v54 = vld [vmem:[#allocation120_spill] sm:$0xff] }
 0x1f8   : > { %v7597_v53 = vpop.permute.xlu1 %1416  ;;  %v7599_v47 = vpop.permute.xlu0 %1420 }
 0x1f9   : > { %12331 = vst [vmem:[#allocation108_spill] sm:$0xff] %v7597_v53  ;;  %12332 = vst [vmem:[#allocation107_spill] sm:$0xff] %v7599_v47  ;;  %1672 = vperm.xlu1 %6436, %v12333_v50   ;;  %1676 = vperm.xlu0 %6435, %v12334_v56   ;;  %v12342_v53 = vld [vmem:[#allocation119_spill] sm:$0xff]  ;;  %v948_v56 = vlaneseq }
 0x1fc   : > { %v7603_v49 = vpop.permute.xlu1 %1424  ;;  %v7605_v46 = vpop.permute.xlu0 %1428 }
 0x1fd   : > { %12335 = vst [vmem:[#allocation112_spill] sm:$0xff] %v7603_v49  ;;  %12336 = vst [vmem:[#allocation111_spill] sm:$0xff] %v7605_v46  ;;  %1680 = vperm.xlu1 %6436, %v12337_v52   ;;  %1684 = vperm.xlu0 %6435, %v12338_v51   ;;  %v12345_v49 = vld [vmem:[#allocation124_spill] sm:$0xff]  ;;  %v12346_v46 = vld [vmem:[#allocation123_spill] sm:$0xff] }
 0x200   : > { %v7609_v45 = vpop.permute.xlu1 %1432  ;;  %v7611_v48 = vpop.permute.xlu0 %1436 }
 0x201   : > { %12339 = vst [vmem:[#allocation116_spill] sm:$0xff] %v7609_v45  ;;  %12340 = vst [vmem:[#allocation115_spill] sm:$0xff] %v7611_v48  ;;  %1688 = vperm.xlu1 %6436, %v12341_v54   ;;  %1692 = vperm.xlu0 %6435, %v12342_v53   ;;  %v7625_v45 = vshrl.u32 %v948_v56, 7  ;;  %v12349_v48 = vld [vmem:[#allocation128_spill] sm:$0xff]  ;;  %v12350_v54 = vld [vmem:[#allocation127_spill] sm:$0xff] }
 0x204   : > { %v7615_v47 = vpop.permute.xlu1 %1440  ;;  %v7617_v50 = vpop.permute.xlu0 %1444 }
 0x205   : > { %12343 = vst [vmem:[#allocation120_spill] sm:$0xff] %v7615_v47  ;;  %12344 = vst [vmem:[#allocation119_spill] sm:$0xff] %v7617_v50  ;;  %1696 = vperm.xlu1 %6436, %v12345_v49   ;;  %1700 = vperm.xlu0 %6435, %v12346_v46   ;;  %v950_v50 = vsub.s32 0, %v7625_v45  ;;  %v12353_v49 = vld [vmem:[#allocation131_spill] sm:$0xff]  ;;  %v7639_v46 = vld [vmem:[%s11990_s1] sm:$0x7] }
 0x208   : > { %v7621_v52 = vpop.permute.xlu1 %1448  ;;  %v7623_v51 = vpop.permute.xlu0 %1452 }
 0x209   : > { %12347 = vst [vmem:[#allocation124_spill] sm:$0xff] %v7621_v52  ;;  %12348 = vst [vmem:[#allocation123_spill] sm:$0xff] %v7623_v51  ;;  %1704 = vperm.xlu1 %6436, %v12349_v48   ;;  %1708 = vperm.xlu0 %6435, %v12350_v54   ;;  %v7646_v54 = vrot.slane %v7639_v46, %v950_v50  ;;  %v12359_v51 = vld [vmem:[#allocation14_spill] sm:$0xff]  ;;  %v12360_v52 = vld [vmem:[#allocation17_spill] sm:$0xff]  ;;  %v6578_v50 = vmov 2  }
 0x20b   : > { %v958_v39 = vmul.f32 %v7646_v54, %v12365_v42  ;;  %v12373_v42 = vld [vmem:[#allocation33_spill] sm:$0xff] }
 0x20c   : > { %v7629_v53 = vpop.permute.xlu1 %1456  ;;  %v7631_v47 = vpop.permute.xlu0 %1460  ;;  %v963_v35 = vmul.f32 %v7646_v54, %v12373_v42  ;;  %v12379_v42 = vld [vmem:[#allocation37_spill] sm:$0xff] }
 0x20d   : > { %12351 = vst [vmem:[#allocation128_spill] sm:$0xff] %v7629_v53  ;;  %12352 = vst [vmem:[#allocation127_spill] sm:$0xff] %v7631_v47  ;;  %1712 = vperm.xlu1 %6436, %v7235_v57   ;;  %1716 = vperm.xlu0 %6435, %v12353_v49   ;;  %v12358_v47 = vld [vmem:[#allocation13_spill] sm:$0xff] }
 0x20e   : > { %v954_v53 = vmul.f32 %v7646_v54, %v12358_v47 }
 0x210   : > { %v7641_v56 = vpop.permute.xlu1 %1464  ;;  %v7643_v48 = vpop.permute.xlu0 %1468 }
 0x211   : > { %12354 = vst [vmem:[#allocation131_spill] sm:$0xff] %v7641_v56  ;;  %12355 = vst [vmem:[#allocation152_spill] sm:$0xff] %v7643_v48  ;;  %1720 = vperm.xlu1 %6436, %v7247_v0   ;;  %1724 = vperm.xlu0 %6435, %v7244_v59   ;;  %v952_v56 = vmul.f32 %v7646_v54, %v12359_v51  ;;  %v955_v48 = vmul.f32 %v7646_v54, %v12360_v52  ;;  %v7663_v59 = vld [vmem:[%s11991_s2] ss:$0 sm:$0xff]  ;;  %v6440_v51 = vld [vmem:[%s6613_s18 + $0x8] sm:$0xff] }
 0x212   : > { %v12361_v0 = vld [vmem:[#allocation18_spill] sm:$0xff] }
 0x213   : > { %v12363_v52 = vld [vmem:[#allocation22_spill] sm:$0xff] }
 0x214   : > { %v7650_v57 = vpop.permute.xlu1 %1472  ;;  %v7652_v49 = vpop.permute.xlu0 %1476  ;;  %v956_v44 = vmul.f32 %v7646_v54, %v12363_v52  ;;  %v7689_v52 = vadd.f32 %v7663_v59, %v952_v56 }
 0x215   : > { %12356 = vst [vmem:[#allocation153_spill] sm:$0xff] %v7650_v57  ;;  %12357 = vst [vmem:[#allocation154_spill] sm:$0xff] %v7652_v49  ;;  %6437 = vset.pattern.permute.xlu1 %v6578_v50  ;;  %6438 = vset.pattern.permute.xlu0 %v6578_v50  ;;  %v953_v49 = vmul.f32 %v7646_v54, %v12361_v0  ;;  %v12362_v57 = vld [vmem:[#allocation21_spill] sm:$0xff]  ;;  %v961_v0 = vmul.f32 %v7646_v54, %v12366_v40 }
 0x216   : > { %v957_v47 = vmul.f32 %v7646_v54, %v12362_v57  ;;  %1988 = vperm.xlu1 %6437, %v6439_v43   ;;  %1992 = vperm.xlu0 %6438, %v6440_v51   ;;  %v12364_v50 = vld [vmem:[#allocation25_spill] sm:$0xff]  ;;  %v960_v57 = vmul.f32 %v7646_v54, %v12367_v37  ;;  %v7686_v51 = vadd.f32 %v7663_v59, %v954_v53  ;;  %v6441_v53 = vld [vmem:[%s6613_s18 + $0x10] sm:$0xff] }
 0x217   : > { %v959_v41 = vmul.f32 %v7646_v54, %v12364_v50  ;;  %12371 = vst [vmem:[#allocation18_spill] sm:$0xff] %v7689_v52  ;;  %v7692_v50 = vadd.f32 %v7663_v59, %v955_v48  ;;  %v7697_v40 = vadd.f32 %v7663_v59, %v953_v49  ;;  %v7707_v56 = vadd.f32 %v7663_v59, %v956_v44  ;;  %v12400_v52 = vld [vmem:[#allocation58_spill] sm:$0xff] }
 0x218   : > { %v7681_v43 = vpop.permute.xlu1 %1480  ;;  %v7683_v38 = vpop.permute.xlu0 %1484  ;;  %12370 = vst [vmem:[#allocation17_spill] sm:$0xff] %v7686_v51  ;;  %v7700_v37 = vadd.f32 %v7663_v59, %v957_v47  ;;  %v6442_v51 = vld [vmem:[%s6613_s18 + $0x20] sm:$0xff]  ;;  %v965_v49 = vmul.f32 %v7646_v54, %v12379_v42  ;;  %v7723_v44 = vadd.f32 %v7663_v59, %v960_v57  ;;  %v7732_v42 = vadd.f32 %v7663_v59, %v963_v35  ;;  %v6443_v35 = vld [vmem:[%s6613_s18 + $0x18] sm:$0xff] }
 0x219   : > { %12368 = vst [vmem:[#allocation13_spill] sm:$0xff] %v7681_v43  ;;  %12369 = vst [vmem:[#allocation14_spill] sm:$0xff] %v7683_v38  ;;  %v12376_v43 = vld [vmem:[#allocation34_spill] sm:$0xff]  ;;  %v7710_v48 = vadd.f32 %v7663_v59, %v959_v41 }
 0x21a   : > { %12372 = vst [vmem:[#allocation21_spill] sm:$0xff] %v7692_v50  ;;  %12374 = vst [vmem:[#allocation22_spill] sm:$0xff] %v7697_v40  ;;  %v962_v38 = vmul.f32 %v7646_v54, %v12376_v43  ;;  %1996 = vperm.xlu1 %6437, %v6441_v53   ;;  %2004 = vperm.xlu0 %6438, %v6442_v51   ;;  %v12380_v50 = vld [vmem:[#allocation38_spill] sm:$0xff]  ;;  %v7717_v43 = vadd.f32 %v7663_v59, %v958_v39  ;;  %v12384_v51 = vld [vmem:[#allocation41_spill] sm:$0xff] }
 0x21b   : > { %12375 = vst [vmem:[#allocation25_spill] sm:$0xff] %v7700_v37  ;;  %12377 = vst [vmem:[#allocation26_spill] sm:$0xff] %v7707_v56  ;;  %v964_v47 = vmul.f32 %v7646_v54, %v12380_v50  ;;  %v7720_v53 = vadd.f32 %v7663_v59, %v961_v0  ;;  %v967_v41 = vmul.f32 %v7646_v54, %v12384_v51  ;;  %v12388_v50 = vld [vmem:[#allocation42_spill] sm:$0xff]  ;;  %v12392_v51 = vld [vmem:[#allocation49_spill] sm:$0xff] }
 0x21c   : > { %12378 = vst [vmem:[#allocation29_spill] sm:$0xff] %v7710_v48  ;;  %12381 = vst [vmem:[#allocation30_spill] sm:$0xff] %v7717_v43  ;;  %v7727_v48 = vpop.permute.xlu1 %1488  ;;  %v7729_v37 = vpop.permute.xlu0 %1492  ;;  %v966_v39 = vmul.f32 %v7646_v54, %v12388_v50  ;;  %v12389_v43 = vld [vmem:[#allocation45_spill] sm:$0xff]  ;;  %v12393_v56 = vld [vmem:[#allocation50_spill] sm:$0xff]  ;;  %v7750_v50 = vadd.f32 %v7663_v59, %v965_v49  ;;  %v974_v49 = vmul.f32 %v7646_v54, %v12400_v52 }
 0x21d   : > { %12382 = vst [vmem:[#allocation33_spill] sm:$0xff] %v7720_v53  ;;  %12383 = vst [vmem:[#allocation34_spill] sm:$0xff] %v7723_v44  ;;  %v969_v0 = vmul.f32 %v7646_v54, %v12389_v43  ;;  %v12390_v53 = vld [vmem:[#allocation46_spill] sm:$0xff]  ;;  %v7741_v44 = vadd.f32 %v7663_v59, %v962_v38  ;;  %v7753_v43 = vadd.f32 %v7663_v59, %v964_v47 }
 0x21e   : > { %12385 = vst [vmem:[#allocation37_spill] sm:$0xff] %v7727_v48  ;;  %12386 = vst [vmem:[#allocation38_spill] sm:$0xff] %v7729_v37  ;;  %v968_v57 = vmul.f32 %v7646_v54, %v12390_v53  ;;  %v971_v48 = vmul.f32 %v7646_v54, %v12392_v51  ;;  %v970_v37 = vmul.f32 %v7646_v54, %v12393_v56  ;;  %2000 = vperm.xlu1 %6437, %v6443_v35   ;;  %v12396_v53 = vld [vmem:[#allocation53_spill] sm:$0xff] }
 0x21f   : > { %12387 = vst [vmem:[#allocation41_spill] sm:$0xff] %v7732_v42  ;;  %12391 = vst [vmem:[#allocation42_spill] sm:$0xff] %v7741_v44  ;;  %v6444_v42 = vld [vmem:[%s6613_s18 + $0x30] sm:$0xff]  ;;  %v973_v38 = vmul.f32 %v7646_v54, %v12396_v53  ;;  %v12397_v44 = vld [vmem:[#allocation54_spill] sm:$0xff]  ;;  %v7760_v56 = vadd.f32 %v7663_v59, %v967_v41  ;;  %v7773_v53 = vadd.f32 %v7663_v59, %v966_v39 }
 0x220   : > { %2012 = vperm.xlu0 %6438, %v6444_v42   ;;  %12394 = vst [vmem:[#allocation45_spill] sm:$0xff] %v7750_v50  ;;  %12395 = vst [vmem:[#allocation46_spill] sm:$0xff] %v7753_v43  ;;  %v972_v51 = vmul.f32 %v7646_v54, %v12397_v44  ;;  %v12399_v35 = vld [vmem:[#allocation57_spill] sm:$0xff]  ;;  %v7768_v43 = vpop.permute.xlu1 %1496  ;;  %v7770_v40 = vpop.permute.xlu0 %1500  ;;  %v7776_v44 = vadd.f32 %v7663_v59, %v969_v0  ;;  %v7779_v41 = vadd.f32 %v7663_v59, %v968_v57  ;;  %v6445_v39 = vld [vmem:[%s6613_s18 + $0x28] sm:$0xff] }
 0x221   : > { %12398 = vst [vmem:[#allocation49_spill] sm:$0xff] %v7760_v56  ;;  %v975_v42 = vmul.f32 %v7646_v54, %v12399_v35  ;;  %v12401_v50 = vld [vmem:[#allocation61_spill] sm:$0xff]  ;;  %12402 = vst [vmem:[#allocation50_spill] sm:$0xff] %v7768_v43  ;;  %v12407_v35 = vld [vmem:[#allocation62_spill] sm:$0xff]  ;;  %v7784_v52 = vadd.f32 %v7663_v59, %v971_v48  ;;  %v7794_v0 = vadd.f32 %v7663_v59, %v973_v38 }
 0x222   : > { %v977_v47 = vmul.f32 %v7646_v54, %v12401_v50  ;;  %12403 = vst [vmem:[#allocation53_spill] sm:$0xff] %v7770_v40  ;;  %12404 = vst [vmem:[#allocation54_spill] sm:$0xff] %v7773_v53  ;;  %v976_v56 = vmul.f32 %v7646_v54, %v12407_v35  ;;  %v7787_v50 = vadd.f32 %v7663_v59, %v970_v37  ;;  %v12410_v43 = vld [vmem:[#allocation65_spill] sm:$0xff]  ;;  %2008 = vperm.xlu1 %6437, %v6445_v39   ;;  %v6446_v53 = vld [vmem:[%s6613_s18 + $0x40] sm:$0xff] }
 0x223   : > { %12405 = vst [vmem:[#allocation57_spill] sm:$0xff] %v7776_v44  ;;  %12406 = vst [vmem:[#allocation58_spill] sm:$0xff] %v7779_v41  ;;  %v979_v40 = vmul.f32 %v7646_v54, %v12410_v43  ;;  %v7797_v57 = vadd.f32 %v7663_v59, %v972_v51  ;;  %v12413_v35 = vld [vmem:[#allocation66_spill] sm:$0xff]  ;;  %v7804_v43 = vadd.f32 %v7663_v59, %v975_v42  ;;  %v12434_v44 = vld [vmem:[#allocation89_spill] sm:$0xff] }
 0x224   : > { %12408 = vst [vmem:[#allocation61_spill] sm:$0xff] %v7784_v52  ;;  %12409 = vst [vmem:[#allocation62_spill] sm:$0xff] %v7787_v50  ;;  %2020 = vperm.xlu0 %6438, %v6446_v53   ;;  %v978_v48 = vmul.f32 %v7646_v54, %v12413_v35  ;;  %v12414_v52 = vld [vmem:[#allocation69_spill] sm:$0xff]  ;;  %v7807_v39 = vadd.f32 %v7663_v59, %v974_v49  ;;  %v7810_v38 = vadd.f32 %v7663_v59, %v977_v47  ;;  %v12418_v53 = vld [vmem:[#allocation70_spill] sm:$0xff] }
 0x225   : > { %12411 = vst [vmem:[#allocation65_spill] sm:$0xff] %v7794_v0  ;;  %12412 = vst [vmem:[#allocation155_spill] sm:$0xff] %v7797_v57  ;;  %v981_v37 = vmul.f32 %v7646_v54, %v12414_v52  ;;  %v980_v51 = vmul.f32 %v7646_v54, %v12418_v53  ;;  %v7814_v0 = vpop.permute.xlu1 %1504  ;;  %v7816_v57 = vpop.permute.xlu0 %1508  ;;  %v7819_v35 = vadd.f32 %v7663_v59, %v976_v56  ;;  %v12422_v52 = vld [vmem:[#allocation73_spill] sm:$0xff]  ;;  %v12426_v53 = vld [vmem:[#allocation78_spill] sm:$0xff] }
 0x226   : > { %12415 = vst [vmem:[#allocation66_spill] sm:$0xff] %v7804_v43  ;;  %12416 = vst [vmem:[#allocation69_spill] sm:$0xff] %v7807_v39  ;;  %v983_v42 = vmul.f32 %v7646_v54, %v12422_v52  ;;  %v12423_v43 = vld [vmem:[#allocation74_spill] sm:$0xff]  ;;  %v12424_v39 = vld [vmem:[#allocation77_spill] sm:$0xff]  ;;  %v7837_v52 = vadd.f32 %v7663_v59, %v978_v48  ;;  %v991_v48 = vmul.f32 %v7646_v54, %v12434_v44 }
 0x227   : > { %12417 = vst [vmem:[#allocation156_spill] sm:$0xff] %v7810_v38  ;;  %12419 = vst [vmem:[#allocation70_spill] sm:$0xff] %v7814_v0  ;;  %v982_v49 = vmul.f32 %v7646_v54, %v12423_v43  ;;  %v985_v47 = vmul.f32 %v7646_v54, %v12424_v39  ;;  %v7828_v38 = vadd.f32 %v7663_v59, %v979_v40  ;;  %v12427_v50 = vld [vmem:[#allocation81_spill] sm:$0xff]  ;;  %v12430_v39 = vld [vmem:[#allocation82_spill] sm:$0xff] }
 0x228   : > { %12420 = vst [vmem:[#allocation157_spill] sm:$0xff] %v7816_v57  ;;  %12421 = vst [vmem:[#allocation158_spill] sm:$0xff] %v7819_v35  ;;  %v984_v0 = vmul.f32 %v7646_v54, %v12426_v53  ;;  %v987_v57 = vmul.f32 %v7646_v54, %v12427_v50  ;;  %v6447_v56 = vld [vmem:[%s6613_s18 + $0x38] sm:$0xff]  ;;  %v6448_v35 = vld [vmem:[%s6613_s18 + $0x50] sm:$0xff]  ;;  %v7840_v43 = vadd.f32 %v7663_v59, %v981_v37 }
 0x229   : > { %12425 = vst [vmem:[#allocation73_spill] sm:$0xff] %v7828_v38  ;;  %2016 = vperm.xlu1 %6437, %v6447_v56   ;;  %2028 = vperm.xlu0 %6438, %v6448_v35   ;;  %12428 = vst [vmem:[#allocation74_spill] sm:$0xff] %v7837_v52  ;;  %v986_v40 = vmul.f32 %v7646_v54, %v12430_v39  ;;  %v12431_v38 = vld [vmem:[#allocation85_spill] sm:$0xff]  ;;  %v7847_v50 = vadd.f32 %v7663_v59, %v980_v51  ;;  %v12433_v56 = vld [vmem:[#allocation86_spill] sm:$0xff]  ;;  %v7857_v41 = vpop.permute.xlu0 %1516 }
 0x22a   : > { %12429 = vst [vmem:[#allocation77_spill] sm:$0xff] %v7840_v43  ;;  %v989_v53 = vmul.f32 %v7646_v54, %v12431_v38  ;;  %v988_v35 = vmul.f32 %v7646_v54, %v12433_v56  ;;  %v12435_v52 = vld [vmem:[#allocation90_spill] sm:$0xff]  ;;  %v7855_v43 = vpop.permute.xlu1 %1512  ;;  %12437 = vst [vmem:[#allocation82_spill] sm:$0xff] %v7857_v41  ;;  %v7860_v39 = vadd.f32 %v7663_v59, %v983_v42  ;;  %v12441_v56 = vld [vmem:[#allocation93_spill] sm:$0xff] }
 0x22b   : > { %12432 = vst [vmem:[#allocation78_spill] sm:$0xff] %v7847_v50  ;;  %v990_v37 = vmul.f32 %v7646_v54, %v12435_v52  ;;  %12436 = vst [vmem:[#allocation81_spill] sm:$0xff] %v7855_v43  ;;  %v7863_v38 = vadd.f32 %v7663_v59, %v982_v49  ;;  %v7866_v51 = vadd.f32 %v7663_v59, %v985_v47  ;;  %v12444_v43 = vld [vmem:[#allocation94_spill] sm:$0xff]  ;;  %v6449_v42 = vld [vmem:[%s6613_s18 + $0x48] sm:$0xff] }
 0x22c   : > { %12438 = vst [vmem:[#allocation85_spill] sm:$0xff] %v7860_v39  ;;  %v993_v50 = vmul.f32 %v7646_v54, %v12441_v56  ;;  %v7871_v44 = vadd.f32 %v7663_v59, %v984_v0  ;;  %v7874_v52 = vadd.f32 %v7663_v59, %v987_v57  ;;  %v992_v41 = vmul.f32 %v7646_v54, %v12444_v43  ;;  %v6450_v39 = vld [vmem:[%s6613_s18 + $0x60] sm:$0xff]  ;;  %v12447_v56 = vld [vmem:[#allocation97_spill] sm:$0xff] }
 0x22d   : > { %12439 = vst [vmem:[#allocation86_spill] sm:$0xff] %v7863_v38  ;;  %12440 = vst [vmem:[#allocation89_spill] sm:$0xff] %v7866_v51  ;;  %2024 = vperm.xlu1 %6437, %v6449_v42   ;;  %2036 = vperm.xlu0 %6438, %v6450_v39   ;;  %v7881_v49 = vadd.f32 %v7663_v59, %v986_v40  ;;  %v7884_v47 = vadd.f32 %v7663_v59, %v989_v53  ;;  %v12448_v51 = vld [vmem:[#allocation98_spill] sm:$0xff]  ;;  %v12452_v39 = vld [vmem:[#allocation101_spill] sm:$0xff] }
 0x22e   : > { %12442 = vst [vmem:[#allocation90_spill] sm:$0xff] %v7871_v44  ;;  %12443 = vst [vmem:[#allocation93_spill] sm:$0xff] %v7874_v52  ;;  %v995_v0 = vmul.f32 %v7646_v54, %v12447_v56  ;;  %v994_v57 = vmul.f32 %v7646_v54, %v12448_v51  ;;  %v7891_v43 = vadd.f32 %v7663_v59, %v988_v35  ;;  %v7903_v52 = vpop.permute.xlu0 %1524  ;;  %v12456_v51 = vld [vmem:[#allocation102_spill] sm:$0xff] }
 0x22f   : > { %12445 = vst [vmem:[#allocation94_spill] sm:$0xff] %v7881_v49  ;;  %12446 = vst [vmem:[#allocation159_spill] sm:$0xff] %v7884_v47  ;;  %v7894_v42 = vadd.f32 %v7663_v59, %v991_v48  ;;  %v7897_v40 = vadd.f32 %v7663_v59, %v990_v37  ;;  %v997_v53 = vmul.f32 %v7646_v54, %v12452_v39  ;;  %v7901_v47 = vpop.permute.xlu1 %1520  ;;  %v12460_v39 = vld [vmem:[#allocation109_spill] sm:$0xff]  ;;  %v12461_v49 = vld [vmem:[#allocation110_spill] sm:$0xff] }
 0x230   : > { %12449 = vst [vmem:[#allocation97_spill] sm:$0xff] %v7891_v43  ;;  %12453 = vst [vmem:[#allocation101_spill] sm:$0xff] %v7901_v47  ;;  %v7906_v56 = vadd.f32 %v7663_v59, %v993_v50  ;;  %v996_v35 = vmul.f32 %v7646_v54, %v12456_v51  ;;  %v12457_v43 = vld [vmem:[#allocation105_spill] sm:$0xff]  ;;  %v1001_v47 = vmul.f32 %v7646_v54, %v12460_v39  ;;  %v12468_v44 = vld [vmem:[#allocation118_spill] sm:$0xff] }
 0x231   : > { %12450 = vst [vmem:[#allocation98_spill] sm:$0xff] %v7894_v42  ;;  %12451 = vst [vmem:[#allocation160_spill] sm:$0xff] %v7897_v40  ;;  %v999_v48 = vmul.f32 %v7646_v54, %v12457_v43  ;;  %v12458_v42 = vld [vmem:[#allocation106_spill] sm:$0xff]  ;;  %v7915_v40 = vadd.f32 %v7663_v59, %v992_v41  ;;  %v6451_v50 = vld [vmem:[%s6613_s18 + $0x58] sm:$0xff]  ;;  %v7924_v51 = vadd.f32 %v7663_v59, %v995_v0 }
 0x232   : > { %12454 = vst [vmem:[#allocation161_spill] sm:$0xff] %v7903_v52  ;;  %12455 = vst [vmem:[#allocation162_spill] sm:$0xff] %v7906_v56  ;;  %v998_v37 = vmul.f32 %v7646_v54, %v12458_v42  ;;  %v1000_v52 = vmul.f32 %v7646_v54, %v12461_v49  ;;  %2032 = vperm.xlu1 %6437, %v6451_v50   ;;  %v6452_v56 = vld [vmem:[%s6613_s18 + $0x70] sm:$0xff]  ;;  %v7927_v43 = vadd.f32 %v7663_v59, %v994_v57  ;;  %v12464_v42 = vld [vmem:[#allocation113_spill] sm:$0xff]  ;;  %v7944_v38 = vpop.permute.xlu0 %1532 }
 0x233   : > { %12459 = vst [vmem:[#allocation102_spill] sm:$0xff] %v7915_v40  ;;  %2044 = vperm.xlu0 %6438, %v6452_v56   ;;  %12462 = vst [vmem:[#allocation105_spill] sm:$0xff] %v7924_v51  ;;  %v1003_v41 = vmul.f32 %v7646_v54, %v12464_v42  ;;  %v12465_v40 = vld [vmem:[#allocation114_spill] sm:$0xff]  ;;  %v7934_v49 = vadd.f32 %v7663_v59, %v997_v53  ;;  %v12467_v50 = vld [vmem:[#allocation117_spill] sm:$0xff]  ;;  %v1004_v0 = vmul.f32 %v7646_v54, %v12468_v44 }
 0x234   : > { %12463 = vst [vmem:[#allocation106_spill] sm:$0xff] %v7927_v43  ;;  %v1002_v39 = vmul.f32 %v7646_v54, %v12465_v40  ;;  %v1005_v56 = vmul.f32 %v7646_v54, %v12467_v50  ;;  %v12469_v51 = vld [vmem:[#allocation121_spill] sm:$0xff]  ;;  %v7942_v43 = vpop.permute.xlu1 %1528  ;;  %12471 = vst [vmem:[#allocation113_spill] sm:$0xff] %v7944_v38  ;;  %v7947_v42 = vadd.f32 %v7663_v59, %v996_v35  ;;  %v12473_v50 = vld [vmem:[#allocation122_spill] sm:$0xff] }
 0x235   : > { %12466 = vst [vmem:[#allocation109_spill] sm:$0xff] %v7934_v49  ;;  %v1007_v57 = vmul.f32 %v7646_v54, %v12469_v51  ;;  %12470 = vst [vmem:[#allocation110_spill] sm:$0xff] %v7942_v43  ;;  %v7950_v40 = vadd.f32 %v7663_v59, %v999_v48  ;;  %v7953_v53 = vadd.f32 %v7663_v59, %v998_v37  ;;  %v12476_v43 = vld [vmem:[#allocation125_spill] sm:$0xff]  ;;  %v6453_v35 = vld [vmem:[%s6613_s18 + $0x68] sm:$0xff] }
 0x236   : > { %12472 = vst [vmem:[#allocation114_spill] sm:$0xff] %v7947_v42  ;;  %v1006_v49 = vmul.f32 %v7646_v54, %v12473_v50  ;;  %v7958_v44 = vadd.f32 %v7663_v59, %v1001_v47  ;;  %v7961_v51 = vadd.f32 %v7663_v59, %v1000_v52  ;;  %v1009_v38 = vmul.f32 %v7646_v54, %v12476_v43  ;;  %v6454_v42 = vld [vmem:[%s6613_s18 + $0x80] sm:$0xff] }
 0x237   : > { %2040 = vperm.xlu1 %6437, %v6453_v35   ;;  %2052 = vperm.xlu0 %6438, %v6454_v42   ;;  %v7968_v48 = vadd.f32 %v7663_v59, %v1003_v41  ;;  %v7971_v37 = vadd.f32 %v7663_v59, %v1002_v39  ;;  %v12479_v50 = vld [vmem:[#allocation126_spill] sm:$0xff]  ;;  %v7981_v43 = vadd.f32 %v7663_v59, %v1004_v0 }
 0x238   : > { %12474 = vst [vmem:[#allocation117_spill] sm:$0xff] %v7958_v44  ;;  %12475 = vst [vmem:[#allocation118_spill] sm:$0xff] %v7961_v51  ;;  %v1008_v47 = vmul.f32 %v7646_v54, %v12479_v50  ;;  %v12480_v44 = vld [vmem:[#allocation129_spill] sm:$0xff]  ;;  %v7978_v51 = vadd.f32 %v7663_v59, %v1005_v56  ;;  %v7984_v41 = vadd.f32 %v7663_v59, %v1007_v57  ;;  %v12484_v42 = vld [vmem:[#allocation130_spill] sm:$0xff]  ;;  %v7988_v35 = vpop.permute.xlu1 %1536  ;;  %v7990_v50 = vpop.permute.xlu0 %1540 }
 0x239   : > { %12477 = vst [vmem:[#allocation121_spill] sm:$0xff] %v7968_v48  ;;  %12478 = vst [vmem:[#allocation122_spill] sm:$0xff] %v7971_v37  ;;  %v1011_v52 = vmul.f32 %v7646_v54, %v12480_v44  ;;  %v1010_v39 = vmul.f32 %v7646_v54, %v12484_v42  ;;  %v7993_v48 = vadd.f32 %v7663_v59, %v1006_v49  ;;  %v12488_v44 = vld [vmem:[#allocation132_spill] sm:$0xff]  ;;  %v12491_v42 = vld [vmem:[#allocation135_spill] sm:$0xff]  ;;  %v1729_v49 = vsub.s32 1, %v7625_v45 }
 0x23a   : > { %12481 = vst [vmem:[#allocation125_spill] sm:$0xff] %v7978_v51  ;;  %12482 = vst [vmem:[#allocation126_spill] sm:$0xff] %v7981_v43  ;;  %v1013_v56 = vmul.f32 %v7646_v54, %v12488_v44  ;;  %v12489_v51 = vld [vmem:[#allocation133_spill] sm:$0xff]  ;;  %v12490_v43 = vld [vmem:[#allocation134_spill] sm:$0xff] }
 0x23b   : > { %12483 = vst [vmem:[#allocation129_spill] sm:$0xff] %v7984_v41  ;;  %12485 = vst [vmem:[#allocation130_spill] sm:$0xff] %v7988_v35  ;;  %v1012_v0 = vmul.f32 %v7646_v54, %v12489_v51  ;;  %v1015_v57 = vmul.f32 %v7646_v54, %v12490_v43  ;;  %v8002_v41 = vadd.f32 %v7663_v59, %v1009_v38  ;;  %v12492_v37 = vld [vmem:[#allocation136_spill] sm:$0xff] }
 0x23c   : > { %12486 = vst [vmem:[#allocation163_spill] sm:$0xff] %v7990_v50  ;;  %12487 = vst [vmem:[#allocation164_spill] sm:$0xff] %v7993_v48  ;;  %v1014_v35 = vmul.f32 %v7646_v54, %v12491_v42  ;;  %v1017_v50 = vmul.f32 %v7646_v54, %v12492_v37  ;;  %v6455_v48 = vld [vmem:[%s6613_s18 + $0x78] sm:$0xff]  ;;  %v6456_v44 = vld [vmem:[%s6613_s18 + $0x90] sm:$0xff]  ;;  %v8012_v51 = vadd.f32 %v7663_v59, %v1008_v47 }
 0x23d   : > { %2048 = vperm.xlu1 %6437, %v6455_v48   ;;  %2060 = vperm.xlu0 %6438, %v6456_v44   ;;  %v8015_v43 = vadd.f32 %v7663_v59, %v1011_v52  ;;  %v1016_v38 = vmul.f32 %v7646_v54, %v7257_v55  ;;  %v1019_v42 = vmul.f32 %v7646_v54, %v7261_v61  ;;  %v8030_v44 = vpop.permute.xlu1 %1544 }
 0x23e   : > { %v8022_v37 = vadd.f32 %v7663_v59, %v1010_v39  ;;  %v1018_v48 = vmul.f32 %v7646_v54, %v7263_v63  ;;  %v1021_v47 = vmul.f32 %v7646_v54, %v7267_v58  ;;  %v1020_v52 = vmul.f32 %v7646_v54, %v7269_v62  ;;  %12494 = vst [vmem:[#allocation133_spill] sm:$0xff] %v8030_v44  ;;  %v6458_v44 = vld [vmem:[%s6613_s18 + $0xa0] sm:$0xff] }
 0x23f   : > { %12493 = vst [vmem:[#allocation132_spill] sm:$0xff] %v8015_v43  ;;  %v8032_v43 = vpop.permute.xlu0 %1548  ;;  %v8035_v55 = vadd.f32 %v7663_v59, %v1013_v56  ;;  %v8038_v61 = vadd.f32 %v7663_v59, %v1012_v0  ;;  %v8041_v39 = vadd.f32 %v7663_v59, %v1015_v57  ;;  %v1023_v63 = vmul.f32 %v7646_v54, %v7273_v60  ;;  %v6457_v56 = vld [vmem:[%s6613_s18 + $0x88] sm:$0xff] }
 0x240   : > { %12495 = vst [vmem:[#allocation134_spill] sm:$0xff] %v8032_v43  ;;  %v8046_v58 = vadd.f32 %v7663_v59, %v1014_v35  ;;  %v8049_v62 = vadd.f32 %v7663_v59, %v1017_v50  ;;  %v8052_v43 = vrot.slane %v7639_v46, %v1729_v49  ;;  %v8057_v0 = vadd.f32 %v7663_v59, %v1016_v38 }
 0x241   : > { %2056 = vperm.xlu1 %6437, %v6457_v56   ;;  %2068 = vperm.xlu0 %6438, %v6458_v44   ;;  %v8060_v57 = vadd.f32 %v7663_v59, %v1019_v42  ;;  %v1022_v60 = vmul.f32 %v7646_v54, %v7275_v4  ;;  %v1025_v35 = vmul.f32 %v7646_v54, %v7279_v2  ;;  %v8077_v44 = vpop.permute.xlu1 %1552 }
 0x242   : > { %12496 = vst [vmem:[#allocation135_spill] sm:$0xff] %v8052_v43  ;;  %v8067_v50 = vadd.f32 %v7663_v59, %v1018_v48  ;;  %v8070_v49 = vadd.f32 %v7663_v59, %v1021_v47  ;;  %v8073_v38 = vadd.f32 %v7663_v59, %v1020_v52  ;;  %v1024_v42 = vmul.f32 %v7646_v54, %v7281_v1 }
 0x243   : > { %12497 = vst [vmem:[#allocation136_spill] sm:$0xff] %v8077_v44  ;;  %v8079_v56 = vpop.permute.xlu0 %1556  ;;  %v8082_v4 = vadd.f32 %v7663_v59, %v1023_v63  ;;  %v1027_v2 = vmul.f32 %v7646_v54, %v7285_v3  ;;  %v1026_v48 = vmul.f32 %v7646_v54, %v7287_v6  ;;  %v1029_v47 = vmul.f32 %v7646_v54, %v7291_v5  ;;  %v6459_v63 = vld [vmem:[%s6613_s18 + $0x98] sm:$0xff]  ;;  %v6460_v44 = vld [vmem:[%s6613_s18 + $0xb0] sm:$0xff] }
 0x244   : > { %12498 = vst [vmem:[#allocation165_spill] sm:$0xff] %v8079_v56  ;;  %v1028_v52 = vmul.f32 %v7646_v54, %v7293_v8  ;;  %v1031_v1 = vmul.f32 %v7646_v54, %v7297_v7  ;;  %v1030_v56 = vmul.f32 %v7646_v54, %v7299_v10  ;;  %v8099_v3 = vadd.f32 %v7663_v59, %v1022_v60 }
 0x245   : > { %2064 = vperm.xlu1 %6437, %v6459_v63   ;;  %2076 = vperm.xlu0 %6438, %v6460_v44   ;;  %v8102_v6 = vadd.f32 %v7663_v59, %v1025_v35  ;;  %v1033_v5 = vmul.f32 %v7646_v54, %v7303_v9  ;;  %v1032_v8 = vmul.f32 %v7646_v54, %v7305_v12  ;;  %v8117_v44 = vpop.permute.xlu1 %1560 }
 0x246   : > { %v8109_v7 = vadd.f32 %v7663_v59, %v1024_v42  ;;  %v1035_v10 = vmul.f32 %v7646_v54, %v7309_v11  ;;  %v1034_v60 = vmul.f32 %v7646_v54, %v7311_v14  ;;  %v1037_v35 = vmul.f32 %v7646_v54, %v7315_v13  ;;  %12499 = vst [vmem:[#allocation166_spill] sm:$0xff] %v8117_v44  ;;  %v6462_v44 = vld [vmem:[%s6613_s18 + $0xc0] sm:$0xff] }
 0x247   : > { %v8119_v63 = vpop.permute.xlu0 %1564  ;;  %v8122_v9 = vadd.f32 %v7663_v59, %v1027_v2  ;;  %v8125_v12 = vadd.f32 %v7663_v59, %v1026_v48  ;;  %v8128_v42 = vadd.f32 %v7663_v59, %v1029_v47  ;;  %v1036_v11 = vmul.f32 %v7646_v54, %v7317_v16  ;;  %v6461_v2 = vld [vmem:[%s6613_s18 + $0xa8] sm:$0xff] }
 0x248   : > { %12500 = vst [vmem:[#allocation167_spill] sm:$0xff] %v8119_v63  ;;  %v8133_v14 = vadd.f32 %v7663_v59, %v1028_v52  ;;  %v8136_v13 = vadd.f32 %v7663_v59, %v1031_v1  ;;  %v8139_v63 = vadd.f32 %v7663_v59, %v1030_v56  ;;  %v8144_v48 = vadd.f32 %v7663_v59, %v1033_v5 }
 0x249   : > { %2072 = vperm.xlu1 %6437, %v6461_v2   ;;  %2084 = vperm.xlu0 %6438, %v6462_v44   ;;  %v8147_v47 = vadd.f32 %v7663_v59, %v1032_v8  ;;  %v1039_v16 = vmul.f32 %v7646_v54, %v7321_v15  ;;  %v1038_v52 = vmul.f32 %v7646_v54, %v7323_v18  ;;  %v8164_v44 = vpop.permute.xlu1 %1568 }
 0x24a   : > { %v8154_v56 = vadd.f32 %v7663_v59, %v1035_v10  ;;  %v8157_v1 = vadd.f32 %v7663_v59, %v1034_v60  ;;  %v8160_v5 = vadd.f32 %v7663_v59, %v1037_v35  ;;  %v1041_v8 = vmul.f32 %v7646_v54, %v7327_v17 }
 0x24b   : > { %v8166_v2 = vpop.permute.xlu0 %1572  ;;  %v8169_v15 = vadd.f32 %v7663_v59, %v1036_v11  ;;  %v1040_v18 = vmul.f32 %v7646_v54, %v7329_v20  ;;  %v1043_v10 = vmul.f32 %v7646_v54, %v7333_v19  ;;  %v1042_v60 = vmul.f32 %v7646_v54, %v7335_v22  ;;  %v6463_v11 = vld [vmem:[%s6613_s18 + $0xb8] sm:$0xff] }
 0x24c   : > { %12501 = vst [vmem:[#allocation168_spill] sm:$0xff] %v8154_v56  ;;  %12502 = vst [vmem:[#allocation169_spill] sm:$0xff] %v8160_v5  ;;  %v1045_v35 = vmul.f32 %v7646_v54, %v7339_v21  ;;  %v1044_v17 = vmul.f32 %v7646_v54, %v7341_v24  ;;  %v1047_v5 = vmul.f32 %v7646_v54, %v7345_v23 }
 0x24d   : > { %12503 = vst [vmem:[#allocation170_spill] sm:$0xff] %v8169_v15  ;;  %2080 = vperm.xlu1 %6437, %v6463_v11   ;;  %v6464_v15 = vld [vmem:[%s6613_s18 + $0xd0] sm:$0xff]  ;;  %v8186_v20 = vadd.f32 %v7663_v59, %v1039_v16  ;;  %v8189_v19 = vadd.f32 %v7663_v59, %v1038_v52  ;;  %v1046_v22 = vmul.f32 %v7646_v54, %v7347_v26 }
 0x24e   : > { %2092 = vperm.xlu0 %6438, %v6464_v15   ;;  %v1049_v21 = vmul.f32 %v7646_v54, %v7351_v25  ;;  %v8196_v24 = vadd.f32 %v7663_v59, %v1041_v8  ;;  %v1048_v23 = vmul.f32 %v7646_v54, %v7353_v28  ;;  %v1051_v16 = vmul.f32 %v7646_v54, %v7357_v27  ;;  %v8204_v15 = vpop.permute.xlu1 %1576 }
 0x24f   : > { %12504 = vst [vmem:[#allocation171_spill] sm:$0xff] %v8186_v20  ;;  %12505 = vst [vmem:[#allocation172_spill] sm:$0xff] %v8189_v19  ;;  %v1050_v52 = vmul.f32 %v7646_v54, %v7359_v30  ;;  %v8206_v11 = vpop.permute.xlu0 %1580  ;;  %v8209_v26 = vadd.f32 %v7663_v59, %v1040_v18  ;;  %v8212_v25 = vadd.f32 %v7663_v59, %v1043_v10  ;;  %v6465_v18 = vld [vmem:[%s6613_s18 + $0xc8] sm:$0xff] }
 0x250   : > { %12506 = vst [vmem:[#allocation173_spill] sm:$0xff] %v8196_v24  ;;  %v8215_v8 = vadd.f32 %v7663_v59, %v1042_v60  ;;  %v1053_v28 = vmul.f32 %v7646_v54, %v7363_v29  ;;  %v8220_v27 = vadd.f32 %v7663_v59, %v1045_v35  ;;  %v8223_v30 = vadd.f32 %v7663_v59, %v1044_v17 }
 0x251   : > { %12507 = vst [vmem:[#allocation174_spill] sm:$0xff] %v8209_v26  ;;  %12508 = vst [vmem:[#allocation175_spill] sm:$0xff] %v8212_v25  ;;  %v8226_v24 = vadd.f32 %v7663_v59, %v1047_v5  ;;  %2088 = vperm.xlu1 %6437, %v6465_v18   ;;  %v6466_v26 = vld [vmem:[%s6613_s18 + $0xe0] sm:$0xff]  ;;  %v8231_v10 = vadd.f32 %v7663_v59, %v1046_v22  ;;  %v8234_v60 = vadd.f32 %v7663_v59, %v1049_v21 }
 0x252   : > { %12509 = vst [vmem:[#allocation176_spill] sm:$0xff] %v8215_v8  ;;  %12510 = vst [vmem:[#allocation177_spill] sm:$0xff] %v8220_v27  ;;  %2100 = vperm.xlu0 %6438, %v6466_v26   ;;  %v1052_v29 = vmul.f32 %v7646_v54, %v7365_v32  ;;  %v1055_v35 = vmul.f32 %v7646_v54, %v7369_v31  ;;  %v8241_v5 = vadd.f32 %v7663_v59, %v1048_v23  ;;  %v8251_v26 = vpop.permute.xlu1 %1584  ;;  %v12529_v27 = vld [vmem:[#allocation144_spill] sm:$0xff] }
 0x253   : > { %12511 = vst [vmem:[#allocation178_spill] sm:$0xff] %v8223_v30  ;;  %12512 = vst [vmem:[#allocation179_spill] sm:$0xff] %v8226_v24  ;;  %v8244_v17 = vadd.f32 %v7663_v59, %v1051_v16  ;;  %v8247_v22 = vadd.f32 %v7663_v59, %v1050_v52  ;;  %v1054_v21 = vmul.f32 %v7646_v54, %v7371_v34  ;;  %v8253_v18 = vpop.permute.xlu0 %1588  ;;  %v12519_v16 = vld [vmem:[#allocation137_spill] sm:$0xff]  ;;  %v12521_v34 = vld [vmem:[#allocation139_spill] sm:$0xff] }
 0x254   : > { %12513 = vst [vmem:[#allocation180_spill] sm:$0xff] %v8231_v10  ;;  %12514 = vst [vmem:[#allocation181_spill] sm:$0xff] %v8234_v60  ;;  %v8256_v32 = vadd.f32 %v7663_v59, %v1053_v28  ;;  %v1057_v31 = vmul.f32 %v7646_v54, %v7375_v33  ;;  %v1056_v23 = vmul.f32 %v7646_v54, %v7377_v36  ;;  %v6467_v28 = vld [vmem:[%s6613_s18 + $0xd8] sm:$0xff]  ;;  %v12526_v10 = vld [vmem:[#allocation142_spill] sm:$0xff] }
 0x255   : > { %12515 = vst [vmem:[#allocation182_spill] sm:$0xff] %v8241_v5  ;;  %12516 = vst [vmem:[#allocation183_spill] sm:$0xff] %v8244_v17  ;;  %v1059_v52 = vmul.f32 %v7646_v54, %v12519_v16  ;;  %v12520_v17 = vld [vmem:[#allocation138_spill] sm:$0xff]  ;;  %v1061_v60 = vmul.f32 %v7646_v54, %v12521_v34  ;;  %v12522_v5 = vld [vmem:[#allocation140_spill] sm:$0xff]  ;;  %2096 = vperm.xlu1 %6437, %v6467_v28   ;;  %v8273_v33 = vadd.f32 %v7663_v59, %v1052_v29 }
 0x256   : > { %12517 = vst [vmem:[#allocation184_spill] sm:$0xff] %v8247_v22  ;;  %12518 = vst [vmem:[#allocation185_spill] sm:$0xff] %v8256_v32  ;;  %v1058_v22 = vmul.f32 %v7646_v54, %v12520_v17  ;;  %v1060_v24 = vmul.f32 %v7646_v54, %v12522_v5  ;;  %v6468_v32 = vld [vmem:[%s6613_s18 + $0xf0] sm:$0xff]  ;;  %v8276_v36 = vadd.f32 %v7663_v59, %v1055_v35  ;;  %v12525_v16 = vld [vmem:[#allocation141_spill] sm:$0xff] }
 0x257   : > { %2108 = vperm.xlu0 %6438, %v6468_v32   ;;  %12523 = vst [vmem:[#allocation137_spill] sm:$0xff] %v8273_v33  ;;  %v1063_v17 = vmul.f32 %v7646_v54, %v12525_v16  ;;  %v1062_v34 = vmul.f32 %v7646_v54, %v12526_v10  ;;  %v8283_v5 = vadd.f32 %v7663_v59, %v1054_v21  ;;  %v12528_v28 = vld [vmem:[#allocation143_spill] sm:$0xff]  ;;  %v12530_v33 = vld [vmem:[#allocation145_spill] sm:$0xff]  ;;  %v8293_v30 = vpop.permute.xlu0 %1596 }
 0x258   : > { %12524 = vst [vmem:[#allocation138_spill] sm:$0xff] %v8276_v36  ;;  %v1065_v32 = vmul.f32 %v7646_v54, %v12528_v28  ;;  %v1064_v29 = vmul.f32 %v7646_v54, %v12529_v27  ;;  %v1067_v35 = vmul.f32 %v7646_v54, %v12530_v33  ;;  %v8291_v36 = vpop.permute.xlu1 %1592  ;;  %12532 = vst [vmem:[#allocation141_spill] sm:$0xff] %v8293_v30  ;;  %v12536_v28 = vld [vmem:[#allocation146_spill] sm:$0xff] }
 0x259   : > { %12527 = vst [vmem:[#allocation139_spill] sm:$0xff] %v8283_v5  ;;  %12531 = vst [vmem:[#allocation140_spill] sm:$0xff] %v8291_v36  ;;  %v8296_v16 = vadd.f32 %v7663_v59, %v1057_v31  ;;  %v8299_v10 = vadd.f32 %v7663_v59, %v1056_v23  ;;  %v8302_v21 = vadd.f32 %v7663_v59, %v1059_v52  ;;  %v6469_v31 = vld [vmem:[%s6613_s18 + $0xe8] sm:$0xff] }
 0x25a   : > { %v1066_v5 = vmul.f32 %v7646_v54, %v12536_v28  ;;  %v8307_v27 = vadd.f32 %v7663_v59, %v1058_v22  ;;  %v8310_v33 = vadd.f32 %v7663_v59, %v1061_v60  ;;  %v8313_v30 = vadd.f32 %v7663_v59, %v1060_v24  ;;  %2104 = vperm.xlu1 %6437, %v6469_v31   ;;  %v12542_v28 = vld [vmem:[#allocation147_spill] sm:$0xff] }
 0x25b   : > { %12533 = vst [vmem:[#allocation142_spill] sm:$0xff] %v8296_v16  ;;  %12534 = vst [vmem:[#allocation143_spill] sm:$0xff] %v8299_v10  ;;  %v6470_v16 = vld [vmem:[%s6613_s18 + $0x100] sm:$0xff]  ;;  %v8318_v23 = vadd.f32 %v7663_v59, %v1063_v17  ;;  %v8321_v52 = vadd.f32 %v7663_v59, %v1062_v34  ;;  %v1069_v22 = vmul.f32 %v7646_v54, %v12542_v28 }
 0x25c   : > { %12535 = vst [vmem:[#allocation144_spill] sm:$0xff] %v8302_v21  ;;  %12537 = vst [vmem:[#allocation145_spill] sm:$0xff] %v8307_v27  ;;  %2116 = vperm.xlu0 %6438, %v6470_v16   ;;  %v12543_v21 = vld [vmem:[#allocation148_spill] sm:$0xff]  ;;  %v8328_v24 = vadd.f32 %v7663_v59, %v1065_v32  ;;  %v8331_v31 = vadd.f32 %v7663_v59, %v1064_v29  ;;  %v8334_v17 = vadd.f32 %v7663_v59, %v1067_v35  ;;  %v12547_v16 = vld [vmem:[#allocation149_spill] sm:$0xff] }
 0x25d   : > { %12538 = vst [vmem:[#allocation146_spill] sm:$0xff] %v8310_v33  ;;  %12539 = vst [vmem:[#allocation186_spill] sm:$0xff] %v8313_v30  ;;  %v1068_v60 = vmul.f32 %v7646_v54, %v12543_v21  ;;  %v1071_v34 = vmul.f32 %v7646_v54, %v12547_v16  ;;  %v8343_v28 = vadd.f32 %v7663_v59, %v1066_v5  ;;  %v12551_v21 = vld [vmem:[#allocation150_spill] sm:$0xff]  ;;  %v12555_v16 = vld [vmem:[#allocation3_spill] sm:$0xff] }
 0x25e   : > { %12540 = vst [vmem:[#allocation187_spill] sm:$0xff] %v8318_v23  ;;  %12541 = vst [vmem:[#allocation188_spill] sm:$0xff] %v8321_v52  ;;  %v8338_v23 = vpop.permute.xlu1 %1600  ;;  %v8340_v52 = vpop.permute.xlu0 %1604  ;;  %v1070_v32 = vmul.f32 %v7646_v54, %v12551_v21  ;;  %v1074_v30 = vmul.f32 %v7646_v54, %v12555_v16  ;;  %v12556_v27 = vld [vmem:[#allocation6_spill] sm:$0xff]  ;;  %v6471_v5 = vld [vmem:[%s6613_s18 + $0xf8] sm:$0xff]  ;;  %v8360_v21 = vadd.f32 %v7663_v59, %v1069_v22 }
 0x25f   : > { %12544 = vst [vmem:[#allocation147_spill] sm:$0xff] %v8328_v24  ;;  %12545 = vst [vmem:[#allocation148_spill] sm:$0xff] %v8331_v31  ;;  %v12552_v24 = vld [vmem:[#allocation2_spill] sm:$0xff]  ;;  %v12553_v31 = vld [vmem:[#allocation151_spill] sm:$0xff]  ;;  %v1077_v10 = vmul.f32 %v7646_v54, %v12556_v27  ;;  %2112 = vperm.xlu1 %6437, %v6471_v5   ;;  %v8370_v27 = vadd.f32 %v7663_v59, %v1071_v34 }
 0x260   : > { %12546 = vst [vmem:[#allocation189_spill] sm:$0xff] %v8334_v17  ;;  %12548 = vst [vmem:[#allocation149_spill] sm:$0xff] %v8338_v23  ;;  %v1073_v29 = vmul.f32 %v7646_v54, %v12552_v24  ;;  %v1072_v35 = vmul.f32 %v7646_v54, %v12553_v31  ;;  %v12554_v17 = vld [vmem:[#allocation4_spill] sm:$0xff]  ;;  %v8363_v24 = vadd.f32 %v7663_v59, %v1068_v60  ;;  %v12559_v31 = vld [vmem:[#allocation5_spill] sm:$0xff] }
 0x261   : > { %12549 = vst [vmem:[#allocation190_spill] sm:$0xff] %v8340_v52  ;;  %12550 = vst [vmem:[#allocation191_spill] sm:$0xff] %v8343_v28  ;;  %v1075_v33 = vmul.f32 %v7646_v54, %v12554_v17  ;;  %v6472_v28 = vld [vmem:[%s6613_s18 + $0x110] sm:$0xff]  ;;  %v1076_v17 = vmul.f32 %v7646_v54, %v12559_v31  ;;  %v12560_v52 = vld [vmem:[#allocation10_spill] sm:$0xff]  ;;  %v8383_v31 = vadd.f32 %v7663_v59, %v1070_v32 }
 0x262   : > { %2124 = vperm.xlu0 %6438, %v6472_v28   ;;  %12557 = vst [vmem:[#allocation150_spill] sm:$0xff] %v8360_v21  ;;  %12558 = vst [vmem:[#allocation2_spill] sm:$0xff] %v8363_v24  ;;  %v1732_v16 = vmul.f32 %v8052_v43, %v12560_v52  ;;  %v12562_v5 = vld [vmem:[#allocation9_spill] sm:$0xff]  ;;  %v12563_v23 = vld [vmem:[#allocation12_spill] sm:$0xff]  ;;  %v8378_v24 = vpop.permute.xlu1 %1608  ;;  %v8380_v36 = vpop.permute.xlu0 %1612  ;;  %v8386_v52 = vadd.f32 %v7663_v59, %v1073_v29  ;;  %v8389_v34 = vadd.f32 %v7663_v59, %v1072_v35 }
 0x263   : > { %12561 = vst [vmem:[#allocation151_spill] sm:$0xff] %v8370_v27  ;;  %v1731_v28 = vmul.f32 %v8052_v43, %v12562_v5  ;;  %v1733_v22 = vmul.f32 %v8052_v43, %v12563_v23  ;;  %v12564_v21 = vld [vmem:[#allocation11_spill] sm:$0xff]  ;;  %12565 = vst [vmem:[#allocation4_spill] sm:$0xff] %v8378_v24  ;;  %v12570_v5 = vld [vmem:[#allocation16_spill] sm:$0xff]  ;;  %v8394_v23 = vadd.f32 %v7663_v59, %v1075_v33 }
 0x264   : > { %v1734_v60 = vmul.f32 %v8052_v43, %v12564_v21  ;;  %12566 = vst [vmem:[#allocation3_spill] sm:$0xff] %v8380_v36  ;;  %12567 = vst [vmem:[#allocation6_spill] sm:$0xff] %v8383_v31  ;;  %v1735_v27 = vmul.f32 %v8052_v43, %v12570_v5  ;;  %v8397_v21 = vadd.f32 %v7663_v59, %v1074_v30  ;;  %v6473_v32 = vld [vmem:[%s6613_s18 + $0x108] sm:$0xff]  ;;  %v6474_v31 = vld [vmem:[%s6613_s18 + $0x120] sm:$0xff] }
 0x265   : > { %12568 = vst [vmem:[#allocation5_spill] sm:$0xff] %v8386_v52  ;;  %12569 = vst [vmem:[#allocation10_spill] sm:$0xff] %v8389_v34  ;;  %v8400_v36 = vadd.f32 %v7663_v59, %v1077_v10  ;;  %2120 = vperm.xlu1 %6437, %v6473_v32   ;;  %v8405_v29 = vadd.f32 %v7663_v59, %v1076_v17  ;;  %v12575_v35 = vld [vmem:[#allocation8_spill] sm:$0xff]  ;;  %v12577_v5 = vld [vmem:[#allocation7_spill] sm:$0xff] }
 0x266   : > { %12571 = vst [vmem:[#allocation9_spill] sm:$0xff] %v8394_v23  ;;  %12572 = vst [vmem:[#allocation12_spill] sm:$0xff] %v8397_v21  ;;  %2132 = vperm.xlu0 %6438, %v6474_v31   ;;  %v8409_v52 = vmul.f32 %v7646_v54, %v12575_v35  ;;  %v8413_v33 = vmul.f32 %v7646_v54, %v12577_v5  ;;  %v12579_v30 = vld [vmem:[#allocation22_spill] sm:$0xff]  ;;  %v12583_v31 = vld [vmem:[#allocation17_spill] sm:$0xff]  ;;  %v8431_v54 = vpop.permute.xlu0 %1620 }
 0x267   : > { %12573 = vst [vmem:[#allocation11_spill] sm:$0xff] %v8400_v36  ;;  %12574 = vst [vmem:[#allocation16_spill] sm:$0xff] %v8405_v29  ;;  %v8416_v23 = vadd.f32 %v1732_v16, %v12579_v30  ;;  %v12581_v10 = vld [vmem:[#allocation18_spill] sm:$0xff]  ;;  %v8422_v36 = vadd.f32 %v1733_v22, %v12583_v31  ;;  %v12585_v59 = vld [vmem:[#allocation21_spill] sm:$0xff]  ;;  %v8429_v29 = vpop.permute.xlu1 %1616 }
 0x268   : > { %12576 = vst [vmem:[#allocation8_spill] sm:$0xff] %v8409_v52  ;;  %12578 = vst [vmem:[#allocation7_spill] sm:$0xff] %v8413_v33  ;;  %v8419_v32 = vadd.f32 %v1731_v28, %v12581_v10  ;;  %v8425_v17 = vadd.f32 %v1734_v60, %v12585_v59  ;;  %v12587_v35 = vld [vmem:[#allocation15_spill] sm:$0xff]  ;;  %v12590_v5 = vld [vmem:[#allocation26_spill] sm:$0xff] }
 0x269   : > { %12580 = vst [vmem:[#allocation22_spill] sm:$0xff] %v8416_v23  ;;  %12584 = vst [vmem:[#allocation17_spill] sm:$0xff] %v8422_v36  ;;  %v1736_v52 = vmul.f32 %v8052_v43, %v12587_v35  ;;  %v8434_v16 = vadd.f32 %v1735_v27, %v12590_v5  ;;  %v12592_v30 = vld [vmem:[#allocation20_spill] sm:$0xff]  ;;  %v12593_v10 = vld [vmem:[#allocation19_spill] sm:$0xff] }
 0x26a   : > { %12582 = vst [vmem:[#allocation18_spill] sm:$0xff] %v8419_v32  ;;  %12586 = vst [vmem:[#allocation21_spill] sm:$0xff] %v8425_v17  ;;  %v1737_v28 = vmul.f32 %v8052_v43, %v12592_v30  ;;  %v1738_v22 = vmul.f32 %v8052_v43, %v12593_v10  ;;  %v12594_v31 = vld [vmem:[#allocation24_spill] sm:$0xff]  ;;  %v12595_v59 = vld [vmem:[#allocation23_spill] sm:$0xff]  ;;  %v8469_v25 = vpop.permute.xlu0 %1628 }
 0x26b   : > { %12588 = vst [vmem:[#allocation15_spill] sm:$0xff] %v8429_v29  ;;  %12589 = vst [vmem:[#allocation192_spill] sm:$0xff] %v8431_v54  ;;  %v1739_v60 = vmul.f32 %v8052_v43, %v12594_v31  ;;  %v1740_v33 = vmul.f32 %v8052_v43, %v12595_v59  ;;  %v12596_v35 = vld [vmem:[#allocation28_spill] sm:$0xff]  ;;  %v12597_v21 = vld [vmem:[#allocation27_spill] sm:$0xff]  ;;  %v8467_v24 = vpop.permute.xlu1 %1624 }
 0x26c   : > { %12591 = vst [vmem:[#allocation26_spill] sm:$0xff] %v8434_v16  ;;  %v1741_v17 = vmul.f32 %v8052_v43, %v12596_v35  ;;  %v1742_v36 = vmul.f32 %v8052_v43, %v12597_v21  ;;  %v6475_v27 = vld [vmem:[%s6613_s18 + $0x118] sm:$0xff]  ;;  %v6476_v5 = vld [vmem:[%s6613_s18 + $0x130] sm:$0xff]  ;;  %v12599_v10 = vld [vmem:[#allocation31_spill] sm:$0xff] }
 0x26d   : > { %2128 = vperm.xlu1 %6437, %v6475_v27   ;;  %2140 = vperm.xlu0 %6438, %v6476_v5   ;;  %v12598_v30 = vld [vmem:[#allocation32_spill] sm:$0xff]  ;;  %v1744_v34 = vmul.f32 %v8052_v43, %v12599_v10  ;;  %v12601_v23 = vld [vmem:[#allocation35_spill] sm:$0xff]  ;;  %v12602_v32 = vld [vmem:[#allocation25_spill] sm:$0xff]  ;;  %12607 = vst [vmem:[#allocation19_spill] sm:$0xff] %v8467_v24 }
 0x26e   : > { %v1743_v16 = vmul.f32 %v8052_v43, %v12598_v30  ;;  %v12600_v31 = vld [vmem:[#allocation36_spill] sm:$0xff]  ;;  %v1746_v35 = vmul.f32 %v8052_v43, %v12601_v23  ;;  %v8459_v21 = vadd.f32 %v1736_v52, %v12602_v32  ;;  %v12605_v54 = vld [vmem:[#allocation39_spill] sm:$0xff]  ;;  %12608 = vst [vmem:[#allocation24_spill] sm:$0xff] %v8469_v25  ;;  %v12611_v23 = vld [vmem:[#allocation29_spill] sm:$0xff] }
 0x26f   : > { %v1745_v59 = vmul.f32 %v8052_v43, %v12600_v31  ;;  %v12604_v27 = vld [vmem:[#allocation40_spill] sm:$0xff]  ;;  %v1748_v30 = vmul.f32 %v8052_v43, %v12605_v54  ;;  %v12609_v31 = vld [vmem:[#allocation30_spill] sm:$0xff]  ;;  %v8475_v20 = vadd.f32 %v1738_v22, %v12611_v23  ;;  %v12616_v54 = vld [vmem:[#allocation33_spill] sm:$0xff] }
 0x270   : > { %12603 = vst [vmem:[#allocation20_spill] sm:$0xff] %v8459_v21  ;;  %v1747_v5 = vmul.f32 %v8052_v43, %v12604_v27  ;;  %v12606_v29 = vld [vmem:[#allocation44_spill] sm:$0xff]  ;;  %v8472_v8 = vadd.f32 %v1737_v28, %v12609_v31  ;;  %v12613_v52 = vld [vmem:[#allocation34_spill] sm:$0xff]  ;;  %v12615_v27 = vld [vmem:[#allocation43_spill] sm:$0xff]  ;;  %v8483_v19 = vadd.f32 %v1740_v33, %v12616_v54 }
 0x271   : > { %v1749_v10 = vmul.f32 %v8052_v43, %v12606_v29  ;;  %12612 = vst [vmem:[#allocation28_spill] sm:$0xff] %v8475_v20  ;;  %v8478_v32 = vadd.f32 %v1739_v60, %v12613_v52  ;;  %v1750_v21 = vmul.f32 %v8052_v43, %v12615_v27  ;;  %v12618_v29 = vld [vmem:[#allocation42_spill] sm:$0xff]  ;;  %v12620_v24 = vld [vmem:[#allocation41_spill] sm:$0xff]  ;;  %v6477_v28 = vld [vmem:[%s6613_s18 + $0x128] sm:$0xff] }
 0x272   : > { %12610 = vst [vmem:[#allocation23_spill] sm:$0xff] %v8472_v8  ;;  %12617 = vst [vmem:[#allocation32_spill] sm:$0xff] %v8483_v19  ;;  %v8486_v56 = vadd.f32 %v1741_v17, %v12618_v29  ;;  %v8489_v25 = vadd.f32 %v1742_v36, %v12620_v24  ;;  %2136 = vperm.xlu1 %6437, %v6477_v28   ;;  %v6478_v31 = vld [vmem:[%s6613_s18 + $0x140] sm:$0xff]  ;;  %v12624_v60 = vld [vmem:[#allocation45_spill] sm:$0xff] }
 0x273   : > { %12614 = vst [vmem:[#allocation27_spill] sm:$0xff] %v8478_v32  ;;  %2148 = vperm.xlu0 %6438, %v6478_v31   ;;  %v12622_v22 = vld [vmem:[#allocation46_spill] sm:$0xff]  ;;  %v8497_v52 = vadd.f32 %v1744_v34, %v12624_v60  ;;  %v12628_v54 = vld [vmem:[#allocation49_spill] sm:$0xff]  ;;  %v8516_v60 = vpop.permute.xlu1 %1632  ;;  %v12655_v19 = vld [vmem:[#allocation71_spill] sm:$0xff] }
 0x274   : > { %12619 = vst [vmem:[#allocation31_spill] sm:$0xff] %v8486_v56  ;;  %12621 = vst [vmem:[#allocation36_spill] sm:$0xff] %v8489_v25  ;;  %v8494_v23 = vadd.f32 %v1743_v16, %v12622_v22  ;;  %v12626_v27 = vld [vmem:[#allocation54_spill] sm:$0xff]  ;;  %v8503_v17 = vadd.f32 %v1746_v35, %v12628_v54  ;;  %v12632_v24 = vld [vmem:[#allocation57_spill] sm:$0xff] }
 0x275   : > { %12625 = vst [vmem:[#allocation25_spill] sm:$0xff] %v8497_v52  ;;  %v8500_v33 = vadd.f32 %v1745_v59, %v12626_v27  ;;  %v12630_v29 = vld [vmem:[#allocation58_spill] sm:$0xff]  ;;  %v8509_v28 = vadd.f32 %v1748_v30, %v12632_v24  ;;  %v12636_v22 = vld [vmem:[#allocation48_spill] sm:$0xff]  ;;  %12637 = vst [vmem:[#allocation34_spill] sm:$0xff] %v8516_v60  ;;  %v8518_v59 = vpop.permute.xlu0 %1636 }
 0x276   : > { %12623 = vst [vmem:[#allocation35_spill] sm:$0xff] %v8494_v23  ;;  %12629 = vst [vmem:[#allocation39_spill] sm:$0xff] %v8503_v17  ;;  %v8506_v36 = vadd.f32 %v1747_v5, %v12630_v29  ;;  %v12634_v31 = vld [vmem:[#allocation62_spill] sm:$0xff]  ;;  %v1751_v34 = vmul.f32 %v8052_v43, %v12636_v22  ;;  %v12639_v27 = vld [vmem:[#allocation61_spill] sm:$0xff] }
 0x277   : > { %12627 = vst [vmem:[#allocation40_spill] sm:$0xff] %v8500_v33  ;;  %12633 = vst [vmem:[#allocation30_spill] sm:$0xff] %v8509_v28  ;;  %v8512_v16 = vadd.f32 %v1749_v10, %v12634_v31  ;;  %v8521_v35 = vadd.f32 %v1750_v21, %v12639_v27  ;;  %v12641_v54 = vld [vmem:[#allocation47_spill] sm:$0xff]  ;;  %v12642_v29 = vld [vmem:[#allocation52_spill] sm:$0xff]  ;;  %v8554_v56 = vpop.permute.xlu1 %1640 }
 0x278   : > { %12631 = vst [vmem:[#allocation44_spill] sm:$0xff] %v8506_v36  ;;  %12638 = vst [vmem:[#allocation43_spill] sm:$0xff] %v8518_v59  ;;  %v1752_v5 = vmul.f32 %v8052_v43, %v12641_v54  ;;  %v1753_v30 = vmul.f32 %v8052_v43, %v12642_v29  ;;  %v12643_v24 = vld [vmem:[#allocation51_spill] sm:$0xff]  ;;  %v12644_v31 = vld [vmem:[#allocation56_spill] sm:$0xff] }
 0x279   : > { %12635 = vst [vmem:[#allocation29_spill] sm:$0xff] %v8512_v16  ;;  %12640 = vst [vmem:[#allocation33_spill] sm:$0xff] %v8521_v35  ;;  %v1754_v10 = vmul.f32 %v8052_v43, %v12643_v24  ;;  %v1755_v28 = vmul.f32 %v8052_v43, %v12644_v31  ;;  %v12645_v22 = vld [vmem:[#allocation55_spill] sm:$0xff]  ;;  %v12646_v17 = vld [vmem:[#allocation60_spill] sm:$0xff]  ;;  %v8556_v20 = vpop.permute.xlu0 %1644 }
 0x27a   : > { %v1756_v16 = vmul.f32 %v8052_v43, %v12645_v22  ;;  %v1757_v36 = vmul.f32 %v8052_v43, %v12646_v17  ;;  %v6479_v21 = vld [vmem:[%s6613_s18 + $0x138] sm:$0xff]  ;;  %v6480_v27 = vld [vmem:[%s6613_s18 + $0x150] sm:$0xff]  ;;  %v12647_v54 = vld [vmem:[#allocation59_spill] sm:$0xff]  ;;  %12656 = vst [vmem:[#allocation41_spill] sm:$0xff] %v8554_v56 }
 0x27b   : > { %2144 = vperm.xlu1 %6437, %v6479_v21   ;;  %2156 = vperm.xlu0 %6438, %v6480_v27   ;;  %v1758_v35 = vmul.f32 %v8052_v43, %v12647_v54  ;;  %v12648_v29 = vld [vmem:[#allocation64_spill] sm:$0xff]  ;;  %v12649_v24 = vld [vmem:[#allocation63_spill] sm:$0xff]  ;;  %12657 = vst [vmem:[#allocation46_spill] sm:$0xff] %v8556_v20  ;;  %v12669_v56 = vld [vmem:[#allocation74_spill] sm:$0xff] }
 0x27c   : > { %v1759_v52 = vmul.f32 %v8052_v43, %v12648_v29  ;;  %v1760_v31 = vmul.f32 %v8052_v43, %v12649_v24  ;;  %v12650_v33 = vld [vmem:[#allocation68_spill] sm:$0xff]  ;;  %v12651_v25 = vld [vmem:[#allocation155_spill] sm:$0xff]  ;;  %v1764_v29 = vmul.f32 %v8052_v43, %v12655_v19  ;;  %v12658_v24 = vld [vmem:[#allocation65_spill] sm:$0xff]  ;;  %v8576_v20 = vadd.f32 %v1757_v36, %v12669_v56 }
 0x27d   : > { %v1761_v22 = vmul.f32 %v8052_v43, %v12650_v33  ;;  %v8546_v17 = vadd.f32 %v1751_v34, %v12651_v25  ;;  %v12653_v21 = vld [vmem:[#allocation67_spill] sm:$0xff]  ;;  %v12654_v23 = vld [vmem:[#allocation72_spill] sm:$0xff]  ;;  %v8559_v32 = vadd.f32 %v1752_v5, %v12658_v24  ;;  %v12660_v33 = vld [vmem:[#allocation69_spill] sm:$0xff] }
 0x27e   : > { %v1762_v27 = vmul.f32 %v8052_v43, %v12653_v21  ;;  %v1763_v54 = vmul.f32 %v8052_v43, %v12654_v23  ;;  %v8562_v8 = vadd.f32 %v1753_v30, %v12660_v33  ;;  %v12662_v25 = vld [vmem:[#allocation66_spill] sm:$0xff]  ;;  %v12664_v21 = vld [vmem:[#allocation76_spill] sm:$0xff]  ;;  %12670 = vst [vmem:[#allocation62_spill] sm:$0xff] %v8576_v20  ;;  %v6481_v5 = vld [vmem:[%s6613_s18 + $0x148] sm:$0xff] }
 0x27f   : > { %12652 = vst [vmem:[#allocation42_spill] sm:$0xff] %v8546_v17  ;;  %12659 = vst [vmem:[#allocation45_spill] sm:$0xff] %v8559_v32  ;;  %v8565_v34 = vadd.f32 %v1754_v10, %v12662_v25  ;;  %v1765_v17 = vmul.f32 %v8052_v43, %v12664_v21  ;;  %v12665_v23 = vld [vmem:[#allocation158_spill] sm:$0xff]  ;;  %v12667_v19 = vld [vmem:[#allocation156_spill] sm:$0xff]  ;;  %2152 = vperm.xlu1 %6437, %v6481_v5  }
 0x280   : > { %12661 = vst [vmem:[#allocation54_spill] sm:$0xff] %v8562_v8  ;;  %v8570_v59 = vadd.f32 %v1755_v28, %v12665_v23  ;;  %v8573_v60 = vadd.f32 %v1756_v16, %v12667_v19  ;;  %v6482_v24 = vld [vmem:[%s6613_s18 + $0x160] sm:$0xff]  ;;  %v12671_v30 = vld [vmem:[#allocation73_spill] sm:$0xff]  ;;  %v12703_v20 = vld [vmem:[#allocation99_spill] sm:$0xff] }
 0x281   : > { %12663 = vst [vmem:[#allocation49_spill] sm:$0xff] %v8565_v34  ;;  %2164 = vperm.xlu0 %6438, %v6482_v24   ;;  %v8581_v33 = vadd.f32 %v1758_v35, %v12671_v30  ;;  %v12673_v10 = vld [vmem:[#allocation78_spill] sm:$0xff]  ;;  %v12675_v21 = vld [vmem:[#allocation77_spill] sm:$0xff]  ;;  %v12685_v30 = vld [vmem:[#allocation75_spill] sm:$0xff] }
 0x282   : > { %12666 = vst [vmem:[#allocation58_spill] sm:$0xff] %v8570_v59  ;;  %12668 = vst [vmem:[#allocation57_spill] sm:$0xff] %v8573_v60  ;;  %v8584_v25 = vadd.f32 %v1759_v52, %v12673_v10  ;;  %v8587_v28 = vadd.f32 %v1760_v31, %v12675_v21  ;;  %v12677_v23 = vld [vmem:[#allocation86_spill] sm:$0xff]  ;;  %v12679_v19 = vld [vmem:[#allocation85_spill] sm:$0xff]  ;;  %v1766_v52 = vmul.f32 %v8052_v43, %v12685_v30  ;;  %v8603_v10 = vpop.permute.xlu1 %1648  ;;  %v8605_v31 = vpop.permute.xlu0 %1652 }
 0x283   : > { %12672 = vst [vmem:[#allocation48_spill] sm:$0xff] %v8581_v33  ;;  %v8590_v16 = vadd.f32 %v1761_v22, %v12677_v23  ;;  %v8593_v56 = vadd.f32 %v1762_v27, %v12679_v19  ;;  %v12681_v36 = vld [vmem:[#allocation90_spill] sm:$0xff]  ;;  %v12683_v24 = vld [vmem:[#allocation89_spill] sm:$0xff]  ;;  %12686 = vst [vmem:[#allocation60_spill] sm:$0xff] %v8603_v10 }
 0x284   : > { %12674 = vst [vmem:[#allocation61_spill] sm:$0xff] %v8584_v25  ;;  %12676 = vst [vmem:[#allocation47_spill] sm:$0xff] %v8587_v28  ;;  %v8596_v5 = vadd.f32 %v1763_v54, %v12681_v36  ;;  %v8599_v35 = vadd.f32 %v1764_v29, %v12683_v24  ;;  %v12688_v21 = vld [vmem:[#allocation94_spill] sm:$0xff]  ;;  %v12690_v23 = vld [vmem:[#allocation80_spill] sm:$0xff] }
 0x285   : > { %12678 = vst [vmem:[#allocation52_spill] sm:$0xff] %v8590_v16  ;;  %12680 = vst [vmem:[#allocation51_spill] sm:$0xff] %v8593_v56  ;;  %v8608_v22 = vadd.f32 %v1765_v17, %v12688_v21  ;;  %v1767_v27 = vmul.f32 %v8052_v43, %v12690_v23  ;;  %v12691_v19 = vld [vmem:[#allocation79_spill] sm:$0xff]  ;;  %v12692_v36 = vld [vmem:[#allocation84_spill] sm:$0xff] }
 0x286   : > { %12682 = vst [vmem:[#allocation56_spill] sm:$0xff] %v8596_v5  ;;  %12684 = vst [vmem:[#allocation55_spill] sm:$0xff] %v8599_v35  ;;  %v1768_v54 = vmul.f32 %v8052_v43, %v12691_v19  ;;  %v1769_v29 = vmul.f32 %v8052_v43, %v12692_v36  ;;  %v12693_v24 = vld [vmem:[#allocation83_spill] sm:$0xff]  ;;  %v12694_v30 = vld [vmem:[#allocation88_spill] sm:$0xff]  ;;  %v8641_v34 = vpop.permute.xlu1 %1656  ;;  %v8643_v59 = vpop.permute.xlu0 %1660 }
 0x287   : > { %12687 = vst [vmem:[#allocation59_spill] sm:$0xff] %v8605_v31  ;;  %12689 = vst [vmem:[#allocation64_spill] sm:$0xff] %v8608_v22  ;;  %v1770_v35 = vmul.f32 %v8052_v43, %v12693_v24  ;;  %v1771_v5 = vmul.f32 %v8052_v43, %v12694_v30  ;;  %v12695_v56 = vld [vmem:[#allocation87_spill] sm:$0xff]  ;;  %v6483_v17 = vld [vmem:[%s6613_s18 + $0x158] sm:$0xff] }
 0x288   : > { %v1772_v16 = vmul.f32 %v8052_v43, %v12695_v56  ;;  %2160 = vperm.xlu1 %6437, %v6483_v17   ;;  %v6484_v21 = vld [vmem:[%s6613_s18 + $0x170] sm:$0xff]  ;;  %v12697_v19 = vld [vmem:[#allocation91_spill] sm:$0xff]  ;;  %v12700_v33 = vld [vmem:[#allocation93_spill] sm:$0xff]  ;;  %12705 = vst [vmem:[#allocation68_spill] sm:$0xff] %v8641_v34 }
 0x289   : > { %2172 = vperm.xlu0 %6438, %v6484_v21   ;;  %v12696_v23 = vld [vmem:[#allocation92_spill] sm:$0xff]  ;;  %v1774_v28 = vmul.f32 %v8052_v43, %v12697_v19  ;;  %v12699_v25 = vld [vmem:[#allocation95_spill] sm:$0xff]  ;;  %v8633_v56 = vadd.f32 %v1766_v52, %v12700_v33  ;;  %12706 = vst [vmem:[#allocation155_spill] sm:$0xff] %v8643_v59  ;;  %v12718_v34 = vld [vmem:[#allocation162_spill] sm:$0xff] }
 0x28a   : > { %v1773_v22 = vmul.f32 %v8052_v43, %v12696_v23  ;;  %v12698_v36 = vld [vmem:[#allocation96_spill] sm:$0xff]  ;;  %v1776_v30 = vmul.f32 %v8052_v43, %v12699_v25  ;;  %v1778_v23 = vmul.f32 %v8052_v43, %v12703_v20  ;;  %v12709_v25 = vld [vmem:[#allocation159_spill] sm:$0xff]  ;;  %v12714_v20 = vld [vmem:[#allocation98_spill] sm:$0xff]  ;;  %v8663_v59 = vadd.f32 %v1772_v16, %v12718_v34 }
 0x28b   : > { %v1775_v24 = vmul.f32 %v8052_v43, %v12698_v36  ;;  %12701 = vst [vmem:[#allocation63_spill] sm:$0xff] %v8633_v56  ;;  %v12702_v17 = vld [vmem:[#allocation100_spill] sm:$0xff]  ;;  %v12707_v36 = vld [vmem:[#allocation97_spill] sm:$0xff]  ;;  %v8649_v32 = vadd.f32 %v1768_v54, %v12709_v25  ;;  %v8657_v31 = vadd.f32 %v1770_v35, %v12714_v20  ;;  %v12720_v54 = vld [vmem:[#allocation106_spill] sm:$0xff] }
 0x28c   : > { %v1777_v21 = vmul.f32 %v8052_v43, %v12702_v17  ;;  %v12704_v60 = vld [vmem:[#allocation104_spill] sm:$0xff]  ;;  %v8646_v8 = vadd.f32 %v1767_v27, %v12707_v36  ;;  %v12713_v17 = vld [vmem:[#allocation103_spill] sm:$0xff]  ;;  %12719 = vst [vmem:[#allocation66_spill] sm:$0xff] %v8663_v59  ;;  %v6486_v36 = vld [vmem:[%s6613_s18 + $0x180] sm:$0xff]  ;;  %v8668_v25 = vadd.f32 %v1773_v22, %v12720_v54  ;;  %v8683_v16 = vadd.f32 %v1778_v23, %v7950_v40 }
 0x28d   : > { %v1779_v19 = vmul.f32 %v8052_v43, %v12704_v60  ;;  %12710 = vst [vmem:[#allocation72_spill] sm:$0xff] %v8649_v32  ;;  %v12711_v33 = vld [vmem:[#allocation160_spill] sm:$0xff]  ;;  %v1780_v56 = vmul.f32 %v8052_v43, %v12713_v17  ;;  %12715 = vst [vmem:[#allocation65_spill] sm:$0xff] %v8657_v31  ;;  %v12716_v60 = vld [vmem:[#allocation102_spill] sm:$0xff]  ;;  %2180 = vperm.xlu0 %6438, %v6486_v36   ;;  %v8690_v36 = vpop.permute.xlu1 %1664 }
 0x28e   : > { %12708 = vst [vmem:[#allocation67_spill] sm:$0xff] %v8646_v8  ;;  %v8652_v52 = vadd.f32 %v1769_v29, %v12711_v33  ;;  %v8660_v10 = vadd.f32 %v1771_v5, %v12716_v60  ;;  %v6485_v27 = vld [vmem:[%s6613_s18 + $0x168] sm:$0xff]  ;;  %12721 = vst [vmem:[#allocation76_spill] sm:$0xff] %v8668_v25  ;;  %v12722_v29 = vld [vmem:[#allocation105_spill] sm:$0xff]  ;;  %v8680_v34 = vadd.f32 %v1777_v21, %v7953_v53 }
 0x28f   : > { %2168 = vperm.xlu1 %6437, %v6485_v27   ;;  %v8671_v33 = vadd.f32 %v1774_v28, %v12722_v29  ;;  %v12724_v17 = vld [vmem:[#allocation114_spill] sm:$0xff]  ;;  %v12726_v20 = vld [vmem:[#allocation109_spill] sm:$0xff]  ;;  %12729 = vst [vmem:[#allocation78_spill] sm:$0xff] %v8683_v16  ;;  %v12732_v27 = vld [vmem:[#allocation108_spill] sm:$0xff] }
 0x290   : > { %12712 = vst [vmem:[#allocation71_spill] sm:$0xff] %v8652_v52  ;;  %12717 = vst [vmem:[#allocation69_spill] sm:$0xff] %v8660_v10  ;;  %v8674_v35 = vadd.f32 %v1775_v24, %v12724_v17  ;;  %v8677_v5 = vadd.f32 %v1776_v30, %v12726_v20  ;;  %v12730_v60 = vld [vmem:[#allocation118_spill] sm:$0xff]  ;;  %v1781_v28 = vmul.f32 %v8052_v43, %v12732_v27  ;;  %v8692_v24 = vpop.permute.xlu0 %1668  ;;  %v12733_v54 = vld [vmem:[#allocation117_spill] sm:$0xff] }
 0x291   : > { %12723 = vst [vmem:[#allocation158_spill] sm:$0xff] %v8671_v33  ;;  %12728 = vst [vmem:[#allocation73_spill] sm:$0xff] %v8680_v34  ;;  %v8686_v22 = vadd.f32 %v1779_v19, %v12730_v60  ;;  %v8695_v30 = vadd.f32 %v1780_v56, %v12733_v54  ;;  %v12735_v29 = vld [vmem:[#allocation107_spill] sm:$0xff]  ;;  %v12736_v21 = vld [vmem:[#allocation112_spill] sm:$0xff]  ;;  %v8728_v25 = vpop.permute.xlu1 %1672 }
 0x292   : > { %12725 = vst [vmem:[#allocation156_spill] sm:$0xff] %v8674_v35  ;;  %12727 = vst [vmem:[#allocation74_spill] sm:$0xff] %v8677_v5  ;;  %v1782_v53 = vmul.f32 %v8052_v43, %v12735_v29  ;;  %v1783_v40 = vmul.f32 %v8052_v43, %v12736_v21  ;;  %v12737_v23 = vld [vmem:[#allocation111_spill] sm:$0xff]  ;;  %v12738_v17 = vld [vmem:[#allocation116_spill] sm:$0xff] }
 0x293   : > { %12731 = vst [vmem:[#allocation77_spill] sm:$0xff] %v8686_v22  ;;  %12734 = vst [vmem:[#allocation86_spill] sm:$0xff] %v8695_v30  ;;  %v1784_v19 = vmul.f32 %v8052_v43, %v12737_v23  ;;  %v1785_v20 = vmul.f32 %v8052_v43, %v12738_v17  ;;  %v12739_v60 = vld [vmem:[#allocation115_spill] sm:$0xff]  ;;  %v12740_v16 = vld [vmem:[#allocation120_spill] sm:$0xff] }
 0x294   : > { %v1786_v27 = vmul.f32 %v8052_v43, %v12739_v60  ;;  %v1787_v22 = vmul.f32 %v8052_v43, %v12740_v16  ;;  %v6487_v56 = vld [vmem:[%s6613_s18 + $0x178] sm:$0xff]  ;;  %v6488_v54 = vld [vmem:[%s6613_s18 + $0x190] sm:$0xff]  ;;  %v12741_v29 = vld [vmem:[#allocation119_spill] sm:$0xff]  ;;  %v8730_v10 = vpop.permute.xlu0 %1676 }
 0x295   : > { %2176 = vperm.xlu1 %6437, %v6487_v56   ;;  %2188 = vperm.xlu0 %6438, %v6488_v54   ;;  %v1788_v30 = vmul.f32 %v8052_v43, %v12741_v29  ;;  %v12742_v21 = vld [vmem:[#allocation124_spill] sm:$0xff]  ;;  %v12743_v23 = vld [vmem:[#allocation123_spill] sm:$0xff]  ;;  %v12745_v33 = vld [vmem:[#allocation122_spill] sm:$0xff]  ;;  %12750 = vst [vmem:[#allocation90_spill] sm:$0xff] %v8730_v10 }
 0x296   : > { %v1789_v5 = vmul.f32 %v8052_v43, %v12742_v21  ;;  %v1790_v17 = vmul.f32 %v8052_v43, %v12743_v23  ;;  %v12744_v34 = vld [vmem:[#allocation128_spill] sm:$0xff]  ;;  %v8720_v16 = vadd.f32 %v1781_v28, %v12745_v33  ;;  %v12747_v56 = vld [vmem:[#allocation127_spill] sm:$0xff]  ;;  %v12751_v23 = vld [vmem:[#allocation121_spill] sm:$0xff]  ;;  %v8749_v8 = vadd.f32 %v1787_v22, %v8012_v51 }
 0x297   : > { %v1791_v60 = vmul.f32 %v8052_v43, %v12744_v34  ;;  %v1792_v54 = vmul.f32 %v8052_v43, %v12747_v56  ;;  %v12748_v35 = vld [vmem:[#allocation131_spill] sm:$0xff]  ;;  %v12749_v59 = vld [vmem:[#allocation152_spill] sm:$0xff]  ;;  %v8733_v31 = vadd.f32 %v1782_v53, %v12751_v23  ;;  %v12752_v34 = vld [vmem:[#allocation126_spill] sm:$0xff]  ;;  %v2501_v56 = vsub.s32 2, %v7625_v45 }
 0x298   : > { %12746 = vst [vmem:[#allocation85_spill] sm:$0xff] %v8720_v16  ;;  %v1793_v29 = vmul.f32 %v8052_v43, %v12748_v35  ;;  %v1794_v21 = vmul.f32 %v8052_v43, %v12749_v59  ;;  %v8736_v32 = vadd.f32 %v1783_v40, %v12752_v34  ;;  %v12753_v33 = vld [vmem:[#allocation125_spill] sm:$0xff]  ;;  %v12754_v16 = vld [vmem:[#allocation164_spill] sm:$0xff]  ;;  %v6489_v10 = vld [vmem:[%s6613_s18 + $0x188] sm:$0xff]  ;;  %v8754_v40 = vadd.f32 %v1788_v30, %v8002_v41  ;;  %v8778_v30 = vpop.permute.xlu0 %1684 }
 0x299   : > { %v8739_v28 = vadd.f32 %v1784_v19, %v12753_v33  ;;  %v8743_v35 = vadd.f32 %v1785_v20, %v12754_v16  ;;  %v12755_v52 = vld [vmem:[#allocation129_spill] sm:$0xff]  ;;  %2184 = vperm.xlu1 %6437, %v6489_v10   ;;  %v6490_v53 = vld [vmem:[%s6613_s18 + $0x1a0] sm:$0xff]  ;;  %v8757_v19 = vadd.f32 %v1789_v5, %v8022_v37  ;;  %v12756_v45 = vld [vmem:[#allocation132_spill] sm:$0xff]  ;;  %v8766_v51 = vadd.f32 %v1792_v54, %v8035_v55  ;;  %v8776_v5 = vpop.permute.xlu1 %1680 }
 0x29a   : > { %v8746_v59 = vadd.f32 %v1786_v27, %v12755_v52  ;;  %2196 = vperm.xlu0 %6438, %v6490_v53   ;;  %v8760_v20 = vadd.f32 %v1790_v17, %v12756_v45  ;;  %v8763_v52 = vadd.f32 %v1791_v60, %v8038_v61  ;;  %v8769_v10 = vadd.f32 %v1793_v29, %v8046_v58  ;;  %v12760_v22 = vld [vmem:[#allocation153_spill] sm:$0xff]  ;;  %v12761_v27 = vld [vmem:[#allocation154_spill] sm:$0xff]  ;;  %v6492_v53 = vld [vmem:[%s6613_s18 + $0x1b0] sm:$0xff] }
 0x29b   : > { %12757 = vst [vmem:[#allocation89_spill] sm:$0xff] %v8766_v51  ;;  %v8772_v41 = vadd.f32 %v1794_v21, %v8041_v39  ;;  %v1795_v37 = vmul.f32 %v8052_v43, %v12760_v22  ;;  %v1796_v61 = vmul.f32 %v8052_v43, %v12761_v27  ;;  %v12762_v17 = vld [vmem:[#allocation13_spill] sm:$0xff]  ;;  %v12763_v60 = vld [vmem:[#allocation14_spill] sm:$0xff]  ;;  %v8787_v16 = vrot.slane %v7639_v46, %v2501_v56 }
 0x29c   : > { %12758 = vst [vmem:[#allocation75_spill] sm:$0xff] %v8769_v10  ;;  %v1797_v55 = vmul.f32 %v8052_v43, %v12762_v17  ;;  %v1798_v58 = vmul.f32 %v8052_v43, %v12763_v60  ;;  %v12764_v39 = vld [vmem:[#allocation37_spill] sm:$0xff]  ;;  %v12765_v29 = vld [vmem:[#allocation38_spill] sm:$0xff]  ;;  %v8816_v51 = vpop.permute.xlu0 %1692 }
 0x29d   : > { %12759 = vst [vmem:[#allocation94_spill] sm:$0xff] %v8772_v41  ;;  %v1799_v54 = vmul.f32 %v8052_v43, %v12764_v39  ;;  %v1800_v21 = vmul.f32 %v8052_v43, %v12765_v29  ;;  %v12766_v23 = vld [vmem:[#allocation50_spill] sm:$0xff]  ;;  %v6491_v33 = vld [vmem:[%s6613_s18 + $0x198] sm:$0xff]  ;;  %v8806_v29 = vadd.f32 %v1795_v37, %v8057_v0  ;;  %v8814_v10 = vpop.permute.xlu1 %1688 }
 0x29e   : > { %v1801_v34 = vmul.f32 %v8052_v43, %v12766_v23  ;;  %2192 = vperm.xlu1 %6437, %v6491_v33   ;;  %2204 = vperm.xlu0 %6438, %v6492_v53   ;;  %v12767_v45 = vld [vmem:[#allocation53_spill] sm:$0xff]  ;;  %v12768_v27 = vld [vmem:[#allocation70_spill] sm:$0xff]  ;;  %v8825_v0 = vadd.f32 %v1798_v58, %v8060_v57 }
 0x29f   : > { %v1802_v22 = vmul.f32 %v8052_v43, %v12767_v45  ;;  %v1803_v46 = vmul.f32 %v8052_v43, %v12768_v27  ;;  %v12769_v56 = vld [vmem:[#allocation157_spill] sm:$0xff]  ;;  %12771 = vst [vmem:[#allocation80_spill] sm:$0xff] %v8806_v29  ;;  %v12772_v23 = vld [vmem:[#allocation82_spill] sm:$0xff] }
 0x2a0   : > { %v1804_v17 = vmul.f32 %v8052_v43, %v12769_v56  ;;  %v12770_v60 = vld [vmem:[#allocation81_spill] sm:$0xff]  ;;  %v1806_v33 = vmul.f32 %v8052_v43, %v12772_v23  ;;  %v8819_v56 = vadd.f32 %v1796_v61, %v8049_v62  ;;  %v12775_v37 = vld [vmem:[#allocation110_spill] sm:$0xff]  ;;  %v8836_v29 = vadd.f32 %v1801_v34, %v8099_v3  ;;  %v6493_v62 = vld [vmem:[%s6613_s18 + $0x1a8] sm:$0xff] }
 0x2a1   : > { %v1805_v39 = vmul.f32 %v8052_v43, %v12770_v60  ;;  %v12773_v53 = vld [vmem:[#allocation101_spill] sm:$0xff]  ;;  %v8822_v60 = vadd.f32 %v1797_v55, %v8067_v50  ;;  %v1809_v23 = vmul.f32 %v8052_v43, %v12775_v37  ;;  %v6494_v61 = vld [vmem:[%s6613_s18 + $0x1c0] sm:$0xff]  ;;  %v8841_v50 = vadd.f32 %v1802_v22, %v8082_v4  ;;  %v12787_v34 = vld [vmem:[#allocation163_spill] sm:$0xff] }
 0x2a2   : > { %v1807_v45 = vmul.f32 %v8052_v43, %v12773_v53  ;;  %v12774_v41 = vld [vmem:[#allocation161_spill] sm:$0xff]  ;;  %v8830_v53 = vadd.f32 %v1799_v54, %v8073_v38  ;;  %2200 = vperm.xlu1 %6437, %v6493_v62   ;;  %2212 = vperm.xlu0 %6438, %v6494_v61   ;;  %v8844_v57 = vadd.f32 %v1803_v46, %v8109_v7  ;;  %v8863_v54 = vpop.permute.xlu1 %1696  ;;  %v12789_v46 = vld [vmem:[#allocation134_spill] sm:$0xff]  ;;  %v6496_v37 = vld [vmem:[%s6613_s18 + $0x1d0] sm:$0xff] }
 0x2a3   : > { %v1808_v27 = vmul.f32 %v8052_v43, %v12774_v41  ;;  %v8833_v41 = vadd.f32 %v1800_v21, %v8070_v49  ;;  %12777 = vst [vmem:[#allocation84_spill] sm:$0xff] %v8841_v50  ;;  %v8847_v38 = vadd.f32 %v1804_v17, %v8102_v6  ;;  %v8850_v49 = vadd.f32 %v1805_v39, %v8125_v12  ;;  %v12784_v58 = vld [vmem:[#allocation113_spill] sm:$0xff]  ;;  %v8865_v6 = vpop.permute.xlu0 %1700  ;;  %v12786_v21 = vld [vmem:[#allocation130_spill] sm:$0xff]  ;;  %v12790_v39 = vld [vmem:[#allocation136_spill] sm:$0xff] }
 0x2a4   : > { %12778 = vst [vmem:[#allocation83_spill] sm:$0xff] %v8844_v57  ;;  %v8853_v3 = vadd.f32 %v1806_v33, %v8122_v9  ;;  %v8856_v55 = vadd.f32 %v1807_v45, %v8133_v14  ;;  %v1810_v7 = vmul.f32 %v8052_v43, %v12784_v58  ;;  %v8868_v12 = vadd.f32 %v1809_v23, %v8139_v63  ;;  %v12788_v22 = vld [vmem:[#allocation133_spill] sm:$0xff]  ;;  %v12792_v23 = vld [vmem:[#allocation166_spill] sm:$0xff]  ;;  %v12793_v61 = vld [vmem:[#allocation167_spill] sm:$0xff] }
 0x2a5   : > { %12776 = vst [vmem:[#allocation79_spill] sm:$0xff] %v8833_v41  ;;  %12779 = vst [vmem:[#allocation88_spill] sm:$0xff] %v8847_v38  ;;  %v8859_v4 = vadd.f32 %v1808_v27, %v8128_v42  ;;  %v1811_v9 = vmul.f32 %v8052_v43, %v12786_v21  ;;  %v1812_v14 = vmul.f32 %v8052_v43, %v12787_v34  ;;  %v12791_v45 = vld [vmem:[#allocation165_spill] sm:$0xff] }
 0x2a6   : > { %12780 = vst [vmem:[#allocation87_spill] sm:$0xff] %v8850_v49  ;;  %12781 = vst [vmem:[#allocation92_spill] sm:$0xff] %v8853_v3  ;;  %v1813_v42 = vmul.f32 %v8052_v43, %v12788_v22  ;;  %v1814_v17 = vmul.f32 %v8052_v43, %v12789_v46  ;;  %v1815_v33 = vmul.f32 %v8052_v43, %v12790_v39  ;;  %v6495_v63 = vld [vmem:[%s6613_s18 + $0x1b8] sm:$0xff]  ;;  %2220 = vperm.xlu0 %6438, %v6496_v37   ;;  %v6558_v3 = vld [vmem:[%s6613_s18 + $0x3c0] sm:$0xff] }
 0x2a7   : > { %12782 = vst [vmem:[#allocation91_spill] sm:$0xff] %v8856_v55  ;;  %12783 = vst [vmem:[#allocation96_spill] sm:$0xff] %v8859_v4  ;;  %v1816_v27 = vmul.f32 %v8052_v43, %v12791_v45  ;;  %2208 = vperm.xlu1 %6437, %v6495_v63   ;;  %v1817_v62 = vmul.f32 %v8052_v43, %v12792_v23  ;;  %v1818_v58 = vmul.f32 %v8052_v43, %v12793_v61  ;;  %v8901_v63 = vpop.permute.xlu1 %1704  ;;  %v8903_v37 = vpop.permute.xlu0 %1708  ;;  %v12802_v61 = vld [vmem:[#allocation169_spill] sm:$0xff] }
 0x2a8   : > { %12785 = vst [vmem:[#allocation95_spill] sm:$0xff] %v8868_v12  ;;  %v1819_v21 = vmul.f32 %v8052_v43, %v8164_v44  ;;  %v1820_v34 = vmul.f32 %v8052_v43, %v8166_v2  ;;  %v8893_v22 = vadd.f32 %v1810_v7, %v8136_v13  ;;  %v1821_v46 = vmul.f32 %v8052_v43, %v8204_v15 }
 0x2a9   : > { %v1822_v39 = vmul.f32 %v8052_v43, %v8206_v11  ;;  %v1823_v45 = vmul.f32 %v8052_v43, %v8251_v26  ;;  %v8906_v44 = vadd.f32 %v1811_v9, %v8147_v47  ;;  %v8909_v2 = vadd.f32 %v1812_v14, %v8144_v48  ;;  %v12798_v11 = vld [vmem:[#allocation168_spill] sm:$0xff]  ;;  %v12800_v26 = vld [vmem:[#allocation170_spill] sm:$0xff]  ;;  %v6497_v47 = vld [vmem:[%s6613_s18 + $0x1c8] sm:$0xff] }
 0x2aa   : > { %12794 = vst [vmem:[#allocation93_spill] sm:$0xff] %v8893_v22  ;;  %v8912_v13 = vadd.f32 %v1813_v42, %v8157_v1  ;;  %v1824_v15 = vmul.f32 %v8052_v43, %v8253_v18  ;;  %v8917_v7 = vadd.f32 %v1814_v17, %v12798_v11  ;;  %v8920_v23 = vadd.f32 %v1815_v33, %v12800_v26  ;;  %v6498_v9 = vld [vmem:[%s6613_s18 + $0x1e0] sm:$0xff]  ;;  %v12804_v48 = vld [vmem:[#allocation172_spill] sm:$0xff]  ;;  %v12806_v1 = vld [vmem:[#allocation171_spill] sm:$0xff] }
 0x2ab   : > { %12795 = vst [vmem:[#allocation100_spill] sm:$0xff] %v8906_v44  ;;  %12796 = vst [vmem:[#allocation99_spill] sm:$0xff] %v8909_v2  ;;  %v8923_v22 = vadd.f32 %v1816_v27, %v12802_v61  ;;  %2216 = vperm.xlu1 %6437, %v6497_v47   ;;  %2228 = vperm.xlu0 %6438, %v6498_v9   ;;  %v8928_v14 = vadd.f32 %v1817_v62, %v12804_v48  ;;  %v12808_v18 = vld [vmem:[#allocation174_spill] sm:$0xff]  ;;  %v12810_v11 = vld [vmem:[#allocation173_spill] sm:$0xff] }
 0x2ac   : > { %12797 = vst [vmem:[#allocation104_spill] sm:$0xff] %v8912_v13  ;;  %12799 = vst [vmem:[#allocation97_spill] sm:$0xff] %v8917_v7  ;;  %v8931_v42 = vadd.f32 %v1818_v58, %v12806_v1  ;;  %v8934_v17 = vadd.f32 %v1819_v21, %v12808_v18  ;;  %v8937_v33 = vadd.f32 %v1820_v34, %v12810_v11  ;;  %v12812_v26 = vld [vmem:[#allocation176_spill] sm:$0xff]  ;;  %v12814_v61 = vld [vmem:[#allocation175_spill] sm:$0xff]  ;;  %v8950_v1 = vpop.permute.xlu1 %1712  ;;  %v8952_v21 = vpop.permute.xlu0 %1716 }
 0x2ad   : > { %12801 = vst [vmem:[#allocation159_spill] sm:$0xff] %v8920_v23  ;;  %12803 = vst [vmem:[#allocation160_spill] sm:$0xff] %v8923_v22  ;;  %v8940_v27 = vadd.f32 %v1821_v46, %v12812_v26  ;;  %v8943_v47 = vadd.f32 %v1822_v39, %v12814_v61  ;;  %v12816_v9 = vld [vmem:[#allocation178_spill] sm:$0xff]  ;;  %v12818_v48 = vld [vmem:[#allocation140_spill] sm:$0xff] }
 0x2ae   : > { %12805 = vst [vmem:[#allocation103_spill] sm:$0xff] %v8928_v14  ;;  %12807 = vst [vmem:[#allocation98_spill] sm:$0xff] %v8931_v42  ;;  %v8946_v62 = vadd.f32 %v1823_v45, %v12816_v9  ;;  %v1825_v58 = vmul.f32 %v8052_v43, %v12818_v48  ;;  %v12819_v18 = vld [vmem:[#allocation177_spill] sm:$0xff]  ;;  %v12823_v61 = vld [vmem:[#allocation190_spill] sm:$0xff] }
 0x2af   : > { %12809 = vst [vmem:[#allocation102_spill] sm:$0xff] %v8934_v17  ;;  %12811 = vst [vmem:[#allocation162_spill] sm:$0xff] %v8937_v33  ;;  %v8955_v34 = vadd.f32 %v1824_v15, %v12819_v18  ;;  %v12821_v11 = vld [vmem:[#allocation141_spill] sm:$0xff]  ;;  %v1828_v45 = vmul.f32 %v8052_v43, %v12823_v61  ;;  %v12824_v9 = vld [vmem:[#allocation4_spill] sm:$0xff] }
 0x2b0   : > { %12813 = vst [vmem:[#allocation106_spill] sm:$0xff] %v8940_v27  ;;  %12815 = vst [vmem:[#allocation105_spill] sm:$0xff] %v8943_v47  ;;  %v1826_v46 = vmul.f32 %v8052_v43, %v12821_v11  ;;  %v12822_v26 = vld [vmem:[#allocation149_spill] sm:$0xff]  ;;  %v12825_v48 = vld [vmem:[#allocation3_spill] sm:$0xff]  ;;  %v8988_v23 = vpop.permute.xlu1 %1720  ;;  %v8990_v2 = vpop.permute.xlu0 %1724 }
 0x2b1   : > { %12817 = vst [vmem:[#allocation114_spill] sm:$0xff] %v8946_v62  ;;  %12820 = vst [vmem:[#allocation109_spill] sm:$0xff] %v8955_v34  ;;  %v1827_v39 = vmul.f32 %v8052_v43, %v12822_v26  ;;  %v1829_v62 = vmul.f32 %v8052_v43, %v12824_v9  ;;  %v1830_v47 = vmul.f32 %v8052_v43, %v12825_v48  ;;  %v12826_v27 = vld [vmem:[#allocation15_spill] sm:$0xff]  ;;  %v6499_v15 = vld [vmem:[%s6613_s18 + $0x1d8] sm:$0xff] }
 0x2b2   : > { %v1831_v33 = vmul.f32 %v8052_v43, %v12826_v27  ;;  %2224 = vperm.xlu1 %6437, %v6499_v15   ;;  %v6500_v18 = vld [vmem:[%s6613_s18 + $0x1f0] sm:$0xff]  ;;  %v12828_v26 = vld [vmem:[#allocation19_spill] sm:$0xff]  ;;  %v12830_v17 = vld [vmem:[#allocation34_spill] sm:$0xff]  ;;  %12836 = vst [vmem:[#allocation108_spill] sm:$0xff] %v8988_v23 }
 0x2b3   : > { %2236 = vperm.xlu0 %6438, %v6500_v18   ;;  %v12827_v11 = vld [vmem:[#allocation192_spill] sm:$0xff]  ;;  %v1833_v42 = vmul.f32 %v8052_v43, %v12828_v26  ;;  %v1835_v48 = vmul.f32 %v8052_v43, %v12830_v17  ;;  %v12833_v15 = vld [vmem:[#allocation43_spill] sm:$0xff]  ;;  %v12834_v14 = vld [vmem:[#allocation41_spill] sm:$0xff]  ;;  %12837 = vst [vmem:[#allocation117_spill] sm:$0xff] %v8990_v2 }
 0x2b4   : > { %v1832_v34 = vmul.f32 %v8052_v43, %v12827_v11  ;;  %v12829_v61 = vld [vmem:[#allocation24_spill] sm:$0xff]  ;;  %v1836_v18 = vmul.f32 %v8052_v43, %v12833_v15  ;;  %v1837_v11 = vmul.f32 %v8052_v43, %v12834_v14  ;;  %v12835_v7 = vld [vmem:[#allocation46_spill] sm:$0xff]  ;;  %v12849_v23 = vld [vmem:[#allocation137_spill] sm:$0xff] }
 0x2b5   : > { %v1834_v9 = vmul.f32 %v8052_v43, %v12829_v61  ;;  %v12831_v22 = vld [vmem:[#allocation180_spill] sm:$0xff]  ;;  %v1838_v26 = vmul.f32 %v8052_v43, %v12835_v7  ;;  %v12838_v61 = vld [vmem:[#allocation179_spill] sm:$0xff]  ;;  %v12840_v17 = vld [vmem:[#allocation182_spill] sm:$0xff]  ;;  %v9010_v2 = vadd.f32 %v1831_v33, %v12849_v23 }
 0x2b6   : > { %v8980_v27 = vadd.f32 %v1825_v58, %v12831_v22  ;;  %v8993_v13 = vadd.f32 %v1826_v46, %v12838_v61  ;;  %v8996_v44 = vadd.f32 %v1827_v39, %v12840_v17  ;;  %v12842_v22 = vld [vmem:[#allocation181_spill] sm:$0xff]  ;;  %v12844_v15 = vld [vmem:[#allocation60_spill] sm:$0xff]  ;;  %v12847_v7 = vld [vmem:[#allocation183_spill] sm:$0xff] }
 0x2b7   : > { %v8999_v58 = vadd.f32 %v1828_v45, %v12842_v22  ;;  %v12845_v14 = vld [vmem:[#allocation184_spill] sm:$0xff]  ;;  %v9007_v12 = vadd.f32 %v1830_v47, %v12847_v7  ;;  %12850 = vst [vmem:[#allocation120_spill] sm:$0xff] %v9010_v2  ;;  %v6501_v46 = vld [vmem:[%s6613_s18 + $0x1e8] sm:$0xff]  ;;  %v6502_v61 = vld [vmem:[%s6613_s18 + $0x200] sm:$0xff] }
 0x2b8   : > { %12832 = vst [vmem:[#allocation118_spill] sm:$0xff] %v8980_v27  ;;  %12839 = vst [vmem:[#allocation107_spill] sm:$0xff] %v8993_v13  ;;  %v1839_v27 = vmul.f32 %v8052_v43, %v12844_v15  ;;  %v9004_v4 = vadd.f32 %v1829_v62, %v12845_v14  ;;  %2232 = vperm.xlu1 %6437, %v6501_v46   ;;  %2244 = vperm.xlu0 %6438, %v6502_v61   ;;  %v12851_v39 = vld [vmem:[#allocation185_spill] sm:$0xff]  ;;  %v12853_v45 = vld [vmem:[#allocation139_spill] sm:$0xff] }
 0x2b9   : > { %12841 = vst [vmem:[#allocation112_spill] sm:$0xff] %v8996_v44  ;;  %12843 = vst [vmem:[#allocation111_spill] sm:$0xff] %v8999_v58  ;;  %v9015_v17 = vadd.f32 %v1832_v34, %v12851_v39  ;;  %v9018_v22 = vadd.f32 %v1833_v42, %v12853_v45  ;;  %v12855_v15 = vld [vmem:[#allocation138_spill] sm:$0xff]  ;;  %v12857_v62 = vld [vmem:[#allocation143_spill] sm:$0xff] }
 0x2ba   : > { %12846 = vst [vmem:[#allocation116_spill] sm:$0xff] %v9004_v4  ;;  %12848 = vst [vmem:[#allocation115_spill] sm:$0xff] %v9007_v12  ;;  %v9021_v58 = vadd.f32 %v1834_v9, %v12855_v15  ;;  %v9024_v14 = vadd.f32 %v1835_v48, %v12857_v62  ;;  %v12859_v47 = vld [vmem:[#allocation142_spill] sm:$0xff]  ;;  %v12861_v33 = vld [vmem:[#allocation145_spill] sm:$0xff]  ;;  %v1989_v62 = vpop.permute.xlu1 %1988 }
 0x2bb   : > { %12852 = vst [vmem:[#allocation119_spill] sm:$0xff] %v9015_v17  ;;  %12854 = vst [vmem:[#allocation124_spill] sm:$0xff] %v9018_v22  ;;  %v9027_v23 = vadd.f32 %v1836_v18, %v12859_v47  ;;  %v9030_v7 = vadd.f32 %v1837_v11, %v12861_v33  ;;  %v12863_v46 = vld [vmem:[#allocation144_spill] sm:$0xff]  ;;  %v12865_v61 = vld [vmem:[#allocation59_spill] sm:$0xff]  ;;  %v1843_v11 = vmul.f32 %v8052_v43, %v8690_v36  ;;  %v1993_v47 = vpop.permute.xlu0 %1992 }
 0x2bc   : > { %12856 = vst [vmem:[#allocation123_spill] sm:$0xff] %v9021_v58  ;;  %12858 = vst [vmem:[#allocation128_spill] sm:$0xff] %v9024_v14  ;;  %v9033_v34 = vadd.f32 %v1838_v26, %v12863_v46  ;;  %v1840_v42 = vmul.f32 %v8052_v43, %v12865_v61  ;;  %v12866_v9 = vld [vmem:[#allocation186_spill] sm:$0xff]  ;;  %v12868_v48 = vld [vmem:[#allocation68_spill] sm:$0xff]  ;;  %v1844_v26 = vmul.f32 %v8052_v43, %v8692_v24 }
 0x2bd   : > { %12860 = vst [vmem:[#allocation122_spill] sm:$0xff] %v9027_v23  ;;  %12862 = vst [vmem:[#allocation127_spill] sm:$0xff] %v9030_v7  ;;  %v9038_v39 = vadd.f32 %v1839_v27, %v12866_v9  ;;  %v1841_v45 = vmul.f32 %v8052_v43, %v12868_v48  ;;  %v12869_v15 = vld [vmem:[#allocation155_spill] sm:$0xff]  ;;  %v2503_v33 = vmul.f32 %v8787_v16, %v1989_v62  ;;  %v6503_v46 = vld [vmem:[%s6613_s18 + $0x1f8] sm:$0xff] }
 0x2be   : > { %12864 = vst [vmem:[#allocation131_spill] sm:$0xff] %v9033_v34  ;;  %v1842_v18 = vmul.f32 %v8052_v43, %v12869_v15  ;;  %v2504_v27 = vmul.f32 %v8787_v16, %v1993_v47  ;;  %2240 = vperm.xlu1 %6437, %v6503_v46   ;;  %v6504_v61 = vld [vmem:[%s6613_s18 + $0x210] sm:$0xff]  ;;  %v1845_v9 = vmul.f32 %v8052_v43, %v8728_v25  ;;  %v12870_v48 = vld [vmem:[#allocation90_spill] sm:$0xff]  ;;  %v12877_v7 = vld [vmem:[#allocation187_spill] sm:$0xff]  ;;  %v1997_v58 = vpop.permute.xlu1 %1996 }
 0x2bf   : > { %12867 = vst [vmem:[#allocation152_spill] sm:$0xff] %v9038_v39  ;;  %2252 = vperm.xlu0 %6438, %v6504_v61   ;;  %v1846_v36 = vmul.f32 %v8052_v43, %v12870_v48  ;;  %v1847_v15 = vmul.f32 %v8052_v43, %v8776_v5  ;;  %v1848_v24 = vmul.f32 %v8052_v43, %v8778_v30  ;;  %v12871_v46 = vld [vmem:[#allocation18_spill] sm:$0xff]  ;;  %v12875_v5 = vld [vmem:[#allocation188_spill] sm:$0xff]  ;;  %v12881_v17 = vld [vmem:[#allocation147_spill] sm:$0xff] }
 0x2c0   : > { %v1849_v62 = vmul.f32 %v8052_v43, %v8814_v10  ;;  %v1850_v47 = vmul.f32 %v8052_v43, %v8816_v51  ;;  %v2631_v61 = vadd.f32 %v2503_v33, %v12871_v46  ;;  %v12872_v25 = vld [vmem:[#allocation22_spill] sm:$0xff]  ;;  %v9070_v23 = vadd.f32 %v1841_v45, %v12875_v5  ;;  %v12879_v14 = vld [vmem:[#allocation148_spill] sm:$0xff]  ;;  %v6505_v46 = vld [vmem:[%s6613_s18 + $0x208] sm:$0xff] }
 0x2c1   : > { %v2632_v34 = vadd.f32 %v2504_v27, %v12872_v25  ;;  %v12873_v48 = vld [vmem:[#allocation146_spill] sm:$0xff]  ;;  %v9073_v30 = vadd.f32 %v1842_v18, %v12877_v7  ;;  %v9076_v10 = vadd.f32 %v1843_v11, %v12879_v14  ;;  %v9079_v51 = vadd.f32 %v1844_v26, %v12881_v17  ;;  %v12883_v7 = vld [vmem:[#allocation191_spill] sm:$0xff]  ;;  %v12885_v14 = vld [vmem:[#allocation189_spill] sm:$0xff] }
 0x2c2   : > { %v9067_v39 = vadd.f32 %v1840_v42, %v12873_v48  ;;  %12876 = vst [vmem:[#allocation126_spill] sm:$0xff] %v9070_v23  ;;  %v1851_v33 = vmul.f32 %v8052_v43, %v8863_v54  ;;  %v9083_v27 = vmax.f32 %v2631_v61, 0.0  ;;  %2248 = vperm.xlu1 %6437, %v6505_v46   ;;  %v6506_v45 = vld [vmem:[%s6613_s18 + $0x220] sm:$0xff]  ;;  %v9090_v18 = vadd.f32 %v1845_v9, %v12883_v7  ;;  %v2005_v54 = vpop.permute.xlu0 %2004  ;;  %v12893_v5 = vld [vmem:[#allocation151_spill] sm:$0xff]  ;;  %v6515_v23 = vld [vmem:[%s6613_s18 + $0x258] sm:$0xff] }
 0x2c3   : > { %12878 = vst [vmem:[#allocation125_spill] sm:$0xff] %v9073_v30  ;;  %12880 = vst [vmem:[#allocation164_spill] sm:$0xff] %v9076_v10  ;;  %v9085_v42 = vmax.f32 %v2632_v34, 0.0  ;;  %2260 = vperm.xlu0 %6438, %v6506_v45   ;;  %v9093_v11 = vadd.f32 %v1846_v36, %v12885_v14  ;;  %v12887_v25 = vld [vmem:[#allocation2_spill] sm:$0xff]  ;;  %v9105_v46 = vadd.f32 %v1850_v47, %v12893_v5  ;;  %v6519_v4 = vld [vmem:[%s6613_s18 + $0x278] sm:$0xff] }
 0x2c4   : > { %12874 = vst [vmem:[#allocation121_spill] sm:$0xff] %v9067_v39  ;;  %12882 = vst [vmem:[#allocation129_spill] sm:$0xff] %v9079_v51  ;;  %v9096_v17 = vadd.f32 %v1847_v15, %v12887_v25  ;;  %v12889_v26 = vld [vmem:[#allocation150_spill] sm:$0xff]  ;;  %v3016_v9 = vrot.slane %v9083_v27, 1  ;;  %v2505_v36 = vmul.f32 %v8787_v16, %v1997_v58  ;;  %v1852_v15 = vmul.f32 %v8052_v43, %v8865_v6  ;;  %v6507_v58 = vld [vmem:[%s6613_s18 + $0x218] sm:$0xff] }
 0x2c5   : > { %12884 = vst [vmem:[#allocation132_spill] sm:$0xff] %v9090_v18  ;;  %12886 = vst [vmem:[#allocation153_spill] sm:$0xff] %v9093_v11  ;;  %v9099_v48 = vadd.f32 %v1848_v24, %v12889_v26  ;;  %v12891_v34 = vld [vmem:[#allocation6_spill] sm:$0xff]  ;;  %v3465_v24 = vrot.slane %v9083_v27, 2  ;;  %v3017_v45 = vrot.slane %v9085_v42, 1  ;;  %v3466_v7 = vrot.slane %v9085_v42, 2 }
 0x2c6   : > { %12888 = vst [vmem:[#allocation154_spill] sm:$0xff] %v9096_v17  ;;  %v9102_v61 = vadd.f32 %v1849_v62, %v12891_v34  ;;  %12894 = vst [vmem:[#allocation37_spill] sm:$0xff] %v9105_v46  ;;  %v2001_v62 = vpop.permute.xlu1 %2000  ;;  %v12895_v14 = vld [vmem:[#allocation10_spill] sm:$0xff]  ;;  %v1853_v47 = vmul.f32 %v8052_v43, %v8901_v63  ;;  %v2507_v26 = vmul.f32 %v8787_v16, %v2005_v54  ;;  %2256 = vperm.xlu1 %6437, %v6507_v58   ;;  %v6508_v34 = vld [vmem:[%s6613_s18 + $0x230] sm:$0xff] }
 0x2c7   : > { %12890 = vst [vmem:[#allocation13_spill] sm:$0xff] %v9099_v48  ;;  %v9115_v25 = vadd.f32 %v1851_v33, %v12895_v14  ;;  %2268 = vperm.xlu0 %6438, %v6508_v34   ;;  %v3914_v6 = vrot.slane %v9083_v27, 3  ;;  %v3018_v5 = vsel %vm3015_vm0, %v3016_v9, %v3017_v45  ;;  %v3337_v46 = vadd.f32 %v3017_v45, %v9085_v42  ;;  %v12901_v39 = vld [vmem:[#allocation12_spill] sm:$0xff] }
 0x2c8   : > { %12892 = vst [vmem:[#allocation14_spill] sm:$0xff] %v9102_v61  ;;  %v3915_v33 = vrot.slane %v9085_v42, 3  ;;  %v1854_v14 = vmul.f32 %v8052_v43, %v8903_v37  ;;  %v4363_v63 = vrot.slane %v9083_v27, 4  ;;  %v3336_v54 = vadd.f32 %v3018_v5, %v9083_v27  ;;  %v2013_v61 = vpop.permute.xlu0 %2012  ;;  %v6509_v5 = vld [vmem:[%s6613_s18 + $0x228] sm:$0xff] }
 0x2c9   : > { %12896 = vst [vmem:[#allocation38_spill] sm:$0xff] %v9115_v25  ;;  %v12897_v25 = vld [vmem:[#allocation17_spill] sm:$0xff]  ;;  %v4812_v34 = vrot.slane %v9083_v27, 5  ;;  %v5261_v48 = vrot.slane %v9083_v27, 6  ;;  %v3467_v9 = vsel %vm3464_vm1, %v3465_v24, %v3466_v7  ;;  %v3786_v45 = vadd.f32 %v3466_v7, %v3337_v46  ;;  %v12898_v27 = vld [vmem:[#allocation26_spill] sm:$0xff] }
 0x2ca   : > { %v2633_v58 = vadd.f32 %v2505_v36, %v12897_v25  ;;  %v2009_v11 = vpop.permute.xlu1 %2008  ;;  %v3785_v17 = vadd.f32 %v3467_v9, %v3336_v54  ;;  %v4364_v51 = vrot.slane %v9085_v42, 4  ;;  %v4813_v37 = vrot.slane %v9085_v42, 5  ;;  %2264 = vperm.xlu1 %6437, %v6509_v5   ;;  %v6510_v46 = vld [vmem:[%s6613_s18 + $0x240] sm:$0xff]  ;;  %v12899_v7 = vld [vmem:[#allocation5_spill] sm:$0xff] }
 0x2cb   : > { %v2506_v18 = vmul.f32 %v8787_v16, %v2001_v62  ;;  %v3916_v36 = vsel %vm3913_vm2, %v3914_v6, %v3915_v33  ;;  %v4235_v25 = vadd.f32 %v3915_v33, %v3786_v45  ;;  %v5262_v30 = vrot.slane %v9085_v42, 6  ;;  %2276 = vperm.xlu0 %6438, %v6510_v46   ;;  %v12903_v6 = vld [vmem:[#allocation9_spill] sm:$0xff]  ;;  %v6512_v46 = vld [vmem:[%s6613_s18 + $0x250] sm:$0xff] }
 0x2cc   : > { %v2635_v24 = vadd.f32 %v2507_v26, %v12898_v27  ;;  %v9143_v54 = vadd.f32 %v1852_v15, %v12899_v7  ;;  %v4234_v9 = vadd.f32 %v3916_v36, %v3785_v17  ;;  %v9145_v10 = vmax.f32 %v2633_v58, 0.0  ;;  %v12905_v26 = vld [vmem:[#allocation21_spill] sm:$0xff]  ;;  %v2021_v27 = vpop.permute.xlu0 %2020 }
 0x2cd   : > { %v2508_v62 = vmul.f32 %v8787_v16, %v2009_v11  ;;  %v9149_v5 = vadd.f32 %v1853_v47, %v12901_v39  ;;  %v9152_v33 = vadd.f32 %v1854_v14, %v12903_v6  ;;  %v9156_v42 = vmul.f32 %v8052_v43, %v8950_v1  ;;  %v6511_v47 = vld [vmem:[%s6613_s18 + $0x238] sm:$0xff]  ;;  %v12907_v6 = vld [vmem:[#allocation23_spill] sm:$0xff] }
 0x2ce   : > { %12900 = vst [vmem:[#allocation50_spill] sm:$0xff] %v9143_v54  ;;  %v2634_v45 = vadd.f32 %v2506_v18, %v12905_v26  ;;  %v9161_v17 = vmul.f32 %v8052_v43, %v8952_v21  ;;  %v4365_v15 = vsel %vm4362_vm3, %v4363_v63, %v4364_v51  ;;  %v4684_v11 = vadd.f32 %v4364_v51, %v4235_v25  ;;  %v2017_v18 = vpop.permute.xlu1 %2016  ;;  %v12906_v63 = vld [vmem:[#allocation20_spill] sm:$0xff] }
 0x2cf   : > { %12902 = vst [vmem:[#allocation53_spill] sm:$0xff] %v9149_v5  ;;  %12904 = vst [vmem:[#allocation70_spill] sm:$0xff] %v9152_v33  ;;  %v2509_v39 = vmul.f32 %v8787_v16, %v2013_v61  ;;  %2272 = vperm.xlu1 %6437, %v6511_v47   ;;  %v4683_v58 = vadd.f32 %v4365_v15, %v4234_v9  ;;  %v4814_v14 = vsel %vm4811_vm4, %v4812_v34, %v4813_v37 }
 0x2d0   : > { %v5263_v36 = vsel %vm5260_vm5, %v5261_v48, %v5262_v30  ;;  %v9168_v1 = vmax.f32 %v2635_v24, 0.0  ;;  %2284 = vperm.xlu0 %6438, %v6512_v46   ;;  %v3019_v21 = vrot.slane %v9145_v10, 1  ;;  %v3468_v51 = vrot.slane %v9145_v10, 2  ;;  %v6513_v46 = vld [vmem:[%s6613_s18 + $0x248] sm:$0xff]  ;;  %v6514_v24 = vld [vmem:[%s6613_s18 + $0x260] sm:$0xff]  ;;  %v2029_v12 = vpop.permute.xlu0 %2028 }
 0x2d1   : > { %v3917_v61 = vrot.slane %v9145_v10, 3  ;;  %v2636_v25 = vadd.f32 %v2508_v62, %v12906_v63  ;;  %v4366_v34 = vrot.slane %v9145_v10, 4  ;;  %v4815_v48 = vrot.slane %v9145_v10, 5 }
 0x2d2   : > { %v9178_v7 = vmax.f32 %v2634_v45, 0.0  ;;  %v5133_v9 = vadd.f32 %v4813_v37, %v4684_v11  ;;  %v2637_v26 = vadd.f32 %v2509_v39, %v12907_v6  ;;  %v2511_v15 = vmul.f32 %v8787_v16, %v2021_v27 }
 0x2d3   : > { %v2510_v47 = vmul.f32 %v8787_v16, %v2017_v18  ;;  %2280 = vperm.xlu1 %6437, %v6513_v46   ;;  %v5132_v33 = vadd.f32 %v4814_v14, %v4683_v58  ;;  %v3022_v62 = vrot.slane %v9168_v1, 1  ;;  %v3471_v37 = vrot.slane %v9168_v1, 2 }
 0x2d4   : > { %v3020_v63 = vrot.slane %v9178_v7, 1  ;;  %v3469_v5 = vrot.slane %v9178_v7, 2  ;;  %2292 = vperm.xlu0 %6438, %v6514_v24   ;;  %v3920_v45 = vrot.slane %v9168_v1, 3  ;;  %v4369_v11 = vrot.slane %v9168_v1, 4 }
 0x2d5   : > { %v9191_v39 = vmax.f32 %v2636_v25, 0.0  ;;  %v3918_v18 = vrot.slane %v9178_v7, 3  ;;  %v9197_v6 = vadd.f32 %v5262_v30, %v5133_v9  ;;  %v9201_v54 = vmax.f32 %v2637_v26, 0.0 }
 0x2d6   : > { %v3021_v14 = vsel %vm3015_vm0, %v3019_v21, %v3020_v63  ;;  %v3339_v27 = vadd.f32 %v3020_v63, %v9178_v7  ;;  %v9204_v25 = vadd.f32 %v5263_v36, %v5132_v33  ;;  %v3470_v58 = vsel %vm3464_vm1, %v3468_v51, %v3469_v5  ;;  %v12908_v21 = vld [vmem:[#allocation27_spill] sm:$0xff]  ;;  %v6516_v63 = vld [vmem:[%s6613_s18 + $0x270] sm:$0xff] }
 0x2d7   : > { %v3338_v46 = vadd.f32 %v3021_v14, %v9145_v10  ;;  %2288 = vperm.xlu1 %6437, %v6515_v23   ;;  %v2639_v2 = vadd.f32 %v2511_v15, %v12908_v21  ;;  %v3023_v9 = vrot.slane %v9191_v39, 1  ;;  %v3472_v24 = vrot.slane %v9191_v39, 2  ;;  %v12909_v14 = vld [vmem:[#allocation28_spill] sm:$0xff] }
 0x2d8   : > { %v3788_v22 = vadd.f32 %v3469_v5, %v3339_v27  ;;  %2300 = vperm.xlu0 %6438, %v6516_v63   ;;  %v2638_v26 = vadd.f32 %v2510_v47, %v12909_v14  ;;  %v3919_v23 = vsel %vm3913_vm2, %v3917_v61, %v3918_v18  ;;  %v4367_v36 = vrot.slane %v9178_v7, 4  ;;  %v6518_v61 = vld [vmem:[%s6613_s18 + $0x280] sm:$0xff] }
 0x2d9   : > { %v3787_v30 = vadd.f32 %v3470_v58, %v3338_v46  ;;  %v4816_v5 = vrot.slane %v9178_v7, 5  ;;  %v3024_v15 = vsel %vm3015_vm0, %v3022_v62, %v3023_v9  ;;  %v3341_v58 = vadd.f32 %v3023_v9, %v9191_v39  ;;  %v6517_v46 = vld [vmem:[%s6613_s18 + $0x268] sm:$0xff] }
 0x2da   : > { %v4237_v33 = vadd.f32 %v3918_v18, %v3788_v22  ;;  %v3921_v27 = vrot.slane %v9191_v39, 3  ;;  %v5265_v47 = vrot.slane %v9178_v7, 6  ;;  %v3340_v63 = vadd.f32 %v3024_v15, %v9168_v1 }
 0x2db   : > { %v4236_v51 = vadd.f32 %v3919_v23, %v3787_v30  ;;  %2296 = vperm.xlu1 %6437, %v6517_v46   ;;  %v2513_v22 = vmul.f32 %v8787_v16, %v2029_v12  ;;  %v3025_v18 = vrot.slane %v9201_v54, 1  ;;  %v3473_v62 = vsel %vm3464_vm1, %v3471_v37, %v3472_v24 }
 0x2dc   : > { %v4686_v21 = vadd.f32 %v4367_v36, %v4237_v33  ;;  %2308 = vperm.xlu0 %6438, %v6518_v61   ;;  %v3790_v30 = vadd.f32 %v3472_v24, %v3341_v58  ;;  %v4370_v9 = vrot.slane %v9191_v39, 4  ;;  %v4368_v14 = vsel %vm4362_vm3, %v4366_v34, %v4367_v36  ;;  %v6520_v34 = vld [vmem:[%s6613_s18 + $0x290] sm:$0xff] }
 0x2dd   : > { %v4817_v23 = vsel %vm4811_vm4, %v4815_v48, %v4816_v5  ;;  %v3474_v7 = vrot.slane %v9201_v54, 2  ;;  %v3789_v33 = vadd.f32 %v3473_v62, %v3340_v63  ;;  %v4685_v15 = vadd.f32 %v4368_v14, %v4236_v51  ;;  %v2037_v14 = vpop.permute.xlu0 %2036 }
 0x2de   : > { %v3922_v12 = vsel %vm3913_vm2, %v3920_v45, %v3921_v27  ;;  %v4239_v46 = vadd.f32 %v3921_v27, %v3790_v30  ;;  %v9230_v61 = vmax.f32 %v2638_v26, 0.0  ;;  %v5135_v37 = vadd.f32 %v4816_v5, %v4686_v21  ;;  %v2025_v30 = vpop.permute.xlu1 %2024 }
 0x2df   : > { %2304 = vperm.xlu1 %6437, %v6519_v4   ;;  %v4238_v24 = vadd.f32 %v3922_v12, %v3789_v33  ;;  %v4819_v58 = vrot.slane %v9191_v39, 5  ;;  %v5268_v44 = vrot.slane %v9191_v39, 6  ;;  %v12910_v48 = vrot.slane %v9145_v10, 6  ;;  %v6521_v33 = vld [vmem:[%s6613_s18 + $0x288] sm:$0xff] }
 0x2e0   : > { %2316 = vperm.xlu0 %6438, %v6520_v34   ;;  %v3923_v45 = vrot.slane %v9201_v54, 3  ;;  %v4371_v26 = vsel %vm4362_vm3, %v4369_v11, %v4370_v9  ;;  %v4688_v51 = vadd.f32 %v4370_v9, %v4239_v46  ;;  %v4372_v4 = vrot.slane %v9201_v54, 4 }
 0x2e1   : > { %v5266_v36 = vsel %vm5260_vm5, %v12910_v48, %v5265_v47  ;;  %v4821_v5 = vrot.slane %v9201_v54, 5  ;;  %v4687_v27 = vadd.f32 %v4371_v26, %v4238_v24  ;;  %v9243_v21 = vmax.f32 %v2639_v2, 0.0  ;;  %v6522_v24 = vld [vmem:[%s6613_s18 + $0x2a0] sm:$0xff] }
 0x2e2   : > { %v5134_v39 = vadd.f32 %v4817_v23, %v4685_v15  ;;  %v5270_v63 = vrot.slane %v9201_v54, 6  ;;  %v3026_v10 = vrot.slane %v9230_v61, 1  ;;  %v3475_v62 = vrot.slane %v9230_v61, 2  ;;  %v12913_v23 = vld [vmem:[#allocation31_spill] sm:$0xff] }
 0x2e3   : > { %2312 = vperm.xlu1 %6437, %v6521_v33   ;;  %v5584_v11 = vadd.f32 %v5265_v47, %v5135_v37  ;;  %v12911_v9 = vrot.slane %v9168_v1, 5  ;;  %v12912_v46 = vrot.slane %v9168_v1, 6  ;;  %v2641_v15 = vadd.f32 %v2513_v22, %v12913_v23 }
 0x2e4   : > { %2324 = vperm.xlu0 %6438, %v6522_v24   ;;  %v5137_v34 = vadd.f32 %v4819_v58, %v4688_v51  ;;  %v3027_v48 = vsel %vm3015_vm0, %v3025_v18, %v3026_v10  ;;  %v3343_v26 = vadd.f32 %v3026_v10, %v9230_v61  ;;  %v3924_v47 = vrot.slane %v9230_v61, 3  ;;  %v6523_v51 = vld [vmem:[%s6613_s18 + $0x298] sm:$0xff] }
 0x2e5   : > { %v4820_v12 = vsel %vm4811_vm4, %v12911_v9, %v4819_v58  ;;  %v5269_v2 = vsel %vm5260_vm5, %v12912_v46, %v5268_v44  ;;  %v3028_v33 = vrot.slane %v9243_v21, 1  ;;  %v3342_v9 = vadd.f32 %v3027_v48, %v9201_v54  ;;  %v2045_v48 = vpop.permute.xlu0 %2044  ;;  %v6528_v54 = vld [vmem:[%s6613_s18 + $0x2d0] sm:$0xff] }
 0x2e6   : > { %v5136_v37 = vadd.f32 %v4820_v12, %v4687_v27  ;;  %v5583_v46 = vadd.f32 %v5266_v36, %v5134_v39  ;;  %v3926_v22 = vrot.slane %v9243_v21, 3  ;;  %v3476_v23 = vsel %vm3464_vm1, %v3474_v7, %v3475_v62  ;;  %v6524_v12 = vld [vmem:[%s6613_s18 + $0x2b0] sm:$0xff] }
 0x2e7   : > { %v3792_v58 = vadd.f32 %v3475_v62, %v3343_v26  ;;  %2320 = vperm.xlu1 %6437, %v6523_v51   ;;  %v5710_v18 = vadd.f32 %v5584_v11, %v9197_v6  ;;  %v4375_v10 = vrot.slane %v9243_v21, 4  ;;  %v3791_v24 = vadd.f32 %v3476_v23, %v3342_v9  ;;  %v2033_v62 = vpop.permute.xlu1 %2032  ;;  %v12917_v51 = vld [vmem:[#allocation40_spill] sm:$0xff] }
 0x2e8   : > { %v4373_v27 = vrot.slane %v9230_v61, 4  ;;  %2332 = vperm.xlu0 %6438, %v6524_v12   ;;  %v9270_v1 = vadd.f32 %v5268_v44, %v5137_v34  ;;  %v3925_v36 = vsel %vm3913_vm2, %v3923_v45, %v3924_v47  ;;  %v2512_v7 = vmul.f32 %v8787_v16, %v2025_v30  ;;  %v6525_v45 = vld [vmem:[%s6613_s18 + $0x2a8] sm:$0xff] }
 0x2e9   : > { %v4241_v39 = vadd.f32 %v3924_v47, %v3792_v58  ;;  %v9274_v26 = vadd.f32 %v5269_v2, %v5136_v37  ;;  %v4240_v9 = vadd.f32 %v3925_v36, %v3791_v24  ;;  %v4822_v23 = vrot.slane %v9230_v61, 5  ;;  %v6526_v58 = vld [vmem:[%s6613_s18 + $0x2c0] sm:$0xff] }
 0x2ea   : > { %v5271_v44 = vrot.slane %v9230_v61, 6  ;;  %v9280_v34 = vmax.f32 %v2641_v15, 0.0  ;;  %v5709_v30 = vadd.f32 %v5583_v46, %v9204_v25  ;;  %v4374_v47 = vsel %vm4362_vm3, %v4372_v4, %v4373_v27  ;;  %v12914_v15 = vld [vmem:[#allocation32_spill] sm:$0xff] }
 0x2eb   : > { %v4690_v12 = vadd.f32 %v4373_v27, %v4241_v39  ;;  %2328 = vperm.xlu1 %6437, %v6525_v45   ;;  %v2515_v2 = vmul.f32 %v8787_v16, %v2037_v14  ;;  %v2514_v37 = vmul.f32 %v8787_v16, %v2033_v62  ;;  %v5712_v24 = vadd.f32 %v9270_v1, %v5584_v11  ;;  %v2053_v62 = vpop.permute.xlu0 %2052 }
 0x2ec   : > { %2340 = vperm.xlu0 %6438, %v6526_v58   ;;  %v5790_v36 = vadd.f32 %v5710_v18, %v9270_v1  ;;  %v4689_v61 = vadd.f32 %v4374_v47, %v4240_v9  ;;  %v2640_v39 = vadd.f32 %v2512_v7, %v12914_v15  ;;  %v9292_v45 = vadd.f32 %v9274_v26, %v5583_v46  ;;  %v2041_v46 = vpop.permute.xlu1 %2040  ;;  %v6527_v9 = vld [vmem:[%s6613_s18 + $0x2b8] sm:$0xff] }
 0x2ed   : > { %v9295_v25 = vadd.f32 %v5709_v30, %v9274_v26  ;;  %v4823_v4 = vsel %vm4811_vm4, %v4821_v5, %v4822_v23  ;;  %v2517_v14 = vmul.f32 %v8787_v16, %v2045_v48  ;;  %v5139_v27 = vadd.f32 %v4822_v23, %v4690_v12  ;;  %v12915_v5 = vld [vmem:[#allocation35_spill] sm:$0xff]  ;;  %v12916_v48 = vld [vmem:[#allocation36_spill] sm:$0xff] }
 0x2ee   : > { %v5272_v11 = vsel %vm5260_vm5, %v5270_v63, %v5271_v44  ;;  %v3031_v18 = vrot.slane %v9280_v34, 1  ;;  %v9305_v7 = vmax.f32 %v2640_v39, 0.0  ;;  %v3480_v30 = vrot.slane %v9280_v34, 2  ;;  %v12920_v12 = vld [vmem:[#allocation44_spill] sm:$0xff] }
 0x2ef   : > { %2336 = vperm.xlu1 %6437, %v6527_v9   ;;  %v2643_v58 = vadd.f32 %v2515_v2, %v12915_v5  ;;  %v2642_v23 = vadd.f32 %v2514_v37, %v12916_v48  ;;  %v5138_v63 = vadd.f32 %v4823_v4, %v4689_v61  ;;  %v2645_v6 = vadd.f32 %v2517_v14, %v12917_v51  ;;  %v6529_v48 = vld [vmem:[%s6613_s18 + $0x2c8] sm:$0xff] }
 0x2f0   : > { %2348 = vperm.xlu0 %6438, %v6528_v54   ;;  %v3029_v39 = vrot.slane %v9305_v7, 1  ;;  %v3478_v9 = vrot.slane %v9305_v7, 2  ;;  %v2516_v47 = vmul.f32 %v8787_v16, %v2041_v46  ;;  %v2519_v2 = vmul.f32 %v8787_v16, %v2053_v62 }
 0x2f1   : > { %v9320_v5 = vadd.f32 %v5271_v44, %v5139_v27  ;;  %v3927_v4 = vrot.slane %v9305_v7, 3  ;;  %v9330_v14 = vmax.f32 %v2643_v58, 0.0  ;;  %v9332_v46 = vmax.f32 %v2642_v23, 0.0  ;;  %v6530_v44 = vld [vmem:[%s6613_s18 + $0x2e0] sm:$0xff]  ;;  %v12919_v58 = vld [vmem:[#allocation25_spill] sm:$0xff] }
 0x2f2   : > { %v3030_v37 = vsel %vm3015_vm0, %v3028_v33, %v3029_v39  ;;  %v3345_v61 = vadd.f32 %v3029_v39, %v9305_v7  ;;  %v9335_v27 = vadd.f32 %v5272_v11, %v5138_v63  ;;  %v12918_v33 = vrot.slane %v9243_v21, 2 }
 0x2f3   : > { %2344 = vperm.xlu1 %6437, %v6529_v48   ;;  %v3344_v51 = vadd.f32 %v3030_v37, %v9243_v21  ;;  %v4376_v48 = vrot.slane %v9305_v7, 4  ;;  %v9341_v15 = vmax.f32 %v2645_v6, 0.0  ;;  %v2644_v37 = vadd.f32 %v2516_v47, %v12919_v58 }
 0x2f4   : > { %2356 = vperm.xlu0 %6438, %v6530_v44   ;;  %v3479_v62 = vsel %vm3464_vm1, %v12918_v33, %v3478_v9  ;;  %v3794_v39 = vadd.f32 %v3478_v9, %v3345_v61  ;;  %v9345_v23 = vadd.f32 %v2519_v2, %v12920_v12  ;;  %v9349_v11 = vadd.f32 %v9320_v5, %v9270_v1  ;;  %v6531_v44 = vld [vmem:[%s6613_s18 + $0x2d8] sm:$0xff]  ;;  %v6532_v2 = vld [vmem:[%s6613_s18 + $0x2f0] sm:$0xff] }
 0x2f5   : > { %v3793_v54 = vadd.f32 %v3479_v62, %v3344_v51  ;;  %v3928_v63 = vsel %vm3913_vm2, %v3926_v22, %v3927_v4  ;;  %v4825_v61 = vrot.slane %v9305_v7, 5  ;;  %v5792_v6 = vadd.f32 %v5712_v24, %v9320_v5 }
 0x2f6   : > { %v4243_v9 = vadd.f32 %v3927_v4, %v3794_v39  ;;  %v3032_v47 = vrot.slane %v9332_v46, 1  ;;  %v3481_v12 = vrot.slane %v9332_v46, 2  ;;  %v5713_v1 = vadd.f32 %v9335_v27, %v9274_v26 }
 0x2f7   : > { %2352 = vperm.xlu1 %6437, %v6531_v44   ;;  %v4242_v51 = vadd.f32 %v3928_v63, %v3793_v54  ;;  %v5870_v22 = vadd.f32 %v5790_v36, %v9320_v5  ;;  %v4377_v4 = vsel %vm4362_vm3, %v4375_v10, %v4376_v48  ;;  %v5274_v54 = vrot.slane %v9305_v7, 6  ;;  %v6533_v10 = vld [vmem:[%s6613_s18 + $0x2e8] sm:$0xff] }
 0x2f8   : > { %2364 = vperm.xlu0 %6438, %v6532_v2   ;;  %v4692_v33 = vadd.f32 %v4376_v48, %v4243_v9  ;;  %v3033_v62 = vsel %vm3015_vm0, %v3031_v18, %v3032_v47  ;;  %v3347_v39 = vadd.f32 %v3032_v47, %v9332_v46  ;;  %v5791_v58 = vadd.f32 %v9292_v45, %v9335_v27 }
 0x2f9   : > { %v4691_v24 = vadd.f32 %v4377_v4, %v4242_v51  ;;  %v12921_v26 = vrot.slane %v9243_v21, 5  ;;  %v3346_v44 = vadd.f32 %v3033_v62, %v9280_v34  ;;  %v3482_v48 = vsel %vm3464_vm1, %v3480_v30, %v3481_v12  ;;  %v6534_v51 = vld [vmem:[%s6613_s18 + $0x300] sm:$0xff] }
 0x2fa   : > { %v5141_v63 = vadd.f32 %v4825_v61, %v4692_v33  ;;  %v3796_v9 = vadd.f32 %v3481_v12, %v3347_v39  ;;  %v3930_v7 = vrot.slane %v9332_v46, 3  ;;  %v4379_v18 = vrot.slane %v9332_v46, 4 }
 0x2fb   : > { %v4826_v36 = vsel %vm4811_vm4, %v12921_v26, %v4825_v61  ;;  %2360 = vperm.xlu1 %6437, %v6533_v10   ;;  %v5869_v45 = vadd.f32 %v9295_v25, %v9335_v27  ;;  %v3795_v2 = vadd.f32 %v3482_v48, %v3346_v44  ;;  %v4828_v61 = vrot.slane %v9332_v46, 5 }
 0x2fc   : > { %2372 = vperm.xlu0 %6438, %v6534_v51   ;;  %v5140_v47 = vadd.f32 %v4826_v36, %v4691_v24  ;;  %v12922_v4 = vrot.slane %v9243_v21, 6  ;;  %v3034_v12 = vrot.slane %v9330_v14, 1  ;;  %v4245_v33 = vadd.f32 %v3930_v7, %v3796_v9  ;;  %v6535_v36 = vld [vmem:[%s6613_s18 + $0x2f8] sm:$0xff]  ;;  %v2049_v21 = vpop.permute.xlu1 %2048 }
 0x2fd   : > { %v5277_v62 = vrot.slane %v9332_v46, 6  ;;  %v9388_v39 = vadd.f32 %v5274_v54, %v5141_v63  ;;  %v3483_v26 = vrot.slane %v9330_v14, 2  ;;  %v12923_v10 = vrot.slane %v9280_v34, 3  ;;  %v6536_v63 = vld [vmem:[%s6613_s18 + $0x310] sm:$0xff] }
 0x2fe   : > { %v5275_v30 = vsel %vm5260_vm5, %v12922_v4, %v5274_v54  ;;  %v12924_v46 = vrot.slane %v9280_v34, 4  ;;  %v4694_v4 = vadd.f32 %v4379_v18, %v4245_v33  ;;  %v12926_v24 = vrot.slane %v9280_v34, 6  ;;  %v6537_v33 = vld [vmem:[%s6613_s18 + $0x308] sm:$0xff] }
 0x2ff   : > { %2368 = vperm.xlu1 %6437, %v6535_v36   ;;  %v3931_v48 = vsel %vm3913_vm2, %v12923_v10, %v3930_v7  ;;  %v9403_v9 = vadd.f32 %v5275_v30, %v5140_v47  ;;  %v12925_v36 = vrot.slane %v9280_v34, 5  ;;  %v3037_v10 = vrot.slane %v9341_v15, 1  ;;  %v6539_v30 = vld [vmem:[%s6613_s18 + $0x318] sm:$0xff] }
 0x300   : > { %v4380_v54 = vsel %vm4362_vm3, %v12924_v46, %v4379_v18  ;;  %2380 = vperm.xlu0 %6438, %v6536_v63   ;;  %v4244_v51 = vadd.f32 %v3931_v48, %v3795_v2  ;;  %v5278_v7 = vsel %vm5260_vm5, %v12926_v24, %v5277_v62  ;;  %v9413_v25 = vmax.f32 %v2644_v37, 0.0  ;;  %v6538_v37 = vld [vmem:[%s6613_s18 + $0x320] sm:$0xff]  ;;  %v6541_v46 = vld [vmem:[%s6613_s18 + $0x328] sm:$0xff] }
 0x301   : > { %v4829_v44 = vsel %vm4811_vm4, %v12925_v36, %v4828_v61  ;;  %v5716_v47 = vadd.f32 %v9388_v39, %v9320_v5  ;;  %v5143_v2 = vadd.f32 %v4828_v61, %v4694_v4  ;;  %v5794_v34 = vadd.f32 %v9349_v11, %v9388_v39  ;;  %v2061_v36 = vpop.permute.xlu0 %2060 }
 0x302   : > { %v4693_v18 = vadd.f32 %v4380_v54, %v4244_v51  ;;  %v5872_v24 = vadd.f32 %v5792_v6, %v9388_v39  ;;  %v5950_v48 = vadd.f32 %v5870_v22, %v9388_v39  ;;  %v3035_v63 = vrot.slane %v9413_v25, 1 }
 0x303   : > { %2376 = vperm.xlu1 %6437, %v6537_v33   ;;  %v5715_v5 = vadd.f32 %v9403_v9, %v9335_v27  ;;  %v5793_v61 = vadd.f32 %v5713_v1, %v9403_v9  ;;  %v5871_v54 = vadd.f32 %v5791_v58, %v9403_v9  ;;  %v3484_v51 = vrot.slane %v9413_v25, 2  ;;  %v2057_v58 = vpop.permute.xlu1 %2056 }
 0x304   : > { %2388 = vperm.xlu0 %6438, %v6538_v37   ;;  %v5949_v11 = vadd.f32 %v5869_v45, %v9403_v9  ;;  %v5142_v6 = vadd.f32 %v4829_v44, %v4693_v18  ;;  %v3036_v22 = vsel %vm3015_vm0, %v3034_v12, %v3035_v63  ;;  %v3349_v4 = vadd.f32 %v3035_v63, %v9413_v25 }
 0x305   : > { %v9433_v33 = vadd.f32 %v5277_v62, %v5143_v2  ;;  %v3933_v1 = vrot.slane %v9413_v25, 3  ;;  %v3348_v44 = vadd.f32 %v3036_v22, %v9330_v14  ;;  %v9442_v12 = vmax.f32 %v9345_v23, 0.0  ;;  %v6540_v62 = vld [vmem:[%s6613_s18 + $0x330] sm:$0xff] }
 0x306   : > { %v3798_v18 = vadd.f32 %v3484_v51, %v3349_v4  ;;  %v3485_v2 = vsel %vm3464_vm1, %v3483_v26, %v3484_v51  ;;  %v4382_v63 = vrot.slane %v9413_v25, 4  ;;  %v2518_v27 = vmul.f32 %v8787_v16, %v2049_v21 }
 0x307   : > { %2384 = vperm.xlu1 %6437, %v6539_v30   ;;  %v2521_v30 = vmul.f32 %v8787_v16, %v2061_v36  ;;  %v9449_v37 = vadd.f32 %v5278_v7, %v5142_v6  ;;  %v3797_v45 = vadd.f32 %v3485_v2, %v3348_v44  ;;  %v2520_v4 = vmul.f32 %v8787_v16, %v2057_v58 }
 0x308   : > { %2396 = vperm.xlu0 %6438, %v6540_v62   ;;  %v4247_v22 = vadd.f32 %v3933_v1, %v3798_v18  ;;  %v9454_v23 = vadd.f32 %v9433_v33, %v9388_v39  ;;  %v12927_v62 = vrot.slane %v9330_v14, 3  ;;  %v4831_v51 = vrot.slane %v9413_v25, 5  ;;  %v6542_v39 = vld [vmem:[%s6613_s18 + $0x340] sm:$0xff] }
 0x309   : > { %v5280_v21 = vrot.slane %v9413_v25, 6  ;;  %v9463_v7 = vadd.f32 %v5716_v47, %v9433_v33  ;;  %v9466_v6 = vadd.f32 %v5794_v34, %v9433_v33  ;;  %v9470_v44 = vadd.f32 %v5872_v24, %v9433_v33  ;;  %v12929_v47 = vld [vmem:[#allocation39_spill] sm:$0xff] }
 0x30a   : > { %v3934_v26 = vsel %vm3913_vm2, %v12927_v62, %v3933_v1  ;;  %v4696_v58 = vadd.f32 %v4382_v63, %v4247_v22  ;;  %v6030_v1 = vadd.f32 %v5950_v48, %v9433_v33  ;;  %v12928_v25 = vrot.slane %v9330_v14, 4 }
 0x30b   : > { %2392 = vperm.xlu1 %6437, %v6541_v46   ;;  %v4246_v36 = vadd.f32 %v3934_v26, %v3797_v45  ;;  %v2646_v18 = vadd.f32 %v2518_v27, %v12929_v47  ;;  %v9479_v34 = vadd.f32 %v9449_v37, %v9403_v9  ;;  %v9482_v45 = vadd.f32 %v5715_v5, %v9449_v37  ;;  %v2069_v9 = vpop.permute.xlu0 %2068  ;;  %v6543_v26 = vld [vmem:[%s6613_s18 + $0x338] sm:$0xff] }
 0x30c   : > { %2404 = vperm.xlu0 %6438, %v6542_v39   ;;  %v4383_v46 = vsel %vm4362_vm3, %v12928_v25, %v4382_v63  ;;  %v5145_v24 = vadd.f32 %v4831_v51, %v4696_v58  ;;  %v9485_v22 = vadd.f32 %v5793_v61, %v9449_v37  ;;  %v9488_v48 = vadd.f32 %v5871_v54, %v9449_v37  ;;  %v6544_v39 = vld [vmem:[%s6613_s18 + $0x350] sm:$0xff]  ;;  %v12932_v47 = vld [vmem:[#allocation29_spill] sm:$0xff] }
 0x30d   : > { %v4695_v2 = vadd.f32 %v4383_v46, %v4246_v36  ;;  %v12930_v63 = vrot.slane %v9330_v14, 5  ;;  %v9493_v62 = vmax.f32 %v2646_v18, 0.0  ;;  %v6029_v5 = vadd.f32 %v5949_v11, %v9449_v37 }
 0x30e   : > { %v12931_v58 = vrot.slane %v9330_v14, 6  ;;  %v9501_v54 = vadd.f32 %v5280_v21, %v5145_v24  ;;  %v2649_v18 = vadd.f32 %v2521_v30, %v12932_v47  ;;  %v6545_v30 = vld [vmem:[%s6613_s18 + $0x348] sm:$0xff]  ;;  %v12935_v13 = vrot.slane %v9341_v15, 3 }
 0x30f   : > { %v4832_v27 = vsel %vm4811_vm4, %v12930_v63, %v4831_v51  ;;  %2400 = vperm.xlu1 %6437, %v6543_v26   ;;  %v3040_v51 = vrot.slane %v9442_v12, 1  ;;  %v3038_v46 = vrot.slane %v9493_v62, 1  ;;  %v12933_v63 = vld [vmem:[#allocation30_spill] sm:$0xff] }
 0x310   : > { %v5144_v36 = vadd.f32 %v4832_v27, %v4695_v2  ;;  %v5281_v61 = vsel %vm5260_vm5, %v12931_v58, %v5280_v21  ;;  %2412 = vperm.xlu0 %6438, %v6544_v39   ;;  %v3487_v2 = vrot.slane %v9493_v62, 2  ;;  %v2648_v21 = vadd.f32 %v2520_v4, %v12933_v63  ;;  %v2065_v39 = vpop.permute.xlu1 %2064  ;;  %v2077_v27 = vpop.permute.xlu0 %2076 }
 0x311   : > { %v6110_v24 = vadd.f32 %v6030_v1, %v9501_v54  ;;  %v3039_v26 = vsel %vm3015_vm0, %v3037_v10, %v3038_v46  ;;  %v3351_v58 = vadd.f32 %v3038_v46, %v9493_v62  ;;  %v3936_v1 = vrot.slane %v9493_v62, 3  ;;  %v6546_v10 = vld [vmem:[%s6613_s18 + $0x360] sm:$0xff] }
 0x312   : > { %v9508_v11 = vadd.f32 %v5281_v61, %v5144_v36  ;;  %v2523_v61 = vmul.f32 %v8787_v16, %v2069_v9  ;;  %v3350_v63 = vadd.f32 %v3039_v26, %v9341_v15  ;;  %v12934_v36 = vrot.slane %v9341_v15, 2  ;;  %v6547_v26 = vld [vmem:[%s6613_s18 + $0x358] sm:$0xff] }
 0x313   : > { %2408 = vperm.xlu1 %6437, %v6545_v30   ;;  %v6190_v47 = vmul.f32 0.020408163, %v6110_v24  ;;  %v9532_v30 = vmax.f32 %v2649_v18, 0.0  ;;  %v3800_v14 = vadd.f32 %v3487_v2, %v3351_v58  ;;  %v4385_v9 = vrot.slane %v9493_v62, 4 }
 0x314   : > { %2420 = vperm.xlu0 %6438, %v6546_v10   ;;  %v6109_v46 = vadd.f32 %v6029_v5, %v9508_v11  ;;  %v3488_v4 = vsel %vm3464_vm1, %v12934_v36, %v3487_v2  ;;  %v9538_v25 = vmax.f32 %v2648_v21, 0.0  ;;  %v4834_v24 = vrot.slane %v9493_v62, 5  ;;  %v12936_v2 = vld [vmem:[#allocation42_spill] sm:$0xff] }
 0x315   : > { %6270 = vst [vmem:[%s9523_s26 + $0x8] sm:$0x3] %v6190_v47  ;;  %v3799_v5 = vadd.f32 %v3488_v4, %v3350_v63  ;;  %v2522_v18 = vmul.f32 %v8787_v16, %v2065_v39  ;;  %v3937_v43 = vsel %vm3913_vm2, %v12935_v13, %v3936_v1  ;;  %v4249_v36 = vadd.f32 %v3936_v1, %v3800_v14 }
 0x316   : > { %v6189_v10 = vmul.f32 0.020408163, %v6109_v46  ;;  %v9548_v58 = vadd.f32 %v2523_v61, %v12936_v2  ;;  %v9551_v21 = vmul.f32 %v8787_v16, %v2077_v27  ;;  %v6548_v46 = vld [vmem:[%s6613_s18 + $0x370] sm:$0xff]  ;;  %v9556_v4 = vadd.f32 %v9454_v23, %v9501_v54 }
 0x317   : > { %2416 = vperm.xlu1 %6437, %v6547_v26   ;;  %v9560_v39 = vadd.f32 %v9463_v7, %v9501_v54  ;;  %v4248_v13 = vadd.f32 %v3937_v43, %v3799_v5  ;;  %v5283_v14 = vrot.slane %v9493_v62, 6  ;;  %v12937_v1 = vrot.slane %v9341_v15, 4  ;;  %v6549_v5 = vld [vmem:[%s6613_s18 + $0x368] sm:$0xff] }
 0x318   : > { %2428 = vperm.xlu0 %6438, %v6548_v46   ;;  %6269 = vst [vmem:[%s9523_s26] sm:$0xff] %v6189_v10  ;;  %v4698_v61 = vadd.f32 %v4385_v9, %v4249_v36  ;;  %v3041_v47 = vrot.slane %v9538_v25, 1  ;;  %v3490_v63 = vrot.slane %v9538_v25, 2  ;;  %v5954_v23 = vadd.f32 %v9466_v6, %v9501_v54  ;;  %v6550_v46 = vld [vmem:[%s6613_s18 + $0x380] sm:$0xff] }
 0x319   : > { %v4386_v27 = vsel %vm4362_vm3, %v12937_v1, %v4385_v9  ;;  %v6032_v7 = vadd.f32 %v9470_v44, %v9501_v54  ;;  %v12938_v43 = vrot.slane %v9341_v15, 5  ;;  %v3939_v2 = vrot.slane %v9538_v25, 3 }
 0x31a   : > { %v4697_v10 = vadd.f32 %v4386_v27, %v4248_v13  ;;  %v5147_v26 = vadd.f32 %v4834_v24, %v4698_v61  ;;  %v3042_v9 = vsel %vm3015_vm0, %v3040_v51, %v3041_v47  ;;  %v3353_v36 = vadd.f32 %v3041_v47, %v9538_v25 }
 0x31b   : > { %v4835_v62 = vsel %vm4811_vm4, %v12938_v43, %v4834_v24  ;;  %2424 = vperm.xlu1 %6437, %v6549_v5   ;;  %v9583_v6 = vadd.f32 %v9479_v34, %v9508_v11  ;;  %v12939_v13 = vrot.slane %v9341_v15, 6  ;;  %v3352_v24 = vadd.f32 %v3042_v9, %v9442_v12  ;;  %v6551_v5 = vld [vmem:[%s6613_s18 + $0x378] sm:$0xff] }
 0x31c   : > { %2436 = vperm.xlu0 %6438, %v6550_v46   ;;  %v5146_v44 = vadd.f32 %v4835_v62, %v4697_v10  ;;  %v9589_v51 = vadd.f32 %v5283_v14, %v5147_v26  ;;  %v12940_v27 = vrot.slane %v9442_v12, 2  ;;  %v3802_v47 = vadd.f32 %v3490_v63, %v3353_v36  ;;  %v6552_v46 = vld [vmem:[%s6613_s18 + $0x390] sm:$0xff] }
 0x31d   : > { %v5284_v1 = vsel %vm5260_vm5, %v12939_v13, %v5283_v14  ;;  %v4388_v43 = vrot.slane %v9538_v25, 4  ;;  %v5875_v34 = vadd.f32 %v9482_v45, %v9508_v11  ;;  %v6031_v15 = vadd.f32 %v9488_v48, %v9508_v11  ;;  %v12942_v13 = vld [vmem:[#allocation33_spill] sm:$0xff] }
 0x31e   : > { %v3491_v61 = vsel %vm3464_vm1, %v12940_v27, %v3490_v63  ;;  %v9599_v10 = vadd.f32 %v5284_v1, %v5146_v44  ;;  %v6112_v14 = vadd.f32 %v6032_v7, %v9589_v51  ;;  %v12941_v26 = vrot.slane %v9442_v12, 3 }
 0x31f   : > { %v3801_v62 = vadd.f32 %v3491_v61, %v3352_v24  ;;  %2432 = vperm.xlu1 %6437, %v6551_v5   ;;  %v4251_v63 = vadd.f32 %v3939_v2, %v3802_v47  ;;  %v4837_v36 = vrot.slane %v9538_v25, 5  ;;  %v5953_v45 = vadd.f32 %v9485_v22, %v9508_v11 }
 0x320   : > { %v3940_v9 = vsel %vm3913_vm2, %v12941_v26, %v3939_v2  ;;  %2444 = vperm.xlu0 %6438, %v6552_v46   ;;  %v6111_v48 = vadd.f32 %v6031_v15, %v9599_v10  ;;  %v2650_v1 = vadd.f32 %v2522_v18, %v12942_v13  ;;  %v6192_v7 = vmul.f32 0.020408163, %v6112_v14  ;;  %v6553_v15 = vld [vmem:[%s6613_s18 + $0x388] sm:$0xff]  ;;  %v2073_v13 = vpop.permute.xlu1 %2072  ;;  %v12946_v46 = vld [vmem:[#allocation45_spill] sm:$0xff] }
 0x321   : > { %v4250_v44 = vadd.f32 %v3940_v9, %v3801_v62  ;;  %v12943_v24 = vrot.slane %v9442_v12, 4  ;;  %v4700_v27 = vadd.f32 %v4388_v43, %v4251_v63  ;;  %v5286_v61 = vrot.slane %v9538_v25, 6  ;;  %v6554_v63 = vld [vmem:[%s6613_s18 + $0x3a0] sm:$0xff] }
 0x322   : > { %v6191_v47 = vmul.f32 0.020408163, %v6111_v48  ;;  %v3043_v5 = vrot.slane %v9532_v30, 1  ;;  %v3492_v22 = vrot.slane %v9532_v30, 2  ;;  %6272 = vst [vmem:[%s9523_s26 + $0x18] sm:$0x3] %v6192_v7  ;;  %v6034_v7 = vadd.f32 %v5954_v23, %v9589_v51 }
 0x323   : > { %v4389_v2 = vsel %vm4362_vm3, %v12943_v24, %v4388_v43  ;;  %2440 = vperm.xlu1 %6437, %v6553_v15   ;;  %v3941_v18 = vrot.slane %v9532_v30, 3  ;;  %v4390_v62 = vrot.slane %v9532_v30, 4  ;;  %v12944_v14 = vrot.slane %v9442_v12, 5 }
 0x324   : > { %v4699_v26 = vadd.f32 %v4389_v2, %v4250_v44  ;;  %v5149_v43 = vadd.f32 %v4837_v36, %v4700_v27  ;;  %2452 = vperm.xlu0 %6438, %v6554_v63   ;;  %6271 = vst [vmem:[%s9523_s26 + $0x10] sm:$0xff] %v6191_v47  ;;  %v9629_v44 = vmax.f32 %v2650_v1, 0.0  ;;  %v12945_v24 = vrot.slane %v9442_v12, 6 }
 0x325   : > { %v4838_v9 = vsel %vm4811_vm4, %v12944_v14, %v4837_v36  ;;  %v9638_v27 = vmax.f32 %v9548_v58, 0.0  ;;  %v6033_v47 = vadd.f32 %v5953_v45, %v9599_v10  ;;  %v6555_v14 = vld [vmem:[%s6613_s18 + $0x398] sm:$0xff]  ;;  %v5955_v23 = vadd.f32 %v5875_v34, %v9599_v10 }
 0x326   : > { %v5148_v48 = vadd.f32 %v4838_v9, %v4699_v26  ;;  %v5287_v2 = vsel %vm5260_vm5, %v12945_v24, %v5286_v61  ;;  %v9635_v36 = vadd.f32 %v5286_v61, %v5149_v43  ;;  %v3044_v1 = vrot.slane %v9629_v44, 1  ;;  %v6556_v9 = vld [vmem:[%s6613_s18 + $0x3b0] sm:$0xff] }
 0x327   : > { %v3493_v26 = vrot.slane %v9629_v44, 2  ;;  %2448 = vperm.xlu1 %6437, %v6555_v14   ;;  %v5956_v12 = vadd.f32 %v9560_v39, %v9589_v51  ;;  %v2524_v58 = vmul.f32 %v8787_v16, %v2073_v13  ;;  %v3046_v39 = vrot.slane %v9638_v27, 1 }
 0x328   : > { %v9641_v15 = vadd.f32 %v5287_v2, %v5148_v48  ;;  %v6114_v61 = vadd.f32 %v6034_v7, %v9635_v36  ;;  %2460 = vperm.xlu0 %6438, %v6556_v9   ;;  %v3045_v43 = vsel %vm3015_vm0, %v3043_v5, %v3044_v1  ;;  %v3355_v63 = vadd.f32 %v3044_v1, %v9629_v44  ;;  %v6557_v5 = vld [vmem:[%s6613_s18 + $0x3a8] sm:$0xff]  ;;  %v2085_v7 = vpop.permute.xlu0 %2084 }
 0x329   : > { %v3942_v48 = vrot.slane %v9629_v44, 3  ;;  %v3354_v13 = vadd.f32 %v3045_v43, %v9532_v30  ;;  %v3494_v2 = vsel %vm3464_vm1, %v3492_v22, %v3493_v26  ;;  %v3944_v1 = vrot.slane %v9638_v27, 3  ;;  %v12947_v43 = vld [vmem:[#allocation54_spill] sm:$0xff] }
 0x32a   : > { %v6113_v45 = vadd.f32 %v6033_v47, %v9641_v15  ;;  %v6194_v34 = vmul.f32 0.020408163, %v6114_v61  ;;  %v3804_v14 = vadd.f32 %v3493_v26, %v3355_v63  ;;  %v4391_v47 = vrot.slane %v9629_v44, 4 }
 0x32b   : > { %2456 = vperm.xlu1 %6437, %v6557_v5   ;;  %v4393_v61 = vrot.slane %v9638_v27, 4  ;;  %v3803_v9 = vadd.f32 %v3494_v2, %v3354_v13  ;;  %v2652_v25 = vadd.f32 %v2524_v58, %v12946_v46  ;;  %v3943_v22 = vsel %vm3913_vm2, %v3941_v18, %v3942_v48  ;;  %v6559_v2 = vld [vmem:[%s6613_s18 + $0x3b8] sm:$0xff]  ;;  %v6562_v13 = vld [vmem:[%s6613_s18 + $0x3e0] sm:$0xff] }
 0x32c   : > { %v6193_v24 = vmul.f32 0.020408163, %v6113_v45  ;;  %6274 = vst [vmem:[%s9523_s26 + $0x28] sm:$0x3] %v6194_v34  ;;  %2468 = vperm.xlu0 %6438, %v6558_v3   ;;  %v4253_v26 = vadd.f32 %v3942_v48, %v3804_v14  ;;  %v4840_v45 = vrot.slane %v9629_v44, 5  ;;  %v2653_v63 = vadd.f32 %v9551_v21, %v12947_v43  ;;  %v2081_v34 = vpop.permute.xlu1 %2080 }
 0x32d   : > { %v4252_v46 = vadd.f32 %v3943_v22, %v3803_v9  ;;  %v5877_v58 = vadd.f32 %v9583_v6, %v9599_v10  ;;  %v4392_v3 = vsel %vm4362_vm3, %v4390_v62, %v4391_v47  ;;  %v5289_v18 = vrot.slane %v9629_v44, 6  ;;  %v6560_v22 = vld [vmem:[%s6613_s18 + $0x3d0] sm:$0xff] }
 0x32e   : > { %6273 = vst [vmem:[%s9523_s26 + $0x20] sm:$0xff] %v6193_v24  ;;  %v4702_v24 = vadd.f32 %v4391_v47, %v4253_v26  ;;  %v2527_v48 = vmul.f32 %v8787_v16, %v2085_v7  ;;  %v6036_v21 = vadd.f32 %v5956_v12, %v9635_v36  ;;  %v9681_v43 = vmax.f32 %v2652_v25, 0.0 }
 0x32f   : > { %2464 = vperm.xlu1 %6437, %v6559_v2   ;;  %v4701_v14 = vadd.f32 %v4392_v3, %v4252_v46  ;;  %v5878_v9 = vadd.f32 %v9556_v4, %v9589_v51  ;;  %v6035_v6 = vadd.f32 %v5955_v23, %v9641_v15  ;;  %v12948_v62 = vrot.slane %v9532_v30, 5  ;;  %v9695_v46 = vpop.permute.xlu0 %2092 }
 0x330   : > { %2476 = vperm.xlu0 %6438, %v6560_v22   ;;  %v5151_v7 = vadd.f32 %v4840_v45, %v4702_v24  ;;  %v9690_v47 = vmax.f32 %v2653_v63, 0.0  ;;  %v3047_v25 = vrot.slane %v9681_v43, 1  ;;  %v3496_v12 = vrot.slane %v9681_v43, 2  ;;  %v12950_v63 = vld [vmem:[#allocation58_spill] sm:$0xff]  ;;  %v6561_v22 = vld [vmem:[%s6613_s18 + $0x3c8] sm:$0xff] }
 0x331   : > { %v4841_v44 = vsel %vm4811_vm4, %v12948_v62, %v4840_v45  ;;  %v5957_v4 = vadd.f32 %v5877_v58, %v9641_v15  ;;  %v12949_v3 = vrot.slane %v9532_v30, 6  ;;  %v5958_v45 = vadd.f32 %v5878_v9, %v9635_v36 }
 0x332   : > { %v5150_v26 = vadd.f32 %v4841_v44, %v4701_v14  ;;  %v9700_v2 = vadd.f32 %v5289_v18, %v5151_v7  ;;  %v2655_v24 = vadd.f32 %v2527_v48, %v12950_v63  ;;  %v2089_v14 = vpop.permute.xlu1 %2088  ;;  %v3048_v44 = vsel %vm3015_vm0, %v3046_v39, %v3047_v25 }
 0x333   : > { %v5290_v23 = vsel %vm5260_vm5, %v12949_v3, %v5289_v18  ;;  %2472 = vperm.xlu1 %6437, %v6561_v22   ;;  %v3357_v58 = vadd.f32 %v3047_v25, %v9681_v43  ;;  %v3945_v30 = vrot.slane %v9681_v43, 3  ;;  %v3049_v9 = vrot.slane %v9690_v47, 1 }
 0x334   : > { %v9705_v62 = vadd.f32 %v5290_v23, %v5150_v26  ;;  %2484 = vperm.xlu0 %6438, %v6562_v13   ;;  %v6116_v18 = vadd.f32 %v6036_v21, %v9700_v2  ;;  %v3356_v48 = vadd.f32 %v3048_v44, %v9638_v27  ;;  %v2526_v7 = vmul.f32 %v8787_v16, %v2081_v34  ;;  %v6563_v44 = vld [vmem:[%s6613_s18 + $0x3d8] sm:$0xff] }
 0x335   : > { %v12951_v39 = vrot.slane %v9638_v27, 2  ;;  %v3806_v3 = vadd.f32 %v3496_v12, %v3357_v58  ;;  %v4394_v23 = vrot.slane %v9681_v43, 4  ;;  %v3498_v21 = vrot.slane %v9690_v47, 2  ;;  %v6564_v58 = vld [vmem:[%s6613_s18 + $0x3f0] sm:$0xff] }
 0x336   : > { %v6115_v26 = vadd.f32 %v6035_v6, %v9705_v62  ;;  %v6196_v13 = vmul.f32 0.020408163, %v6116_v18  ;;  %v3946_v6 = vsel %vm3913_vm2, %v3944_v1, %v3945_v30  ;;  %v4396_v18 = vrot.slane %v9690_v47, 4 }
 0x337   : > { %v3497_v25 = vsel %vm3464_vm1, %v12951_v39, %v3496_v12  ;;  %2480 = vperm.xlu1 %6437, %v6563_v44   ;;  %v4255_v5 = vadd.f32 %v3945_v30, %v3806_v3  ;;  %v4843_v39 = vrot.slane %v9681_v43, 5  ;;  %v9727_v12 = vpop.permute.xlu0 %2100  ;;  %v9734_v44 = vpop.permute.xlu1 %2096  ;;  %v4395_v1 = vsel %vm4362_vm3, %v4393_v61, %v4394_v23 }
 0x338   : > { %v3805_v22 = vadd.f32 %v3497_v25, %v3356_v48  ;;  %v6195_v34 = vmul.f32 0.020408163, %v6115_v26  ;;  %2492 = vperm.xlu0 %6438, %v6564_v58   ;;  %6276 = vst [vmem:[%s9523_s26 + $0x38] sm:$0x3] %v6196_v13  ;;  %v5292_v26 = vrot.slane %v9681_v43, 6  ;;  %v9740_v3 = vmax.f32 %v2655_v24, 0.0 }
 0x339   : > { %v4704_v30 = vadd.f32 %v4394_v23, %v4255_v5  ;;  %v12952_v58 = vld [vmem:[#allocation49_spill] sm:$0xff]  ;;  %v5294_v13 = vrot.slane %v9690_v47, 6  ;;  %v2528_v43 = vmul.f32 %v8787_v16, %v2089_v14  ;;  %v5720_v24 = vadd.f32 %v9501_v54, %v9433_v33 }
 0x33a   : > { %v4254_v25 = vadd.f32 %v3946_v6, %v3805_v22  ;;  %6275 = vst [vmem:[%s9523_s26 + $0x30] sm:$0xff] %v6195_v34  ;;  %v2654_v63 = vadd.f32 %v2526_v7, %v12952_v58  ;;  %v5719_v22 = vadd.f32 %v9508_v11, %v9449_v37  ;;  %v6565_v6 = vld [vmem:[%s6613_s18 + $0x3e8] sm:$0xff]  ;;  %v12953_v34 = vrot.slane %v9638_v27, 5  ;;  %v12955_v33 = vld [vmem:[#allocation57_spill] sm:$0xff] }
 0x33b   : > { %2488 = vperm.xlu1 %6437, %v6565_v6   ;;  %v5153_v61 = vadd.f32 %v4843_v39, %v4704_v30  ;;  %v12954_v23 = vrot.slane %v9638_v27, 6  ;;  %v6037_v37 = vadd.f32 %v5957_v4, %v9705_v62  ;;  %v6038_v14 = vadd.f32 %v5958_v45, %v9700_v2 }
 0x33c   : > { %v4703_v55 = vadd.f32 %v4395_v1, %v4254_v25  ;;  %v4844_v48 = vsel %vm4811_vm4, %v12953_v34, %v4843_v39  ;;  %v2782_v5 = vmax.f32 %v2654_v63, 0.0  ;;  %v3052_v58 = vrot.slane %v9740_v3, 1  ;;  %v6566_v34 = vld [vmem:[%s6613_s18 + $0x3f8] sm:$0xff] }
 0x33d   : > { %v5293_v25 = vsel %vm5260_vm5, %v12954_v23, %v5292_v26  ;;  %v9758_v1 = vadd.f32 %v5292_v26, %v5153_v61  ;;  %v3501_v63 = vrot.slane %v9740_v3, 2  ;;  %v2656_v27 = vadd.f32 %v2528_v43, %v12955_v33 }
 0x33e   : > { %v5152_v7 = vadd.f32 %v4844_v48, %v4703_v55  ;;  %v3050_v6 = vrot.slane %v2782_v5, 1  ;;  %v3499_v39 = vrot.slane %v2782_v5, 2  ;;  %v3950_v55 = vrot.slane %v9740_v3, 3  ;;  %v9766_v48 = vpop.permute.xlu1 %2104 }
 0x33f   : > { %2496 = vperm.xlu1 %6437, %v6566_v34   ;;  %v6118_v4 = vadd.f32 %v6038_v14, %v9758_v1  ;;  %v3948_v61 = vrot.slane %v2782_v5, 3  ;;  %v2529_v43 = vmul.f32 %v8787_v16, %v9695_v46  ;;  %v4397_v14 = vrot.slane %v2782_v5, 4 }
 0x340   : > { %v9761_v30 = vadd.f32 %v5293_v25, %v5152_v7  ;;  %v3051_v45 = vsel %vm3015_vm0, %v3049_v9, %v3050_v6  ;;  %v3359_v26 = vadd.f32 %v3050_v6, %v2782_v5  ;;  %v5799_v25 = vadd.f32 %v5719_v22, %v9599_v10 }
 0x341   : > { %v3358_v23 = vadd.f32 %v3051_v45, %v9690_v47  ;;  %v6198_v33 = vmul.f32 0.020408163, %v6118_v4  ;;  %v3500_v34 = vsel %vm3464_vm1, %v3498_v21, %v3499_v39  ;;  %v4846_v9 = vrot.slane %v2782_v5, 5  ;;  %v12957_v4 = vld [vmem:[#allocation62_spill] sm:$0xff] }
 0x342   : > { %v6117_v7 = vadd.f32 %v6037_v37, %v9761_v30  ;;  %v3808_v38 = vadd.f32 %v3499_v39, %v3359_v26  ;;  %v5295_v6 = vrot.slane %v2782_v5, 6  ;;  %v12956_v37 = vrot.slane %v9690_v47, 3 }
 0x343   : > { %v3807_v57 = vadd.f32 %v3500_v34, %v3358_v23  ;;  %6278 = vst [vmem:[%s9523_s26 + $0x48] sm:$0x3] %v6198_v33  ;;  %v5800_v22 = vadd.f32 %v5720_v24, %v9589_v51  ;;  %v9782_v41 = vmax.f32 %v2656_v27, 0.0  ;;  %v4399_v46 = vrot.slane %v9740_v3, 4 }
 0x344   : > { %v6197_v49 = vmul.f32 0.020408163, %v6117_v7  ;;  %v3949_v45 = vsel %vm3913_vm2, %v12956_v37, %v3948_v61  ;;  %v4257_v50 = vadd.f32 %v3948_v61, %v3808_v38  ;;  %v4848_v21 = vrot.slane %v9740_v3, 5 }
 0x345   : > { %v4256_v39 = vadd.f32 %v3949_v45, %v3807_v57  ;;  %v2657_v26 = vadd.f32 %v2529_v43, %v12957_v4  ;;  %v4398_v5 = vsel %vm4362_vm3, %v4396_v18, %v4397_v14  ;;  %v5879_v23 = vadd.f32 %v5799_v25, %v9641_v15 }
 0x346   : > { %6277 = vst [vmem:[%s9523_s26 + $0x40] sm:$0xff] %v6197_v49  ;;  %v4706_v7 = vadd.f32 %v4397_v14, %v4257_v50  ;;  %v5880_v33 = vadd.f32 %v5800_v22, %v9635_v36  ;;  %v12958_v24 = vrot.slane %v9690_v47, 5  ;;  %v5296_v49 = vsel %vm5260_vm5, %v5294_v13, %v5295_v6 }
 0x347   : > { %v4705_v38 = vadd.f32 %v4398_v5, %v4256_v39  ;;  %v5721_v61 = vadd.f32 %v9599_v10, %v9508_v11  ;;  %v3053_v18 = vrot.slane %v9782_v41, 1  ;;  %v3502_v50 = vrot.slane %v9782_v41, 2 }
 0x348   : > { %v4847_v27 = vsel %vm4811_vm4, %v12958_v24, %v4846_v9  ;;  %v5155_v57 = vadd.f32 %v4846_v9, %v4706_v7  ;;  %v5960_v43 = vadd.f32 %v5880_v33, %v9700_v2  ;;  %v5959_v34 = vadd.f32 %v5879_v23, %v9705_v62 }
 0x349   : > { %v5154_v25 = vadd.f32 %v4847_v27, %v4705_v38  ;;  %v9801_v14 = vmax.f32 %v2657_v26, 0.0  ;;  %v3951_v47 = vrot.slane %v9782_v41, 3  ;;  %v3054_v11 = vsel %vm3015_vm0, %v3052_v58, %v3053_v18 }
 0x34a   : > { %v9804_v37 = vadd.f32 %v5295_v6, %v5155_v57  ;;  %v6040_v13 = vadd.f32 %v5960_v43, %v9758_v1  ;;  %v3361_v9 = vadd.f32 %v3053_v18, %v9782_v41  ;;  %v6039_v22 = vadd.f32 %v5959_v34, %v9761_v30  ;;  %v12959_v34 = vld [vmem:[#allocation48_spill] sm:$0xff] }
 0x34b   : > { %v9809_v45 = vadd.f32 %v5296_v49, %v5154_v25  ;;  %v3360_v39 = vadd.f32 %v3054_v11, %v9740_v3  ;;  %v5722_v4 = vadd.f32 %v9589_v51, %v9501_v54  ;;  %v3503_v6 = vsel %vm3464_vm1, %v3501_v63, %v3502_v50 }
 0x34c   : > { %v6120_v26 = vadd.f32 %v6040_v13, %v9804_v37  ;;  %v3810_v5 = vadd.f32 %v3502_v50, %v3361_v9  ;;  %v4400_v7 = vrot.slane %v9782_v41, 4  ;;  %v3952_v33 = vsel %vm3913_vm2, %v3950_v55, %v3951_v47 }
 0x34d   : > { %v6119_v58 = vadd.f32 %v6039_v22, %v9809_v45  ;;  %v3809_v23 = vadd.f32 %v3503_v6, %v3360_v39  ;;  %v4849_v38 = vrot.slane %v9782_v41, 5  ;;  %v5802_v54 = vadd.f32 %v5722_v4, %v9635_v36  ;;  %v12960_v39 = vld [vmem:[#allocation16_spill] sm:$0xff] }
 0x34e   : > { %v6200_v24 = vmul.f32 0.020408163, %v6120_v26  ;;  %v4259_v27 = vadd.f32 %v3951_v47, %v3810_v5  ;;  %v2530_v49 = vmul.f32 %v8787_v16, %v9734_v44  ;;  %v5298_v43 = vrot.slane %v9782_v41, 6  ;;  %v12961_v26 = vld [vmem:[#allocation11_spill] sm:$0xff] }
 0x34f   : > { %v6199_v57 = vmul.f32 0.020408163, %v6119_v58  ;;  %v4258_v63 = vadd.f32 %v3952_v33, %v3809_v23  ;;  %v5801_v18 = vadd.f32 %v5721_v61, %v9641_v15  ;;  %v4401_v50 = vsel %vm4362_vm3, %v4399_v46, %v4400_v7 }
 0x350   : > { %6280 = vst [vmem:[%s9523_s26 + $0x58] sm:$0x3] %v6200_v24  ;;  %v4708_v55 = vadd.f32 %v4400_v7, %v4259_v27  ;;  %v5882_v25 = vadd.f32 %v5802_v54, %v9700_v2  ;;  %v2658_v13 = vadd.f32 %v2530_v49, %v12959_v34  ;;  %v5297_v47 = vrot.slane %v9740_v3, 6 }
 0x351   : > { %6279 = vst [vmem:[%s9523_s26 + $0x50] sm:$0xff] %v6199_v57  ;;  %v4707_v11 = vadd.f32 %v4401_v50, %v4258_v63  ;;  %v5881_v44 = vadd.f32 %v5801_v18, %v9705_v62  ;;  %v2531_v9 = vmul.f32 %v8787_v16, %v9727_v12  ;;  %v4850_v41 = vsel %vm4811_vm4, %v4848_v21, %v4849_v38 }
 0x352   : > { %v5157_v61 = vadd.f32 %v4849_v38, %v4708_v55  ;;  %v5962_v22 = vadd.f32 %v5882_v25, %v9758_v1  ;;  %v9837_v46 = vmax.f32 %v2658_v13, 0.0  ;;  %v9841_v4 = vadd.f32 %v9156_v42, %v12960_v39  ;;  %v12962_v38 = vld [vmem:[#allocation61_spill] sm:$0xff] }
 0x353   : > { %v9845_v3 = vadd.f32 %v9161_v17, %v12961_v26  ;;  %v5156_v6 = vadd.f32 %v4850_v41, %v4707_v11  ;;  %v5961_v5 = vadd.f32 %v5881_v44, %v9761_v30  ;;  %v3055_v12 = vrot.slane %v9801_v14, 1 }
 0x354   : > { %v5299_v21 = vsel %vm5260_vm5, %v5297_v47, %v5298_v43  ;;  %v9850_v7 = vadd.f32 %v5298_v43, %v5157_v61  ;;  %v6042_v58 = vadd.f32 %v5962_v22, %v9804_v37  ;;  %v3504_v23 = vrot.slane %v9801_v14, 2 }
 0x355   : > { %v9854_v33 = vadd.f32 %v5299_v21, %v5156_v6  ;;  %v6041_v42 = vadd.f32 %v5961_v5, %v9809_v45  ;;  %v2659_v17 = vadd.f32 %v2531_v9, %v12962_v38  ;;  %v3953_v24 = vrot.slane %v9801_v14, 3  ;;  %v2109_v9 = vpop.permute.xlu0 %2108  ;;  %v12963_v38 = vld [vmem:[#allocation47_spill] sm:$0xff] }
 0x356   : > { %v6122_v27 = vadd.f32 %v6042_v58, %v9850_v7  ;;  %v3056_v54 = vrot.slane %v9837_v46, 1  ;;  %v3505_v49 = vrot.slane %v9837_v46, 2  ;;  %v4402_v57 = vrot.slane %v9801_v14, 4 }
 0x357   : > { %v4851_v63 = vrot.slane %v9801_v14, 5  ;;  %v6121_v43 = vadd.f32 %v6041_v42, %v9854_v33  ;;  %v5723_v18 = vadd.f32 %v9641_v15, %v9599_v10  ;;  %v3954_v34 = vrot.slane %v9837_v46, 3 }
 0x358   : > { %v6202_v50 = vmul.f32 0.020408163, %v6122_v27  ;;  %v3057_v55 = vsel %vm3015_vm0, %v3055_v12, %v3056_v54  ;;  %v3363_v25 = vadd.f32 %v3056_v54, %v9837_v46  ;;  %v9870_v47 = vmax.f32 %v2659_v17, 0.0 }
 0x359   : > { %v6201_v13 = vmul.f32 0.020408163, %v6121_v43  ;;  %v3362_v11 = vadd.f32 %v3057_v55, %v9801_v14  ;;  %v5724_v44 = vadd.f32 %v9635_v36, %v9589_v51  ;;  %v5300_v41 = vrot.slane %v9801_v14, 6 }
 0x35a   : > { %6282 = vst [vmem:[%s9523_s26 + $0x68] sm:$0x3] %v6202_v50  ;;  %v3506_v10 = vsel %vm3464_vm1, %v3504_v23, %v3505_v49  ;;  %v3812_v61 = vadd.f32 %v3505_v49, %v3363_v25  ;;  %v4403_v22 = vrot.slane %v9837_v46, 4  ;;  %v5803_v26 = vadd.f32 %v5723_v18, %v9705_v62 }
 0x35b   : > { %6281 = vst [vmem:[%s9523_s26 + $0x60] sm:$0xff] %v6201_v13  ;;  %v3811_v39 = vadd.f32 %v3506_v10, %v3362_v11  ;;  %v5804_v6 = vadd.f32 %v5724_v44, %v9700_v2  ;;  %v2532_v5 = vmul.f32 %v8787_v16, %v9766_v48  ;;  %v3955_v51 = vsel %vm3913_vm2, %v3953_v24, %v3954_v34  ;;  %v12964_v13 = vld [vmem:[#allocation52_spill] sm:$0xff] }
 0x35c   : > { %v4261_v12 = vadd.f32 %v3954_v34, %v3812_v61  ;;  %v4852_v14 = vrot.slane %v9837_v46, 5  ;;  %v2533_v21 = vmul.f32 %v8787_v16, %v2109_v9  ;;  %v3058_v58 = vrot.slane %v9870_v47, 1 }
 0x35d   : > { %v3507_v23 = vrot.slane %v9870_v47, 2  ;;  %v4260_v42 = vadd.f32 %v3955_v51, %v3811_v39  ;;  %v2660_v17 = vadd.f32 %v2532_v5, %v12963_v38  ;;  %v4404_v27 = vsel %vm4362_vm3, %v4402_v57, %v4403_v22 }
 0x35e   : > { %v4710_v54 = vadd.f32 %v4403_v22, %v4261_v12  ;;  %v5301_v49 = vrot.slane %v9837_v46, 6  ;;  %v5884_v48 = vadd.f32 %v5804_v6, %v9758_v1  ;;  %v3956_v24 = vrot.slane %v9870_v47, 3 }
 0x35f   : > { %v4405_v43 = vrot.slane %v9870_v47, 4  ;;  %v4709_v18 = vadd.f32 %v4404_v27, %v4260_v42  ;;  %v5883_v50 = vadd.f32 %v5803_v26, %v9761_v30  ;;  %v4853_v55 = vsel %vm4811_vm4, %v4851_v63, %v4852_v14 }
 0x360   : > { %v5159_v25 = vadd.f32 %v4852_v14, %v4710_v54  ;;  %v5964_v34 = vadd.f32 %v5884_v48, %v9804_v37  ;;  %v2661_v11 = vadd.f32 %v2533_v21, %v12964_v13  ;;  %v4854_v57 = vrot.slane %v9870_v47, 5  ;;  %v2117_v13 = vpop.permute.xlu0 %2116 }
 0x361   : > { %v5158_v44 = vadd.f32 %v4853_v55, %v4709_v18  ;;  %v5963_v46 = vadd.f32 %v5883_v50, %v9809_v45  ;;  %v2788_v9 = vmax.f32 %v2660_v17, 0.0  ;;  %v5303_v10 = vrot.slane %v9870_v47, 6 }
 0x362   : > { %v5302_v61 = vsel %vm5260_vm5, %v5300_v41, %v5301_v49  ;;  %v9903_v22 = vadd.f32 %v5301_v49, %v5159_v25  ;;  %v6044_v39 = vadd.f32 %v5964_v34, %v9850_v7  ;;  %v9910_v12 = vmax.f32 %v2661_v11, 0.0 }
 0x363   : > { %v9906_v63 = vadd.f32 %v5302_v61, %v5158_v44  ;;  %v6043_v26 = vadd.f32 %v5963_v46, %v9854_v33  ;;  %v3059_v6 = vrot.slane %v2788_v9, 1  ;;  %v3508_v5 = vrot.slane %v2788_v9, 2 }
 0x364   : > { %v6124_v51 = vadd.f32 %v6044_v39, %v9903_v22  ;;  %v5725_v14 = vadd.f32 %v9705_v62, %v9641_v15  ;;  %v5726_v41 = vadd.f32 %v9700_v2, %v9635_v36  ;;  %v3957_v17 = vrot.slane %v2788_v9, 3  ;;  %v2113_v15 = vpop.permute.xlu1 %2112 }
 0x365   : > { %v6123_v21 = vadd.f32 %v6043_v26, %v9906_v63  ;;  %v3060_v42 = vsel %vm3015_vm0, %v3058_v58, %v3059_v6  ;;  %v3365_v38 = vadd.f32 %v3059_v6, %v2788_v9  ;;  %v5727_v49 = vadd.f32 %v9761_v30, %v9705_v62 }
 0x366   : > { %v6204_v27 = vmul.f32 0.020408163, %v6124_v51  ;;  %v3364_v54 = vadd.f32 %v3060_v42, %v9870_v47  ;;  %v5728_v48 = vadd.f32 %v9758_v1, %v9700_v2  ;;  %v3509_v36 = vsel %vm3464_vm1, %v3507_v23, %v3508_v5 }
 0x367   : > { %v6203_v18 = vmul.f32 0.020408163, %v6123_v21  ;;  %v3814_v50 = vadd.f32 %v3508_v5, %v3365_v38  ;;  %v4406_v55 = vrot.slane %v2788_v9, 4  ;;  %v3061_v58 = vrot.slane %v9910_v12, 1 }
 0x368   : > { %6284 = vst [vmem:[%s9523_s26 + $0x78] sm:$0x3] %v6204_v27  ;;  %v3510_v25 = vrot.slane %v9910_v12, 2  ;;  %v3813_v34 = vadd.f32 %v3509_v36, %v3364_v54  ;;  %v5806_v47 = vadd.f32 %v5726_v41, %v9758_v1  ;;  %v3958_v62 = vsel %vm3913_vm2, %v3956_v24, %v3957_v17  ;;  %v12965_v1 = vld [vmem:[#allocation51_spill] sm:$0xff] }
 0x369   : > { %6283 = vst [vmem:[%s9523_s26 + $0x70] sm:$0xff] %v6203_v18  ;;  %v4263_v11 = vadd.f32 %v3957_v17, %v3814_v50  ;;  %v4855_v2 = vrot.slane %v2788_v9, 5  ;;  %v2534_v44 = vmul.f32 %v8787_v16, %v2113_v15  ;;  %v3959_v23 = vrot.slane %v9910_v12, 3  ;;  %v2125_v18 = vpop.permute.xlu0 %2124 }
 0x36a   : > { %v4262_v46 = vadd.f32 %v3958_v62, %v3813_v34  ;;  %v5304_v61 = vrot.slane %v2788_v9, 6  ;;  %v5805_v39 = vadd.f32 %v5725_v14, %v9761_v30  ;;  %v4407_v26 = vsel %vm4362_vm3, %v4405_v43, %v4406_v55  ;;  %v2121_v43 = vpop.permute.xlu1 %2120  ;;  %v12966_v62 = vld [vmem:[#allocation56_spill] sm:$0xff] }
 0x36b   : > { %v4712_v6 = vadd.f32 %v4406_v55, %v4263_v11  ;;  %v5886_v5 = vadd.f32 %v5806_v47, %v9804_v37  ;;  %v2662_v51 = vadd.f32 %v2534_v44, %v12965_v1  ;;  %v4408_v41 = vrot.slane %v9910_v12, 4 }
 0x36c   : > { %v4711_v24 = vadd.f32 %v4407_v26, %v4262_v46  ;;  %v5885_v21 = vadd.f32 %v5805_v39, %v9809_v45  ;;  %v2535_v42 = vmul.f32 %v8787_v16, %v2117_v13  ;;  %v4856_v38 = vsel %vm4811_vm4, %v4854_v57, %v4855_v2 }
 0x36d   : > { %v5161_v17 = vadd.f32 %v4855_v2, %v4712_v6  ;;  %v5966_v9 = vadd.f32 %v5886_v5, %v9850_v7  ;;  %v9941_v30 = vmax.f32 %v2662_v51, 0.0  ;;  %v4857_v14 = vrot.slane %v9910_v12, 5 }
 0x36e   : > { %v5306_v27 = vrot.slane %v9910_v12, 6  ;;  %v5160_v54 = vadd.f32 %v4856_v38, %v4711_v24  ;;  %v5965_v15 = vadd.f32 %v5885_v21, %v9854_v33  ;;  %v5305_v36 = vsel %vm5260_vm5, %v5303_v10, %v5304_v61  ;;  %v2129_v6 = vpop.permute.xlu1 %2128  ;;  %v2133_v24 = vpop.permute.xlu0 %2132 }
 0x36f   : > { %v5610_v50 = vadd.f32 %v5304_v61, %v5161_v17  ;;  %v5807_v55 = vadd.f32 %v5727_v49, %v9809_v45  ;;  %v6046_v57 = vadd.f32 %v5966_v9, %v9903_v22  ;;  %v5808_v47 = vadd.f32 %v5728_v48, %v9804_v37  ;;  %v12967_v9 = vld [vmem:[#allocation64_spill] sm:$0xff] }
 0x370   : > { %v5609_v34 = vadd.f32 %v5305_v36, %v5160_v54  ;;  %v6045_v13 = vadd.f32 %v5965_v15, %v9906_v63  ;;  %v2663_v11 = vadd.f32 %v2535_v42, %v12966_v62  ;;  %v3062_v46 = vrot.slane %v9941_v30, 1  ;;  %v12968_v54 = vld [vmem:[#allocation55_spill] sm:$0xff] }
 0x371   : > { %v5887_v2 = vadd.f32 %v5807_v55, %v9854_v33  ;;  %v6126_v44 = vadd.f32 %v6046_v57, %v5610_v50  ;;  %v3511_v39 = vrot.slane %v9941_v30, 2  ;;  %v5888_v10 = vadd.f32 %v5808_v47, %v9850_v7 }
 0x372   : > { %v6125_v45 = vadd.f32 %v6045_v13, %v5609_v34  ;;  %v2537_v49 = vmul.f32 %v8787_v16, %v2125_v18  ;;  %v2536_v61 = vmul.f32 %v8787_v16, %v2121_v43  ;;  %v3063_v48 = vsel %vm3015_vm0, %v3061_v58, %v3062_v46 }
 0x373   : > { %v6206_v37 = vmul.f32 0.020408163, %v6126_v44  ;;  %v3367_v26 = vadd.f32 %v3062_v46, %v9941_v30  ;;  %v3960_v33 = vrot.slane %v9941_v30, 3  ;;  %v5967_v5 = vadd.f32 %v5887_v2, %v9906_v63 }
 0x374   : > { %v6205_v1 = vmul.f32 0.020408163, %v6125_v45  ;;  %v9962_v51 = vmax.f32 %v2663_v11, 0.0  ;;  %v3366_v7 = vadd.f32 %v3063_v48, %v9910_v12  ;;  %v5968_v21 = vadd.f32 %v5888_v10, %v9903_v22  ;;  %v12969_v10 = vld [vmem:[#allocation63_spill] sm:$0xff] }
 0x375   : > { %6286 = vst [vmem:[%s9523_s26 + $0x88] sm:$0x3] %v6206_v37  ;;  %v3512_v42 = vsel %vm3464_vm1, %v3510_v25, %v3511_v39  ;;  %v3816_v38 = vadd.f32 %v3511_v39, %v3367_v26  ;;  %v4409_v58 = vrot.slane %v9941_v30, 4  ;;  %v2665_v43 = vadd.f32 %v2537_v49, %v12967_v9 }
 0x376   : > { %6285 = vst [vmem:[%s9523_s26 + $0x80] sm:$0xff] %v6205_v1  ;;  %v3815_v17 = vadd.f32 %v3512_v42, %v3366_v7  ;;  %v2664_v63 = vadd.f32 %v2536_v61, %v12968_v54  ;;  %v2538_v15 = vmul.f32 %v8787_v16, %v2129_v6  ;;  %v3961_v18 = vsel %vm3913_vm2, %v3959_v23, %v3960_v33 }
 0x377   : > { %v4265_v36 = vadd.f32 %v3960_v33, %v3816_v38  ;;  %v4858_v55 = vrot.slane %v9941_v30, 5  ;;  %v2539_v22 = vmul.f32 %v8787_v16, %v2133_v24  ;;  %v3064_v25 = vrot.slane %v9962_v51, 1  ;;  %v2141_v24 = vpop.permute.xlu0 %2140 }
 0x378   : > { %v3513_v57 = vrot.slane %v9962_v51, 2  ;;  %v3962_v47 = vrot.slane %v9962_v51, 3  ;;  %v4264_v13 = vadd.f32 %v3961_v18, %v3815_v17  ;;  %v4410_v62 = vsel %vm4362_vm3, %v4408_v41, %v4409_v58 }
 0x379   : > { %v4714_v11 = vadd.f32 %v4409_v58, %v4265_v36  ;;  %v5307_v2 = vrot.slane %v9941_v30, 6  ;;  %v9981_v44 = vmax.f32 %v2664_v63, 0.0  ;;  %v4411_v23 = vrot.slane %v9962_v51, 4  ;;  %v12970_v63 = vld [vmem:[#allocation67_spill] sm:$0xff] }
 0x37a   : > { %v4860_v46 = vrot.slane %v9962_v51, 5  ;;  %v4713_v39 = vadd.f32 %v4410_v62, %v4264_v13  ;;  %v2666_v45 = vadd.f32 %v2538_v15, %v12969_v10  ;;  %v4859_v49 = vsel %vm4811_vm4, %v4857_v14, %v4858_v55 }
 0x37b   : > { %v5163_v61 = vadd.f32 %v4858_v55, %v4714_v11  ;;  %v3065_v37 = vrot.slane %v9981_v44, 1  ;;  %v3514_v48 = vrot.slane %v9981_v44, 2  ;;  %v6048_v41 = vadd.f32 %v5968_v21, %v5610_v50 }
 0x37c   : > { %v5309_v26 = vrot.slane %v9962_v51, 6  ;;  %v5162_v30 = vadd.f32 %v4859_v49, %v4713_v39  ;;  %v9990_v33 = vmax.f32 %v2665_v43, 0.0  ;;  %v5308_v6 = vsel %vm5260_vm5, %v5306_v27, %v5307_v2  ;;  %v2149_v39 = vpop.permute.xlu0 %2148 }
 0x37d   : > { %v5612_v1 = vadd.f32 %v5307_v2, %v5163_v61  ;;  %v3066_v7 = vsel %vm3015_vm0, %v3064_v25, %v3065_v37  ;;  %v3369_v14 = vadd.f32 %v3065_v37, %v9981_v44  ;;  %v6047_v42 = vadd.f32 %v5967_v5, %v5609_v34  ;;  %v2137_v34 = vpop.permute.xlu1 %2136 }
 0x37e   : > { %v5611_v38 = vadd.f32 %v5308_v6, %v5162_v30  ;;  %v3368_v58 = vadd.f32 %v3066_v7, %v9962_v51  ;;  %v3963_v50 = vrot.slane %v9981_v44, 3  ;;  %v3515_v17 = vsel %vm3464_vm1, %v3513_v57, %v3514_v48 }
 0x37f   : > { %v6128_v21 = vadd.f32 %v6048_v41, %v5612_v1  ;;  %v3818_v9 = vadd.f32 %v3514_v48, %v3369_v14  ;;  %v10000_v12 = vmax.f32 %v2666_v45, 0.0  ;;  %v3067_v43 = vrot.slane %v9990_v33, 1 }
 0x380   : > { %v6127_v27 = vadd.f32 %v6047_v42, %v5611_v38  ;;  %v3817_v54 = vadd.f32 %v3515_v17, %v3368_v58  ;;  %v2667_v15 = vadd.f32 %v2539_v22, %v12970_v63  ;;  %v3516_v51 = vrot.slane %v9990_v33, 2  ;;  %v12972_v63 = vld [vmem:[#allocation72_spill] sm:$0xff] }
 0x381   : > { %v6208_v5 = vmul.f32 0.020408163, %v6128_v21  ;;  %v3965_v18 = vrot.slane %v9990_v33, 3  ;;  %v4412_v36 = vrot.slane %v9981_v44, 4  ;;  %v3964_v25 = vsel %vm3913_vm2, %v3962_v47, %v3963_v50  ;;  %v2145_v7 = vpop.permute.xlu1 %2144 }
 0x382   : > { %v6207_v55 = vmul.f32 0.020408163, %v6127_v27  ;;  %v4267_v57 = vadd.f32 %v3963_v50, %v3818_v9  ;;  %v4861_v13 = vrot.slane %v9981_v44, 5  ;;  %v4266_v62 = vadd.f32 %v3964_v25, %v3817_v54 }
 0x383   : > { %6288 = vst [vmem:[%s9523_s26 + $0x98] sm:$0x3] %v6208_v5  ;;  %v5310_v11 = vrot.slane %v9981_v44, 6  ;;  %v3068_v22 = vrot.slane %v10000_v12, 1  ;;  %v3517_v2 = vrot.slane %v10000_v12, 2  ;;  %v4414_v10 = vrot.slane %v9990_v33, 4 }
 0x384   : > { %6287 = vst [vmem:[%s9523_s26 + $0x90] sm:$0xff] %v6207_v55  ;;  %v4863_v45 = vrot.slane %v9990_v33, 5  ;;  %v5312_v49 = vrot.slane %v9990_v33, 6  ;;  %v10017_v47 = vmax.f32 %v2667_v15, 0.0  ;;  %v3966_v44 = vrot.slane %v10000_v12, 3 }
 0x385   : > { %v3069_v61 = vsel %vm3015_vm0, %v3067_v43, %v3068_v22  ;;  %v3371_v37 = vadd.f32 %v3068_v22, %v10000_v12  ;;  %v2541_v48 = vmul.f32 %v8787_v16, %v2141_v24  ;;  %v4413_v41 = vsel %vm4362_vm3, %v4411_v23, %v4412_v36  ;;  %v2157_v43 = vpop.permute.xlu0 %2156 }
 0x386   : > { %v4716_v30 = vadd.f32 %v4412_v36, %v4267_v57  ;;  %v4862_v6 = vsel %vm4811_vm4, %v4860_v46, %v4861_v13  ;;  %v3370_v1 = vadd.f32 %v3069_v61, %v9990_v33  ;;  %v4715_v14 = vadd.f32 %v4413_v41, %v4266_v62  ;;  %v12971_v33 = vld [vmem:[#allocation71_spill] sm:$0xff]  ;;  %v2153_v62 = vpop.permute.xlu1 %2152 }
 0x387   : > { %v5311_v42 = vsel %vm5260_vm5, %v5309_v26, %v5310_v11  ;;  %v3518_v38 = vsel %vm3464_vm1, %v3516_v51, %v3517_v2  ;;  %v3820_v58 = vadd.f32 %v3517_v2, %v3371_v37  ;;  %v3070_v50 = vrot.slane %v10017_v47, 1 }
 0x388   : > { %v3519_v21 = vrot.slane %v10017_v47, 2  ;;  %v3819_v17 = vadd.f32 %v3518_v38, %v3370_v1  ;;  %v2540_v24 = vmul.f32 %v8787_v16, %v2137_v34  ;;  %v3967_v23 = vsel %vm3913_vm2, %v3965_v18, %v3966_v44  ;;  %v12974_v38 = vld [vmem:[#allocation69_spill] sm:$0xff] }
 0x389   : > { %v4269_v9 = vadd.f32 %v3966_v44, %v3820_v58  ;;  %v4415_v46 = vrot.slane %v10000_v12, 4  ;;  %v2669_v27 = vadd.f32 %v2541_v48, %v12971_v33  ;;  %v5165_v54 = vadd.f32 %v4861_v13, %v4716_v30 }
 0x38a   : > { %v4268_v26 = vadd.f32 %v3967_v23, %v3819_v17  ;;  %v2668_v15 = vadd.f32 %v2540_v24, %v12972_v63  ;;  %v2542_v5 = vmul.f32 %v8787_v16, %v2145_v7  ;;  %v5164_v51 = vadd.f32 %v4862_v6, %v4715_v14  ;;  %v12975_v17 = vld [vmem:[#allocation76_spill] sm:$0xff] }
 0x38b   : > { %v3968_v36 = vrot.slane %v10017_v47, 3  ;;  %v4864_v55 = vrot.slane %v10000_v12, 5  ;;  %v5313_v34 = vrot.slane %v10000_v12, 6  ;;  %v4417_v18 = vrot.slane %v10017_v47, 4  ;;  %v12973_v12 = vld [vmem:[#allocation65_spill] sm:$0xff] }
 0x38c   : > { %v4866_v25 = vrot.slane %v10017_v47, 5  ;;  %v2543_v57 = vmul.f32 %v8787_v16, %v2149_v39  ;;  %v2545_v13 = vmul.f32 %v8787_v16, %v2157_v43  ;;  %v5315_v22 = vrot.slane %v10017_v47, 6 }
 0x38d   : > { %v4416_v2 = vsel %vm4362_vm3, %v4414_v10, %v4415_v46  ;;  %v4718_v61 = vadd.f32 %v4415_v46, %v4269_v9  ;;  %v10045_v37 = vmax.f32 %v2669_v27, 0.0  ;;  %v5614_v44 = vadd.f32 %v5310_v11, %v5165_v54 }
 0x38e   : > { %v4717_v48 = vadd.f32 %v4416_v2, %v4268_v26  ;;  %v10047_v41 = vmax.f32 %v2668_v15, 0.0  ;;  %v2670_v30 = vadd.f32 %v2542_v5, %v12973_v12  ;;  %v5613_v6 = vadd.f32 %v5311_v42, %v5164_v51 }
 0x38f   : > { %v4865_v1 = vsel %vm4811_vm4, %v4863_v45, %v4864_v55  ;;  %v5314_v39 = vsel %vm5260_vm5, %v5312_v49, %v5313_v34  ;;  %v2544_v7 = vmul.f32 %v8787_v16, %v2153_v62  ;;  %v2671_v58 = vadd.f32 %v2543_v57, %v12974_v38 }
 0x390   : > { %v3071_v14 = vrot.slane %v10047_v41, 1  ;;  %v3520_v10 = vrot.slane %v10047_v41, 2  ;;  %v2673_v11 = vadd.f32 %v2545_v13, %v12975_v17  ;;  %v5167_v24 = vadd.f32 %v4864_v55, %v4718_v61  ;;  %v12976_v13 = vld [vmem:[#allocation66_spill] sm:$0xff] }
 0x391   : > { %v3073_v23 = vrot.slane %v10045_v37, 1  ;;  %v3522_v9 = vrot.slane %v10045_v37, 2  ;;  %v3971_v42 = vrot.slane %v10045_v37, 3  ;;  %v5166_v45 = vadd.f32 %v4865_v1, %v4717_v48 }
 0x392   : > { %v3072_v49 = vsel %vm3015_vm0, %v3070_v50, %v3071_v14  ;;  %v3373_v46 = vadd.f32 %v3071_v14, %v10047_v41  ;;  %v10062_v33 = vmax.f32 %v2670_v30, 0.0  ;;  %v4420_v27 = vrot.slane %v10045_v37, 4  ;;  %v2165_v30 = vpop.permute.xlu0 %2164 }
 0x393   : > { %v4869_v43 = vrot.slane %v10045_v37, 5  ;;  %v3372_v54 = vadd.f32 %v3072_v49, %v10017_v47  ;;  %v3969_v26 = vrot.slane %v10047_v41, 3  ;;  %v5318_v63 = vrot.slane %v10045_v37, 6 }
 0x394   : > { %v3521_v15 = vsel %vm3464_vm1, %v3519_v21, %v3520_v10  ;;  %v3822_v5 = vadd.f32 %v3520_v10, %v3373_v46  ;;  %v10070_v51 = vmax.f32 %v2671_v58, 0.0  ;;  %v10072_v50 = vadd.f32 %v5313_v34, %v5167_v24 }
 0x395   : > { %v3821_v55 = vadd.f32 %v3521_v15, %v3372_v54  ;;  %v10074_v57 = vmax.f32 %v2673_v11, 0.0  ;;  %v2672_v62 = vadd.f32 %v2544_v7, %v12976_v13  ;;  %v10077_v2 = vadd.f32 %v5314_v39, %v5166_v45 }
 0x396   : > { %v4271_v61 = vadd.f32 %v3969_v26, %v3822_v5  ;;  %v3074_v48 = vrot.slane %v10062_v33, 1  ;;  %v3523_v12 = vrot.slane %v10062_v33, 2  ;;  %v3970_v21 = vsel %vm3913_vm2, %v3968_v36, %v3969_v26 }
 0x397   : > { %v4418_v1 = vrot.slane %v10047_v41, 4  ;;  %v4867_v34 = vrot.slane %v10047_v41, 5  ;;  %v5316_v14 = vrot.slane %v10047_v41, 6  ;;  %v4270_v10 = vadd.f32 %v3970_v21, %v3821_v55 }
 0x398   : > { %v3075_v38 = vsel %vm3015_vm0, %v3073_v23, %v3074_v48  ;;  %v3375_v39 = vadd.f32 %v3074_v48, %v10062_v33  ;;  %v3972_v7 = vrot.slane %v10062_v33, 3  ;;  %v5730_v58 = vadd.f32 %v10072_v50, %v5614_v44 }
 0x399   : > { %v4720_v17 = vadd.f32 %v4418_v1, %v4271_v61  ;;  %v3374_v11 = vadd.f32 %v3075_v38, %v10045_v37  ;;  %v2547_v36 = vmul.f32 %v8787_v16, %v2165_v30  ;;  %v5729_v24 = vadd.f32 %v10077_v2, %v5613_v6  ;;  %v2161_v30 = vpop.permute.xlu1 %2160 }
 0x39a   : > { %v3524_v45 = vsel %vm3464_vm1, %v3522_v9, %v3523_v12  ;;  %v3824_v49 = vadd.f32 %v3523_v12, %v3375_v39  ;;  %v4421_v41 = vrot.slane %v10062_v33, 4  ;;  %v4419_v23 = vsel %vm4362_vm3, %v4417_v18, %v4418_v1 }
 0x39b   : > { %v4868_v44 = vsel %vm4811_vm4, %v4866_v25, %v4867_v34  ;;  %v5317_v46 = vsel %vm5260_vm5, %v5315_v22, %v5316_v14  ;;  %v3823_v37 = vadd.f32 %v3524_v45, %v3374_v11  ;;  %v4719_v54 = vadd.f32 %v4419_v23, %v4270_v10 }
 0x39c   : > { %v3973_v26 = vsel %vm3913_vm2, %v3971_v42, %v3972_v7  ;;  %v4273_v6 = vadd.f32 %v3972_v7, %v3824_v49  ;;  %v4870_v9 = vrot.slane %v10062_v33, 5  ;;  %v5169_v15 = vadd.f32 %v4867_v34, %v4720_v17 }
 0x39d   : > { %v3076_v5 = vrot.slane %v10070_v51, 1  ;;  %v3525_v55 = vrot.slane %v10070_v51, 2  ;;  %v4272_v13 = vadd.f32 %v3973_v26, %v3823_v37  ;;  %v3974_v18 = vrot.slane %v10070_v51, 3 }
 0x39e   : > { %v4422_v47 = vsel %vm4362_vm3, %v4420_v27, %v4421_v41  ;;  %v4722_v25 = vadd.f32 %v4421_v41, %v4273_v6  ;;  %v5319_v22 = vrot.slane %v10062_v33, 6  ;;  %v4423_v61 = vrot.slane %v10070_v51, 4  ;;  %v2173_v41 = vpop.permute.xlu0 %2172 }
 0x39f   : > { %v4872_v42 = vrot.slane %v10070_v51, 5  ;;  %v4721_v48 = vadd.f32 %v4422_v47, %v4272_v13  ;;  %v10110_v12 = vmax.f32 %v2672_v62, 0.0  ;;  %v5168_v21 = vadd.f32 %v4868_v44, %v4719_v54  ;;  %v12977_v47 = vld [vmem:[#allocation156_spill] sm:$0xff] }
 0x3a0   : > { %v5321_v1 = vrot.slane %v10070_v51, 6  ;;  %v4871_v34 = vsel %vm4811_vm4, %v4869_v43, %v4870_v9  ;;  %v3079_v10 = vrot.slane %v10074_v57, 1  ;;  %v5618_v38 = vadd.f32 %v5316_v14, %v5169_v15 }
 0x3a1   : > { %v3528_v27 = vrot.slane %v10074_v57, 2  ;;  %v3077_v33 = vrot.slane %v10110_v12, 1  ;;  %v3526_v39 = vrot.slane %v10110_v12, 2  ;;  %v5171_v7 = vadd.f32 %v4870_v9, %v4722_v25 }
 0x3a2   : > { %v5320_v17 = vsel %vm5260_vm5, %v5318_v63, %v5319_v22  ;;  %v3977_v62 = vrot.slane %v10074_v57, 3  ;;  %v2546_v11 = vmul.f32 %v8787_v16, %v2161_v30  ;;  %v5170_v45 = vadd.f32 %v4871_v34, %v4721_v48 }
 0x3a3   : > { %v3078_v49 = vsel %vm3015_vm0, %v3076_v5, %v3077_v33  ;;  %v3377_v43 = vadd.f32 %v3077_v33, %v10110_v12  ;;  %v3975_v14 = vrot.slane %v10110_v12, 3  ;;  %v5617_v23 = vadd.f32 %v5317_v46, %v5168_v21  ;;  %v12978_v21 = vld [vmem:[#allocation158_spill] sm:$0xff] }
 0x3a4   : > { %v4426_v44 = vrot.slane %v10074_v57, 4  ;;  %v4875_v37 = vrot.slane %v10074_v57, 5  ;;  %v3376_v54 = vadd.f32 %v3078_v49, %v10070_v51  ;;  %v5732_v63 = vadd.f32 %v5618_v38, %v10072_v50 }
 0x3a5   : > { %v3527_v26 = vsel %vm3464_vm1, %v3525_v55, %v3526_v39  ;;  %v3826_v6 = vadd.f32 %v3526_v39, %v3377_v43  ;;  %v4424_v9 = vrot.slane %v10110_v12, 4  ;;  %v5810_v15 = vadd.f32 %v5730_v58, %v5618_v38 }
 0x3a6   : > { %v5620_v5 = vadd.f32 %v5319_v22, %v5171_v7  ;;  %v3825_v13 = vadd.f32 %v3527_v26, %v3376_v54  ;;  %v2675_v25 = vadd.f32 %v2547_v36, %v12977_v47  ;;  %v10131_v48 = vadd.f32 %v5320_v17, %v5170_v45  ;;  %v2169_v7 = vpop.permute.xlu1 %2168  ;;  %v2181_v17 = vpop.permute.xlu0 %2180 }
 0x3a7   : > { %v3976_v46 = vsel %vm3913_vm2, %v3974_v18, %v3975_v14  ;;  %v4275_v30 = vadd.f32 %v3975_v14, %v3826_v6  ;;  %v2674_v34 = vadd.f32 %v2546_v11, %v12978_v21  ;;  %v5731_v51 = vadd.f32 %v5617_v23, %v10077_v2 }
 0x3a8   : > { %v5324_v50 = vrot.slane %v10074_v57, 6  ;;  %v4274_v55 = vadd.f32 %v3976_v46, %v3825_v13  ;;  %v2549_v33 = vmul.f32 %v8787_v16, %v2173_v41  ;;  %v5809_v39 = vadd.f32 %v5729_v24, %v5617_v23  ;;  %v12979_v41 = vld [vmem:[#allocation73_spill] sm:$0xff] }
 0x3a9   : > { %v4425_v58 = vsel %vm4362_vm3, %v4423_v61, %v4424_v9  ;;  %v4724_v22 = vadd.f32 %v4424_v9, %v4275_v30  ;;  %v4873_v36 = vrot.slane %v10110_v12, 5  ;;  %v5734_v45 = vadd.f32 %v5620_v5, %v5618_v38 }
 0x3aa   : > { %v4723_v18 = vadd.f32 %v4425_v58, %v4274_v55  ;;  %v5322_v49 = vrot.slane %v10110_v12, 6  ;;  %v10141_v11 = vmax.f32 %v2675_v25, 0.0  ;;  %v5733_v2 = vadd.f32 %v10131_v48, %v5617_v23 }
 0x3ab   : > { %v5812_v43 = vadd.f32 %v5732_v63, %v5620_v5  ;;  %v5890_v14 = vadd.f32 %v5810_v15, %v5620_v5  ;;  %v10144_v54 = vmax.f32 %v2674_v34, 0.0  ;;  %v5811_v24 = vadd.f32 %v5731_v51, %v10131_v48  ;;  %v2189_v34 = vpop.permute.xlu0 %2188 }
 0x3ac   : > { %v5173_v61 = vadd.f32 %v4873_v36, %v4724_v22  ;;  %v2677_v26 = vadd.f32 %v2549_v33, %v12979_v41  ;;  %v2548_v6 = vmul.f32 %v8787_v16, %v2169_v7  ;;  %v5889_v38 = vadd.f32 %v5809_v39, %v10131_v48  ;;  %v12981_v7 = vld [vmem:[#allocation77_spill] sm:$0xff] }
 0x3ad   : > { %v4874_v9 = vsel %vm4811_vm4, %v4872_v42, %v4873_v36  ;;  %v3080_v12 = vrot.slane %v10144_v54, 1  ;;  %v2551_v13 = vmul.f32 %v8787_v16, %v2181_v17  ;;  %v5323_v63 = vsel %vm5260_vm5, %v5321_v1, %v5322_v49  ;;  %v2177_v42 = vpop.permute.xlu1 %2176  ;;  %v12980_v1 = vld [vmem:[#allocation74_spill] sm:$0xff] }
 0x3ae   : > { %v5172_v23 = vadd.f32 %v4874_v9, %v4723_v18  ;;  %v3082_v15 = vrot.slane %v10141_v11, 1  ;;  %v3531_v47 = vrot.slane %v10141_v11, 2  ;;  %v3980_v25 = vrot.slane %v10141_v11, 3 }
 0x3af   : > { %v4429_v46 = vrot.slane %v10141_v11, 4  ;;  %v4878_v30 = vrot.slane %v10141_v11, 5  ;;  %v3529_v21 = vrot.slane %v10144_v54, 2  ;;  %v10160_v51 = vadd.f32 %v5322_v49, %v5173_v61 }
 0x3b0   : > { %v5327_v55 = vrot.slane %v10141_v11, 6  ;;  %v10163_v33 = vmax.f32 %v2677_v26, 0.0  ;;  %v2676_v39 = vadd.f32 %v2548_v6, %v12980_v1  ;;  %v3081_v58 = vsel %vm3015_vm0, %v3079_v10, %v3080_v12 }
 0x3b1   : > { %v3379_v22 = vadd.f32 %v3080_v12, %v10144_v54  ;;  %v3978_v36 = vrot.slane %v10144_v54, 3  ;;  %v2679_v17 = vadd.f32 %v2551_v13, %v12981_v7  ;;  %v10172_v18 = vadd.f32 %v5323_v63, %v5172_v23 }
 0x3b2   : > { %v3378_v49 = vadd.f32 %v3081_v58, %v10074_v57  ;;  %v2550_v61 = vmul.f32 %v8787_v16, %v2177_v42  ;;  %v2553_v41 = vmul.f32 %v8787_v16, %v2189_v34  ;;  %v3530_v26 = vsel %vm3464_vm1, %v3528_v27, %v3529_v21 }
 0x3b3   : > { %v3828_v6 = vadd.f32 %v3529_v21, %v3379_v22  ;;  %v4427_v10 = vrot.slane %v10144_v54, 4  ;;  %v4876_v9 = vrot.slane %v10144_v54, 5  ;;  %v5736_v12 = vadd.f32 %v10160_v51, %v5620_v5 }
 0x3b4   : > { %v5814_v13 = vadd.f32 %v5734_v45, %v10160_v51  ;;  %v3827_v23 = vadd.f32 %v3530_v26, %v3378_v49  ;;  %v5325_v63 = vrot.slane %v10144_v54, 6  ;;  %v5892_v42 = vadd.f32 %v5812_v43, %v10160_v51 }
 0x3b5   : > { %v3979_v34 = vsel %vm3913_vm2, %v3977_v62, %v3978_v36  ;;  %v4277_v1 = vadd.f32 %v3978_v36, %v3828_v6  ;;  %v10189_v27 = vmax.f32 %v2676_v39, 0.0  ;;  %v5735_v21 = vadd.f32 %v10172_v18, %v10131_v48 }
 0x3b6   : > { %v5813_v58 = vadd.f32 %v5733_v2, %v10172_v18  ;;  %v10195_v5 = vadd.f32 %v5890_v14, %v10160_v51  ;;  %v4276_v45 = vadd.f32 %v3979_v34, %v3827_v23  ;;  %v4428_v43 = vsel %vm4362_vm3, %v4426_v44, %v4427_v10 }
 0x3b7   : > { %v4726_v54 = vadd.f32 %v4427_v10, %v4277_v1  ;;  %v3083_v22 = vrot.slane %v10189_v27, 1  ;;  %v3532_v62 = vrot.slane %v10189_v27, 2  ;;  %v5891_v39 = vadd.f32 %v5811_v24, %v10172_v18 }
 0x3b8   : > { %v5969_v36 = vadd.f32 %v5889_v38, %v10172_v18  ;;  %v4725_v48 = vadd.f32 %v4428_v43, %v4276_v45  ;;  %v4877_v2 = vsel %vm4811_vm4, %v4875_v37, %v4876_v9  ;;  %v5326_v14 = vsel %vm5260_vm5, %v5324_v50, %v5325_v63  ;;  %v2197_v45 = vpop.permute.xlu0 %2196 }
 0x3b9   : > { %v3085_v44 = vrot.slane %v10163_v33, 1  ;;  %v3084_v7 = vsel %vm3015_vm0, %v3082_v15, %v3083_v22  ;;  %v3381_v49 = vadd.f32 %v3083_v22, %v10189_v27  ;;  %v5175_v26 = vadd.f32 %v4876_v9, %v4726_v54  ;;  %v2185_v9 = vpop.permute.xlu1 %2184 }
 0x3ba   : > { %v3534_v24 = vrot.slane %v10163_v33, 2  ;;  %v3380_v38 = vadd.f32 %v3084_v7, %v10141_v11  ;;  %v3981_v6 = vrot.slane %v10189_v27, 3  ;;  %v3533_v37 = vsel %vm3464_vm1, %v3531_v47, %v3532_v62  ;;  %v12982_v7 = vld [vmem:[#allocation78_spill] sm:$0xff] }
 0x3bb   : > { %v3830_v57 = vadd.f32 %v3532_v62, %v3381_v49  ;;  %v4430_v50 = vrot.slane %v10189_v27, 4  ;;  %v5174_v23 = vadd.f32 %v4877_v2, %v4725_v48  ;;  %v4879_v15 = vrot.slane %v10189_v27, 5  ;;  %v12983_v2 = vld [vmem:[#allocation85_spill] sm:$0xff] }
 0x3bc   : > { %v3829_v34 = vadd.f32 %v3533_v37, %v3380_v38  ;;  %v5328_v1 = vrot.slane %v10189_v27, 6  ;;  %v4432_v43 = vrot.slane %v10163_v33, 4  ;;  %v10223_v22 = vmax.f32 %v2679_v17, 0.0 }
 0x3bd   : > { %v2678_v10 = vadd.f32 %v2550_v61, %v12982_v7  ;;  %v10226_v47 = vadd.f32 %v5325_v63, %v5175_v26  ;;  %v5330_v62 = vrot.slane %v10163_v33, 6  ;;  %v3982_v48 = vsel %vm3913_vm2, %v3980_v25, %v3981_v6 }
 0x3be   : > { %v2681_v27 = vadd.f32 %v2553_v41, %v12983_v2  ;;  %v4278_v49 = vadd.f32 %v3982_v48, %v3829_v34  ;;  %v4279_v38 = vadd.f32 %v3981_v6, %v3830_v57  ;;  %v2552_v37 = vmul.f32 %v8787_v16, %v2185_v9 }
 0x3bf   : > { %v2555_v54 = vmul.f32 %v8787_v16, %v2197_v45  ;;  %v10235_v17 = vadd.f32 %v5326_v14, %v5174_v23  ;;  %v4431_v61 = vsel %vm4362_vm3, %v4429_v46, %v4430_v50  ;;  %v4880_v63 = vsel %vm4811_vm4, %v4878_v30, %v4879_v15 }
 0x3c0   : > { %v5329_v25 = vsel %vm5260_vm5, %v5327_v55, %v5328_v1  ;;  %v4727_v41 = vadd.f32 %v4431_v61, %v4278_v49  ;;  %v4728_v26 = vadd.f32 %v4430_v50, %v4279_v38  ;;  %v3088_v6 = vrot.slane %v10223_v22, 1 }
 0x3c1   : > { %v10247_v57 = vmax.f32 %v2678_v10, 0.0  ;;  %v5738_v14 = vadd.f32 %v10226_v47, %v10160_v51  ;;  %v5816_v23 = vadd.f32 %v5736_v12, %v10226_v47  ;;  %v5894_v46 = vadd.f32 %v5814_v13, %v10226_v47 }
 0x3c2   : > { %v3537_v34 = vrot.slane %v10223_v22, 2  ;;  %v10255_v30 = vadd.f32 %v5892_v42, %v10226_v47  ;;  %v5176_v11 = vadd.f32 %v4880_v63, %v4727_v41  ;;  %v5177_v55 = vadd.f32 %v4879_v15, %v4728_v26  ;;  %v2193_v26 = vpop.permute.xlu1 %2192 }
 0x3c3   : > { %v3086_v50 = vrot.slane %v10247_v57, 1  ;;  %v5737_v10 = vadd.f32 %v10235_v17, %v10172_v18  ;;  %v5815_v9 = vadd.f32 %v5735_v21, %v10235_v17  ;;  %v5893_v51 = vadd.f32 %v5813_v58, %v10235_v17 }
 0x3c4   : > { %v3535_v12 = vrot.slane %v10247_v57, 2  ;;  %v10263_v45 = vadd.f32 %v5329_v25, %v5176_v11  ;;  %v10265_v13 = vadd.f32 %v5328_v1, %v5177_v55  ;;  %v5971_v15 = vadd.f32 %v5891_v39, %v10235_v17  ;;  %v2205_v11 = vpop.permute.xlu0 %2204 }
 0x3c5   : > { %v3087_v42 = vsel %vm3015_vm0, %v3085_v44, %v3086_v50  ;;  %v3383_v7 = vadd.f32 %v3086_v50, %v10247_v57  ;;  %v6049_v48 = vadd.f32 %v5969_v36, %v10235_v17  ;;  %v3984_v21 = vrot.slane %v10247_v57, 3  ;;  %v12984_v36 = vld [vmem:[#allocation86_spill] sm:$0xff] }
 0x3c6   : > { %v3382_v18 = vadd.f32 %v3087_v42, %v10163_v33  ;;  %v6050_v58 = vadd.f32 %v10195_v5, %v10226_v47  ;;  %v3986_v2 = vrot.slane %v10223_v22, 3  ;;  %v4435_v1 = vrot.slane %v10223_v22, 4 }
 0x3c7   : > { %v4884_v49 = vrot.slane %v10223_v22, 5  ;;  %v3536_v38 = vsel %vm3464_vm1, %v3534_v24, %v3535_v12  ;;  %v4433_v39 = vrot.slane %v10247_v57, 4  ;;  %v2680_v61 = vadd.f32 %v2552_v37, %v12984_v36 }
 0x3c8   : > { %v6129_v63 = vadd.f32 %v6049_v48, %v10263_v45  ;;  %v6130_v25 = vadd.f32 %v6050_v58, %v10265_v13  ;;  %v3831_v41 = vadd.f32 %v3536_v38, %v3382_v18  ;;  %v3832_v5 = vadd.f32 %v3535_v12, %v3383_v7 }
 0x3c9   : > { %v12985_v55 = vrot.slane %v10163_v33, 3  ;;  %v4882_v24 = vrot.slane %v10247_v57, 5  ;;  %v10288_v42 = vmax.f32 %v2681_v27, 0.0  ;;  %v2683_v37 = vadd.f32 %v2555_v54, %v8736_v32 }
 0x3ca   : > { %v6209_v36 = vmul.f32 0.020408163, %v6129_v63  ;;  %v6210_v48 = vmul.f32 0.020408163, %v6130_v25  ;;  %v4281_v58 = vadd.f32 %v3984_v21, %v3832_v5  ;;  %v4434_v12 = vsel %vm4362_vm3, %v4432_v43, %v4433_v39 }
 0x3cb   : > { %v3985_v50 = vsel %vm3913_vm2, %v12985_v55, %v3984_v21  ;;  %v5331_v7 = vrot.slane %v10247_v57, 6  ;;  %v2554_v18 = vmul.f32 %v8787_v16, %v2193_v26  ;;  %v2557_v38 = vmul.f32 %v8787_v16, %v2205_v11 }
 0x3cc   : > { %v4280_v44 = vadd.f32 %v3985_v50, %v3831_v41  ;;  %v10298_v55 = vadd.f32 %v5737_v10, %v10263_v45  ;;  %6289 = vst [vmem:[%s9523_s26 + $0xa0] sm:$0xff] %v6209_v36  ;;  %6290 = vst [vmem:[%s9523_s26 + $0xa8] sm:$0x3] %v6210_v48  ;;  %v4730_v54 = vadd.f32 %v4433_v39, %v4281_v58  ;;  %v10302_v27 = vmax.f32 %v2680_v61, 0.0 }
 0x3cd   : > { %v10305_v21 = vadd.f32 %v5738_v14, %v10265_v13  ;;  %v10308_v43 = vadd.f32 %v5815_v9, %v10263_v45  ;;  %v10311_v57 = vadd.f32 %v5816_v23, %v10265_v13  ;;  %v12986_v63 = vrot.slane %v10163_v33, 5 }
 0x3ce   : > { %v4729_v32 = vadd.f32 %v4434_v12, %v4280_v44  ;;  %v5179_v41 = vadd.f32 %v4882_v24, %v4730_v54  ;;  %v3089_v44 = vrot.slane %v10302_v27, 1  ;;  %v3538_v39 = vrot.slane %v10302_v27, 2 }
 0x3cf   : > { %v4883_v10 = vsel %vm4811_vm4, %v12986_v63, %v4882_v24  ;;  %v5973_v61 = vadd.f32 %v5893_v51, %v10263_v45  ;;  %v5974_v14 = vadd.f32 %v5894_v46, %v10265_v13  ;;  %v5332_v9 = vsel %vm5260_vm5, %v5330_v62, %v5331_v7 }
 0x3d0   : > { %v5178_v25 = vadd.f32 %v4883_v10, %v4729_v32  ;;  %v3987_v23 = vrot.slane %v10302_v27, 3  ;;  %v10326_v26 = vadd.f32 %v5331_v7, %v5179_v41  ;;  %v3090_v11 = vsel %vm3015_vm0, %v3088_v6, %v3089_v44  ;;  %v2213_v41 = vpop.permute.xlu0 %2212 }
 0x3d1   : > { %v3385_v50 = vadd.f32 %v3089_v44, %v10302_v27  ;;  %v6051_v51 = vadd.f32 %v5971_v15, %v10263_v45  ;;  %v6052_v46 = vadd.f32 %v10255_v30, %v10265_v13  ;;  %v3091_v33 = vrot.slane %v10288_v42, 1 }
 0x3d2   : > { %v10324_v5 = vadd.f32 %v5332_v9, %v5178_v25  ;;  %v3384_v62 = vadd.f32 %v3090_v11, %v10223_v22  ;;  %v3540_v24 = vrot.slane %v10288_v42, 2  ;;  %v3539_v36 = vsel %vm3464_vm1, %v3537_v34, %v3538_v39 }
 0x3d3   : > { %v4436_v48 = vrot.slane %v10302_v27, 4  ;;  %v2682_v6 = vadd.f32 %v2554_v18, %v8733_v31  ;;  %v6132_v15 = vadd.f32 %v6052_v46, %v10326_v26  ;;  %v3834_v30 = vadd.f32 %v3538_v39, %v3385_v50  ;;  %v2201_v18 = vpop.permute.xlu1 %2200 }
 0x3d4   : > { %v6131_v58 = vadd.f32 %v6051_v51, %v10324_v5  ;;  %v3833_v12 = vadd.f32 %v3539_v36, %v3384_v62  ;;  %v3989_v7 = vrot.slane %v10288_v42, 3  ;;  %v4438_v32 = vrot.slane %v10288_v42, 4 }
 0x3d5   : > { %v3988_v54 = vsel %vm3913_vm2, %v3986_v2, %v3987_v23  ;;  %v4885_v34 = vrot.slane %v10302_v27, 5  ;;  %v6212_v10 = vmul.f32 0.020408163, %v6132_v15  ;;  %v4283_v31 = vadd.f32 %v3987_v23, %v3834_v30 }
 0x3d6   : > { %v6211_v63 = vmul.f32 0.020408163, %v6131_v58  ;;  %v4282_v25 = vadd.f32 %v3988_v54, %v3833_v12  ;;  %v4887_v44 = vrot.slane %v10288_v42, 5  ;;  %v5336_v9 = vrot.slane %v10288_v42, 6 }
 0x3d7   : > { %v4437_v39 = vsel %vm4362_vm3, %v4435_v1, %v4436_v48  ;;  %v5334_v11 = vrot.slane %v10302_v27, 6  ;;  %6292 = vst [vmem:[%s9523_s26 + $0xb8] sm:$0x3] %v6212_v10  ;;  %v4732_v50 = vadd.f32 %v4436_v48, %v4283_v31  ;;  %v10357_v51 = vmax.f32 %v2683_v37, 0.0 }
 0x3d8   : > { %6291 = vst [vmem:[%s9523_s26 + $0xb0] sm:$0xff] %v6211_v63  ;;  %v4731_v2 = vadd.f32 %v4437_v39, %v4282_v25  ;;  %v2810_v46 = vmax.f32 %v2682_v6, 0.0  ;;  %v4886_v23 = vsel %vm4811_vm4, %v4884_v49, %v4885_v34  ;;  %v2685_v62 = vadd.f32 %v2557_v38, %v8743_v35 }
 0x3d9   : > { %v2556_v36 = vmul.f32 %v8787_v16, %v2201_v18  ;;  %v2559_v58 = vmul.f32 %v8787_v16, %v2213_v41  ;;  %v5181_v15 = vadd.f32 %v4885_v34, %v4732_v50  ;;  %v6053_v30 = vadd.f32 %v5973_v61, %v10324_v5 }
 0x3da   : > { %v5180_v1 = vadd.f32 %v4886_v23, %v4731_v2  ;;  %v3092_v27 = vrot.slane %v2810_v46, 1  ;;  %v3541_v12 = vrot.slane %v2810_v46, 2  ;;  %v6054_v37 = vadd.f32 %v5974_v14, %v10326_v26 }
 0x3db   : > { %v12987_v48 = vrot.slane %v10223_v22, 6  ;;  %v3990_v54 = vrot.slane %v2810_v46, 3  ;;  %v10372_v35 = vadd.f32 %v5334_v11, %v5181_v15  ;;  %v5975_v34 = vadd.f32 %v10308_v43, %v10324_v5 }
 0x3dc   : > { %v3093_v38 = vsel %vm3015_vm0, %v3091_v33, %v3092_v27  ;;  %v3387_v63 = vadd.f32 %v3092_v27, %v2810_v46  ;;  %v5976_v61 = vadd.f32 %v10311_v57, %v10326_v26  ;;  %v2684_v22 = vadd.f32 %v2556_v36, %v8739_v28 }
 0x3dd   : > { %v5335_v6 = vsel %vm5260_vm5, %v12987_v48, %v5334_v11  ;;  %v3386_v14 = vadd.f32 %v3093_v38, %v10288_v42  ;;  %v6134_v25 = vadd.f32 %v6054_v37, %v10372_v35  ;;  %v3542_v31 = vsel %vm3464_vm1, %v3540_v24, %v3541_v12 }
 0x3de   : > { %v10370_v49 = vadd.f32 %v5335_v6, %v5180_v1  ;;  %v4439_v33 = vrot.slane %v2810_v46, 4  ;;  %v3094_v18 = vrot.slane %v10357_v51, 1  ;;  %v3543_v43 = vrot.slane %v10357_v51, 2 }
 0x3df   : > { %v3835_v41 = vadd.f32 %v3542_v31, %v3386_v14  ;;  %v3836_v39 = vadd.f32 %v3541_v12, %v3387_v63  ;;  %v6214_v11 = vmul.f32 0.020408163, %v6134_v25  ;;  %v3991_v2 = vsel %vm3913_vm2, %v3989_v7, %v3990_v54 }
 0x3e0   : > { %v6133_v10 = vadd.f32 %v6053_v30, %v10370_v49  ;;  %v4888_v28 = vrot.slane %v2810_v46, 5  ;;  %v3992_v50 = vrot.slane %v10357_v51, 3  ;;  %v4441_v23 = vrot.slane %v10357_v51, 4 }
 0x3e1   : > { %v4284_v36 = vadd.f32 %v3991_v2, %v3835_v41  ;;  %v4285_v1 = vadd.f32 %v3990_v54, %v3836_v39  ;;  %6294 = vst [vmem:[%s9523_s26 + $0xc8] sm:$0x3] %v6214_v11  ;;  %v4890_v24 = vrot.slane %v10357_v51, 5  ;;  %v4440_v15 = vsel %vm4362_vm3, %v4438_v32, %v4439_v33  ;;  %v2209_v11 = vpop.permute.xlu1 %2208 }
 0x3e2   : > { %v6213_v57 = vmul.f32 0.020408163, %v6133_v10  ;;  %v5337_v27 = vrot.slane %v2810_v46, 6  ;;  %v2812_v30 = vmax.f32 %v2684_v22, 0.0  ;;  %v5339_v12 = vrot.slane %v10357_v51, 6 }
 0x3e3   : > { %v4733_v37 = vadd.f32 %v4440_v15, %v4284_v36  ;;  %v4734_v48 = vadd.f32 %v4439_v33, %v4285_v1  ;;  %v10394_v7 = vmax.f32 %v2685_v62, 0.0  ;;  %v4889_v6 = vsel %vm4811_vm4, %v4887_v44, %v4888_v28 }
 0x3e4   : > { %6293 = vst [vmem:[%s9523_s26 + $0xc0] sm:$0xff] %v6213_v57  ;;  %v3095_v38 = vrot.slane %v2812_v30, 1  ;;  %v3544_v63 = vrot.slane %v2812_v30, 2  ;;  %v5897_v54 = vadd.f32 %v10298_v55, %v10324_v5  ;;  %v6055_v14 = vadd.f32 %v5975_v34, %v10370_v49 }
 0x3e5   : > { %v5182_v10 = vadd.f32 %v4889_v6, %v4733_v37  ;;  %v5183_v25 = vadd.f32 %v4888_v28, %v4734_v48  ;;  %v5898_v32 = vadd.f32 %v10305_v21, %v10326_v26  ;;  %v5338_v46 = vsel %vm5260_vm5, %v5336_v9, %v5337_v27 }
 0x3e6   : > { %v3096_v62 = vsel %vm3015_vm0, %v3094_v18, %v3095_v38  ;;  %v3389_v22 = vadd.f32 %v3095_v38, %v2812_v30  ;;  %v3993_v44 = vrot.slane %v2812_v30, 3  ;;  %v6056_v31 = vadd.f32 %v5976_v61, %v10372_v35 }
 0x3e7   : > { %v10407_v33 = vadd.f32 %v5338_v46, %v5182_v10  ;;  %v10409_v55 = vadd.f32 %v5337_v27, %v5183_v25  ;;  %v3388_v34 = vadd.f32 %v3096_v62, %v10357_v51  ;;  %v3545_v41 = vsel %vm3464_vm1, %v3543_v43, %v3544_v63 }
 0x3e8   : > { %v3838_v39 = vadd.f32 %v3544_v63, %v3389_v22  ;;  %v4442_v21 = vrot.slane %v2812_v30, 4  ;;  %v2687_v42 = vadd.f32 %v2559_v58, %v8749_v8  ;;  %v3097_v57 = vrot.slane %v10394_v7, 1 }
 0x3e9   : > { %v6135_v9 = vadd.f32 %v6055_v14, %v10407_v33  ;;  %v6136_v18 = vadd.f32 %v6056_v31, %v10409_v55  ;;  %v3837_v61 = vadd.f32 %v3545_v41, %v3388_v34  ;;  %v3546_v2 = vrot.slane %v10394_v7, 2 }
 0x3ea   : > { %v3994_v51 = vsel %vm3913_vm2, %v3992_v50, %v3993_v44  ;;  %v4287_v28 = vadd.f32 %v3993_v44, %v3838_v39  ;;  %v4891_v43 = vrot.slane %v2812_v30, 5  ;;  %v5340_v8 = vrot.slane %v2812_v30, 6  ;;  %v2217_v44 = vpop.permute.xlu1 %2216 }
 0x3eb   : > { %v6215_v36 = vmul.f32 0.020408163, %v6135_v9  ;;  %v6216_v1 = vmul.f32 0.020408163, %v6136_v18  ;;  %v4286_v15 = vadd.f32 %v3994_v51, %v3837_v61  ;;  %v4443_v58 = vsel %vm4362_vm3, %v4441_v23, %v4442_v21  ;;  %v2221_v9 = vpop.permute.xlu0 %2220 }
 0x3ec   : > { %v4736_v27 = vadd.f32 %v4442_v21, %v4287_v28  ;;  %v10420_v37 = vmax.f32 %v2687_v42, 0.0  ;;  %v2558_v48 = vmul.f32 %v8787_v16, %v2209_v11  ;;  %v3995_v6 = vrot.slane %v10394_v7, 3 }
 0x3ed   : > { %6295 = vst [vmem:[%s9523_s26 + $0xd0] sm:$0xff] %v6215_v36  ;;  %6296 = vst [vmem:[%s9523_s26 + $0xd8] sm:$0x3] %v6216_v1  ;;  %v4444_v38 = vrot.slane %v10394_v7, 4  ;;  %v4893_v50 = vrot.slane %v10394_v7, 5  ;;  %v4735_v63 = vadd.f32 %v4443_v58, %v4286_v15  ;;  %v4892_v14 = vsel %vm4811_vm4, %v4890_v24, %v4891_v43 }
 0x3ee   : > { %v5185_v10 = vadd.f32 %v4891_v43, %v4736_v27  ;;  %v5978_v30 = vadd.f32 %v5898_v32, %v10372_v35  ;;  %v2686_v23 = vadd.f32 %v2558_v48, %v8746_v59  ;;  %v5342_v25 = vrot.slane %v10394_v7, 6 }
 0x3ef   : > { %v5184_v46 = vadd.f32 %v4892_v14, %v4735_v63  ;;  %v5341_v62 = vsel %vm5260_vm5, %v5339_v12, %v5340_v8  ;;  %v5977_v22 = vadd.f32 %v5897_v54, %v10370_v49  ;;  %v3100_v41 = vrot.slane %v10420_v37, 1 }
 0x3f0   : > { %v10434_v31 = vadd.f32 %v5340_v8, %v5185_v10  ;;  %v6058_v34 = vadd.f32 %v5978_v30, %v10409_v55  ;;  %v2814_v24 = vmax.f32 %v2686_v23, 0.0  ;;  %v3549_v59 = vrot.slane %v10420_v37, 2 }
 0x3f1   : > { %v10438_v39 = vadd.f32 %v5341_v62, %v5184_v46  ;;  %v6057_v32 = vadd.f32 %v5977_v22, %v10407_v33  ;;  %v3998_v21 = vrot.slane %v10420_v37, 3  ;;  %v2560_v18 = vmul.f32 %v8787_v16, %v2217_v44 }
 0x3f2   : > { %v6138_v12 = vadd.f32 %v6058_v34, %v10434_v31  ;;  %v3098_v42 = vrot.slane %v2814_v24, 1  ;;  %v3547_v54 = vrot.slane %v2814_v24, 2  ;;  %v4447_v11 = vrot.slane %v10420_v37, 4 }
 0x3f3   : > { %v6137_v61 = vadd.f32 %v6057_v32, %v10438_v39  ;;  %v4896_v51 = vrot.slane %v10420_v37, 5  ;;  %v5345_v28 = vrot.slane %v10420_v37, 6  ;;  %v3996_v15 = vrot.slane %v2814_v24, 3 }
 0x3f4   : > { %v6218_v43 = vmul.f32 0.020408163, %v6138_v12  ;;  %v3099_v36 = vsel %vm3015_vm0, %v3097_v57, %v3098_v42  ;;  %v3391_v1 = vadd.f32 %v3098_v42, %v2814_v24  ;;  %v5740_v27 = vadd.f32 %v10265_v13, %v10226_v47 }
 0x3f5   : > { %v6217_v8 = vmul.f32 0.020408163, %v6137_v61  ;;  %v3390_v58 = vadd.f32 %v3099_v36, %v10394_v7  ;;  %v2561_v48 = vmul.f32 %v8787_v16, %v2221_v9  ;;  %v3548_v63 = vsel %vm3464_vm1, %v3546_v2, %v3547_v54 }
 0x3f6   : > { %6298 = vst [vmem:[%s9523_s26 + $0xe8] sm:$0x3] %v6218_v43  ;;  %v3840_v14 = vadd.f32 %v3547_v54, %v3391_v1  ;;  %v4445_v10 = vrot.slane %v2814_v24, 4  ;;  %v2688_v30 = vadd.f32 %v2560_v18, %v8754_v40  ;;  %v4894_v57 = vrot.slane %v2814_v24, 5 }
 0x3f7   : > { %6297 = vst [vmem:[%s9523_s26 + $0xe0] sm:$0xff] %v6217_v8  ;;  %v3839_v23 = vadd.f32 %v3548_v63, %v3390_v58  ;;  %v5739_v46 = vadd.f32 %v10263_v45, %v10235_v17  ;;  %v5820_v7 = vadd.f32 %v5740_v27, %v10326_v26  ;;  %v3997_v62 = vsel %vm3913_vm2, %v3995_v6, %v3996_v15  ;;  %v2225_v6 = vpop.permute.xlu1 %2224 }
 0x3f8   : > { %v4289_v47 = vadd.f32 %v3996_v15, %v3840_v14  ;;  %v5343_v22 = vrot.slane %v2814_v24, 6  ;;  %v5741_v44 = vadd.f32 %v10324_v5, %v10263_v45  ;;  %v2689_v32 = vadd.f32 %v2561_v48, %v8757_v19 }
 0x3f9   : > { %v4288_v2 = vadd.f32 %v3997_v62, %v3839_v23  ;;  %v5819_v34 = vadd.f32 %v5739_v46, %v10324_v5  ;;  %v5900_v40 = vadd.f32 %v5820_v7, %v10372_v35  ;;  %v4446_v12 = vsel %vm4362_vm3, %v4444_v38, %v4445_v10 }
 0x3fa   : > { %v4738_v42 = vadd.f32 %v4445_v10, %v4289_v47  ;;  %v2816_v17 = vmax.f32 %v2688_v30, 0.0  ;;  %v5742_v54 = vadd.f32 %v10326_v26, %v10265_v13  ;;  %v4895_v24 = vsel %vm4811_vm4, %v4893_v50, %v4894_v57 }
 0x3fb   : > { %v4737_v9 = vadd.f32 %v4446_v12, %v4288_v2  ;;  %v5899_v45 = vadd.f32 %v5819_v34, %v10370_v49  ;;  %v5980_v18 = vadd.f32 %v5900_v40, %v10409_v55  ;;  %v5344_v43 = vsel %vm5260_vm5, %v5342_v25, %v5343_v22 }
 0x3fc   : > { %v5187_v61 = vadd.f32 %v4894_v57, %v4738_v42  ;;  %v3101_v36 = vrot.slane %v2816_v17, 1  ;;  %v3550_v19 = vrot.slane %v2816_v17, 2  ;;  %v2562_v13 = vmul.f32 %v8787_v16, %v2225_v6 }
 0x3fd   : > { %v5186_v1 = vadd.f32 %v4895_v24, %v4737_v9  ;;  %v5979_v38 = vadd.f32 %v5899_v45, %v10407_v33  ;;  %v6060_v15 = vadd.f32 %v5980_v18, %v10434_v31  ;;  %v3999_v27 = vrot.slane %v2816_v17, 3  ;;  %v2229_v9 = vpop.permute.xlu0 %2228 }
 0x3fe   : > { %v10477_v8 = vadd.f32 %v5343_v22, %v5187_v61  ;;  %v3102_v50 = vsel %vm3015_vm0, %v3100_v41, %v3101_v36  ;;  %v3393_v58 = vadd.f32 %v3101_v36, %v2816_v17  ;;  %v10483_v25 = vmax.f32 %v2689_v32, 0.0 }
 0x3ff   : > { %v10480_v48 = vadd.f32 %v5344_v43, %v5186_v1  ;;  %v6059_v63 = vadd.f32 %v5979_v38, %v10438_v39  ;;  %v3392_v14 = vadd.f32 %v3102_v50, %v10420_v37  ;;  %v3551_v30 = vsel %vm3464_vm1, %v3549_v59, %v3550_v19 }
 0x400   : > { %v6140_v10 = vadd.f32 %v6060_v15, %v10477_v8  ;;  %v3842_v23 = vadd.f32 %v3550_v19, %v3393_v58  ;;  %v4448_v57 = vrot.slane %v2816_v17, 4  ;;  %v4897_v7 = vrot.slane %v2816_v17, 5 }
 0x401   : > { %v6139_v41 = vadd.f32 %v6059_v63, %v10480_v48  ;;  %v3841_v46 = vadd.f32 %v3551_v30, %v3392_v14  ;;  %v5822_v62 = vadd.f32 %v5742_v54, %v10372_v35  ;;  %v4000_v22 = vsel %vm3913_vm2, %v3998_v21, %v3999_v27 }
 0x402   : > { %v6220_v47 = vmul.f32 0.020408163, %v6140_v10  ;;  %v4291_v2 = vadd.f32 %v3999_v27, %v3842_v23  ;;  %v2690_v34 = vadd.f32 %v2562_v13, %v8760_v20  ;;  %v5346_v59 = vrot.slane %v2816_v17, 6 }
 0x403   : > { %v6219_v40 = vmul.f32 0.020408163, %v6139_v41  ;;  %v4290_v32 = vadd.f32 %v4000_v22, %v3841_v46  ;;  %v5821_v12 = vadd.f32 %v5741_v44, %v10370_v49  ;;  %v4449_v42 = vsel %vm4362_vm3, %v4447_v11, %v4448_v57  ;;  %v2233_v46 = vpop.permute.xlu1 %2232 }
 0x404   : > { %6300 = vst [vmem:[%s9523_s26 + $0xf8] sm:$0x3] %v6220_v47  ;;  %v4740_v6 = vadd.f32 %v4448_v57, %v4291_v2  ;;  %v5902_v54 = vadd.f32 %v5822_v62, %v10409_v55  ;;  %v10502_v24 = vmax.f32 %v2690_v34, 0.0  ;;  %v3103_v21 = vrot.slane %v10483_v25, 1 }
 0x405   : > { %6299 = vst [vmem:[%s9523_s26 + $0xf0] sm:$0xff] %v6219_v40  ;;  %v3552_v20 = vrot.slane %v10483_v25, 2  ;;  %v4739_v45 = vadd.f32 %v4449_v42, %v4290_v32  ;;  %v5901_v17 = vadd.f32 %v5821_v12, %v10407_v33  ;;  %v4001_v44 = vrot.slane %v10483_v25, 3  ;;  %v2237_v12 = vpop.permute.xlu0 %2236 }
 0x406   : > { %v4898_v11 = vsel %vm4811_vm4, %v4896_v51, %v4897_v7  ;;  %v5189_v18 = vadd.f32 %v4897_v7, %v4740_v6  ;;  %v5982_v61 = vadd.f32 %v5902_v54, %v10434_v31  ;;  %v5347_v36 = vsel %vm5260_vm5, %v5345_v28, %v5346_v59 }
 0x407   : > { %v5188_v43 = vadd.f32 %v4898_v11, %v4739_v45  ;;  %v5981_v19 = vadd.f32 %v5901_v17, %v10438_v39  ;;  %v2563_v1 = vmul.f32 %v8787_v16, %v2229_v9  ;;  %v3104_v13 = vrot.slane %v10502_v24, 1  ;;  %v12988_v17 = vld [vmem:[#allocation89_spill] sm:$0xff] }
 0x408   : > { %v10518_v38 = vadd.f32 %v5346_v59, %v5189_v18  ;;  %v6062_v15 = vadd.f32 %v5982_v61, %v10477_v8  ;;  %v3553_v51 = vrot.slane %v10502_v24, 2  ;;  %v4450_v50 = vrot.slane %v10483_v25, 4 }
 0x409   : > { %v4899_v58 = vrot.slane %v10483_v25, 5  ;;  %v10525_v27 = vadd.f32 %v5347_v36, %v5188_v43  ;;  %v6061_v37 = vadd.f32 %v5981_v19, %v10480_v48  ;;  %v3105_v63 = vsel %vm3015_vm0, %v3103_v21, %v3104_v13 }
 0x40a   : > { %v6142_v28 = vadd.f32 %v6062_v15, %v10518_v38  ;;  %v3395_v14 = vadd.f32 %v3104_v13, %v10502_v24  ;;  %v4002_v10 = vrot.slane %v10502_v24, 3  ;;  %v2691_v23 = vadd.f32 %v2563_v1, %v8763_v52 }
 0x40b   : > { %v6141_v30 = vadd.f32 %v6061_v37, %v10525_v27  ;;  %v3394_v57 = vadd.f32 %v3105_v63, %v10483_v25  ;;  %v5744_v41 = vadd.f32 %v10372_v35, %v10326_v26  ;;  %v3554_v62 = vsel %vm3464_vm1, %v3552_v20, %v3553_v51 }
 0x40c   : > { %v6222_v7 = vmul.f32 0.020408163, %v6142_v28  ;;  %v3844_v47 = vadd.f32 %v3553_v51, %v3395_v14  ;;  %v4451_v22 = vrot.slane %v10502_v24, 4  ;;  %v4900_v40 = vrot.slane %v10502_v24, 5 }
 0x40d   : > { %v6221_v2 = vmul.f32 0.020408163, %v6141_v30  ;;  %v3843_v34 = vadd.f32 %v3554_v62, %v3394_v57  ;;  %v5743_v52 = vadd.f32 %v10370_v49, %v10324_v5  ;;  %v4003_v32 = vsel %vm3913_vm2, %v4001_v44, %v4002_v10  ;;  %v12989_v30 = vld [vmem:[#allocation75_spill] sm:$0xff] }
 0x40e   : > { %6302 = vst [vmem:[%s9523_s26 + $0x108] sm:$0x3] %v6222_v7  ;;  %v4293_v59 = vadd.f32 %v4002_v10, %v3844_v47  ;;  %v5824_v26 = vadd.f32 %v5744_v41, %v10409_v55  ;;  %v2564_v42 = vmul.f32 %v8787_v16, %v2233_v46  ;;  %v10547_v6 = vmax.f32 %v2691_v23, 0.0 }
 0x40f   : > { %6301 = vst [vmem:[%s9523_s26 + $0x100] sm:$0xff] %v6221_v2  ;;  %v4292_v54 = vadd.f32 %v4003_v32, %v3843_v34  ;;  %v5349_v9 = vrot.slane %v10502_v24, 6  ;;  %v5823_v21 = vadd.f32 %v5743_v52, %v10407_v33  ;;  %v4452_v20 = vsel %vm4362_vm3, %v4450_v50, %v4451_v22 }
 0x410   : > { %v4742_v5 = vadd.f32 %v4451_v22, %v4293_v59  ;;  %v5904_v45 = vadd.f32 %v5824_v26, %v10434_v31  ;;  %v2692_v44 = vadd.f32 %v2564_v42, %v12988_v17  ;;  %v5348_v11 = vrot.slane %v10483_v25, 6  ;;  %v2245_v17 = vpop.permute.xlu0 %2244 }
 0x411   : > { %v4741_v18 = vadd.f32 %v4452_v20, %v4292_v54  ;;  %v5903_v61 = vadd.f32 %v5823_v21, %v10438_v39  ;;  %v2565_v43 = vmul.f32 %v8787_v16, %v2237_v12  ;;  %v4901_v36 = vsel %vm4811_vm4, %v4899_v58, %v4900_v40 }
 0x412   : > { %v5191_v19 = vadd.f32 %v4900_v40, %v4742_v5  ;;  %v5984_v24 = vadd.f32 %v5904_v45, %v10477_v8  ;;  %v10559_v1 = vmax.f32 %v2692_v44, 0.0  ;;  %v3106_v15 = vrot.slane %v10547_v6, 1 }
 0x413   : > { %v3555_v13 = vrot.slane %v10547_v6, 2  ;;  %v5190_v51 = vadd.f32 %v4901_v36, %v4741_v18  ;;  %v5983_v50 = vadd.f32 %v5903_v61, %v10480_v48  ;;  %v4004_v25 = vrot.slane %v10547_v6, 3 }
 0x414   : > { %v5350_v37 = vsel %vm5260_vm5, %v5348_v11, %v5349_v9  ;;  %v10566_v28 = vadd.f32 %v5349_v9, %v5191_v19  ;;  %v6064_v58 = vadd.f32 %v5984_v24, %v10518_v38  ;;  %v4453_v63 = vrot.slane %v10547_v6, 4  ;;  %v12990_v24 = vld [vmem:[#allocation94_spill] sm:$0xff] }
 0x415   : > { %v10570_v14 = vadd.f32 %v5350_v37, %v5190_v51  ;;  %v6063_v10 = vadd.f32 %v5983_v50, %v10525_v27  ;;  %v2693_v23 = vadd.f32 %v2565_v43, %v12989_v30  ;;  %v4902_v57 = vrot.slane %v10547_v6, 5 }
 0x416   : > { %v6144_v41 = vadd.f32 %v6064_v58, %v10566_v28  ;;  %v3107_v46 = vrot.slane %v10559_v1, 1  ;;  %v3556_v7 = vrot.slane %v10559_v1, 2  ;;  %v5351_v62 = vrot.slane %v10547_v6, 6 }
 0x417   : > { %v6143_v47 = vadd.f32 %v6063_v10, %v10570_v14  ;;  %v5745_v22 = vadd.f32 %v10407_v33, %v10370_v49  ;;  %v5746_v2 = vadd.f32 %v10409_v55, %v10372_v35  ;;  %v4005_v32 = vrot.slane %v10559_v1, 3  ;;  %v2241_v49 = vpop.permute.xlu1 %2240 }
 0x418   : > { %v6224_v34 = vmul.f32 0.020408163, %v6144_v41  ;;  %v3108_v40 = vsel %vm3015_vm0, %v3106_v15, %v3107_v46  ;;  %v3397_v52 = vadd.f32 %v3107_v46, %v10559_v1  ;;  %v10587_v26 = vmax.f32 %v2693_v23, 0.0 }
 0x419   : > { %v6223_v59 = vmul.f32 0.020408163, %v6143_v47  ;;  %v3396_v12 = vadd.f32 %v3108_v40, %v10547_v6  ;;  %v5747_v42 = vadd.f32 %v10438_v39, %v10407_v33  ;;  %v3557_v54 = vsel %vm3464_vm1, %v3555_v13, %v3556_v7 }
 0x41a   : > { %6304 = vst [vmem:[%s9523_s26 + $0x118] sm:$0x3] %v6224_v34  ;;  %v3846_v35 = vadd.f32 %v3556_v7, %v3397_v52  ;;  %v4454_v9 = vrot.slane %v10559_v1, 4  ;;  %v5748_v21 = vadd.f32 %v10434_v31, %v10409_v55  ;;  %v5825_v5 = vadd.f32 %v5745_v22, %v10438_v39  ;;  %v2253_v7 = vpop.permute.xlu0 %2252  ;;  %v12991_v52 = vld [vmem:[#allocation80_spill] sm:$0xff] }
 0x41b   : > { %6303 = vst [vmem:[%s9523_s26 + $0x110] sm:$0xff] %v6223_v59  ;;  %v3845_v20 = vadd.f32 %v3557_v54, %v3396_v12  ;;  %v5826_v45 = vadd.f32 %v5746_v2, %v10434_v31  ;;  %v5827_v6 = vadd.f32 %v5747_v42, %v10480_v48  ;;  %v4006_v33 = vsel %vm3913_vm2, %v4004_v25, %v4005_v32 }
 0x41c   : > { %v4295_v44 = vadd.f32 %v4005_v32, %v3846_v35  ;;  %v4903_v11 = vrot.slane %v10559_v1, 5  ;;  %v2566_v18 = vmul.f32 %v8787_v16, %v2241_v49  ;;  %v3109_v61 = vrot.slane %v10587_v26, 1 }
 0x41d   : > { %v3558_v55 = vrot.slane %v10587_v26, 2  ;;  %v4294_v43 = vadd.f32 %v4006_v33, %v3845_v20  ;;  %v5352_v36 = vrot.slane %v10559_v1, 6  ;;  %v4455_v39 = vsel %vm4362_vm3, %v4453_v63, %v4454_v9  ;;  %v2249_v63 = vpop.permute.xlu1 %2248 }
 0x41e   : > { %v4744_v31 = vadd.f32 %v4454_v9, %v4295_v44  ;;  %v5906_v19 = vadd.f32 %v5826_v45, %v10477_v8  ;;  %v2694_v15 = vadd.f32 %v2566_v18, %v12990_v24  ;;  %v4007_v13 = vrot.slane %v10587_v26, 3  ;;  %v2261_v33 = vpop.permute.xlu0 %2260 }
 0x41f   : > { %v4743_v51 = vadd.f32 %v4455_v39, %v4294_v43  ;;  %v5905_v50 = vadd.f32 %v5825_v5, %v10480_v48  ;;  %v2567_v25 = vmul.f32 %v8787_v16, %v2245_v17  ;;  %v4904_v37 = vsel %vm4811_vm4, %v4902_v57, %v4903_v11 }
 0x420   : > { %v5193_v58 = vadd.f32 %v4903_v11, %v4744_v31  ;;  %v5986_v10 = vadd.f32 %v5906_v19, %v10518_v38  ;;  %v10615_v1 = vmax.f32 %v2694_v15, 0.0  ;;  %v4456_v30 = vrot.slane %v10587_v26, 4 }
 0x421   : > { %v4905_v23 = vrot.slane %v10587_v26, 5  ;;  %v5192_v41 = vadd.f32 %v4904_v37, %v4743_v51  ;;  %v5985_v46 = vadd.f32 %v5905_v50, %v10525_v27  ;;  %v5354_v48 = vrot.slane %v10587_v26, 6  ;;  %v2257_v5 = vpop.permute.xlu1 %2256 }
 0x422   : > { %v5353_v47 = vsel %vm5260_vm5, %v5351_v62, %v5352_v36  ;;  %v5642_v22 = vadd.f32 %v5352_v36, %v5193_v58  ;;  %v6066_v57 = vadd.f32 %v5986_v10, %v10566_v28  ;;  %v5828_v34 = vadd.f32 %v5748_v21, %v10477_v8 }
 0x423   : > { %v5641_v2 = vadd.f32 %v5353_v47, %v5192_v41  ;;  %v6065_v40 = vadd.f32 %v5985_v46, %v10570_v14  ;;  %v2695_v32 = vadd.f32 %v2567_v25, %v12991_v52  ;;  %v5907_v59 = vadd.f32 %v5827_v6, %v10525_v27 }
 0x424   : > { %v6146_v12 = vadd.f32 %v6066_v57, %v5642_v22  ;;  %v3110_v42 = vrot.slane %v10615_v1, 1  ;;  %v3559_v49 = vrot.slane %v10615_v1, 2  ;;  %v5908_v62 = vadd.f32 %v5828_v34, %v10518_v38 }
 0x425   : > { %v6145_v54 = vadd.f32 %v6065_v40, %v5641_v2  ;;  %v2569_v35 = vmul.f32 %v8787_v16, %v2253_v7  ;;  %v2568_v9 = vmul.f32 %v8787_v16, %v2249_v63  ;;  %v4008_v27 = vrot.slane %v10615_v1, 3 }
 0x426   : > { %v6226_v8 = vmul.f32 0.020408163, %v6146_v12  ;;  %v3111_v21 = vsel %vm3015_vm0, %v3109_v61, %v3110_v42  ;;  %v3399_v20 = vadd.f32 %v3110_v42, %v10615_v1  ;;  %v5987_v45 = vadd.f32 %v5907_v59, %v10570_v14 }
 0x427   : > { %v6225_v6 = vmul.f32 0.020408163, %v6145_v54  ;;  %v10636_v17 = vmax.f32 %v2695_v32, 0.0  ;;  %v3398_v38 = vadd.f32 %v3111_v21, %v10587_v26  ;;  %v5988_v44 = vadd.f32 %v5908_v62, %v10566_v28  ;;  %v2269_v32 = vpop.permute.xlu0 %2268 }
 0x428   : > { %6306 = vst [vmem:[%s9523_s26 + $0x128] sm:$0x3] %v6226_v8  ;;  %v3560_v11 = vsel %vm3464_vm1, %v3558_v55, %v3559_v49  ;;  %v3848_v18 = vadd.f32 %v3559_v49, %v3399_v20  ;;  %v4457_v61 = vrot.slane %v10615_v1, 4  ;;  %v2697_v36 = vadd.f32 %v2569_v35, %v8822_v60 }
 0x429   : > { %6305 = vst [vmem:[%s9523_s26 + $0x120] sm:$0xff] %v6225_v6  ;;  %v3847_v43 = vadd.f32 %v3560_v11, %v3398_v38  ;;  %v2696_v14 = vadd.f32 %v2568_v9, %v8819_v56  ;;  %v2570_v39 = vmul.f32 %v8787_v16, %v2257_v5  ;;  %v4009_v31 = vsel %vm3913_vm2, %v4007_v13, %v4008_v27 }
 0x42a   : > { %v4297_v26 = vadd.f32 %v4008_v27, %v3848_v18  ;;  %v4906_v19 = vrot.slane %v10615_v1, 5  ;;  %v2571_v28 = vmul.f32 %v8787_v16, %v2261_v33  ;;  %v3112_v55 = vrot.slane %v10636_v17, 1 }
 0x42b   : > { %v3561_v24 = vrot.slane %v10636_v17, 2  ;;  %v4010_v15 = vrot.slane %v10636_v17, 3  ;;  %v4296_v51 = vadd.f32 %v4009_v31, %v3847_v43  ;;  %v4458_v60 = vsel %vm4362_vm3, %v4456_v30, %v4457_v61  ;;  %v2277_v18 = vpop.permute.xlu0 %2276 }
 0x42c   : > { %v4746_v50 = vadd.f32 %v4457_v61, %v4297_v26  ;;  %v5355_v56 = vrot.slane %v10615_v1, 6  ;;  %v10655_v25 = vmax.f32 %v2696_v14, 0.0  ;;  %v4459_v13 = vrot.slane %v10636_v17, 4 }
 0x42d   : > { %v4908_v37 = vrot.slane %v10636_v17, 5  ;;  %v4745_v58 = vadd.f32 %v4458_v60, %v4296_v51  ;;  %v2698_v10 = vadd.f32 %v2570_v39, %v8825_v0  ;;  %v4907_v63 = vsel %vm4811_vm4, %v4905_v23, %v4906_v19 }
 0x42e   : > { %v5195_v41 = vadd.f32 %v4906_v19, %v4746_v50  ;;  %v3113_v46 = vrot.slane %v10655_v25, 1  ;;  %v3562_v7 = vrot.slane %v10655_v25, 2  ;;  %v6068_v30 = vadd.f32 %v5988_v44, %v5642_v22 }
 0x42f   : > { %v5357_v47 = vrot.slane %v10636_v17, 6  ;;  %v5194_v1 = vadd.f32 %v4907_v63, %v4745_v58  ;;  %v10664_v57 = vmax.f32 %v2697_v36, 0.0  ;;  %v5356_v34 = vsel %vm5260_vm5, %v5354_v48, %v5355_v56 }
 0x430   : > { %v5644_v40 = vadd.f32 %v5355_v56, %v5195_v41  ;;  %v3114_v52 = vsel %vm3015_vm0, %v3112_v55, %v3113_v46  ;;  %v3401_v0 = vadd.f32 %v3113_v46, %v10655_v25  ;;  %v6067_v23 = vadd.f32 %v5987_v45, %v5641_v2  ;;  %v2265_v2 = vpop.permute.xlu1 %2264 }
 0x431   : > { %v5643_v59 = vadd.f32 %v5356_v34, %v5194_v1  ;;  %v3400_v12 = vadd.f32 %v3114_v52, %v10636_v17  ;;  %v4011_v42 = vrot.slane %v10655_v25, 3  ;;  %v3563_v49 = vsel %vm3464_vm1, %v3561_v24, %v3562_v7 }
 0x432   : > { %v6148_v22 = vadd.f32 %v6068_v30, %v5644_v40  ;;  %v3850_v62 = vadd.f32 %v3562_v7, %v3401_v0  ;;  %v10672_v54 = vmax.f32 %v2698_v10, 0.0  ;;  %v3115_v35 = vrot.slane %v10664_v57, 1  ;;  %v2285_v30 = vpop.permute.xlu0 %2284 }
 0x433   : > { %v6147_v48 = vadd.f32 %v6067_v23, %v5643_v59  ;;  %v3849_v9 = vadd.f32 %v3563_v49, %v3400_v12  ;;  %v2699_v8 = vadd.f32 %v2571_v28, %v8830_v53  ;;  %v3564_v20 = vrot.slane %v10664_v57, 2 }
 0x434   : > { %v6228_v21 = vmul.f32 0.020408163, %v6148_v22  ;;  %v4013_v27 = vrot.slane %v10664_v57, 3  ;;  %v4460_v5 = vrot.slane %v10655_v25, 4  ;;  %v4012_v6 = vsel %vm3913_vm2, %v4010_v15, %v4011_v42  ;;  %v2273_v51 = vpop.permute.xlu1 %2272 }
 0x435   : > { %v6227_v45 = vmul.f32 0.020408163, %v6147_v48  ;;  %v4299_v17 = vadd.f32 %v4011_v42, %v3850_v62  ;;  %v4909_v38 = vrot.slane %v10655_v25, 5  ;;  %v4298_v33 = vadd.f32 %v4012_v6, %v3849_v9 }
 0x436   : > { %6308 = vst [vmem:[%s9523_s26 + $0x138] sm:$0x3] %v6228_v21  ;;  %v5358_v44 = vrot.slane %v10655_v25, 6  ;;  %v3116_v53 = vrot.slane %v10672_v54, 1  ;;  %v3565_v11 = vrot.slane %v10672_v54, 2  ;;  %v4462_v61 = vrot.slane %v10664_v57, 4 }
 0x437   : > { %6307 = vst [vmem:[%s9523_s26 + $0x130] sm:$0xff] %v6227_v45  ;;  %v4911_v43 = vrot.slane %v10664_v57, 5  ;;  %v5360_v36 = vrot.slane %v10664_v57, 6  ;;  %v10689_v14 = vmax.f32 %v2699_v8, 0.0  ;;  %v4014_v26 = vrot.slane %v10672_v54, 3 }
 0x438   : > { %v3117_v39 = vsel %vm3015_vm0, %v3115_v35, %v3116_v53  ;;  %v3403_v31 = vadd.f32 %v3116_v53, %v10672_v54  ;;  %v2573_v19 = vmul.f32 %v8787_v16, %v2269_v32  ;;  %v4461_v28 = vsel %vm4362_vm3, %v4459_v13, %v4460_v5  ;;  %v2281_v22 = vpop.permute.xlu1 %2280  ;;  %v12995_v53 = vld [vmem:[#allocation87_spill] sm:$0xff] }
 0x439   : > { %v4748_v55 = vadd.f32 %v4460_v5, %v4299_v17  ;;  %v4910_v24 = vsel %vm4811_vm4, %v4908_v37, %v4909_v38  ;;  %v3402_v15 = vadd.f32 %v3117_v39, %v10664_v57  ;;  %v4747_v60 = vadd.f32 %v4461_v28, %v4298_v33  ;;  %v12992_v57 = vld [vmem:[#allocation79_spill] sm:$0xff] }
 0x43a   : > { %v5359_v50 = vsel %vm5260_vm5, %v5357_v47, %v5358_v44  ;;  %v3566_v56 = vsel %vm3464_vm1, %v3564_v20, %v3565_v11  ;;  %v3852_v25 = vadd.f32 %v3565_v11, %v3403_v31  ;;  %v3118_v58 = vrot.slane %v10689_v14, 1 }
 0x43b   : > { %v3567_v10 = vrot.slane %v10689_v14, 2  ;;  %v3851_v63 = vadd.f32 %v3566_v56, %v3402_v15  ;;  %v2572_v41 = vmul.f32 %v8787_v16, %v2265_v2  ;;  %v4015_v13 = vsel %vm3913_vm2, %v4013_v27, %v4014_v26 }
 0x43c   : > { %v4301_v46 = vadd.f32 %v4014_v26, %v3852_v25  ;;  %v4463_v37 = vrot.slane %v10672_v54, 4  ;;  %v2701_v7 = vadd.f32 %v2573_v19, %v8836_v29  ;;  %v5197_v1 = vadd.f32 %v4909_v38, %v4748_v55  ;;  %v12994_v38 = vld [vmem:[#allocation83_spill] sm:$0xff] }
 0x43d   : > { %v4300_v47 = vadd.f32 %v4015_v13, %v3851_v63  ;;  %v2700_v34 = vadd.f32 %v2572_v41, %v12992_v57  ;;  %v2574_v40 = vmul.f32 %v8787_v16, %v2273_v51  ;;  %v5196_v52 = vadd.f32 %v4910_v24, %v4747_v60  ;;  %v12996_v63 = vld [vmem:[#allocation88_spill] sm:$0xff] }
 0x43e   : > { %v4016_v0 = vrot.slane %v10689_v14, 3  ;;  %v4912_v32 = vrot.slane %v10672_v54, 5  ;;  %v5361_v23 = vrot.slane %v10672_v54, 6  ;;  %v4465_v59 = vrot.slane %v10689_v14, 4  ;;  %v12993_v54 = vld [vmem:[#allocation84_spill] sm:$0xff] }
 0x43f   : > { %v4914_v12 = vrot.slane %v10689_v14, 5  ;;  %v2575_v29 = vmul.f32 %v8787_v16, %v2277_v18  ;;  %v2577_v42 = vmul.f32 %v8787_v16, %v2285_v30  ;;  %v5363_v49 = vrot.slane %v10689_v14, 6  ;;  %v2293_v30 = vpop.permute.xlu0 %2292 }
 0x440   : > { %v4464_v62 = vsel %vm4362_vm3, %v4462_v61, %v4463_v37  ;;  %v4750_v48 = vadd.f32 %v4463_v37, %v4301_v46  ;;  %v10717_v35 = vmax.f32 %v2701_v7, 0.0  ;;  %v5646_v9 = vadd.f32 %v5358_v44, %v5197_v1 }
 0x441   : > { %v4749_v8 = vadd.f32 %v4464_v62, %v4300_v47  ;;  %v10719_v2 = vmax.f32 %v2700_v34, 0.0  ;;  %v2702_v21 = vadd.f32 %v2574_v40, %v12993_v54  ;;  %v5645_v20 = vadd.f32 %v5359_v50, %v5196_v52 }
 0x442   : > { %v4913_v27 = vsel %vm4811_vm4, %v4911_v43, %v4912_v32  ;;  %v5362_v5 = vsel %vm5260_vm5, %v5360_v36, %v5361_v23  ;;  %v2576_v45 = vmul.f32 %v8787_v16, %v2281_v22  ;;  %v2703_v33 = vadd.f32 %v2575_v29, %v12994_v38 }
 0x443   : > { %v3119_v6 = vrot.slane %v10719_v2, 1  ;;  %v3568_v17 = vrot.slane %v10719_v2, 2  ;;  %v2705_v44 = vadd.f32 %v2577_v42, %v12995_v53  ;;  %v5199_v11 = vadd.f32 %v4912_v32, %v4750_v48 }
 0x444   : > { %v3121_v18 = vrot.slane %v10717_v35, 1  ;;  %v3570_v61 = vrot.slane %v10717_v35, 2  ;;  %v4019_v39 = vrot.slane %v10717_v35, 3  ;;  %v5198_v43 = vadd.f32 %v4913_v27, %v4749_v8 }
 0x445   : > { %v3120_v36 = vsel %vm3015_vm0, %v3118_v58, %v3119_v6  ;;  %v3405_v31 = vadd.f32 %v3119_v6, %v10719_v2  ;;  %v10734_v26 = vmax.f32 %v2702_v21, 0.0  ;;  %v4468_v19 = vrot.slane %v10717_v35, 4 }
 0x446   : > { %v4917_v28 = vrot.slane %v10717_v35, 5  ;;  %v3404_v55 = vadd.f32 %v3120_v36, %v10689_v14  ;;  %v4017_v24 = vrot.slane %v10719_v2, 3  ;;  %v5366_v15 = vrot.slane %v10717_v35, 6 }
 0x447   : > { %v3569_v51 = vsel %vm3464_vm1, %v3567_v10, %v3568_v17  ;;  %v3854_v60 = vadd.f32 %v3568_v17, %v3405_v31  ;;  %v10742_v50 = vmax.f32 %v2703_v33, 0.0  ;;  %v10744_v56 = vadd.f32 %v5361_v23, %v5199_v11 }
 0x448   : > { %v3853_v25 = vadd.f32 %v3569_v51, %v3404_v55  ;;  %v10746_v58 = vmax.f32 %v2705_v44, 0.0  ;;  %v2704_v41 = vadd.f32 %v2576_v45, %v12996_v63  ;;  %v10749_v13 = vadd.f32 %v5362_v5, %v5198_v43 }
 0x449   : > { %v4303_v46 = vadd.f32 %v4017_v24, %v3854_v60  ;;  %v3122_v37 = vrot.slane %v10734_v26, 1  ;;  %v3571_v7 = vrot.slane %v10734_v26, 2  ;;  %v4018_v10 = vsel %vm3913_vm2, %v4016_v0, %v4017_v24 }
 0x44a   : > { %v4466_v1 = vrot.slane %v10719_v2, 4  ;;  %v4915_v47 = vrot.slane %v10719_v2, 5  ;;  %v5364_v57 = vrot.slane %v10719_v2, 6  ;;  %v4302_v34 = vadd.f32 %v4018_v10, %v3853_v25 }
 0x44b   : > { %v3123_v40 = vsel %vm3015_vm0, %v3121_v18, %v3122_v37  ;;  %v3407_v52 = vadd.f32 %v3122_v37, %v10734_v26  ;;  %v4020_v32 = vrot.slane %v10734_v26, 3  ;;  %v5750_v23 = vadd.f32 %v10744_v56, %v5646_v9  ;;  %v2289_v18 = vpop.permute.xlu1 %2288  ;;  %v2301_v37 = vpop.permute.xlu0 %2300 }
 0x44c   : > { %v4752_v29 = vadd.f32 %v4466_v1, %v4303_v46  ;;  %v3406_v42 = vadd.f32 %v3123_v40, %v10717_v35  ;;  %v2579_v0 = vmul.f32 %v8787_v16, %v2293_v30  ;;  %v5749_v22 = vadd.f32 %v10749_v13, %v5645_v20 }
 0x44d   : > { %v3572_v62 = vsel %vm3464_vm1, %v3570_v61, %v3571_v7  ;;  %v3856_v48 = vadd.f32 %v3571_v7, %v3407_v52  ;;  %v4469_v8 = vrot.slane %v10734_v26, 4  ;;  %v4467_v2 = vsel %vm4362_vm3, %v4465_v59, %v4466_v1 }
 0x44e   : > { %v4916_v9 = vsel %vm4811_vm4, %v4914_v12, %v4915_v47  ;;  %v5365_v54 = vsel %vm5260_vm5, %v5363_v49, %v5364_v57  ;;  %v3855_v35 = vadd.f32 %v3572_v62, %v3406_v42  ;;  %v4751_v21 = vadd.f32 %v4467_v2, %v4302_v34  ;;  %v12998_v2 = vld [vmem:[#allocation92_spill] sm:$0xff] }
 0x44f   : > { %v4021_v27 = vsel %vm3913_vm2, %v4019_v39, %v4020_v32  ;;  %v4305_v20 = vadd.f32 %v4020_v32, %v3856_v48  ;;  %v4918_v5 = vrot.slane %v10734_v26, 5  ;;  %v5201_v45 = vadd.f32 %v4915_v47, %v4752_v29  ;;  %v12997_v29 = vld [vmem:[#allocation91_spill] sm:$0xff] }
 0x450   : > { %v3124_v6 = vrot.slane %v10742_v50, 1  ;;  %v3573_v17 = vrot.slane %v10742_v50, 2  ;;  %v4304_v38 = vadd.f32 %v4021_v27, %v3855_v35  ;;  %v4022_v59 = vrot.slane %v10742_v50, 3 }
 0x451   : > { %v4470_v14 = vsel %vm4362_vm3, %v4468_v19, %v4469_v8  ;;  %v4754_v12 = vadd.f32 %v4469_v8, %v4305_v20  ;;  %v5367_v49 = vrot.slane %v10734_v26, 6  ;;  %v4471_v33 = vrot.slane %v10742_v50, 4  ;;  %v2297_v20 = vpop.permute.xlu1 %2296 }
 0x452   : > { %v4920_v53 = vrot.slane %v10742_v50, 5  ;;  %v4753_v44 = vadd.f32 %v4470_v14, %v4304_v38  ;;  %v10782_v11 = vmax.f32 %v2704_v41, 0.0  ;;  %v5200_v61 = vadd.f32 %v4916_v9, %v4751_v21 }
 0x453   : > { %v5369_v39 = vrot.slane %v10742_v50, 6  ;;  %v4919_v43 = vsel %vm4811_vm4, %v4917_v28, %v4918_v5  ;;  %v3127_v36 = vrot.slane %v10746_v58, 1  ;;  %v5650_v31 = vadd.f32 %v5364_v57, %v5201_v45 }
 0x454   : > { %v3576_v19 = vrot.slane %v10746_v58, 2  ;;  %v3125_v26 = vrot.slane %v10782_v11, 1  ;;  %v3574_v55 = vrot.slane %v10782_v11, 2  ;;  %v5203_v24 = vadd.f32 %v4918_v5, %v4754_v12  ;;  %v2309_v5 = vpop.permute.xlu0 %2308 }
 0x455   : > { %v5368_v51 = vsel %vm5260_vm5, %v5366_v15, %v5367_v49  ;;  %v4025_v60 = vrot.slane %v10746_v58, 3  ;;  %v2578_v25 = vmul.f32 %v8787_v16, %v2289_v18  ;;  %v5202_v63 = vadd.f32 %v4919_v43, %v4753_v44 }
 0x456   : > { %v3126_v41 = vsel %vm3015_vm0, %v3124_v6, %v3125_v26  ;;  %v3409_v28 = vadd.f32 %v3125_v26, %v10782_v11  ;;  %v4023_v46 = vrot.slane %v10782_v11, 3  ;;  %v5649_v7 = vadd.f32 %v5365_v54, %v5200_v61 }
 0x457   : > { %v4474_v30 = vrot.slane %v10746_v58, 4  ;;  %v4923_v10 = vrot.slane %v10746_v58, 5  ;;  %v3408_v1 = vadd.f32 %v3126_v41, %v10742_v50  ;;  %v5752_v15 = vadd.f32 %v5650_v31, %v10744_v56 }
 0x458   : > { %v3575_v47 = vsel %vm3464_vm1, %v3573_v17, %v3574_v55  ;;  %v3858_v57 = vadd.f32 %v3574_v55, %v3409_v28  ;;  %v4472_v34 = vrot.slane %v10782_v11, 4  ;;  %v5830_v40 = vadd.f32 %v5750_v23, %v5650_v31 }
 0x459   : > { %v5652_v52 = vadd.f32 %v5367_v49, %v5203_v24  ;;  %v3857_v32 = vadd.f32 %v3575_v47, %v3408_v1  ;;  %v2707_v42 = vadd.f32 %v2579_v0, %v12997_v29  ;;  %v10803_v62 = vadd.f32 %v5368_v51, %v5202_v63 }
 0x45a   : > { %v4024_v48 = vsel %vm3913_vm2, %v4022_v59, %v4023_v46  ;;  %v4307_v8 = vadd.f32 %v4023_v46, %v3858_v57  ;;  %v2706_v9 = vadd.f32 %v2578_v25, %v12998_v2  ;;  %v5751_v50 = vadd.f32 %v5649_v7, %v10749_v13  ;;  %v2317_v46 = vpop.permute.xlu0 %2316 }
 0x45b   : > { %v5372_v56 = vrot.slane %v10746_v58, 6  ;;  %v4306_v54 = vadd.f32 %v4024_v48, %v3857_v32  ;;  %v2581_v35 = vmul.f32 %v8787_v16, %v2301_v37  ;;  %v5829_v21 = vadd.f32 %v5749_v22, %v5649_v7 }
 0x45c   : > { %v4473_v23 = vsel %vm4362_vm3, %v4471_v33, %v4472_v34  ;;  %v4756_v27 = vadd.f32 %v4472_v34, %v4307_v8  ;;  %v4921_v0 = vrot.slane %v10782_v11, 5  ;;  %v5754_v45 = vadd.f32 %v5652_v52, %v5650_v31  ;;  %v12999_v33 = vld [vmem:[#allocation95_spill] sm:$0xff] }
 0x45d   : > { %v4755_v6 = vadd.f32 %v4473_v23, %v4306_v54  ;;  %v5370_v17 = vrot.slane %v10782_v11, 6  ;;  %v10813_v38 = vmax.f32 %v2707_v42, 0.0  ;;  %v5753_v13 = vadd.f32 %v10803_v62, %v5649_v7 }
 0x45e   : > { %v5832_v59 = vadd.f32 %v5752_v15, %v5652_v52  ;;  %v5910_v14 = vadd.f32 %v5830_v40, %v5652_v52  ;;  %v10816_v12 = vmax.f32 %v2706_v9, 0.0  ;;  %v5831_v22 = vadd.f32 %v5751_v50, %v10803_v62  ;;  %v13001_v40 = vld [vmem:[#allocation100_spill] sm:$0xff] }
 0x45f   : > { %v5205_v49 = vadd.f32 %v4921_v0, %v4756_v27  ;;  %v2709_v44 = vadd.f32 %v2581_v35, %v12999_v33  ;;  %v2580_v18 = vmul.f32 %v8787_v16, %v2297_v20  ;;  %v5909_v61 = vadd.f32 %v5829_v21, %v10803_v62 }
 0x460   : > { %v4922_v43 = vsel %vm4811_vm4, %v4920_v53, %v4921_v0  ;;  %v3128_v11 = vrot.slane %v10816_v12, 1  ;;  %v2583_v31 = vmul.f32 %v8787_v16, %v2309_v5  ;;  %v5371_v55 = vsel %vm5260_vm5, %v5369_v39, %v5370_v17  ;;  %v2305_v53 = vpop.permute.xlu1 %2304  ;;  %v13000_v39 = vld [vmem:[#allocation96_spill] sm:$0xff] }
 0x461   : > { %v5204_v26 = vadd.f32 %v4922_v43, %v4755_v6  ;;  %v3130_v24 = vrot.slane %v10813_v38, 1  ;;  %v3579_v51 = vrot.slane %v10813_v38, 2  ;;  %v4028_v25 = vrot.slane %v10813_v38, 3 }
 0x462   : > { %v4477_v63 = vrot.slane %v10813_v38, 4  ;;  %v4926_v41 = vrot.slane %v10813_v38, 5  ;;  %v3577_v28 = vrot.slane %v10816_v12, 2  ;;  %v10832_v37 = vadd.f32 %v5370_v17, %v5205_v49 }
 0x463   : > { %v5375_v7 = vrot.slane %v10813_v38, 6  ;;  %v10835_v1 = vmax.f32 %v2709_v44, 0.0  ;;  %v2708_v15 = vadd.f32 %v2580_v18, %v13000_v39  ;;  %v3129_v47 = vsel %vm3015_vm0, %v3127_v36, %v3128_v11 }
 0x464   : > { %v3411_v57 = vadd.f32 %v3128_v11, %v10816_v12  ;;  %v4026_v34 = vrot.slane %v10816_v12, 3  ;;  %v2711_v32 = vadd.f32 %v2583_v31, %v13001_v40  ;;  %v10844_v29 = vadd.f32 %v5371_v55, %v5204_v26 }
 0x465   : > { %v3410_v42 = vadd.f32 %v3129_v47, %v10746_v58  ;;  %v2582_v48 = vmul.f32 %v8787_v16, %v2305_v53  ;;  %v2585_v8 = vmul.f32 %v8787_v16, %v2317_v46  ;;  %v3578_v2 = vsel %vm3464_vm1, %v3576_v19, %v3577_v28  ;;  %v2313_v53 = vpop.permute.xlu1 %2312  ;;  %v2325_v46 = vpop.permute.xlu0 %2324 }
 0x466   : > { %v3860_v9 = vadd.f32 %v3577_v28, %v3411_v57  ;;  %v4475_v36 = vrot.slane %v10816_v12, 4  ;;  %v4924_v50 = vrot.slane %v10816_v12, 5  ;;  %v5756_v54 = vadd.f32 %v10832_v37, %v5652_v52  ;;  %v13002_v57 = vld [vmem:[#allocation93_spill] sm:$0xff] }
 0x467   : > { %v5834_v35 = vadd.f32 %v5754_v45, %v10832_v37  ;;  %v3859_v21 = vadd.f32 %v3578_v2, %v3410_v42  ;;  %v5373_v23 = vrot.slane %v10816_v12, 6  ;;  %v5912_v27 = vadd.f32 %v5832_v59, %v10832_v37  ;;  %v13003_v2 = vld [vmem:[#allocation104_spill] sm:$0xff] }
 0x468   : > { %v4027_v0 = vsel %vm3913_vm2, %v4025_v60, %v4026_v34  ;;  %v4309_v20 = vadd.f32 %v4026_v34, %v3860_v9  ;;  %v10861_v19 = vmax.f32 %v2708_v15, 0.0  ;;  %v5755_v5 = vadd.f32 %v10844_v29, %v10803_v62 }
 0x469   : > { %v5833_v6 = vadd.f32 %v5753_v13, %v10844_v29  ;;  %v10867_v52 = vadd.f32 %v5910_v14, %v10832_v37  ;;  %v4308_v45 = vadd.f32 %v4027_v0, %v3859_v21  ;;  %v4476_v17 = vsel %vm4362_vm3, %v4474_v30, %v4475_v36 }
 0x46a   : > { %v4758_v59 = vadd.f32 %v4475_v36, %v4309_v20  ;;  %v3131_v12 = vrot.slane %v10861_v19, 1  ;;  %v3580_v60 = vrot.slane %v10861_v19, 2  ;;  %v5911_v49 = vadd.f32 %v5831_v22, %v10844_v29 }
 0x46b   : > { %v5989_v33 = vadd.f32 %v5909_v61, %v10844_v29  ;;  %v4757_v62 = vadd.f32 %v4476_v17, %v4308_v45  ;;  %v4925_v13 = vsel %vm4811_vm4, %v4923_v10, %v4924_v50  ;;  %v5374_v14 = vsel %vm5260_vm5, %v5372_v56, %v5373_v23 }
 0x46c   : > { %v3133_v30 = vrot.slane %v10835_v1, 1  ;;  %v3132_v44 = vsel %vm3015_vm0, %v3130_v24, %v3131_v12  ;;  %v3413_v18 = vadd.f32 %v3131_v12, %v10861_v19  ;;  %v5207_v43 = vadd.f32 %v4924_v50, %v4758_v59 }
 0x46d   : > { %v3582_v22 = vrot.slane %v10835_v1, 2  ;;  %v3412_v61 = vadd.f32 %v3132_v44, %v10813_v38  ;;  %v4029_v11 = vrot.slane %v10861_v19, 3  ;;  %v4031_v31 = vrot.slane %v10835_v1, 3 }
 0x46e   : > { %v3581_v10 = vsel %vm3464_vm1, %v3579_v51, %v3580_v60  ;;  %v3862_v58 = vadd.f32 %v3580_v60, %v3413_v18  ;;  %v4478_v56 = vrot.slane %v10861_v19, 4  ;;  %v5206_v26 = vadd.f32 %v4925_v13, %v4757_v62 }
 0x46f   : > { %v3861_v55 = vadd.f32 %v3581_v10, %v3412_v61  ;;  %v4927_v24 = vrot.slane %v10861_v19, 5  ;;  %v5376_v28 = vrot.slane %v10861_v19, 6  ;;  %v4480_v39 = vrot.slane %v10835_v1, 4 }
 0x470   : > { %v4929_v15 = vrot.slane %v10835_v1, 5  ;;  %v10895_v47 = vmax.f32 %v2711_v32, 0.0  ;;  %v2710_v34 = vadd.f32 %v2582_v48, %v13002_v57  ;;  %v10898_v51 = vadd.f32 %v5373_v23, %v5207_v43 }
 0x471   : > { %v5378_v40 = vrot.slane %v10835_v1, 6  ;;  %v4030_v42 = vsel %vm3913_vm2, %v4028_v25, %v4029_v11  ;;  %v2713_v9 = vadd.f32 %v2585_v8, %v13003_v2  ;;  %v4311_v50 = vadd.f32 %v4029_v11, %v3862_v58 }
 0x472   : > { %v4310_v36 = vadd.f32 %v4030_v42, %v3861_v55  ;;  %v2584_v21 = vmul.f32 %v8787_v16, %v2313_v53  ;;  %v2587_v0 = vmul.f32 %v8787_v16, %v2325_v46  ;;  %v10907_v32 = vadd.f32 %v5374_v14, %v5206_v26  ;;  %v2333_v53 = vpop.permute.xlu0 %2332 }
 0x473   : > { %v4479_v48 = vsel %vm4362_vm3, %v4477_v63, %v4478_v56  ;;  %v4928_v23 = vsel %vm4811_vm4, %v4926_v41, %v4927_v24  ;;  %v5377_v25 = vsel %vm5260_vm5, %v5375_v7, %v5376_v28  ;;  %v4760_v20 = vadd.f32 %v4478_v56, %v4311_v50 }
 0x474   : > { %v4759_v8 = vadd.f32 %v4479_v48, %v4310_v36  ;;  %v3136_v19 = vrot.slane %v10895_v47, 1  ;;  %v10919_v45 = vmax.f32 %v2710_v34, 0.0  ;;  %v5758_v17 = vadd.f32 %v10898_v51, %v10832_v37  ;;  %v13005_v34 = vld [vmem:[#allocation159_spill] sm:$0xff] }
 0x475   : > { %v5836_v59 = vadd.f32 %v5756_v54, %v10898_v51  ;;  %v5914_v63 = vadd.f32 %v5834_v35, %v10898_v51  ;;  %v3585_v12 = vrot.slane %v10895_v47, 2  ;;  %v10927_v41 = vadd.f32 %v5912_v27, %v10898_v51 }
 0x476   : > { %v5208_v38 = vadd.f32 %v4928_v23, %v4759_v8  ;;  %v5209_v7 = vadd.f32 %v4927_v24, %v4760_v20  ;;  %v3134_v60 = vrot.slane %v10919_v45, 1  ;;  %v5757_v62 = vadd.f32 %v10907_v32, %v10844_v29 }
 0x477   : > { %v5835_v13 = vadd.f32 %v5755_v5, %v10907_v32  ;;  %v5913_v37 = vadd.f32 %v5833_v6, %v10907_v32  ;;  %v3583_v54 = vrot.slane %v10919_v45, 2  ;;  %v5991_v18 = vadd.f32 %v5911_v49, %v10907_v32 }
 0x478   : > { %v10935_v14 = vadd.f32 %v5377_v25, %v5208_v38  ;;  %v10937_v35 = vadd.f32 %v5376_v28, %v5209_v7  ;;  %v3135_v27 = vsel %vm3015_vm0, %v3133_v30, %v3134_v60  ;;  %v3415_v44 = vadd.f32 %v3134_v60, %v10919_v45  ;;  %v2321_v28 = vpop.permute.xlu1 %2320 }
 0x479   : > { %v6069_v43 = vadd.f32 %v5989_v33, %v10907_v32  ;;  %v3414_v29 = vadd.f32 %v3135_v27, %v10835_v1  ;;  %v4032_v5 = vrot.slane %v10919_v45, 3  ;;  %v6070_v6 = vadd.f32 %v10867_v52, %v10898_v51  ;;  %v13004_v33 = vld [vmem:[#allocation99_spill] sm:$0xff] }
 0x47a   : > { %v4034_v61 = vrot.slane %v10895_v47, 3  ;;  %v4483_v11 = vrot.slane %v10895_v47, 4  ;;  %v4932_v10 = vrot.slane %v10895_v47, 5  ;;  %v5381_v30 = vrot.slane %v10895_v47, 6 }
 0x47b   : > { %v3584_v58 = vsel %vm3464_vm1, %v3582_v22, %v3583_v54  ;;  %v4481_v49 = vrot.slane %v10919_v45, 4  ;;  %v2712_v56 = vadd.f32 %v2584_v21, %v13004_v33  ;;  %v6149_v26 = vadd.f32 %v6069_v43, %v10935_v14 }
 0x47c   : > { %v6150_v55 = vadd.f32 %v6070_v6, %v10937_v35  ;;  %v3863_v24 = vadd.f32 %v3584_v58, %v3414_v29  ;;  %v3864_v52 = vadd.f32 %v3583_v54, %v3415_v44  ;;  %v4033_v46 = vsel %vm3913_vm2, %v4031_v31, %v4032_v5 }
 0x47d   : > { %v4930_v22 = vrot.slane %v10919_v45, 5  ;;  %v10960_v57 = vmax.f32 %v2713_v9, 0.0  ;;  %v2715_v42 = vadd.f32 %v2587_v0, %v13005_v34  ;;  %v6229_v2 = vmul.f32 0.020408163, %v6149_v26  ;;  %v2329_v34 = vpop.permute.xlu1 %2328 }
 0x47e   : > { %v6230_v36 = vmul.f32 0.020408163, %v6150_v55  ;;  %v4312_v50 = vadd.f32 %v4033_v46, %v3863_v24  ;;  %v4313_v21 = vadd.f32 %v4032_v5, %v3864_v52  ;;  %v4482_v48 = vsel %vm4362_vm3, %v4480_v39, %v4481_v49 }
 0x47f   : > { %v5379_v23 = vrot.slane %v10919_v45, 6  ;;  %v2586_v25 = vmul.f32 %v8787_v16, %v2321_v28  ;;  %v2589_v31 = vmul.f32 %v8787_v16, %v2333_v53  ;;  %v10970_v8 = vadd.f32 %v5757_v62, %v10935_v14  ;;  %6309 = vst [vmem:[%s9523_s26 + $0x140] sm:$0xff] %v6229_v2  ;;  %v2341_v2 = vpop.permute.xlu0 %2340 }
 0x480   : > { %6310 = vst [vmem:[%s9523_s26 + $0x148] sm:$0x3] %v6230_v36  ;;  %v4761_v9 = vadd.f32 %v4482_v48, %v4312_v50  ;;  %v4762_v0 = vadd.f32 %v4481_v49, %v4313_v21  ;;  %v10974_v20 = vmax.f32 %v2712_v56, 0.0  ;;  %v10977_v38 = vadd.f32 %v5758_v17, %v10937_v35 }
 0x481   : > { %v10980_v39 = vadd.f32 %v5835_v13, %v10935_v14  ;;  %v10983_v45 = vadd.f32 %v5836_v59, %v10937_v35  ;;  %v4931_v7 = vsel %vm4811_vm4, %v4929_v15, %v4930_v22  ;;  %v5993_v44 = vadd.f32 %v5913_v37, %v10935_v14 }
 0x482   : > { %v5210_v60 = vadd.f32 %v4931_v7, %v4761_v9  ;;  %v5211_v62 = vadd.f32 %v4930_v22, %v4762_v0  ;;  %v3137_v54 = vrot.slane %v10974_v20, 1  ;;  %v3586_v27 = vrot.slane %v10974_v20, 2  ;;  %v13007_v7 = vld [vmem:[#allocation103_spill] sm:$0xff] }
 0x483   : > { %v5994_v17 = vadd.f32 %v5914_v63, %v10937_v35  ;;  %v5380_v13 = vsel %vm5260_vm5, %v5378_v40, %v5379_v23  ;;  %v4035_v59 = vrot.slane %v10974_v20, 3  ;;  %v6071_v37 = vadd.f32 %v5991_v18, %v10935_v14 }
 0x484   : > { %v10996_v43 = vadd.f32 %v5380_v13, %v5210_v60  ;;  %v10998_v29 = vadd.f32 %v5379_v23, %v5211_v62  ;;  %v3138_v15 = vsel %vm3015_vm0, %v3136_v19, %v3137_v54  ;;  %v3417_v5 = vadd.f32 %v3137_v54, %v10974_v20  ;;  %v13006_v19 = vld [vmem:[#allocation97_spill] sm:$0xff] }
 0x485   : > { %v6072_v63 = vadd.f32 %v10927_v41, %v10937_v35  ;;  %v3139_v1 = vrot.slane %v10960_v57, 1  ;;  %v3416_v40 = vadd.f32 %v3138_v15, %v10895_v47  ;;  %v3588_v6 = vrot.slane %v10960_v57, 2 }
 0x486   : > { %v3587_v58 = vsel %vm3464_vm1, %v3585_v12, %v3586_v27  ;;  %v4484_v49 = vrot.slane %v10974_v20, 4  ;;  %v2714_v33 = vadd.f32 %v2586_v25, %v13006_v19  ;;  %v6151_v56 = vadd.f32 %v6071_v37, %v10996_v43 }
 0x487   : > { %v6152_v18 = vadd.f32 %v6072_v63, %v10998_v29  ;;  %v3865_v26 = vadd.f32 %v3587_v58, %v3416_v40  ;;  %v3866_v41 = vadd.f32 %v3586_v27, %v3417_v5  ;;  %v4037_v55 = vrot.slane %v10960_v57, 3  ;;  %v13008_v58 = vld [vmem:[#allocation160_spill] sm:$0xff] }
 0x488   : > { %v4486_v24 = vrot.slane %v10960_v57, 4  ;;  %v4036_v52 = vsel %vm3913_vm2, %v4034_v61, %v4035_v59  ;;  %v4933_v12 = vrot.slane %v10974_v20, 5  ;;  %v6231_v28 = vmul.f32 0.020408163, %v6151_v56 }
 0x489   : > { %v6232_v53 = vmul.f32 0.020408163, %v6152_v18  ;;  %v4314_v46 = vadd.f32 %v4036_v52, %v3865_v26  ;;  %v4315_v22 = vadd.f32 %v4035_v59, %v3866_v41  ;;  %v4935_v36 = vrot.slane %v10960_v57, 5 }
 0x48a   : > { %v5384_v50 = vrot.slane %v10960_v57, 6  ;;  %v4485_v21 = vsel %vm4362_vm3, %v4483_v11, %v4484_v49  ;;  %v5382_v48 = vrot.slane %v10974_v20, 6  ;;  %6311 = vst [vmem:[%s9523_s26 + $0x150] sm:$0xff] %v6231_v28  ;;  %v11029_v25 = vmax.f32 %v2715_v42, 0.0 }
 0x48b   : > { %6312 = vst [vmem:[%s9523_s26 + $0x158] sm:$0x3] %v6232_v53  ;;  %v4763_v61 = vadd.f32 %v4485_v21, %v4314_v46  ;;  %v4764_v23 = vadd.f32 %v4484_v49, %v4315_v22  ;;  %v2842_v9 = vmax.f32 %v2714_v33, 0.0  ;;  %v4934_v0 = vsel %vm4811_vm4, %v4932_v10, %v4933_v12 }
 0x48c   : > { %v2717_v60 = vadd.f32 %v2589_v31, %v13007_v7  ;;  %v2588_v62 = vmul.f32 %v8787_v16, %v2329_v34  ;;  %v2591_v54 = vmul.f32 %v8787_v16, %v2341_v2  ;;  %v6073_v59 = vadd.f32 %v5993_v44, %v10996_v43 }
 0x48d   : > { %v5212_v11 = vadd.f32 %v4934_v0, %v4763_v61  ;;  %v5213_v27 = vadd.f32 %v4933_v12, %v4764_v23  ;;  %v3140_v20 = vrot.slane %v2842_v9, 1  ;;  %v3589_v13 = vrot.slane %v2842_v9, 2 }
 0x48e   : > { %v6074_v42 = vadd.f32 %v5994_v17, %v10998_v29  ;;  %v5383_v15 = vsel %vm5260_vm5, %v5381_v30, %v5382_v48  ;;  %v4038_v5 = vrot.slane %v2842_v9, 3  ;;  %v5995_v40 = vadd.f32 %v10980_v39, %v10996_v43 }
 0x48f   : > { %v11042_v10 = vadd.f32 %v5383_v15, %v5212_v11  ;;  %v11044_v31 = vadd.f32 %v5382_v48, %v5213_v27  ;;  %v3141_v37 = vsel %vm3015_vm0, %v3139_v1, %v3140_v20  ;;  %v3419_v63 = vadd.f32 %v3140_v20, %v2842_v9 }
 0x490   : > { %v5996_v44 = vadd.f32 %v10983_v45, %v10998_v29  ;;  %v3418_v17 = vadd.f32 %v3141_v37, %v10960_v57  ;;  %v2716_v47 = vadd.f32 %v2588_v62, %v13008_v58  ;;  %v3590_v19 = vsel %vm3464_vm1, %v3588_v6, %v3589_v13  ;;  %v2337_v58 = vpop.permute.xlu1 %2336 }
 0x491   : > { %v6153_v30 = vadd.f32 %v6073_v59, %v11042_v10  ;;  %v6154_v49 = vadd.f32 %v6074_v42, %v11044_v31  ;;  %v4487_v1 = vrot.slane %v2842_v9, 4  ;;  %v3142_v33 = vrot.slane %v11029_v25, 1 }
 0x492   : > { %v3591_v39 = vrot.slane %v11029_v25, 2  ;;  %v3867_v56 = vadd.f32 %v3590_v19, %v3418_v17  ;;  %v3868_v18 = vadd.f32 %v3589_v13, %v3419_v63  ;;  %v4039_v41 = vsel %vm3913_vm2, %v4037_v55, %v4038_v5  ;;  %v13009_v63 = vld [vmem:[#allocation102_spill] sm:$0xff] }
 0x493   : > { %v6233_v45 = vmul.f32 0.020408163, %v6153_v30  ;;  %v6234_v26 = vmul.f32 0.020408163, %v6154_v49  ;;  %v4936_v52 = vrot.slane %v2842_v9, 5  ;;  %v4040_v12 = vrot.slane %v11029_v25, 3 }
 0x494   : > { %v4489_v28 = vrot.slane %v11029_v25, 4  ;;  %v4316_v53 = vadd.f32 %v4039_v41, %v3867_v56  ;;  %v4317_v46 = vadd.f32 %v4038_v5, %v3868_v18  ;;  %v4938_v6 = vrot.slane %v11029_v25, 5 }
 0x495   : > { %6313 = vst [vmem:[%s9523_s26 + $0x160] sm:$0xff] %v6233_v45  ;;  %6314 = vst [vmem:[%s9523_s26 + $0x168] sm:$0x3] %v6234_v26  ;;  %v4488_v22 = vsel %vm4362_vm3, %v4486_v24, %v4487_v1  ;;  %v5385_v34 = vrot.slane %v2842_v9, 6  ;;  %v2844_v2 = vmax.f32 %v2716_v47, 0.0  ;;  %v5387_v21 = vrot.slane %v11029_v25, 6 }
 0x496   : > { %v4765_v48 = vadd.f32 %v4488_v22, %v4316_v53  ;;  %v4766_v61 = vadd.f32 %v4487_v1, %v4317_v46  ;;  %v11066_v55 = vmax.f32 %v2717_v60, 0.0  ;;  %v4937_v23 = vsel %vm4811_vm4, %v4935_v36, %v4936_v52 }
 0x497   : > { %v3143_v0 = vrot.slane %v2844_v2, 1  ;;  %v3592_v7 = vrot.slane %v2844_v2, 2  ;;  %v5917_v62 = vadd.f32 %v10970_v8, %v10996_v43  ;;  %v6075_v11 = vadd.f32 %v5995_v40, %v11042_v10 }
 0x498   : > { %v5214_v27 = vadd.f32 %v4937_v23, %v4765_v48  ;;  %v5215_v20 = vadd.f32 %v4936_v52, %v4766_v61  ;;  %v5918_v24 = vadd.f32 %v10977_v38, %v10998_v29  ;;  %v5386_v9 = vsel %vm5260_vm5, %v5384_v50, %v5385_v34 }
 0x499   : > { %v3144_v60 = vsel %vm3015_vm0, %v3142_v33, %v3143_v0  ;;  %v3421_v13 = vadd.f32 %v3143_v0, %v2844_v2  ;;  %v4041_v36 = vrot.slane %v2844_v2, 3  ;;  %v6076_v59 = vadd.f32 %v5996_v44, %v11044_v31  ;;  %v2345_v0 = vpop.permute.xlu1 %2344 }
 0x49a   : > { %v11079_v42 = vadd.f32 %v5386_v9, %v5214_v27  ;;  %v11081_v8 = vadd.f32 %v5385_v34, %v5215_v20  ;;  %v3420_v15 = vadd.f32 %v3144_v60, %v11029_v25  ;;  %v3593_v5 = vsel %vm3464_vm1, %v3591_v39, %v3592_v7 }
 0x49b   : > { %v3870_v37 = vadd.f32 %v3592_v7, %v3421_v13  ;;  %v4490_v38 = vrot.slane %v2844_v2, 4  ;;  %v2719_v57 = vadd.f32 %v2591_v54, %v13009_v63  ;;  %v3145_v17 = vrot.slane %v11066_v55, 1 }
 0x49c   : > { %v6155_v50 = vadd.f32 %v6075_v11, %v11079_v42  ;;  %v6156_v40 = vadd.f32 %v6076_v59, %v11081_v8  ;;  %v3869_v44 = vadd.f32 %v3593_v5, %v3420_v15  ;;  %v3594_v47 = vrot.slane %v11066_v55, 2 }
 0x49d   : > { %v4042_v25 = vsel %vm3913_vm2, %v4040_v12, %v4041_v36  ;;  %v4319_v30 = vadd.f32 %v4041_v36, %v3870_v37  ;;  %v4939_v49 = vrot.slane %v2844_v2, 5  ;;  %v5388_v54 = vrot.slane %v2844_v2, 6  ;;  %v2349_v36 = vpop.permute.xlu0 %2348 }
 0x49e   : > { %v6235_v19 = vmul.f32 0.020408163, %v6155_v50  ;;  %v6236_v1 = vmul.f32 0.020408163, %v6156_v40  ;;  %v4318_v33 = vadd.f32 %v4042_v25, %v3869_v44  ;;  %v4491_v39 = vsel %vm4362_vm3, %v4489_v28, %v4490_v38  ;;  %v13010_v28 = vld [vmem:[#allocation98_spill] sm:$0xff] }
 0x49f   : > { %v4768_v56 = vadd.f32 %v4490_v38, %v4319_v30  ;;  %v11092_v18 = vmax.f32 %v2719_v57, 0.0  ;;  %v2590_v45 = vmul.f32 %v8787_v16, %v2337_v58  ;;  %v4043_v26 = vrot.slane %v11066_v55, 3 }
 0x4a0   : > { %6315 = vst [vmem:[%s9523_s26 + $0x170] sm:$0xff] %v6235_v19  ;;  %6316 = vst [vmem:[%s9523_s26 + $0x178] sm:$0x3] %v6236_v1  ;;  %v4492_v41 = vrot.slane %v11066_v55, 4  ;;  %v4941_v52 = vrot.slane %v11066_v55, 5  ;;  %v4767_v12 = vadd.f32 %v4491_v39, %v4318_v33  ;;  %v4940_v53 = vsel %vm4811_vm4, %v4938_v6, %v4939_v49  ;;  %v13011_v33 = vld [vmem:[#allocation162_spill] sm:$0xff] }
 0x4a1   : > { %v5217_v46 = vadd.f32 %v4939_v49, %v4768_v56  ;;  %v5998_v22 = vadd.f32 %v5918_v24, %v11044_v31  ;;  %v2718_v34 = vadd.f32 %v2590_v45, %v13010_v28  ;;  %v5390_v2 = vrot.slane %v11066_v55, 6  ;;  %v13012_v28 = vld [vmem:[#allocation106_spill] sm:$0xff] }
 0x4a2   : > { %v5216_v48 = vadd.f32 %v4940_v53, %v4767_v12  ;;  %v5389_v61 = vsel %vm5260_vm5, %v5387_v21, %v5388_v54  ;;  %v5997_v23 = vadd.f32 %v5917_v62, %v11042_v10  ;;  %v3148_v27 = vrot.slane %v11092_v18, 1 }
 0x4a3   : > { %v11106_v7 = vadd.f32 %v5388_v54, %v5217_v46  ;;  %v6078_v11 = vadd.f32 %v5998_v22, %v11081_v8  ;;  %v2846_v6 = vmax.f32 %v2718_v34, 0.0  ;;  %v3597_v9 = vrot.slane %v11092_v18, 2 }
 0x4a4   : > { %v11110_v20 = vadd.f32 %v5389_v61, %v5216_v48  ;;  %v6077_v24 = vadd.f32 %v5997_v23, %v11079_v42  ;;  %v4046_v60 = vrot.slane %v11092_v18, 3  ;;  %v2592_v59 = vmul.f32 %v8787_v16, %v2345_v0 }
 0x4a5   : > { %v6158_v21 = vadd.f32 %v6078_v11, %v11106_v7  ;;  %v3146_v13 = vrot.slane %v2846_v6, 1  ;;  %v3595_v62 = vrot.slane %v2846_v6, 2  ;;  %v4495_v5 = vrot.slane %v11092_v18, 4 }
 0x4a6   : > { %v6157_v15 = vadd.f32 %v6077_v24, %v11110_v20  ;;  %v4944_v37 = vrot.slane %v11092_v18, 5  ;;  %v5393_v38 = vrot.slane %v11092_v18, 6  ;;  %v4044_v40 = vrot.slane %v2846_v6, 3 }
 0x4a7   : > { %v6238_v63 = vmul.f32 0.020408163, %v6158_v21  ;;  %v3147_v57 = vsel %vm3015_vm0, %v3145_v17, %v3146_v13  ;;  %v3423_v50 = vadd.f32 %v3146_v13, %v2846_v6  ;;  %v5760_v25 = vadd.f32 %v10937_v35, %v10898_v51 }
 0x4a8   : > { %v6237_v44 = vmul.f32 0.020408163, %v6157_v15  ;;  %v3422_v58 = vadd.f32 %v3147_v57, %v11066_v55  ;;  %v2593_v30 = vmul.f32 %v8787_v16, %v2349_v36  ;;  %v3596_v49 = vsel %vm3464_vm1, %v3594_v47, %v3595_v62 }
 0x4a9   : > { %6318 = vst [vmem:[%s9523_s26 + $0x188] sm:$0x3] %v6238_v63  ;;  %v3872_v19 = vadd.f32 %v3595_v62, %v3423_v50  ;;  %v4493_v1 = vrot.slane %v2846_v6, 4  ;;  %v2720_v54 = vadd.f32 %v2592_v59, %v13011_v33  ;;  %v4942_v17 = vrot.slane %v2846_v6, 5 }
 0x4aa   : > { %6317 = vst [vmem:[%s9523_s26 + $0x180] sm:$0xff] %v6237_v44  ;;  %v3871_v39 = vadd.f32 %v3596_v49, %v3422_v58  ;;  %v5759_v56 = vadd.f32 %v10935_v14, %v10907_v32  ;;  %v5840_v55 = vadd.f32 %v5760_v25, %v10998_v29  ;;  %v4045_v45 = vsel %vm3913_vm2, %v4043_v26, %v4044_v40  ;;  %v2353_v26 = vpop.permute.xlu1 %2352 }
 0x4ab   : > { %v4321_v51 = vadd.f32 %v4044_v40, %v3872_v19  ;;  %v5391_v12 = vrot.slane %v2846_v6, 6  ;;  %v5761_v53 = vadd.f32 %v10996_v43, %v10935_v14  ;;  %v2721_v34 = vadd.f32 %v2593_v30, %v13012_v28  ;;  %v2357_v28 = vpop.permute.xlu0 %2356 }
 0x4ac   : > { %v4320_v47 = vadd.f32 %v4045_v45, %v3871_v39  ;;  %v5839_v46 = vadd.f32 %v5759_v56, %v10996_v43  ;;  %v5920_v22 = vadd.f32 %v5840_v55, %v11044_v31  ;;  %v4494_v48 = vsel %vm4362_vm3, %v4492_v41, %v4493_v1  ;;  %v13013_v56 = vld [vmem:[#allocation105_spill] sm:$0xff] }
 0x4ad   : > { %v4770_v61 = vadd.f32 %v4493_v1, %v4321_v51  ;;  %v2848_v32 = vmax.f32 %v2720_v54, 0.0  ;;  %v5762_v23 = vadd.f32 %v10998_v29, %v10937_v35  ;;  %v4943_v11 = vsel %vm4811_vm4, %v4941_v52, %v4942_v17 }
 0x4ae   : > { %v4769_v0 = vadd.f32 %v4494_v48, %v4320_v47  ;;  %v5919_v14 = vadd.f32 %v5839_v46, %v11042_v10  ;;  %v6000_v6 = vadd.f32 %v5920_v22, %v11081_v8  ;;  %v5392_v21 = vsel %vm5260_vm5, %v5390_v2, %v5391_v12 }
 0x4af   : > { %v5219_v24 = vadd.f32 %v4942_v17, %v4770_v61  ;;  %v3149_v13 = vrot.slane %v2848_v32, 1  ;;  %v3598_v62 = vrot.slane %v2848_v32, 2  ;;  %v2594_v35 = vmul.f32 %v8787_v16, %v2353_v26 }
 0x4b0   : > { %v5218_v36 = vadd.f32 %v4943_v11, %v4769_v0  ;;  %v5999_v41 = vadd.f32 %v5919_v14, %v11079_v42  ;;  %v6080_v59 = vadd.f32 %v6000_v6, %v11106_v7  ;;  %v4047_v57 = vrot.slane %v2848_v32, 3 }
 0x4b1   : > { %v11149_v15 = vadd.f32 %v5391_v12, %v5219_v24  ;;  %v3150_v52 = vsel %vm3015_vm0, %v3148_v27, %v3149_v13  ;;  %v3425_v63 = vadd.f32 %v3149_v13, %v2848_v32  ;;  %v11155_v2 = vmax.f32 %v2721_v34, 0.0 }
 0x4b2   : > { %v11152_v50 = vadd.f32 %v5392_v21, %v5218_v36  ;;  %v6079_v40 = vadd.f32 %v5999_v41, %v11110_v20  ;;  %v3424_v44 = vadd.f32 %v3150_v52, %v11092_v18  ;;  %v3599_v25 = vsel %vm3464_vm1, %v3597_v9, %v3598_v62 }
 0x4b3   : > { %v6160_v58 = vadd.f32 %v6080_v59, %v11149_v15  ;;  %v3874_v30 = vadd.f32 %v3598_v62, %v3425_v63  ;;  %v4496_v49 = vrot.slane %v2848_v32, 4  ;;  %v4945_v1 = vrot.slane %v2848_v32, 5 }
 0x4b4   : > { %v6159_v27 = vadd.f32 %v6079_v40, %v11152_v50  ;;  %v3873_v19 = vadd.f32 %v3599_v25, %v3424_v44  ;;  %v5842_v33 = vadd.f32 %v5762_v23, %v11044_v31  ;;  %v4048_v39 = vsel %vm3913_vm2, %v4046_v60, %v4047_v57  ;;  %v2361_v25 = vpop.permute.xlu1 %2360 }
 0x4b5   : > { %v6240_v54 = vmul.f32 0.020408163, %v6160_v58  ;;  %v4323_v17 = vadd.f32 %v4047_v57, %v3874_v30  ;;  %v2722_v55 = vadd.f32 %v2594_v35, %v13013_v56  ;;  %v5394_v9 = vrot.slane %v2848_v32, 6  ;;  %v13014_v57 = vld [vmem:[#allocation114_spill] sm:$0xff] }
 0x4b6   : > { %v6239_v45 = vmul.f32 0.020408163, %v6159_v27  ;;  %v4322_v51 = vadd.f32 %v4048_v39, %v3873_v19  ;;  %v5841_v12 = vadd.f32 %v5761_v53, %v11042_v10  ;;  %v4497_v47 = vsel %vm4362_vm3, %v4495_v5, %v4496_v49 }
 0x4b7   : > { %6320 = vst [vmem:[%s9523_s26 + $0x198] sm:$0x3] %v6240_v54  ;;  %v4772_v46 = vadd.f32 %v4496_v49, %v4323_v17  ;;  %v5922_v22 = vadd.f32 %v5842_v33, %v11081_v8  ;;  %v11174_v34 = vmax.f32 %v2722_v55, 0.0  ;;  %v3151_v60 = vrot.slane %v11155_v2, 1  ;;  %v2365_v55 = vpop.permute.xlu0 %2364 }
 0x4b8   : > { %6319 = vst [vmem:[%s9523_s26 + $0x190] sm:$0xff] %v6239_v45  ;;  %v3600_v48 = vrot.slane %v11155_v2, 2  ;;  %v4771_v61 = vadd.f32 %v4497_v47, %v4322_v51  ;;  %v5921_v32 = vadd.f32 %v5841_v12, %v11079_v42  ;;  %v4049_v53 = vrot.slane %v11155_v2, 3 }
 0x4b9   : > { %v4946_v5 = vsel %vm4811_vm4, %v4944_v37, %v4945_v1  ;;  %v5221_v23 = vadd.f32 %v4945_v1, %v4772_v46  ;;  %v6002_v26 = vadd.f32 %v5922_v22, %v11106_v7  ;;  %v5395_v11 = vsel %vm5260_vm5, %v5393_v38, %v5394_v9 }
 0x4ba   : > { %v5220_v0 = vadd.f32 %v4946_v5, %v4771_v61  ;;  %v6001_v14 = vadd.f32 %v5921_v32, %v11110_v20  ;;  %v2595_v6 = vmul.f32 %v8787_v16, %v2357_v28  ;;  %v3152_v13 = vrot.slane %v11174_v34, 1  ;;  %v13015_v28 = vld [vmem:[#allocation109_spill] sm:$0xff] }
 0x4bb   : > { %v11190_v24 = vadd.f32 %v5394_v9, %v5221_v23  ;;  %v6082_v21 = vadd.f32 %v6002_v26, %v11149_v15  ;;  %v3601_v37 = vrot.slane %v11174_v34, 2  ;;  %v4498_v62 = vrot.slane %v11155_v2, 4 }
 0x4bc   : > { %v4947_v36 = vrot.slane %v11155_v2, 5  ;;  %v11197_v41 = vadd.f32 %v5395_v11, %v5220_v0  ;;  %v6081_v18 = vadd.f32 %v6001_v14, %v11152_v50  ;;  %v3153_v59 = vsel %vm3015_vm0, %v3151_v60, %v3152_v13  ;;  %v13016_v0 = vld [vmem:[#allocation108_spill] sm:$0xff]  ;;  %v13017_v11 = vld [vmem:[#allocation135_spill] sm:$0xff] }
 0x4bd   : > { %v6162_v38 = vadd.f32 %v6082_v21, %v11190_v24  ;;  %v3427_v35 = vadd.f32 %v3152_v13, %v11174_v34  ;;  %v4050_v52 = vrot.slane %v11174_v34, 3  ;;  %v2723_v40 = vadd.f32 %v2595_v6, %v13014_v57 }
 0x4be   : > { %v6161_v63 = vadd.f32 %v6081_v18, %v11197_v41  ;;  %v3426_v44 = vadd.f32 %v3153_v59, %v11155_v2  ;;  %v5764_v58 = vadd.f32 %v11044_v31, %v10998_v29  ;;  %v3602_v49 = vsel %vm3464_vm1, %v3600_v48, %v3601_v37 }
 0x4bf   : > { %v6242_v30 = vmul.f32 0.020408163, %v6162_v38  ;;  %v3876_v27 = vadd.f32 %v3601_v37, %v3427_v35  ;;  %v4499_v19 = vrot.slane %v11174_v34, 4  ;;  %v4948_v54 = vrot.slane %v11174_v34, 5  ;;  %v13018_v35 = vld [vmem:[#allocation118_spill] sm:$0xff] }
 0x4c0   : > { %v6241_v1 = vmul.f32 0.020408163, %v6161_v63  ;;  %v3875_v33 = vadd.f32 %v3602_v49, %v3426_v44  ;;  %v5763_v39 = vadd.f32 %v11042_v10, %v10996_v43  ;;  %v4051_v17 = vsel %vm3913_vm2, %v4049_v53, %v4050_v52 }
 0x4c1   : > { %6322 = vst [vmem:[%s9523_s26 + $0x1a8] sm:$0x3] %v6242_v30  ;;  %v4325_v56 = vadd.f32 %v4050_v52, %v3876_v27  ;;  %v5844_v29 = vadd.f32 %v5764_v58, %v11081_v8  ;;  %v2596_v45 = vmul.f32 %v8787_v16, %v2361_v25  ;;  %v11219_v51 = vmax.f32 %v2723_v40, 0.0 }
 0x4c2   : > { %6321 = vst [vmem:[%s9523_s26 + $0x1a0] sm:$0xff] %v6241_v1  ;;  %v4324_v9 = vadd.f32 %v4051_v17, %v3875_v33  ;;  %v5397_v12 = vrot.slane %v11174_v34, 6  ;;  %v5843_v47 = vadd.f32 %v5763_v39, %v11079_v42  ;;  %v4500_v46 = vsel %vm4362_vm3, %v4498_v62, %v4499_v19 }
 0x4c3   : > { %v4774_v43 = vadd.f32 %v4499_v19, %v4325_v56  ;;  %v5924_v22 = vadd.f32 %v5844_v29, %v11106_v7  ;;  %v2724_v60 = vadd.f32 %v2596_v45, %v13015_v28  ;;  %v5396_v48 = vrot.slane %v11155_v2, 6  ;;  %v2369_v29 = vpop.permute.xlu1 %2368  ;;  %v2373_v28 = vpop.permute.xlu0 %2372 }
 0x4c4   : > { %v4773_v61 = vadd.f32 %v4500_v46, %v4324_v9  ;;  %v5923_v32 = vadd.f32 %v5843_v47, %v11110_v20  ;;  %v2597_v53 = vmul.f32 %v8787_v16, %v2365_v55  ;;  %v4949_v5 = vsel %vm4811_vm4, %v4947_v36, %v4948_v54 }
 0x4c5   : > { %v5223_v23 = vadd.f32 %v4948_v54, %v4774_v43  ;;  %v6004_v34 = vadd.f32 %v5924_v22, %v11149_v15  ;;  %v11231_v26 = vmax.f32 %v2724_v60, 0.0  ;;  %v11235_v14 = vmul.f32 %v13017_v11, %v13016_v0 }
 0x4c6   : > { %v3154_v6 = vrot.slane %v11219_v51, 1  ;;  %v5222_v21 = vadd.f32 %v4949_v5, %v4773_v61  ;;  %v6003_v2 = vadd.f32 %v5923_v32, %v11152_v50  ;;  %v3603_v13 = vrot.slane %v11219_v51, 2 }
 0x4c7   : > { %v5398_v37 = vsel %vm5260_vm5, %v5396_v48, %v5397_v12  ;;  %v11241_v62 = vadd.f32 %v5397_v12, %v5223_v23  ;;  %v6084_v36 = vadd.f32 %v6004_v34, %v11190_v24  ;;  %v4052_v18 = vrot.slane %v11219_v51, 3 }
 0x4c8   : > { %v11245_v38 = vadd.f32 %v5398_v37, %v5222_v21  ;;  %v6083_v59 = vadd.f32 %v6003_v2, %v11197_v41  ;;  %v2725_v52 = vadd.f32 %v2597_v53, %v13018_v35  ;;  %v4501_v63 = vrot.slane %v11219_v51, 4  ;;  %v13019_v53 = vld [vmem:[#allocation107_spill] sm:$0xff]  ;;  %v2377_v37 = vpop.permute.xlu1 %2376 }
 0x4c9   : > { %v6164_v57 = vadd.f32 %v6084_v36, %v11241_v62  ;;  %v3155_v40 = vrot.slane %v11231_v26, 1  ;;  %v3604_v44 = vrot.slane %v11231_v26, 2  ;;  %v4950_v58 = vrot.slane %v11219_v51, 5 }
 0x4ca   : > { %v5399_v25 = vrot.slane %v11219_v51, 6  ;;  %v6163_v30 = vadd.f32 %v6083_v59, %v11245_v38  ;;  %v5765_v49 = vadd.f32 %v11079_v42, %v11042_v10  ;;  %v4053_v33 = vrot.slane %v11231_v26, 3 }
 0x4cb   : > { %v6244_v27 = vmul.f32 0.020408163, %v6164_v57  ;;  %v3156_v19 = vsel %vm3015_vm0, %v3154_v6, %v3155_v40  ;;  %v3429_v1 = vadd.f32 %v3155_v40, %v11231_v26  ;;  %v11261_v39 = vmax.f32 %v2725_v52, 0.0  ;;  %v2381_v40 = vpop.permute.xlu0 %2380 }
 0x4cc   : > { %v6243_v54 = vmul.f32 0.020408163, %v6163_v30  ;;  %v3428_v17 = vadd.f32 %v3156_v19, %v11219_v51  ;;  %v5766_v56 = vadd.f32 %v11081_v8, %v11044_v31  ;;  %v3605_v55 = vsel %vm3464_vm1, %v3603_v13, %v3604_v44 }
 0x4cd   : > { %6324 = vst [vmem:[%s9523_s26 + $0x1b8] sm:$0x3] %v6244_v27  ;;  %v3878_v10 = vadd.f32 %v3604_v44, %v3429_v1  ;;  %v4502_v45 = vrot.slane %v11231_v26, 4  ;;  %v5767_v9 = vadd.f32 %v11110_v20, %v11079_v42  ;;  %v5768_v47 = vadd.f32 %v11106_v7, %v11081_v8 }
 0x4ce   : > { %6323 = vst [vmem:[%s9523_s26 + $0x1b0] sm:$0xff] %v6243_v54  ;;  %v3877_v12 = vadd.f32 %v3605_v55, %v3428_v17  ;;  %v5845_v51 = vadd.f32 %v5765_v49, %v11110_v20  ;;  %v5846_v46 = vadd.f32 %v5766_v56, %v11106_v7  ;;  %v4054_v31 = vsel %vm3913_vm2, %v4052_v18, %v4053_v33  ;;  %v13020_v49 = vld [vmem:[#allocation112_spill] sm:$0xff] }
 0x4cf   : > { %v4327_v43 = vadd.f32 %v4053_v33, %v3878_v10  ;;  %v4951_v22 = vrot.slane %v11231_v26, 5  ;;  %v2598_v60 = vmul.f32 %v8787_v16, %v2369_v29  ;;  %v3157_v48 = vrot.slane %v11261_v39, 1 }
 0x4d0   : > { %v4326_v42 = vadd.f32 %v4054_v31, %v3877_v12  ;;  %v5400_v61 = vrot.slane %v11231_v26, 6  ;;  %v5847_v32 = vadd.f32 %v5767_v9, %v11152_v50  ;;  %v4503_v8 = vsel %vm4362_vm3, %v4501_v63, %v4502_v45  ;;  %v2385_v9 = vpop.permute.xlu1 %2384 }
 0x4d1   : > { %v4776_v20 = vadd.f32 %v4502_v45, %v4327_v43  ;;  %v5926_v7 = vadd.f32 %v5846_v46, %v11149_v15  ;;  %v2726_v5 = vadd.f32 %v2598_v60, %v13019_v53  ;;  %v3606_v23 = vrot.slane %v11261_v39, 2 }
 0x4d2   : > { %v4775_v34 = vadd.f32 %v4503_v8, %v4326_v42  ;;  %v5925_v0 = vadd.f32 %v5845_v51, %v11152_v50  ;;  %v2599_v6 = vmul.f32 %v8787_v16, %v2373_v28  ;;  %v4952_v21 = vsel %vm4811_vm4, %v4950_v58, %v4951_v22  ;;  %v2389_v28 = vpop.permute.xlu0 %2388  ;;  %v13021_v42 = vld [vmem:[#allocation111_spill] sm:$0xff]  ;;  %v13022_v8 = vld [vmem:[#allocation116_spill] sm:$0xff] }
 0x4d3   : > { %v5225_v2 = vadd.f32 %v4951_v22, %v4776_v20  ;;  %v6006_v26 = vadd.f32 %v5926_v7, %v11190_v24  ;;  %v11290_v13 = vmax.f32 %v2726_v5, 0.0  ;;  %v4055_v36 = vrot.slane %v11261_v39, 3 }
 0x4d4   : > { %v4504_v18 = vrot.slane %v11261_v39, 4  ;;  %v5224_v59 = vadd.f32 %v4952_v21, %v4775_v34  ;;  %v6005_v35 = vadd.f32 %v5925_v0, %v11197_v41  ;;  %v4953_v52 = vrot.slane %v11261_v39, 5 }
 0x4d5   : > { %v5401_v50 = vsel %vm5260_vm5, %v5399_v25, %v5400_v61  ;;  %v5674_v63 = vadd.f32 %v5400_v61, %v5225_v2  ;;  %v6086_v57 = vadd.f32 %v6006_v26, %v11241_v62  ;;  %v5402_v44 = vrot.slane %v11261_v39, 6 }
 0x4d6   : > { %v5673_v58 = vadd.f32 %v5401_v50, %v5224_v59  ;;  %v6085_v30 = vadd.f32 %v6005_v35, %v11245_v38  ;;  %v2727_v27 = vadd.f32 %v2599_v6, %v13020_v49  ;;  %v5848_v19 = vadd.f32 %v5768_v47, %v11149_v15 }
 0x4d7   : > { %v6166_v1 = vadd.f32 %v6086_v57, %v5674_v63  ;;  %v3158_v33 = vrot.slane %v11290_v13, 1  ;;  %v3607_v54 = vrot.slane %v11290_v13, 2  ;;  %v5927_v25 = vadd.f32 %v5847_v32, %v11197_v41 }
 0x4d8   : > { %v6165_v17 = vadd.f32 %v6085_v30, %v5673_v58  ;;  %v2601_v56 = vmul.f32 %v8787_v16, %v2381_v40  ;;  %v2600_v29 = vmul.f32 %v8787_v16, %v2377_v37  ;;  %v4056_v15 = vrot.slane %v11290_v13, 3  ;;  %v13023_v37 = vld [vmem:[#allocation115_spill] sm:$0xff] }
 0x4d9   : > { %v6246_v55 = vmul.f32 0.020408163, %v6166_v1  ;;  %v3159_v10 = vsel %vm3015_vm0, %v3157_v48, %v3158_v33  ;;  %v3431_v45 = vadd.f32 %v3158_v33, %v11290_v13  ;;  %v5928_v12 = vadd.f32 %v5848_v19, %v11190_v24 }
 0x4da   : > { %v6245_v47 = vmul.f32 0.020408163, %v6165_v17  ;;  %v11311_v51 = vmax.f32 %v2727_v27, 0.0  ;;  %v3430_v41 = vadd.f32 %v3159_v10, %v11261_v39  ;;  %v6007_v46 = vadd.f32 %v5927_v25, %v11245_v38  ;;  %v2397_v17 = vpop.permute.xlu0 %2396 }
 0x4db   : > { %6326 = vst [vmem:[%s9523_s26 + $0x1c8] sm:$0x3] %v6246_v55  ;;  %v3608_v31 = vsel %vm3464_vm1, %v3606_v23, %v3607_v54  ;;  %v3880_v43 = vadd.f32 %v3607_v54, %v3431_v45  ;;  %v4505_v22 = vrot.slane %v11290_v13, 4  ;;  %v6008_v60 = vadd.f32 %v5928_v12, %v11241_v62 }
 0x4dc   : > { %6325 = vst [vmem:[%s9523_s26 + $0x1c0] sm:$0xff] %v6245_v47  ;;  %v3879_v48 = vadd.f32 %v3608_v31, %v3430_v41  ;;  %v2728_v24 = vadd.f32 %v2600_v29, %v13021_v42  ;;  %v2602_v61 = vmul.f32 %v8787_v16, %v2385_v9  ;;  %v4057_v32 = vsel %vm3913_vm2, %v4055_v36, %v4056_v15 }
 0x4dd   : > { %v4329_v39 = vadd.f32 %v4056_v15, %v3880_v43  ;;  %v4954_v38 = vrot.slane %v11290_v13, 5  ;;  %v2729_v20 = vadd.f32 %v2601_v56, %v13022_v8  ;;  %v3160_v7 = vrot.slane %v11311_v51, 1  ;;  %v13024_v15 = vld [vmem:[#allocation120_spill] sm:$0xff] }
 0x4de   : > { %v3609_v53 = vrot.slane %v11311_v51, 2  ;;  %v4328_v5 = vadd.f32 %v4057_v32, %v3879_v48  ;;  %v2603_v62 = vmul.f32 %v8787_v16, %v2389_v28  ;;  %v4506_v23 = vsel %vm4362_vm3, %v4504_v18, %v4505_v22 }
 0x4df   : > { %v4778_v34 = vadd.f32 %v4505_v22, %v4329_v39  ;;  %v5403_v0 = vrot.slane %v11290_v13, 6  ;;  %v11330_v6 = vmax.f32 %v2728_v24, 0.0  ;;  %v4058_v21 = vrot.slane %v11311_v51, 3 }
 0x4e0   : > { %v4507_v2 = vrot.slane %v11311_v51, 4  ;;  %v4777_v26 = vadd.f32 %v4506_v23, %v4328_v5  ;;  %v2730_v36 = vadd.f32 %v2602_v61, %v13023_v37  ;;  %v4955_v59 = vsel %vm4811_vm4, %v4953_v52, %v4954_v38 }
 0x4e1   : > { %v5227_v35 = vadd.f32 %v4954_v38, %v4778_v34  ;;  %v3161_v50 = vrot.slane %v11330_v6, 1  ;;  %v3610_v57 = vrot.slane %v11330_v6, 2  ;;  %v6088_v18 = vadd.f32 %v6008_v60, %v5674_v63  ;;  %v2405_v38 = vpop.permute.xlu0 %2404 }
 0x4e2   : > { %v4956_v40 = vrot.slane %v11311_v51, 5  ;;  %v5226_v13 = vadd.f32 %v4955_v59, %v4777_v26  ;;  %v11339_v30 = vmax.f32 %v2729_v20, 0.0  ;;  %v5404_v49 = vsel %vm5260_vm5, %v5402_v44, %v5403_v0 }
 0x4e3   : > { %v5676_v27 = vadd.f32 %v5403_v0, %v5227_v35  ;;  %v3162_v19 = vsel %vm3015_vm0, %v3160_v7, %v3161_v50  ;;  %v3433_v1 = vadd.f32 %v3161_v50, %v11330_v6  ;;  %v6087_v33 = vadd.f32 %v6007_v46, %v5673_v58  ;;  %v2393_v46 = vpop.permute.xlu1 %2392 }
 0x4e4   : > { %v5675_v52 = vadd.f32 %v5404_v49, %v5226_v13  ;;  %v3432_v54 = vadd.f32 %v3162_v19, %v11311_v51  ;;  %v4059_v25 = vrot.slane %v11330_v6, 3  ;;  %v3611_v56 = vsel %vm3464_vm1, %v3609_v53, %v3610_v57 }
 0x4e5   : > { %v6168_v63 = vadd.f32 %v6088_v18, %v5676_v27  ;;  %v3882_v29 = vadd.f32 %v3610_v57, %v3433_v1  ;;  %v11347_v55 = vmax.f32 %v2730_v36, 0.0  ;;  %v5405_v44 = vrot.slane %v11311_v51, 6  ;;  %v13026_v27 = vld [vmem:[#allocation119_spill] sm:$0xff] }
 0x4e6   : > { %v6167_v10 = vadd.f32 %v6087_v33, %v5675_v52  ;;  %v3881_v45 = vadd.f32 %v3611_v56, %v3432_v54  ;;  %v2731_v58 = vadd.f32 %v2603_v62, %v13024_v15  ;;  %v3163_v12 = vrot.slane %v11339_v30, 1  ;;  %v2413_v33 = vpop.permute.xlu0 %2412 }
 0x4e7   : > { %v6248_v9 = vmul.f32 0.020408163, %v6168_v63  ;;  %v3612_v47 = vrot.slane %v11339_v30, 2  ;;  %v4061_v41 = vrot.slane %v11339_v30, 3  ;;  %v4060_v43 = vsel %vm3913_vm2, %v4058_v21, %v4059_v25  ;;  %v2401_v37 = vpop.permute.xlu1 %2400 }
 0x4e8   : > { %v6247_v31 = vmul.f32 0.020408163, %v6167_v10  ;;  %v4508_v22 = vrot.slane %v11330_v6, 4  ;;  %v4957_v51 = vrot.slane %v11330_v6, 5  ;;  %v4330_v28 = vadd.f32 %v4060_v43, %v3881_v45 }
 0x4e9   : > { %6328 = vst [vmem:[%s9523_s26 + $0x1d8] sm:$0x3] %v6248_v9  ;;  %v4331_v60 = vadd.f32 %v4059_v25, %v3882_v29  ;;  %v3164_v48 = vrot.slane %v11347_v55, 1  ;;  %v3613_v42 = vrot.slane %v11347_v55, 2  ;;  %v4510_v24 = vrot.slane %v11339_v30, 4 }
 0x4ea   : > { %6327 = vst [vmem:[%s9523_s26 + $0x1d0] sm:$0xff] %v6247_v31  ;;  %v4959_v61 = vrot.slane %v11339_v30, 5  ;;  %v5406_v32 = vrot.slane %v11330_v6, 6  ;;  %v11364_v39 = vmax.f32 %v2731_v58, 0.0  ;;  %v4062_v7 = vrot.slane %v11347_v55, 3 }
 0x4eb   : > { %v3165_v8 = vsel %vm3015_vm0, %v3163_v12, %v3164_v48  ;;  %v3435_v20 = vadd.f32 %v3164_v48, %v11347_v55  ;;  %v2605_v53 = vmul.f32 %v8787_v16, %v2397_v17  ;;  %v5408_v5 = vrot.slane %v11339_v30, 6  ;;  %v2409_v9 = vpop.permute.xlu1 %2408  ;;  %v13028_v48 = vld [vmem:[#allocation128_spill] sm:$0xff] }
 0x4ec   : > { %v4509_v62 = vsel %vm4362_vm3, %v4507_v2, %v4508_v22  ;;  %v4958_v23 = vsel %vm4811_vm4, %v4956_v40, %v4957_v51  ;;  %v3434_v34 = vadd.f32 %v3165_v8, %v11339_v30  ;;  %v4780_v6 = vadd.f32 %v4508_v22, %v4331_v60  ;;  %v13025_v40 = vld [vmem:[#allocation124_spill] sm:$0xff] }
 0x4ed   : > { %v4779_v0 = vadd.f32 %v4509_v62, %v4330_v28  ;;  %v3614_v21 = vsel %vm3464_vm1, %v3612_v47, %v3613_v42  ;;  %v3884_v26 = vadd.f32 %v3613_v42, %v3435_v20  ;;  %v5407_v36 = vsel %vm5260_vm5, %v5405_v44, %v5406_v32 }
 0x4ee   : > { %v3166_v59 = vrot.slane %v11364_v39, 1  ;;  %v3883_v35 = vadd.f32 %v3614_v21, %v3434_v34  ;;  %v2604_v50 = vmul.f32 %v8787_v16, %v2393_v46  ;;  %v4063_v57 = vsel %vm3913_vm2, %v4061_v41, %v4062_v7  ;;  %v13027_v41 = vld [vmem:[#allocation123_spill] sm:$0xff] }
 0x4ef   : > { %v4333_v2 = vadd.f32 %v4062_v7, %v3884_v26  ;;  %v4511_v18 = vrot.slane %v11347_v55, 4  ;;  %v2733_v13 = vadd.f32 %v2605_v53, %v13025_v40  ;;  %v3615_v30 = vrot.slane %v11364_v39, 2  ;;  %v13029_v7 = vld [vmem:[#allocation127_spill] sm:$0xff] }
 0x4f0   : > { %v4332_v49 = vadd.f32 %v4063_v57, %v3883_v35  ;;  %v2732_v19 = vadd.f32 %v2604_v50, %v13026_v27  ;;  %v2606_v1 = vmul.f32 %v8787_v16, %v2401_v37  ;;  %v5228_v52 = vadd.f32 %v4958_v23, %v4779_v0 }
 0x4f1   : > { %v5229_v54 = vadd.f32 %v4957_v51, %v4780_v6  ;;  %v4960_v25 = vrot.slane %v11347_v55, 5  ;;  %v5409_v17 = vrot.slane %v11347_v55, 6  ;;  %v4064_v63 = vrot.slane %v11364_v39, 3 }
 0x4f2   : > { %v4513_v56 = vrot.slane %v11364_v39, 4  ;;  %v4962_v29 = vrot.slane %v11364_v39, 5  ;;  %v2607_v44 = vmul.f32 %v8787_v16, %v2405_v38  ;;  %v4512_v10 = vsel %vm4362_vm3, %v4510_v24, %v4511_v18 }
 0x4f3   : > { %v4782_v45 = vadd.f32 %v4511_v18, %v4333_v2  ;;  %v11391_v15 = vmax.f32 %v2733_v13, 0.0  ;;  %v2609_v58 = vmul.f32 %v8787_v16, %v2413_v33  ;;  %v5411_v12 = vrot.slane %v11364_v39, 6  ;;  %v2421_v13 = vpop.permute.xlu0 %2420 }
 0x4f4   : > { %v4781_v47 = vadd.f32 %v4512_v10, %v4332_v49  ;;  %v11395_v55 = vmax.f32 %v2732_v19, 0.0  ;;  %v2734_v46 = vadd.f32 %v2606_v1, %v13027_v41  ;;  %v5677_v31 = vadd.f32 %v5407_v36, %v5228_v52  ;;  %v13030_v19 = vld [vmem:[#allocation122_spill] sm:$0xff] }
 0x4f5   : > { %v5678_v43 = vadd.f32 %v5406_v32, %v5229_v54  ;;  %v4961_v22 = vsel %vm4811_vm4, %v4959_v61, %v4960_v25  ;;  %v5410_v51 = vsel %vm5260_vm5, %v5408_v5, %v5409_v17  ;;  %v2735_v42 = vadd.f32 %v2607_v44, %v13028_v48 }
 0x4f6   : > { %v3167_v28 = vrot.slane %v11395_v55, 1  ;;  %v3616_v60 = vrot.slane %v11395_v55, 2  ;;  %v2608_v24 = vmul.f32 %v8787_v16, %v2409_v9  ;;  %v5231_v38 = vadd.f32 %v4960_v25, %v4782_v45 }
 0x4f7   : > { %v3169_v8 = vrot.slane %v11391_v15, 1  ;;  %v3618_v20 = vrot.slane %v11391_v15, 2  ;;  %v2737_v53 = vadd.f32 %v2609_v58, %v13029_v7  ;;  %v5230_v32 = vadd.f32 %v4961_v22, %v4781_v47 }
 0x4f8   : > { %v3168_v61 = vsel %vm3015_vm0, %v3166_v59, %v3167_v28  ;;  %v3437_v5 = vadd.f32 %v3167_v28, %v11395_v55  ;;  %v11409_v62 = vmax.f32 %v2734_v46, 0.0  ;;  %v4067_v23 = vrot.slane %v11391_v15, 3 }
 0x4f9   : > { %v4516_v34 = vrot.slane %v11391_v15, 4  ;;  %v3436_v0 = vadd.f32 %v3168_v61, %v11364_v39  ;;  %v4065_v6 = vrot.slane %v11395_v55, 3  ;;  %v4965_v21 = vrot.slane %v11391_v15, 5 }
 0x4fa   : > { %v5414_v26 = vrot.slane %v11391_v15, 6  ;;  %v3617_v37 = vsel %vm3464_vm1, %v3615_v30, %v3616_v60  ;;  %v3886_v36 = vadd.f32 %v3616_v60, %v3437_v5  ;;  %v11418_v59 = vadd.f32 %v5409_v17, %v5231_v38 }
 0x4fb   : > { %v3885_v35 = vadd.f32 %v3617_v37, %v3436_v0  ;;  %v11420_v50 = vmax.f32 %v2735_v42, 0.0  ;;  %v11422_v57 = vmax.f32 %v2737_v53, 0.0  ;;  %v11424_v2 = vadd.f32 %v5410_v51, %v5230_v32 }
 0x4fc   : > { %v4335_v18 = vadd.f32 %v4065_v6, %v3886_v36  ;;  %v3170_v39 = vrot.slane %v11409_v62, 1  ;;  %v3619_v40 = vrot.slane %v11409_v62, 2  ;;  %v4066_v49 = vsel %vm3913_vm2, %v4064_v63, %v4065_v6 }
 0x4fd   : > { %v4514_v30 = vrot.slane %v11395_v55, 4  ;;  %v4963_v27 = vrot.slane %v11395_v55, 5  ;;  %v2736_v1 = vadd.f32 %v2608_v24, %v13030_v19  ;;  %v4334_v33 = vadd.f32 %v4066_v49, %v3885_v35 }
 0x4fe   : > { %v3171_v52 = vsel %vm3015_vm0, %v3169_v8, %v3170_v39  ;;  %v3439_v54 = vadd.f32 %v3170_v39, %v11409_v62  ;;  %v4068_v25 = vrot.slane %v11409_v62, 3  ;;  %v5770_v17 = vadd.f32 %v11418_v59, %v5678_v43 }
 0x4ff   : > { %v5412_v44 = vrot.slane %v11395_v55, 6  ;;  %v3438_v10 = vadd.f32 %v3171_v52, %v11391_v15  ;;  %v2611_v63 = vmul.f32 %v8787_v16, %v2421_v13  ;;  %v11440_v45 = vadd.f32 %v11424_v2, %v5677_v31 }
 0x500   : > { %v4784_v58 = vadd.f32 %v4514_v30, %v4335_v18  ;;  %v3620_v9 = vsel %vm3464_vm1, %v3618_v20, %v3619_v40  ;;  %v3888_v47 = vadd.f32 %v3619_v40, %v3439_v54  ;;  %v4515_v41 = vsel %vm4362_vm3, %v4513_v56, %v4514_v30 }
 0x501   : > { %v4964_v46 = vsel %vm4811_vm4, %v4962_v29, %v4963_v27  ;;  %v3887_v22 = vadd.f32 %v3620_v9, %v3438_v10  ;;  %v4517_v43 = vrot.slane %v11409_v62, 4  ;;  %v4783_v51 = vadd.f32 %v4515_v41, %v4334_v33 }
 0x502   : > { %v4069_v55 = vsel %vm3913_vm2, %v4067_v23, %v4068_v25  ;;  %v4337_v15 = vadd.f32 %v4068_v25, %v3888_v47  ;;  %v4966_v28 = vrot.slane %v11409_v62, 5  ;;  %v5413_v31 = vsel %vm5260_vm5, %v5411_v12, %v5412_v44  ;;  %v2417_v23 = vpop.permute.xlu1 %2416 }
 0x503   : > { %v3172_v60 = vrot.slane %v11420_v50, 1  ;;  %v3621_v48 = vrot.slane %v11420_v50, 2  ;;  %v4336_v42 = vadd.f32 %v4069_v55, %v3887_v22  ;;  %v5233_v24 = vadd.f32 %v4963_v27, %v4784_v58  ;;  %v13031_v58 = vld [vmem:[#allocation152_spill] sm:$0xff]  ;;  %v13032_v22 = vld [vmem:[#allocation131_spill] sm:$0xff] }
 0x504   : > { %v4070_v56 = vrot.slane %v11420_v50, 3  ;;  %v4786_v29 = vadd.f32 %v4517_v43, %v4337_v15  ;;  %v5415_v38 = vrot.slane %v11409_v62, 6  ;;  %v4519_v8 = vrot.slane %v11420_v50, 4 }
 0x505   : > { %v4968_v20 = vrot.slane %v11420_v50, 5  ;;  %v4518_v7 = vsel %vm4362_vm3, %v4516_v34, %v4517_v43  ;;  %v11456_v53 = vmax.f32 %v2736_v1, 0.0  ;;  %v5232_v12 = vadd.f32 %v4964_v46, %v4783_v51  ;;  %v2429_v1 = vpop.permute.xlu0 %2428 }
 0x506   : > { %v5417_v32 = vrot.slane %v11420_v50, 6  ;;  %v4785_v61 = vadd.f32 %v4518_v7, %v4336_v42  ;;  %v4967_v5 = vsel %vm4811_vm4, %v4965_v21, %v4966_v28  ;;  %v3175_v0 = vrot.slane %v11422_v57, 1 }
 0x507   : > { %v3624_v6 = vrot.slane %v11422_v57, 2  ;;  %v3173_v62 = vrot.slane %v11456_v53, 1  ;;  %v3622_v37 = vrot.slane %v11456_v53, 2  ;;  %v5682_v36 = vadd.f32 %v5412_v44, %v5233_v24 }
 0x508   : > { %v5235_v35 = vadd.f32 %v4966_v28, %v4786_v29  ;;  %v5416_v34 = vsel %vm5260_vm5, %v5414_v26, %v5415_v38  ;;  %v4073_v18 = vrot.slane %v11422_v57, 3  ;;  %v4071_v21 = vrot.slane %v11456_v53, 3 }
 0x509   : > { %v3174_v39 = vsel %vm3015_vm0, %v3172_v60, %v3173_v62  ;;  %v3441_v40 = vadd.f32 %v3173_v62, %v11456_v53  ;;  %v2610_v13 = vmul.f32 %v8787_v16, %v2417_v23  ;;  %v5681_v49 = vadd.f32 %v5413_v31, %v5232_v12 }
 0x50a   : > { %v5234_v30 = vadd.f32 %v4967_v5, %v4785_v61  ;;  %v4522_v27 = vrot.slane %v11422_v57, 4  ;;  %v3440_v19 = vadd.f32 %v3174_v39, %v11420_v50  ;;  %v4971_v33 = vrot.slane %v11422_v57, 5  ;;  %v13033_v5 = vld [vmem:[#allocation126_spill] sm:$0xff] }
 0x50b   : > { %v3623_v26 = vsel %vm3464_vm1, %v3621_v48, %v3622_v37  ;;  %v3890_v52 = vadd.f32 %v3622_v37, %v3441_v40  ;;  %v4520_v54 = vrot.slane %v11456_v53, 4  ;;  %v5772_v25 = vadd.f32 %v5682_v36, %v11418_v59 }
 0x50c   : > { %v5850_v44 = vadd.f32 %v5770_v17, %v5682_v36  ;;  %v3889_v10 = vadd.f32 %v3623_v26, %v3440_v19  ;;  %v2739_v9 = vadd.f32 %v2611_v63, %v13031_v58  ;;  %v5684_v47 = vadd.f32 %v5415_v38, %v5235_v35  ;;  %v2425_v63 = vpop.permute.xlu1 %2424 }
 0x50d   : > { %v4072_v41 = vsel %vm3913_vm2, %v4070_v56, %v4071_v21  ;;  %v4339_v46 = vadd.f32 %v4071_v21, %v3890_v52  ;;  %v2738_v50 = vadd.f32 %v2610_v13, %v13032_v22  ;;  %v5683_v43 = vadd.f32 %v5416_v34, %v5234_v30  ;;  %v2437_v56 = vpop.permute.xlu0 %2436 }
 0x50e   : > { %v5420_v51 = vrot.slane %v11422_v57, 6  ;;  %v4338_v55 = vadd.f32 %v4072_v41, %v3889_v10  ;;  %v2613_v15 = vmul.f32 %v8787_v16, %v2429_v1  ;;  %v5771_v28 = vadd.f32 %v5681_v49, %v11424_v2  ;;  %v13035_v41 = vld [vmem:[#allocation164_spill] sm:$0xff] }
 0x50f   : > { %v4521_v59 = vsel %vm4362_vm3, %v4519_v8, %v4520_v54  ;;  %v4788_v17 = vadd.f32 %v4520_v54, %v4339_v46  ;;  %v4969_v31 = vrot.slane %v11456_v53, 5  ;;  %v5849_v60 = vadd.f32 %v11440_v45, %v5681_v49 }
 0x510   : > { %v4787_v48 = vadd.f32 %v4521_v59, %v4338_v55  ;;  %v5418_v42 = vrot.slane %v11456_v53, 6  ;;  %v11486_v24 = vmax.f32 %v2739_v9, 0.0  ;;  %v5774_v29 = vadd.f32 %v5684_v47, %v5682_v36 }
 0x511   : > { %v5852_v38 = vadd.f32 %v5772_v25, %v5684_v47  ;;  %v5930_v7 = vadd.f32 %v5850_v44, %v5684_v47  ;;  %v11488_v12 = vmax.f32 %v2738_v50, 0.0  ;;  %v5773_v2 = vadd.f32 %v5683_v43, %v5681_v49  ;;  %v2445_v26 = vpop.permute.xlu0 %2444  ;;  %v13034_v44 = vld [vmem:[#allocation121_spill] sm:$0xff] }
 0x512   : > { %v5851_v61 = vadd.f32 %v5771_v28, %v5683_v43  ;;  %v5237_v8 = vadd.f32 %v4969_v31, %v4788_v17  ;;  %v2741_v23 = vadd.f32 %v2613_v15, %v13033_v5  ;;  %v5929_v62 = vadd.f32 %v5849_v60, %v5683_v43 }
 0x513   : > { %v4970_v37 = vsel %vm4811_vm4, %v4968_v20, %v4969_v31  ;;  %v3176_v45 = vrot.slane %v11488_v12, 1  ;;  %v2612_v53 = vmul.f32 %v8787_v16, %v2425_v63  ;;  %v5419_v34 = vsel %vm5260_vm5, %v5417_v32, %v5418_v42  ;;  %v2433_v20 = vpop.permute.xlu1 %2432 }
 0x514   : > { %v5236_v35 = vadd.f32 %v4970_v37, %v4787_v48  ;;  %v3178_v36 = vrot.slane %v11486_v24, 1  ;;  %v2615_v39 = vmul.f32 %v8787_v16, %v2437_v56  ;;  %v3627_v40 = vrot.slane %v11486_v24, 2 }
 0x515   : > { %v4076_v21 = vrot.slane %v11486_v24, 3  ;;  %v4525_v13 = vrot.slane %v11486_v24, 4  ;;  %v3625_v49 = vrot.slane %v11488_v12, 2  ;;  %v11501_v30 = vadd.f32 %v5418_v42, %v5237_v8 }
 0x516   : > { %v4974_v19 = vrot.slane %v11486_v24, 5  ;;  %v5423_v1 = vrot.slane %v11486_v24, 6  ;;  %v11505_v32 = vmax.f32 %v2741_v23, 0.0  ;;  %v3177_v52 = vsel %vm3015_vm0, %v3175_v0, %v3176_v45 }
 0x517   : > { %v3443_v54 = vadd.f32 %v3176_v45, %v11488_v12  ;;  %v4074_v25 = vrot.slane %v11488_v12, 3  ;;  %v2740_v10 = vadd.f32 %v2612_v53, %v13034_v44  ;;  %v11513_v58 = vadd.f32 %v5419_v34, %v5236_v35  ;;  %v13036_v44 = vld [vmem:[#allocation125_spill] sm:$0xff] }
 0x518   : > { %v3442_v9 = vadd.f32 %v3177_v52, %v11422_v57  ;;  %v2743_v46 = vadd.f32 %v2615_v39, %v13035_v41  ;;  %v2614_v22 = vmul.f32 %v8787_v16, %v2433_v20  ;;  %v3626_v50 = vsel %vm3464_vm1, %v3624_v6, %v3625_v49 }
 0x519   : > { %v3892_v55 = vadd.f32 %v3625_v49, %v3443_v54  ;;  %v4523_v0 = vrot.slane %v11488_v12, 4  ;;  %v2617_v15 = vmul.f32 %v8787_v16, %v2445_v26  ;;  %v5776_v28 = vadd.f32 %v11501_v30, %v5684_v47  ;;  %v2441_v26 = vpop.permute.xlu1 %2440 }
 0x51a   : > { %v3891_v59 = vadd.f32 %v3626_v50, %v3442_v9  ;;  %v4972_v17 = vrot.slane %v11488_v12, 5  ;;  %v5421_v31 = vrot.slane %v11488_v12, 6  ;;  %v5854_v63 = vadd.f32 %v5774_v29, %v11501_v30  ;;  %v2453_v9 = vpop.permute.xlu0 %2452 }
 0x51b   : > { %v4075_v60 = vsel %vm3913_vm2, %v4073_v18, %v4074_v25  ;;  %v4341_v48 = vadd.f32 %v4074_v25, %v3892_v55  ;;  %v11530_v6 = vmax.f32 %v2740_v10, 0.0  ;;  %v5775_v42 = vadd.f32 %v11513_v58, %v5683_v43 }
 0x51c   : > { %v5932_v56 = vadd.f32 %v5852_v38, %v11501_v30  ;;  %v11535_v47 = vadd.f32 %v5930_v7, %v11501_v30  ;;  %v4340_v8 = vadd.f32 %v4075_v60, %v3891_v59  ;;  %v4524_v12 = vsel %vm4362_vm3, %v4522_v27, %v4523_v0 }
 0x51d   : > { %v4790_v29 = vadd.f32 %v4523_v0, %v4341_v48  ;;  %v3179_v5 = vrot.slane %v11530_v6, 1  ;;  %v3628_v18 = vrot.slane %v11530_v6, 2  ;;  %v5853_v23 = vadd.f32 %v5773_v2, %v11513_v58 }
 0x51e   : > { %v5931_v37 = vadd.f32 %v5851_v61, %v11513_v58  ;;  %v6009_v43 = vadd.f32 %v5929_v62, %v11513_v58  ;;  %v4789_v38 = vadd.f32 %v4524_v12, %v4340_v8  ;;  %v4973_v7 = vsel %vm4811_vm4, %v4971_v33, %v4972_v17 }
 0x51f   : > { %v5422_v27 = vsel %vm5260_vm5, %v5420_v51, %v5421_v31  ;;  %v3180_v45 = vsel %vm3015_vm0, %v3178_v36, %v3179_v5  ;;  %v3445_v53 = vadd.f32 %v3179_v5, %v11530_v6  ;;  %v5239_v35 = vadd.f32 %v4972_v17, %v4790_v29  ;;  %v13037_v17 = vld [vmem:[#allocation132_spill] sm:$0xff] }
 0x520   : > { %v3181_v2 = vrot.slane %v11505_v32, 1  ;;  %v3444_v61 = vadd.f32 %v3180_v45, %v11486_v24  ;;  %v4077_v62 = vrot.slane %v11530_v6, 3  ;;  %v3630_v34 = vrot.slane %v11505_v32, 2 }
 0x521   : > { %v4079_v39 = vrot.slane %v11505_v32, 3  ;;  %v3629_v33 = vsel %vm3464_vm1, %v3627_v40, %v3628_v18  ;;  %v3894_v57 = vadd.f32 %v3628_v18, %v3445_v53  ;;  %v5238_v49 = vadd.f32 %v4973_v7, %v4789_v38 }
 0x522   : > { %v3893_v51 = vadd.f32 %v3629_v33, %v3444_v61  ;;  %v4526_v36 = vrot.slane %v11530_v6, 4  ;;  %v4975_v20 = vrot.slane %v11530_v6, 5  ;;  %v4528_v52 = vrot.slane %v11505_v32, 4 }
 0x523   : > { %v4977_v54 = vrot.slane %v11505_v32, 5  ;;  %v5424_v25 = vrot.slane %v11530_v6, 6  ;;  %v2742_v10 = vadd.f32 %v2614_v22, %v13036_v44  ;;  %v11565_v41 = vadd.f32 %v5421_v31, %v5239_v35 }
 0x524   : > { %v5426_v40 = vrot.slane %v11505_v32, 6  ;;  %v4078_v50 = vsel %vm3913_vm2, %v4076_v21, %v4077_v62  ;;  %v11571_v55 = vmax.f32 %v2743_v46, 0.0  ;;  %v4343_v59 = vadd.f32 %v4077_v62, %v3894_v57 }
 0x525   : > { %v4342_v0 = vadd.f32 %v4078_v50, %v3893_v51  ;;  %v2745_v60 = vadd.f32 %v2617_v15, %v13037_v17  ;;  %v2616_v48 = vmul.f32 %v8787_v16, %v2441_v26  ;;  %v11575_v6 = vadd.f32 %v5422_v27, %v5238_v49  ;;  %v2461_v50 = vpop.permute.xlu0 %2460 }
 0x526   : > { %v4527_v22 = vsel %vm4362_vm3, %v4525_v13, %v4526_v36  ;;  %v4976_v31 = vsel %vm4811_vm4, %v4974_v19, %v4975_v20  ;;  %v2619_v21 = vmul.f32 %v8787_v16, %v2453_v9  ;;  %v4792_v8 = vadd.f32 %v4526_v36, %v4343_v59 }
 0x527   : > { %v4791_v46 = vadd.f32 %v4527_v22, %v4342_v0  ;;  %v5425_v15 = vsel %vm5260_vm5, %v5423_v1, %v5424_v25  ;;  %v11587_v12 = vmax.f32 %v2742_v10, 0.0  ;;  %v5778_v29 = vadd.f32 %v11565_v41, %v11501_v30 }
 0x528   : > { %v5856_v5 = vadd.f32 %v5776_v28, %v11565_v41  ;;  %v3184_v13 = vrot.slane %v11571_v55, 1  ;;  %v3633_v18 = vrot.slane %v11571_v55, 2  ;;  %v11595_v19 = vadd.f32 %v5854_v63, %v11565_v41 }
 0x529   : > { %v5240_v38 = vadd.f32 %v4976_v31, %v4791_v46  ;;  %v5241_v7 = vadd.f32 %v4975_v20, %v4792_v8  ;;  %v3182_v24 = vrot.slane %v11587_v12, 1  ;;  %v5777_v1 = vadd.f32 %v11575_v6, %v11513_v58  ;;  %v13039_v46 = vld [vmem:[#allocation154_spill] sm:$0xff] }
 0x52a   : > { %v5855_v27 = vadd.f32 %v5775_v42, %v11575_v6  ;;  %v6012_v30 = vadd.f32 %v5932_v56, %v11565_v41  ;;  %v3631_v28 = vrot.slane %v11587_v12, 2  ;;  %v5933_v61 = vadd.f32 %v5853_v23, %v11575_v6 }
 0x52b   : > { %v11603_v45 = vadd.f32 %v5425_v15, %v5240_v38  ;;  %v11605_v53 = vadd.f32 %v5424_v25, %v5241_v7  ;;  %v3183_v63 = vsel %vm3015_vm0, %v3181_v2, %v3182_v24  ;;  %v3447_v35 = vadd.f32 %v3182_v24, %v11587_v12 }
 0x52c   : > { %v6011_v62 = vadd.f32 %v5931_v37, %v11575_v6  ;;  %v3446_v58 = vadd.f32 %v3183_v63, %v11505_v32  ;;  %v4080_v42 = vrot.slane %v11587_v12, 3  ;;  %v6089_v56 = vadd.f32 %v6009_v43, %v11575_v6  ;;  %v13038_v37 = vld [vmem:[#allocation129_spill] sm:$0xff] }
 0x52d   : > { %v6090_v33 = vadd.f32 %v11535_v47, %v11565_v41  ;;  %v4082_v57 = vrot.slane %v11571_v55, 3  ;;  %v4531_v49 = vrot.slane %v11571_v55, 4  ;;  %v4980_v2 = vrot.slane %v11571_v55, 5  ;;  %v2449_v47 = vpop.permute.xlu1 %2448 }
 0x52e   : > { %v3632_v51 = vsel %vm3464_vm1, %v3630_v34, %v3631_v28  ;;  %v4529_v23 = vrot.slane %v11587_v12, 4  ;;  %v2744_v36 = vadd.f32 %v2616_v48, %v13038_v37  ;;  %v6169_v20 = vadd.f32 %v6089_v56, %v11603_v45 }
 0x52f   : > { %v6170_v26 = vadd.f32 %v6090_v33, %v11605_v53  ;;  %v3895_v43 = vadd.f32 %v3632_v51, %v3446_v58  ;;  %v3896_v25 = vadd.f32 %v3631_v28, %v3447_v35  ;;  %v5429_v44 = vrot.slane %v11571_v55, 6 }
 0x530   : > { %v4081_v10 = vsel %vm3913_vm2, %v4079_v39, %v4080_v42  ;;  %v4978_v34 = vrot.slane %v11587_v12, 5  ;;  %v11629_v9 = vmax.f32 %v2745_v60, 0.0  ;;  %v6249_v0 = vmul.f32 0.020408163, %v6169_v20 }
 0x531   : > { %v6250_v59 = vmul.f32 0.020408163, %v6170_v26  ;;  %v4344_v17 = vadd.f32 %v4081_v10, %v3895_v43  ;;  %v4345_v48 = vadd.f32 %v4080_v42, %v3896_v25  ;;  %v4530_v22 = vsel %vm4362_vm3, %v4528_v52, %v4529_v23 }
 0x532   : > { %v5427_v31 = vrot.slane %v11587_v12, 6  ;;  %v2747_v8 = vadd.f32 %v2619_v21, %v13039_v46  ;;  %v2618_v15 = vmul.f32 %v8787_v16, %v2449_v47  ;;  %6329 = vst [vmem:[%s9523_s26 + $0x1e0] sm:$0xff] %v6249_v0  ;;  %v11639_v38 = vmax.f32 %v2744_v36, 0.0 }
 0x533   : > { %6330 = vst [vmem:[%s9523_s26 + $0x1e8] sm:$0x3] %v6250_v59  ;;  %v4793_v39 = vadd.f32 %v4530_v22, %v4344_v17  ;;  %v4794_v60 = vadd.f32 %v4529_v23, %v4345_v48  ;;  %v2621_v7 = vmul.f32 %v8787_v16, %v2461_v50  ;;  %v11643_v24 = vadd.f32 %v5777_v1, %v11603_v45  ;;  %v2457_v59 = vpop.permute.xlu1 %2456 }
 0x534   : > { %v11646_v28 = vadd.f32 %v5778_v29, %v11605_v53  ;;  %v5935_v52 = vadd.f32 %v5855_v27, %v11603_v45  ;;  %v4979_v21 = vsel %vm4811_vm4, %v4977_v54, %v4978_v34  ;;  %v3185_v35 = vrot.slane %v11639_v38, 1 }
 0x535   : > { %v5242_v12 = vadd.f32 %v4979_v21, %v4793_v39  ;;  %v5243_v63 = vadd.f32 %v4978_v34, %v4794_v60  ;;  %v3634_v58 = vrot.slane %v11639_v38, 2  ;;  %v11655_v42 = vadd.f32 %v5856_v5, %v11605_v53 }
 0x536   : > { %v6013_v1 = vadd.f32 %v5933_v61, %v11603_v45  ;;  %v5428_v29 = vsel %vm5260_vm5, %v5426_v40, %v5427_v31  ;;  %v4083_v27 = vrot.slane %v11639_v38, 3  ;;  %v3186_v33 = vsel %vm3015_vm0, %v3184_v13, %v3185_v35  ;;  %v13040_v13 = vld [vmem:[#allocation153_spill] sm:$0xff] }
 0x537   : > { %v11662_v56 = vadd.f32 %v5428_v29, %v5242_v12  ;;  %v11664_v54 = vadd.f32 %v5427_v31, %v5243_v63  ;;  %v3449_v51 = vadd.f32 %v3185_v35, %v11639_v38  ;;  %v6014_v5 = vadd.f32 %v11595_v19, %v11605_v53  ;;  %v13041_v12 = vld [vmem:[#allocation14_spill] sm:$0xff] }
 0x538   : > { %v6091_v61 = vadd.f32 %v6011_v62, %v11603_v45  ;;  %v6092_v32 = vadd.f32 %v6012_v30, %v11605_v53  ;;  %v3448_v40 = vadd.f32 %v3186_v33, %v11571_v55  ;;  %v3187_v23 = vrot.slane %v11629_v9, 1 }
 0x539   : > { %v3635_v37 = vsel %vm3464_vm1, %v3633_v18, %v3634_v58  ;;  %v4532_v36 = vrot.slane %v11639_v38, 4  ;;  %v2746_v20 = vadd.f32 %v2618_v15, %v13040_v13  ;;  %v3898_v30 = vadd.f32 %v3634_v58, %v3449_v51 }
 0x53a   : > { %v6171_v26 = vadd.f32 %v6091_v61, %v11662_v56  ;;  %v6172_v19 = vadd.f32 %v6092_v32, %v11664_v54  ;;  %v3897_v62 = vadd.f32 %v3635_v37, %v3448_v40  ;;  %v3636_v43 = vrot.slane %v11629_v9, 2 }
 0x53b   : > { %v4085_v25 = vrot.slane %v11629_v9, 3  ;;  %v4084_v47 = vsel %vm3913_vm2, %v4082_v57, %v4083_v27  ;;  %v4981_v18 = vrot.slane %v11639_v38, 5  ;;  %v4347_v0 = vadd.f32 %v4083_v27, %v3898_v30  ;;  %v2469_v27 = vpop.permute.xlu0 %2468 }
 0x53c   : > { %v6251_v10 = vmul.f32 0.020408163, %v6171_v26  ;;  %v6252_v34 = vmul.f32 0.020408163, %v6172_v19  ;;  %v4346_v50 = vadd.f32 %v4084_v47, %v3897_v62  ;;  %v4534_v17 = vrot.slane %v11629_v9, 4 }
 0x53d   : > { %v4983_v48 = vrot.slane %v11629_v9, 5  ;;  %v4533_v22 = vsel %vm4362_vm3, %v4531_v49, %v4532_v36  ;;  %v5430_v31 = vrot.slane %v11639_v38, 6  ;;  %v5432_v57 = vrot.slane %v11629_v9, 6 }
 0x53e   : > { %6331 = vst [vmem:[%s9523_s26 + $0x1f0] sm:$0xff] %v6251_v10  ;;  %6332 = vst [vmem:[%s9523_s26 + $0x1f8] sm:$0x3] %v6252_v34  ;;  %v4795_v46 = vadd.f32 %v4533_v22, %v4346_v50  ;;  %v4796_v15 = vadd.f32 %v4532_v36, %v4347_v0  ;;  %v11696_v39 = vmax.f32 %v2746_v20, 0.0  ;;  %v4982_v60 = vsel %vm4811_vm4, %v4980_v2, %v4981_v18  ;;  %v13042_v36 = vld [vmem:[#allocation13_spill] sm:$0xff] }
 0x53f   : > { %v11701_v21 = vmax.f32 %v2747_v8, 0.0  ;;  %v2749_v63 = vadd.f32 %v2621_v7, %v13041_v12  ;;  %v2620_v49 = vmul.f32 %v8787_v16, %v2457_v59  ;;  %v6093_v33 = vadd.f32 %v6013_v1, %v11662_v56 }
 0x540   : > { %v5244_v35 = vadd.f32 %v4982_v60, %v4795_v46  ;;  %v5245_v38 = vadd.f32 %v4981_v18, %v4796_v15  ;;  %v3188_v58 = vrot.slane %v11696_v39, 1  ;;  %v3637_v29 = vrot.slane %v11696_v39, 2 }
 0x541   : > { %v6094_v51 = vadd.f32 %v6014_v5, %v11664_v54  ;;  %v5431_v2 = vsel %vm5260_vm5, %v5429_v44, %v5430_v31  ;;  %v4086_v8 = vrot.slane %v11696_v39, 3  ;;  %v6015_v37 = vadd.f32 %v5935_v52, %v11662_v56 }
 0x542   : > { %v11713_v7 = vadd.f32 %v5431_v2, %v5244_v35  ;;  %v11715_v61 = vadd.f32 %v5430_v31, %v5245_v38  ;;  %v3189_v32 = vsel %vm3015_vm0, %v3187_v23, %v3188_v58  ;;  %v3451_v40 = vadd.f32 %v3188_v58, %v11696_v39 }
 0x543   : > { %v3450_v1 = vadd.f32 %v3189_v32, %v11629_v9  ;;  %v2748_v5 = vadd.f32 %v2620_v49, %v13042_v36  ;;  %v2623_v55 = vmul.f32 %v8787_v16, %v2469_v27  ;;  %v3638_v20 = vsel %vm3464_vm1, %v3636_v43, %v3637_v29 }
 0x544   : > { %v6173_v44 = vadd.f32 %v6093_v33, %v11713_v7  ;;  %v6174_v13 = vadd.f32 %v6094_v51, %v11715_v61  ;;  %v4535_v23 = vrot.slane %v11696_v39, 4  ;;  %v6016_v26 = vadd.f32 %v11655_v42, %v11664_v54 }
 0x545   : > { %v3190_v52 = vrot.slane %v11701_v21, 1  ;;  %v3899_v9 = vadd.f32 %v3638_v20, %v3450_v1  ;;  %v3900_v19 = vadd.f32 %v3637_v29, %v3451_v40  ;;  %v4087_v47 = vsel %vm3913_vm2, %v4085_v25, %v4086_v8 }
 0x546   : > { %v6253_v62 = vmul.f32 0.020408163, %v6173_v44  ;;  %v6254_v30 = vmul.f32 0.020408163, %v6174_v13  ;;  %v4984_v18 = vrot.slane %v11696_v39, 5  ;;  %v3639_v10 = vrot.slane %v11701_v21, 2  ;;  %v2465_v13 = vpop.permute.xlu1 %2464 }
 0x547   : > { %v4088_v34 = vrot.slane %v11701_v21, 3  ;;  %v4348_v43 = vadd.f32 %v4087_v47, %v3899_v9  ;;  %v4349_v50 = vadd.f32 %v4086_v8, %v3900_v19  ;;  %v4537_v42 = vrot.slane %v11701_v21, 4 }
 0x548   : > { %6333 = vst [vmem:[%s9523_s26 + $0x200] sm:$0xff] %v6253_v62  ;;  %6334 = vst [vmem:[%s9523_s26 + $0x208] sm:$0x3] %v6254_v30  ;;  %v4536_v0 = vsel %vm4362_vm3, %v4534_v17, %v4535_v23  ;;  %v5433_v59 = vrot.slane %v11696_v39, 6  ;;  %v2876_v22 = vmax.f32 %v2748_v5, 0.0  ;;  %v4986_v31 = vrot.slane %v11701_v21, 5 }
 0x549   : > { %v5435_v25 = vrot.slane %v11701_v21, 6  ;;  %v4797_v46 = vadd.f32 %v4536_v0, %v4348_v43  ;;  %v4798_v15 = vadd.f32 %v4535_v23, %v4349_v50  ;;  %v4985_v60 = vsel %vm4811_vm4, %v4983_v48, %v4984_v18  ;;  %v13043_v5 = vld [vmem:[#allocation38_spill] sm:$0xff] }
 0x54a   : > { %v11742_v12 = vmax.f32 %v2749_v63, 0.0  ;;  %v3191_v49 = vrot.slane %v2876_v22, 1  ;;  %v3640_v35 = vrot.slane %v2876_v22, 2  ;;  %v6095_v38 = vadd.f32 %v6015_v37, %v11713_v7 }
 0x54b   : > { %v5246_v58 = vadd.f32 %v4985_v60, %v4797_v46  ;;  %v5247_v29 = vadd.f32 %v4984_v18, %v4798_v15  ;;  %v5937_v17 = vadd.f32 %v11643_v24, %v11662_v56  ;;  %v5434_v39 = vsel %vm5260_vm5, %v5432_v57, %v5433_v59  ;;  %v13044_v46 = vld [vmem:[#allocation37_spill] sm:$0xff] }
 0x54c   : > { %v3192_v27 = vsel %vm3015_vm0, %v3190_v52, %v3191_v49  ;;  %v3453_v33 = vadd.f32 %v3191_v49, %v2876_v22  ;;  %v4089_v51 = vrot.slane %v2876_v22, 3  ;;  %v6096_v2 = vadd.f32 %v6016_v26, %v11715_v61 }
 0x54d   : > { %v11750_v48 = vadd.f32 %v5434_v39, %v5246_v58  ;;  %v11752_v63 = vadd.f32 %v5433_v59, %v5247_v29  ;;  %v3452_v8 = vadd.f32 %v3192_v27, %v11701_v21  ;;  %v3641_v32 = vsel %vm3464_vm1, %v3639_v10, %v3640_v35 }
 0x54e   : > { %v3902_v40 = vadd.f32 %v3640_v35, %v3453_v33  ;;  %v4538_v37 = vrot.slane %v2876_v22, 4  ;;  %v5938_v24 = vadd.f32 %v11646_v28, %v11664_v54  ;;  %v2751_v44 = vadd.f32 %v2623_v55, %v13043_v5  ;;  %v2473_v35 = vpop.permute.xlu1 %2472 }
 0x54f   : > { %v6175_v57 = vadd.f32 %v6095_v38, %v11750_v48  ;;  %v6176_v1 = vadd.f32 %v6096_v2, %v11752_v63  ;;  %v3901_v36 = vadd.f32 %v3641_v32, %v3452_v8  ;;  %v3193_v20 = vrot.slane %v11742_v12, 1  ;;  %v2477_v32 = vpop.permute.xlu0 %2476 }
 0x550   : > { %v4090_v21 = vsel %vm3913_vm2, %v4088_v34, %v4089_v51  ;;  %v4351_v23 = vadd.f32 %v4089_v51, %v3902_v40  ;;  %v4987_v26 = vrot.slane %v2876_v22, 5  ;;  %v3642_v28 = vrot.slane %v11742_v12, 2 }
 0x551   : > { %v6255_v52 = vmul.f32 0.020408163, %v6175_v57  ;;  %v6256_v9 = vmul.f32 0.020408163, %v6176_v1  ;;  %v4350_v19 = vadd.f32 %v4090_v21, %v3901_v36  ;;  %v4539_v62 = vsel %vm4362_vm3, %v4537_v42, %v4538_v37 }
 0x552   : > { %v4800_v30 = vadd.f32 %v4538_v37, %v4351_v23  ;;  %v5436_v47 = vrot.slane %v2876_v22, 6  ;;  %v2622_v18 = vmul.f32 %v8787_v16, %v2465_v13  ;;  %v4091_v55 = vrot.slane %v11742_v12, 3 }
 0x553   : > { %6335 = vst [vmem:[%s9523_s26 + $0x210] sm:$0xff] %v6255_v52  ;;  %6336 = vst [vmem:[%s9523_s26 + $0x218] sm:$0x3] %v6256_v9  ;;  %v4540_v10 = vrot.slane %v11742_v12, 4  ;;  %v4799_v34 = vadd.f32 %v4539_v62, %v4350_v19  ;;  %v11770_v43 = vmax.f32 %v2751_v44, 0.0  ;;  %v4988_v50 = vsel %vm4811_vm4, %v4986_v31, %v4987_v26  ;;  %v13045_v62 = vld [vmem:[#allocation50_spill] sm:$0xff] }
 0x554   : > { %v5249_v0 = vadd.f32 %v4987_v26, %v4800_v30  ;;  %v6018_v59 = vadd.f32 %v5938_v24, %v11715_v61  ;;  %v2750_v42 = vadd.f32 %v2622_v18, %v13044_v46  ;;  %v4989_v22 = vrot.slane %v11742_v12, 5 }
 0x555   : > { %v5438_v15 = vrot.slane %v11742_v12, 6  ;;  %v5248_v60 = vadd.f32 %v4988_v50, %v4799_v34  ;;  %v6017_v49 = vadd.f32 %v5937_v17, %v11713_v7  ;;  %v5437_v38 = vsel %vm5260_vm5, %v5435_v25, %v5436_v47 }
 0x556   : > { %v11779_v58 = vadd.f32 %v5436_v47, %v5249_v0  ;;  %v6098_v29 = vadd.f32 %v6018_v59, %v11752_v63  ;;  %v2878_v31 = vmax.f32 %v2750_v42, 0.0  ;;  %v3196_v33 = vrot.slane %v11770_v43, 1  ;;  %v13046_v42 = vld [vmem:[#allocation53_spill] sm:$0xff] }
 0x557   : > { %v11782_v39 = vadd.f32 %v5437_v38, %v5248_v60  ;;  %v6097_v27 = vadd.f32 %v6017_v49, %v11750_v48  ;;  %v3645_v51 = vrot.slane %v11770_v43, 2  ;;  %v2624_v25 = vmul.f32 %v8787_v16, %v2473_v35 }
 0x558   : > { %v6178_v2 = vadd.f32 %v6098_v29, %v11779_v58  ;;  %v3194_v8 = vrot.slane %v2878_v31, 1  ;;  %v3643_v17 = vrot.slane %v2878_v31, 2  ;;  %v4094_v37 = vrot.slane %v11770_v43, 3 }
 0x559   : > { %v6177_v40 = vadd.f32 %v6097_v27, %v11782_v39  ;;  %v4543_v24 = vrot.slane %v11770_v43, 4  ;;  %v4992_v57 = vrot.slane %v11770_v43, 5  ;;  %v4092_v44 = vrot.slane %v2878_v31, 3 }
 0x55a   : > { %v6258_v1 = vmul.f32 0.020408163, %v6178_v2  ;;  %v3195_v36 = vsel %vm3015_vm0, %v3193_v20, %v3194_v8  ;;  %v3455_v5 = vadd.f32 %v3194_v8, %v2878_v31  ;;  %v5780_v23 = vadd.f32 %v11605_v53, %v11565_v41 }
 0x55b   : > { %v6257_v13 = vmul.f32 0.020408163, %v6177_v40  ;;  %v3454_v21 = vadd.f32 %v3195_v36, %v11742_v12  ;;  %v2625_v26 = vmul.f32 %v8787_v16, %v2477_v32  ;;  %v3644_v52 = vsel %vm3464_vm1, %v3642_v28, %v3643_v17 }
 0x55c   : > { %6338 = vst [vmem:[%s9523_s26 + $0x228] sm:$0x3] %v6258_v1  ;;  %v3904_v9 = vadd.f32 %v3643_v17, %v3455_v5  ;;  %v4541_v19 = vrot.slane %v2878_v31, 4  ;;  %v2752_v30 = vadd.f32 %v2624_v25, %v13045_v62  ;;  %v4990_v20 = vrot.slane %v2878_v31, 5 }
 0x55d   : > { %6337 = vst [vmem:[%s9523_s26 + $0x220] sm:$0xff] %v6257_v13  ;;  %v3903_v47 = vadd.f32 %v3644_v52, %v3454_v21  ;;  %v5779_v18 = vadd.f32 %v11603_v45, %v11575_v6  ;;  %v5860_v12 = vadd.f32 %v5780_v23, %v11664_v54  ;;  %v4093_v34 = vsel %vm3913_vm2, %v4091_v55, %v4092_v44  ;;  %v2481_v55 = vpop.permute.xlu1 %2480 }
 0x55e   : > { %v4353_v41 = vadd.f32 %v4092_v44, %v3904_v9  ;;  %v5439_v50 = vrot.slane %v2878_v31, 6  ;;  %v5781_v0 = vadd.f32 %v11662_v56, %v11603_v45  ;;  %v2753_v60 = vadd.f32 %v2625_v26, %v13046_v42 }
 0x55f   : > { %v4352_v28 = vadd.f32 %v4093_v34, %v3903_v47  ;;  %v5859_v59 = vadd.f32 %v5779_v18, %v11662_v56  ;;  %v5940_v46 = vadd.f32 %v5860_v12, %v11715_v61  ;;  %v4542_v49 = vsel %vm4362_vm3, %v4540_v10, %v4541_v19  ;;  %v13047_v12 = vld [vmem:[#allocation70_spill] sm:$0xff] }
 0x560   : > { %v4802_v35 = vadd.f32 %v4541_v19, %v4353_v41  ;;  %v2880_v6 = vmax.f32 %v2752_v30, 0.0  ;;  %v5782_v38 = vadd.f32 %v11664_v54, %v11605_v53  ;;  %v4991_v31 = vsel %vm4811_vm4, %v4989_v22, %v4990_v20 }
 0x561   : > { %v4801_v29 = vadd.f32 %v4542_v49, %v4352_v28  ;;  %v5939_v45 = vadd.f32 %v5859_v59, %v11713_v7  ;;  %v6020_v27 = vadd.f32 %v5940_v46, %v11752_v63  ;;  %v5440_v8 = vsel %vm5260_vm5, %v5438_v15, %v5439_v50 }
 0x562   : > { %v5251_v2 = vadd.f32 %v4990_v20, %v4802_v35  ;;  %v3197_v17 = vrot.slane %v2880_v6, 1  ;;  %v3646_v32 = vrot.slane %v2880_v6, 2  ;;  %v2626_v53 = vmul.f32 %v8787_v16, %v2481_v55 }
 0x563   : > { %v5250_v25 = vadd.f32 %v4991_v31, %v4801_v29  ;;  %v6019_v10 = vadd.f32 %v5939_v45, %v11750_v48  ;;  %v6100_v40 = vadd.f32 %v6020_v27, %v11779_v58  ;;  %v4095_v5 = vrot.slane %v2880_v6, 3  ;;  %v2485_v29 = vpop.permute.xlu0 %2484 }
 0x564   : > { %v11821_v1 = vadd.f32 %v5439_v50, %v5251_v2  ;;  %v3198_v22 = vsel %vm3015_vm0, %v3196_v33, %v3197_v17  ;;  %v3457_v36 = vadd.f32 %v3197_v17, %v2880_v6  ;;  %v11827_v15 = vmax.f32 %v2753_v60, 0.0 }
 0x565   : > { %v11824_v44 = vadd.f32 %v5440_v8, %v5250_v25  ;;  %v6099_v13 = vadd.f32 %v6019_v10, %v11782_v39  ;;  %v3456_v21 = vadd.f32 %v3198_v22, %v11770_v43  ;;  %v3647_v26 = vsel %vm3464_vm1, %v3645_v51, %v3646_v32 }
 0x566   : > { %v6180_v23 = vadd.f32 %v6100_v40, %v11821_v1  ;;  %v3906_v52 = vadd.f32 %v3646_v32, %v3457_v36  ;;  %v4544_v9 = vrot.slane %v2880_v6, 4  ;;  %v4993_v62 = vrot.slane %v2880_v6, 5 }
 0x567   : > { %v6179_v33 = vadd.f32 %v6099_v13, %v11824_v44  ;;  %v3905_v19 = vadd.f32 %v3647_v26, %v3456_v21  ;;  %v5862_v30 = vadd.f32 %v5782_v38, %v11715_v61  ;;  %v4096_v20 = vsel %vm3913_vm2, %v4094_v37, %v4095_v5 }
 0x568   : > { %v6260_v47 = vmul.f32 0.020408163, %v6180_v23  ;;  %v4355_v18 = vadd.f32 %v4095_v5, %v3906_v52  ;;  %v2754_v34 = vadd.f32 %v2626_v53, %v13047_v12  ;;  %v5442_v51 = vrot.slane %v2880_v6, 6  ;;  %v2489_v52 = vpop.permute.xlu1 %2488 }
 0x569   : > { %v6259_v41 = vmul.f32 0.020408163, %v6179_v33  ;;  %v4354_v50 = vadd.f32 %v4096_v20, %v3905_v19  ;;  %v5861_v28 = vadd.f32 %v5781_v0, %v11713_v7  ;;  %v4545_v59 = vsel %vm4362_vm3, %v4543_v24, %v4544_v9 }
 0x56a   : > { %6340 = vst [vmem:[%s9523_s26 + $0x238] sm:$0x3] %v6260_v47  ;;  %v4804_v46 = vadd.f32 %v4544_v9, %v4355_v18  ;;  %v5942_v42 = vadd.f32 %v5862_v30, %v11752_v63  ;;  %v11846_v60 = vmax.f32 %v2754_v34, 0.0  ;;  %v5441_v37 = vrot.slane %v11770_v43, 6 }
 0x56b   : > { %6339 = vst [vmem:[%s9523_s26 + $0x230] sm:$0xff] %v6259_v41  ;;  %v3199_v49 = vrot.slane %v11827_v15, 1  ;;  %v4803_v35 = vadd.f32 %v4545_v59, %v4354_v50  ;;  %v5941_v6 = vadd.f32 %v5861_v28, %v11750_v48  ;;  %v3648_v0 = vrot.slane %v11827_v15, 2 }
 0x56c   : > { %v4994_v38 = vsel %vm4811_vm4, %v4992_v57, %v4993_v62  ;;  %v5253_v24 = vadd.f32 %v4993_v62, %v4804_v46  ;;  %v6022_v55 = vadd.f32 %v5942_v42, %v11779_v58  ;;  %v4097_v31 = vrot.slane %v11827_v15, 3 }
 0x56d   : > { %v5252_v45 = vadd.f32 %v4994_v38, %v4803_v35  ;;  %v5443_v27 = vsel %vm5260_vm5, %v5441_v37, %v5442_v51  ;;  %v6021_v2 = vadd.f32 %v5941_v6, %v11782_v39  ;;  %v3200_v32 = vrot.slane %v11846_v60, 1 }
 0x56e   : > { %v11860_v8 = vadd.f32 %v5442_v51, %v5253_v24  ;;  %v6102_v17 = vadd.f32 %v6022_v55, %v11821_v1  ;;  %v3649_v43 = vrot.slane %v11846_v60, 2  ;;  %v4546_v57 = vrot.slane %v11827_v15, 4  ;;  %v2493_v24 = vpop.permute.xlu0 %2492 }
 0x56f   : > { %v11866_v25 = vadd.f32 %v5443_v27, %v5252_v45  ;;  %v6101_v10 = vadd.f32 %v6021_v2, %v11824_v44  ;;  %v2627_v40 = vmul.f32 %v8787_v16, %v2485_v29  ;;  %v3201_v22 = vsel %vm3015_vm0, %v3199_v49, %v3200_v32  ;;  %v6567_v29 = vld [vmem:[%s11991_s2] ss:$0 sm:$0xff] }
 0x570   : > { %v6182_v53 = vadd.f32 %v6102_v17, %v11860_v8  ;;  %v3459_v36 = vadd.f32 %v3200_v32, %v11846_v60  ;;  %v4098_v5 = vrot.slane %v11846_v60, 3  ;;  %v3458_v21 = vadd.f32 %v3201_v22, %v11827_v15  ;;  %v13050_v17 = vld [vmem:[#allocation8_spill] sm:$0xff] }
 0x571   : > { %v6181_v13 = vadd.f32 %v6101_v10, %v11866_v25  ;;  %v5783_v23 = vadd.f32 %v11713_v7, %v11662_v56  ;;  %v5784_v26 = vadd.f32 %v11715_v61, %v11664_v54  ;;  %v3650_v33 = vsel %vm3464_vm1, %v3648_v0, %v3649_v43 }
 0x572   : > { %v6262_v9 = vmul.f32 0.020408163, %v6182_v53  ;;  %v3908_v19 = vadd.f32 %v3649_v43, %v3459_v36  ;;  %v4547_v62 = vrot.slane %v11846_v60, 4  ;;  %v2755_v47 = vadd.f32 %v2627_v40, %v9841_v4 }
 0x573   : > { %v6261_v30 = vmul.f32 0.020408163, %v6181_v13  ;;  %v3907_v20 = vadd.f32 %v3650_v33, %v3458_v21  ;;  %v4996_v18 = vrot.slane %v11846_v60, 5  ;;  %v4099_v56 = vsel %vm3913_vm2, %v4097_v31, %v4098_v5 }
 0x574   : > { %6342 = vst [vmem:[%s9523_s26 + $0x248] sm:$0x3] %v6262_v9  ;;  %v4357_v12 = vadd.f32 %v4098_v5, %v3908_v19  ;;  %v5864_v54 = vadd.f32 %v5784_v26, %v11752_v63  ;;  %v2628_v34 = vmul.f32 %v8787_v16, %v2489_v52  ;;  %v4995_v41 = vrot.slane %v11827_v15, 5 }
 0x575   : > { %6341 = vst [vmem:[%s9523_s26 + $0x240] sm:$0xff] %v6261_v30  ;;  %v4356_v50 = vadd.f32 %v4099_v56, %v3907_v20  ;;  %v5445_v51 = vrot.slane %v11846_v60, 6  ;;  %v5863_v28 = vadd.f32 %v5783_v23, %v11750_v48  ;;  %v4548_v4 = vsel %vm4362_vm3, %v4546_v57, %v4547_v62  ;;  %v2497_v56 = vpop.permute.xlu1 %2496 }
 0x576   : > { %v4806_v59 = vadd.f32 %v4547_v62, %v4357_v12  ;;  %v5944_v46 = vadd.f32 %v5864_v54, %v11779_v58  ;;  %v2756_v42 = vadd.f32 %v2628_v34, %v9845_v3  ;;  %v5444_v37 = vrot.slane %v11827_v15, 6  ;;  %v13048_v3 = vld [vmem:[#allocation7_spill] sm:$0xff]  ;;  %v13049_v15 = vld [vmem:[#allocation117_spill] sm:$0xff] }
 0x577   : > { %v11896_v49 = vmax.f32 %v2755_v47, 0.0  ;;  %v4805_v35 = vadd.f32 %v4548_v4, %v4356_v50  ;;  %v5943_v6 = vadd.f32 %v5863_v28, %v11782_v39  ;;  %v4997_v0 = vsel %vm4811_vm4, %v4995_v41, %v4996_v18 }
 0x578   : > { %v5255_v38 = vadd.f32 %v4996_v18, %v4806_v59  ;;  %v6024_v60 = vadd.f32 %v5944_v46, %v11821_v1  ;;  %v11901_v55 = vmax.f32 %v2756_v42, 0.0  ;;  %v1213_v31 = vadd.f32 %v6567_v29, %v13048_v3 }
 0x579   : > { %v1858_v45 = vmul.f32 %v13017_v11, %v13049_v15  ;;  %v5254_v27 = vadd.f32 %v4997_v0, %v4805_v35  ;;  %v6023_v2 = vadd.f32 %v5943_v6, %v11824_v44  ;;  %v1214_v32 = vadd.f32 %v6567_v29, %v13050_v17 }
 0x57a   : > { %v5446_v43 = vsel %vm5260_vm5, %v5444_v37, %v5445_v51  ;;  %v11912_v57 = vadd.f32 %v5445_v51, %v5255_v38  ;;  %v6104_v10 = vadd.f32 %v6024_v60, %v11860_v8  ;;  %v1985_v40 = vadd.f32 %v11235_v14, %v1213_v31 }
 0x57b   : > { %v11916_v53 = vadd.f32 %v5446_v43, %v5254_v27  ;;  %v6103_v22 = vadd.f32 %v6023_v2, %v11866_v25  ;;  %v2629_v36 = vmul.f32 %v8787_v16, %v2493_v24  ;;  %v3202_v11 = vrot.slane %v11896_v49, 1 }
 0x57c   : > { %v6184_v5 = vadd.f32 %v6104_v10, %v11912_v57  ;;  %v3203_v13 = vrot.slane %v11901_v55, 1  ;;  %v3652_v21 = vrot.slane %v11901_v55, 2  ;;  %v1986_v23 = vadd.f32 %v1858_v45, %v1214_v32 }
 0x57d   : > { %v3651_v26 = vrot.slane %v11896_v49, 2  ;;  %v4100_v14 = vrot.slane %v11896_v49, 3  ;;  %v6183_v52 = vadd.f32 %v6103_v22, %v11916_v53  ;;  %v4101_v62 = vrot.slane %v11901_v55, 3 }
 0x57e   : > { %v6264_v9 = vmul.f32 0.020408163, %v6184_v5  ;;  %v3204_v33 = vsel %vm3015_vm0, %v3202_v11, %v3203_v13  ;;  %v3461_v19 = vadd.f32 %v3203_v13, %v11901_v55  ;;  %v2757_v47 = vadd.f32 %v2629_v36, %v1985_v40 }
 0x57f   : > { %v6263_v30 = vmul.f32 0.020408163, %v6183_v52  ;;  %v3460_v20 = vadd.f32 %v3204_v33, %v11896_v49  ;;  %v5786_v18 = vadd.f32 %v11752_v63, %v11715_v61  ;;  %v4549_v12 = vrot.slane %v11896_v49, 4 }
 0x580   : > { %6344 = vst [vmem:[%s9523_s26 + $0x258] sm:$0x3] %v6264_v9  ;;  %v3653_v54 = vsel %vm3464_vm1, %v3651_v26, %v3652_v21  ;;  %v3910_v34 = vadd.f32 %v3652_v21, %v3461_v19  ;;  %v4550_v41 = vrot.slane %v11901_v55, 4  ;;  %v4998_v50 = vrot.slane %v11896_v49, 5 }
 0x581   : > { %6343 = vst [vmem:[%s9523_s26 + $0x250] sm:$0xff] %v6263_v30  ;;  %v3909_v51 = vadd.f32 %v3653_v54, %v3460_v20  ;;  %v5785_v28 = vadd.f32 %v11750_v48, %v11713_v7  ;;  %v5866_v4 = vadd.f32 %v5786_v18, %v11779_v58  ;;  %v4102_v61 = vsel %vm3913_vm2, %v4100_v14, %v4101_v62 }
 0x582   : > { %v4359_v59 = vadd.f32 %v4101_v62, %v3910_v34  ;;  %v4999_v46 = vrot.slane %v11901_v55, 5  ;;  %v2630_v42 = vmul.f32 %v8787_v16, %v2497_v56  ;;  %v11945_v37 = vmax.f32 %v2757_v47, 0.0 }
 0x583   : > { %v4358_v35 = vadd.f32 %v4102_v61, %v3909_v51  ;;  %v5448_v6 = vrot.slane %v11901_v55, 6  ;;  %v5865_v0 = vadd.f32 %v5785_v28, %v11782_v39  ;;  %v4551_v38 = vsel %vm4362_vm3, %v4549_v12, %v4550_v41 }
 0x584   : > { %v4808_v60 = vadd.f32 %v4550_v41, %v4359_v59  ;;  %v5946_v7 = vadd.f32 %v5866_v4, %v11821_v1  ;;  %v2758_v24 = vadd.f32 %v2630_v42, %v1986_v23  ;;  %v5447_v29 = vrot.slane %v11896_v49, 6 }
 0x585   : > { %v4807_v3 = vadd.f32 %v4551_v38, %v4358_v35  ;;  %v5945_v31 = vadd.f32 %v5865_v0, %v11824_v44  ;;  %v5000_v16 = vsel %vm4811_vm4, %v4998_v50, %v4999_v46  ;;  %v3205_v55 = vrot.slane %v11945_v37, 1 }
 0x586   : > { %v5257_v15 = vadd.f32 %v4999_v46, %v4808_v60  ;;  %v6026_v45 = vadd.f32 %v5946_v7, %v11860_v8  ;;  %v2886_v27 = vmax.f32 %v2758_v24, 0.0  ;;  %v5449_v17 = vsel %vm5260_vm5, %v5447_v29, %v5448_v6 }
 0x587   : > { %v5256_v2 = vadd.f32 %v5000_v16, %v4807_v3  ;;  %v6025_v32 = vadd.f32 %v5945_v31, %v11866_v25  ;;  %v3654_v22 = vrot.slane %v11945_v37, 2  ;;  %v4103_v26 = vrot.slane %v11945_v37, 3 }
 0x588   : > { %v5706_v43 = vadd.f32 %v5448_v6, %v5257_v15  ;;  %v6106_v10 = vadd.f32 %v6026_v45, %v11912_v57  ;;  %v3206_v49 = vrot.slane %v2886_v27, 1  ;;  %v3655_v40 = vrot.slane %v2886_v27, 2 }
 0x589   : > { %v5705_v36 = vadd.f32 %v5449_v17, %v5256_v2  ;;  %v6105_v11 = vadd.f32 %v6025_v32, %v11916_v53  ;;  %v4104_v23 = vrot.slane %v2886_v27, 3  ;;  %v5788_v14 = vadd.f32 %v11779_v58, %v11752_v63 }
 0x58a   : > { %v6186_v5 = vadd.f32 %v6106_v10, %v5706_v43  ;;  %v3207_v13 = vsel %vm3015_vm0, %v3205_v55, %v3206_v49  ;;  %v3463_v21 = vadd.f32 %v3206_v49, %v2886_v27  ;;  %v3656_v19 = vsel %vm3464_vm1, %v3654_v22, %v3655_v40 }
 0x58b   : > { %v6185_v52 = vadd.f32 %v6105_v11, %v5705_v36  ;;  %v3462_v9 = vadd.f32 %v3207_v13, %v11945_v37  ;;  %v4553_v30 = vrot.slane %v2886_v27, 4  ;;  %v4552_v47 = vrot.slane %v11945_v37, 4 }
 0x58c   : > { %v6266_v33 = vmul.f32 0.020408163, %v6186_v5  ;;  %v3912_v62 = vadd.f32 %v3655_v40, %v3463_v21  ;;  %v5787_v20 = vadd.f32 %v11782_v39, %v11750_v48  ;;  %v5868_v12 = vadd.f32 %v5788_v14, %v11821_v1 }
 0x58d   : > { %v6265_v18 = vmul.f32 0.020408163, %v6185_v52  ;;  %v3911_v56 = vadd.f32 %v3656_v19, %v3462_v9  ;;  %v4105_v63 = vsel %vm3913_vm2, %v4103_v26, %v4104_v23  ;;  %v5002_v54 = vrot.slane %v2886_v27, 5 }
 0x58e   : > { %6346 = vst [vmem:[%s9523_s26 + $0x268] sm:$0x3] %v6266_v33  ;;  %v4361_v58 = vadd.f32 %v4104_v23, %v3912_v62  ;;  %v5001_v34 = vrot.slane %v11945_v37, 5  ;;  %v5867_v41 = vadd.f32 %v5787_v20, %v11824_v44  ;;  %v5948_v51 = vadd.f32 %v5868_v12, %v11860_v8 }
 0x58f   : > { %6345 = vst [vmem:[%s9523_s26 + $0x260] sm:$0xff] %v6265_v18  ;;  %v4360_v50 = vadd.f32 %v4105_v63, %v3911_v56  ;;  %v4554_v28 = vsel %vm4362_vm3, %v4552_v47, %v4553_v30  ;;  %v5451_v39 = vrot.slane %v2886_v27, 6  ;;  %v5450_v61 = vrot.slane %v11945_v37, 6 }
 0x590   : > { %v4810_v48 = vadd.f32 %v4553_v30, %v4361_v58  ;;  %v5947_v4 = vadd.f32 %v5867_v41, %v11866_v25  ;;  %v6028_v59 = vadd.f32 %v5948_v51, %v11912_v57  ;;  %v5003_v46 = vsel %vm4811_vm4, %v5001_v34, %v5002_v54 }
 0x591   : > { %v4809_v1 = vadd.f32 %v4554_v28, %v4360_v50  ;;  %v5452_v6 = vsel %vm5260_vm5, %v5450_v61, %v5451_v39 }
 0x592   : > { %v5259_v44 = vadd.f32 %v5002_v54, %v4810_v48  ;;  %v6027_v42 = vadd.f32 %v5947_v4, %v11916_v53  ;;  %v6108_v8 = vadd.f32 %v6028_v59, %v5706_v43 }
 0x593   : > { %v5258_v35 = vadd.f32 %v5003_v46, %v4809_v1 }
 0x594   : > { %v5708_v0 = vadd.f32 %v5451_v39, %v5259_v44  ;;  %v6107_v38 = vadd.f32 %v6027_v42, %v5705_v36 }
 0x595   : > { %v5707_v60 = vadd.f32 %v5452_v6, %v5258_v35 }
 0x596   : > { %v6188_v25 = vadd.f32 %v6108_v8, %v5708_v0 }
 0x597   : > { %v6187_v7 = vadd.f32 %v6107_v38, %v5707_v60 }
 0x598   : > { %v6268_v24 = vmul.f32 0.020408163, %v6188_v25 }
 0x599   : > { %v6267_v29 = vmul.f32 0.020408163, %v6187_v7 }
 0x59a   : > { %6348 = vst [vmem:[%s9523_s26 + $0x278] sm:$0x3] %v6268_v24 }
 0x59b   : > { %6347 = vst [vmem:[%s9523_s26 + $0x270] sm:$0xff] %v6267_v29 }
 0x59c PF: > { %s13_s12 = sadd.s32 1, %s6574_s12  }
 0x59d   : > { %p10_p4 = scmp.ge.s32.totalorder %s13_s12, 4  }
 0x59f   :  { %12 = sbr.rel (!%p10_p4) target bundleno = 1 (0x1), region = 62 }

</bundles_post_ra>
